<compile_context>
chip_gen: v7x
topology: tpu7x:2x2x1
jax: 0.10.0
libtpu: 0.0.40
codegen_flags: <defaults>
</compile_context>

<pallas_src>
import jax
import jax.numpy as jnp
from jax import lax
from jax.experimental import pallas as pl
from jax.experimental.pallas import tpu as pltpu

# ---- small, self-consistent module config --------------------------------
N_EMBED = 128          # C; must equal T (because value() is applied to wei)
BLOCK_SIZE = 128       # causal window; must satisfy T <= block_size
T = 128                # sequence length
NUM_HEADS = 8
HEAD_SIZE = 16         # NUM_HEADS * HEAD_SIZE == N_EMBED (spec head_size = 16)
SCALE = float(N_EMBED) ** -0.5   # wei scaled by C ** -0.5 (C == n_embed)


def _mha_kernel(x_ref, wqk_ref, m_ref, bp_ref, o_ref, q_scr, kT_scr):
    """One grid step processes a tile of TB batch elements end-to-end.

    x_ref   : (TB, T, C)      bf16 activations
    wqk_ref : (C, 2*NH*HS)    bf16 fused, pre-transposed [Wq*scale | Wk]
    m_ref   : (NH, C, C)      bf16 per-head fused value+projection  M_h = WvT_h @ WpT_h
    bp_ref  : (1, C)          f32 projection bias
    o_ref   : (TB, T, C)      f32 output
    q_scr   : (NH, TB, T, HS) bf16 scratch — per-head Q, head-major
    kT_scr  : (NH, TB, HS, T) bf16 scratch — per-head K^T, head-major
    """
    tb = x_ref.shape[0]
    C = N_EMBED
    NH_HS = NUM_HEADS * HEAD_SIZE

    # Fused Q/K projection: one wide MXU matmul, M = TB*T, K = 128, N = 256.
    x2d = x_ref[...].reshape(tb * T, C)                                       # bf16
    qk = jnp.dot(x2d, wqk_ref[...], preferred_element_type=jnp.float32)       # (TB*T, 256) f32

    # Split into Q / K halves (128-lane-aligned slices), transpose K ONCE for
    # all heads so the per-head score matmul needs no in-loop relayout.
    q_all = qk[:, :NH_HS].reshape(tb, T, NH_HS)                               # (TB, T, 128)
    k_all = qk[:, NH_HS:].reshape(tb, T, NH_HS)                               # (TB, T, 128)
    kT = jnp.swapaxes(k_all, 1, 2)                                            # (TB, 128, T)

    # Hoisted staging: the 16-wide head slices happen once, outside the head
    # loop, and land head-major in VMEM scratch (leading-axis indexable).
    for h in range(NUM_HEADS):                    # static: slices + stores only
        q_scr[h] = q_all[:, :, h * HEAD_SIZE:(h + 1) * HEAD_SIZE].astype(jnp.bfloat16)
        kT_scr[h] = kT[:, h * HEAD_SIZE:(h + 1) * HEAD_SIZE, :].astype(jnp.bfloat16)

    # Additive causal mask, built once per grid step (0 visible / -1e30 masked).
    row = lax.broadcasted_iota(jnp.int32, (T, T), 0)
    col = lax.broadcasted_iota(jnp.int32, (T, T), 1)
    mask_add = jnp.where(col <= row, jnp.float32(0.0), jnp.float32(-1e30))    # (T, T)

    # Initialize the output block with the projection bias; heads accumulate in.
    o_ref[...] = jnp.broadcast_to(bp_ref[...].reshape(1, 1, C),
                                  (tb, T, C)).astype(o_ref.dtype)

    # Rolled head loop: bounds per-head live ranges; all per-head operands are
    # dynamic leading-axis ref reads (q_scr[h], kT_scr[h], m_ref[h]).
    @pl.loop(0, NUM_HEADS)
    def _(h):
        q_h = q_scr[h]                       # (TB, T, HS)  bf16 (scale pre-folded)
        k_hT = kT_scr[h]                     # (TB, HS, T)  bf16

        # attention scores, batched over the TB tile (canonical MXU form)
        s = jnp.einsum('bqh,bhk->bqk', q_h, k_hT,
                       preferred_element_type=jnp.float32)                    # (TB, T, T) f32
        s = s + mask_add

        # softmax over last dim, in f32 (EUP exp + approx reciprocal)
        s = s - jnp.max(s, axis=-1, keepdims=True)
        p = jnp.exp(s)
        p = p * pl.reciprocal(jnp.sum(p, axis=-1, keepdims=True), approx=True)
        p_bf = p.astype(jnp.bfloat16)

        # Reassociated head output: wei @ (wei @ WvT_h) @ WpT_h == (wei@wei) @ M_h
        p2 = jnp.einsum('bqk,bkj->bqj', p_bf, p_bf,
                        preferred_element_type=jnp.float32)                   # (TB, T, T) f32
        contrib = jnp.dot(p2.astype(jnp.bfloat16).reshape(tb * T, T), m_ref[h],
                          preferred_element_type=jnp.float32)                 # (TB*T, C) f32
        o_ref[...] += contrib.reshape(tb, T, C).astype(o_ref.dtype)


def multi_head_attention(x, wk, wq, wv, wp, bp, *, tb=8):
    """x: (B, T, C).  wk/wq/wv: (NUM_HEADS, HEAD_SIZE, C) torch.nn.Linear layout.
    wp: (C, C), bp: (C,).  Returns (B, T, C) float32."""
    B, t, c = x.shape
    assert t == T and c == N_EMBED and t <= BLOCK_SIZE
    assert NUM_HEADS * HEAD_SIZE == N_EMBED

    # ---- weight prep (plain JAX, outside the kernel) --------------------
    # fuse + pre-transpose Q/K weights; fold the softmax scale into Q
    wq_t = wq.reshape(NUM_HEADS * HEAD_SIZE, c).T * SCALE          # (C, NH*HS)
    wk_t = wk.reshape(NUM_HEADS * HEAD_SIZE, c).T                  # (C, NH*HS)
    w_qk = jnp.concatenate([wq_t, wk_t], axis=1).astype(jnp.bfloat16)   # (C, 2*NH*HS)

    # reassociated per-head value+projection:  M_h = WvT_h @ (Wp^T)[h*HS:(h+1)*HS, :]
    wv_t = jnp.transpose(wv, (0, 2, 1))                            # (NH, C, HS)
    wp_t = wp.T.reshape(NUM_HEADS, HEAD_SIZE, c)                   # (NH, HS, C)
    m = jnp.einsum('hcs,hsd->hcd', wv_t, wp_t).astype(jnp.bfloat16)  # (NH, C, C)

    bp2 = bp.reshape(1, c).astype(jnp.float32)

    # activations streamed in bf16 (halves x DMA); softmax/accum stay f32 in-kernel
    x_bf = x.astype(jnp.bfloat16)

    # ---- batch tiling (pad B up to a multiple of the batch tile) --------
    tb = max(1, min(tb, B))
    b_pad = pl.cdiv(B, tb) * tb
    if b_pad != B:
        x_bf = jnp.pad(x_bf, ((0, b_pad - B), (0, 0), (0, 0)))
    n_tiles = b_pad // tb

    out = pl.pallas_call(
        _mha_kernel,
        out_shape=jax.ShapeDtypeStruct((b_pad, t, c), jnp.float32),
        grid=(n_tiles,),
        in_specs=[
            pl.BlockSpec((tb, t, c), lambda b: (b, 0, 0)),
            pl.BlockSpec((c, 2 * NUM_HEADS * HEAD_SIZE), lambda b: (0, 0)),
            pl.BlockSpec((NUM_HEADS, c, c), lambda b: (0, 0, 0)),
            pl.BlockSpec((1, c), lambda b: (0, 0)),
        ],
        out_specs=pl.BlockSpec((tb, t, c), lambda b: (b, 0, 0)),
        scratch_shapes=[
            pltpu.VMEM((NUM_HEADS, tb, t, HEAD_SIZE), jnp.bfloat16),   # Q, head-major
            pltpu.VMEM((NUM_HEADS, tb, HEAD_SIZE, t), jnp.bfloat16),   # K^T, head-major
        ],
        compiler_params=pltpu.CompilerParams(
            dimension_semantics=("parallel",),
            vmem_limit_bytes=32 * 1024 * 1024,   # ~10 MiB working set; <64 MiB (v7x), raises v5e default
        ),
    )(x_bf, w_qk, m, bp2)
    return out[:B]


def _reference(x, wk, wq, wv, wp, bp):
    """Plain-JAX replica of the PyTorch forward for verification."""
    mask = jnp.tril(jnp.ones((T, T), dtype=bool))
    outs = []
    for h in range(NUM_HEADS):
        k = x @ wk[h].T
        q = x @ wq[h].T
        wei = q @ jnp.swapaxes(k, -2, -1) * SCALE
        wei = jnp.where(mask, wei, -jnp.inf)
        wei = jax.nn.softmax(wei, axis=-1)
        v = wei @ wv[h].T                       # quirky: value applied to wei
        outs.append(wei @ v)
    cat = jnp.concatenate(outs, axis=-1)
    return cat @ wp.T + bp


if __name__ == "__main__":
    B = 32   # 4 grid steps with tb=8: even and >=4 so both v7x TensorCores stay busy
    key = jax.random.PRNGKey(0)
    kx, kk, kq, kv, kp, kb = jax.random.split(key, 6)

    x = jax.random.normal(kx, (B, T, N_EMBED), dtype=jnp.float32)

    # nn.Linear-style deterministic init: U(-1/sqrt(fan_in), 1/sqrt(fan_in))
    bound = 1.0 / (N_EMBED ** 0.5)
    wk = jax.random.uniform(kk, (NUM_HEADS, HEAD_SIZE, N_EMBED), jnp.float32, -bound, bound)
    wq = jax.random.uniform(kq, (NUM_HEADS, HEAD_SIZE, N_EMBED), jnp.float32, -bound, bound)
    wv = jax.random.uniform(kv, (NUM_HEADS, HEAD_SIZE, N_EMBED), jnp.float32, -bound, bound)
    wp = jax.random.uniform(kp, (N_EMBED, N_EMBED), jnp.float32, -bound, bound)
    bp = jax.random.uniform(kb, (N_EMBED,), jnp.float32, -bound, bound)

    out = multi_head_attention(x, wk, wq, wv, wp, bp, tb=8)
    out = jax.block_until_ready(out)

    with jax.default_matmul_precision('float32'):   # high-precision ground truth
        ref = _reference(x, wk, wq, wv, wp, bp)

    assert out.shape == (B, T, N_EMBED)
    max_err = float(jnp.max(jnp.abs(out - ref)))
    # tolerance accounts for bf16 MXU operands (f32 accumulation) + EUP
    # approximate-reciprocal softmax normalization (per performance feedback)
    assert jnp.allclose(out, ref, atol=3e-3, rtol=3e-3), \
        f"mismatch vs JAX reference (max abs err {max_err})"

    print("KERNEL_OK")
</pallas_src>

<mosaic_0001>
module attributes {stable_mosaic.version = 11 : i64} {
  func.func @_mha_kernel(%arg0: i32, %arg1: memref<8x128x128xbf16, #tpu.memory_space<vmem>>, %arg2: memref<128x256xbf16, #tpu.memory_space<vmem>>, %arg3: memref<8x128x128xbf16, #tpu.memory_space<vmem>>, %arg4: memref<1x128xf32, #tpu.memory_space<vmem>>, %arg5: memref<8x128x128xf32, #tpu.memory_space<vmem>>, %arg6: memref<8x8x128x16xbf16, #tpu.memory_space<vmem>>, %arg7: memref<8x8x16x128xbf16, #tpu.memory_space<vmem>>) attributes {dimension_semantics = [#tpu.dimension_semantics<parallel>], iteration_bounds = array<i64: 4>, scalar_prefetch = 0 : i64, scratch_operands = 2 : i64, tpu.core_type = #tpu.core_type<tc>, window_params = [{transform_indices = @transform_0, window_bounds = array<i64: 8, 128, 128>}, {pipeline_mode = #tpu.pipeline_mode<synchronous>, transform_indices = @transform_1, window_bounds = array<i64: 128, 256>}, {pipeline_mode = #tpu.pipeline_mode<synchronous>, transform_indices = @transform_2, window_bounds = array<i64: 8, 128, 128>}, {pipeline_mode = #tpu.pipeline_mode<synchronous>, transform_indices = @transform_3, window_bounds = array<i64: 1, 128>}, {transform_indices = @transform_4, window_bounds = array<i64: 8, 128, 128>}]} {
    %c0 = arith.constant 0 : index
    %c0_0 = arith.constant 0 : index
    %c0_1 = arith.constant 0 : index
    %0 = vector.load %arg1[%c0, %c0_0, %c0_1] : memref<8x128x128xbf16, #tpu.memory_space<vmem>>, vector<8x128x128xbf16>
    %1 = vector.shape_cast %0 : vector<8x128x128xbf16> to vector<1024x128xbf16>
    %c0_2 = arith.constant 0 : index
    %c0_3 = arith.constant 0 : index
    %2 = vector.load %arg2[%c0_2, %c0_3] : memref<128x256xbf16, #tpu.memory_space<vmem>>, vector<128x256xbf16>
    %cst = arith.constant dense<0.000000e+00> : vector<1024x256xf32>
    %3 = tpu.matmul %1, %2, %cst {dimension_numbers = #tpu.dot_dimension_numbers<[1], [0], [0], [1], [0, 0, 1, 1], [], []>} : vector<1024x128xbf16>, vector<128x256xbf16>, vector<1024x256xf32> -> vector<1024x256xf32>
    %4 = vector.extract_strided_slice %3 {offsets = [0, 0], sizes = [1024, 128], strides = [1, 1]} : vector<1024x256xf32> to vector<1024x128xf32>
    %5 = vector.shape_cast %4 : vector<1024x128xf32> to vector<8x128x128xf32>
    %6 = vector.extract_strided_slice %3 {offsets = [0, 128], sizes = [1024, 128], strides = [1, 1]} : vector<1024x256xf32> to vector<1024x128xf32>
    %7 = vector.shape_cast %6 : vector<1024x128xf32> to vector<8x128x128xf32>
    %8 = tpu.transpose %7, [0, 2, 1] : vector<8x128x128xf32> -> vector<8x128x128xf32>
    %9 = vector.extract_strided_slice %5 {offsets = [0, 0, 0], sizes = [8, 128, 16], strides = [1, 1, 1]} : vector<8x128x128xf32> to vector<8x128x16xf32>
    %10 = arith.truncf %9 : vector<8x128x16xf32> to vector<8x128x16xbf16>
    %c0_4 = arith.constant 0 : index
    %c0_5 = arith.constant 0 : index
    %c0_6 = arith.constant 0 : index
    %c0_7 = arith.constant 0 : index
    %11 = vector.load %arg6[%c0_4, %c0_5, %c0_6, %c0_7] : memref<8x8x128x16xbf16, #tpu.memory_space<vmem>>, vector<1x8x128x16xbf16>
    %12 = vector.shape_cast %11 : vector<1x8x128x16xbf16> to vector<8x128x16xbf16>
    %13 = vector.shape_cast %10 : vector<8x128x16xbf16> to vector<1x8x128x16xbf16>
    tpu.vector_store %arg6[%c0_4, %c0_5, %c0_6, %c0_7], %13 {strides = array<i32>} : memref<8x8x128x16xbf16, #tpu.memory_space<vmem>>, vector<1x8x128x16xbf16>,
    %14 = vector.extract_strided_slice %8 {offsets = [0, 0, 0], sizes = [8, 16, 128], strides = [1, 1, 1]} : vector<8x128x128xf32> to vector<8x16x128xf32>
    %15 = arith.truncf %14 : vector<8x16x128xf32> to vector<8x16x128xbf16>
    %c0_8 = arith.constant 0 : index
    %c0_9 = arith.constant 0 : index
    %c0_10 = arith.constant 0 : index
    %c0_11 = arith.constant 0 : index
    %16 = vector.load %arg7[%c0_8, %c0_9, %c0_10, %c0_11] : memref<8x8x16x128xbf16, #tpu.memory_space<vmem>>, vector<1x8x16x128xbf16>
    %17 = vector.shape_cast %16 : vector<1x8x16x128xbf16> to vector<8x16x128xbf16>
    %18 = vector.shape_cast %15 : vector<8x16x128xbf16> to vector<1x8x16x128xbf16>
    tpu.vector_store %arg7[%c0_8, %c0_9, %c0_10, %c0_11], %18 {strides = array<i32>} : memref<8x8x16x128xbf16, #tpu.memory_space<vmem>>, vector<1x8x16x128xbf16>,
    %19 = vector.extract_strided_slice %5 {offsets = [0, 0, 16], sizes = [8, 128, 16], strides = [1, 1, 1]} : vector<8x128x128xf32> to vector<8x128x16xf32>
    %20 = arith.truncf %19 : vector<8x128x16xf32> to vector<8x128x16xbf16>
    %c1 = arith.constant 1 : index
    %c0_12 = arith.constant 0 : index
    %c0_13 = arith.constant 0 : index
    %c0_14 = arith.constant 0 : index
    %21 = vector.load %arg6[%c1, %c0_12, %c0_13, %c0_14] : memref<8x8x128x16xbf16, #tpu.memory_space<vmem>>, vector<1x8x128x16xbf16>
    %22 = vector.shape_cast %21 : vector<1x8x128x16xbf16> to vector<8x128x16xbf16>
    %23 = vector.shape_cast %20 : vector<8x128x16xbf16> to vector<1x8x128x16xbf16>
    tpu.vector_store %arg6[%c1, %c0_12, %c0_13, %c0_14], %23 {strides = array<i32>} : memref<8x8x128x16xbf16, #tpu.memory_space<vmem>>, vector<1x8x128x16xbf16>,
    %24 = vector.extract_strided_slice %8 {offsets = [0, 16, 0], sizes = [8, 16, 128], strides = [1, 1, 1]} : vector<8x128x128xf32> to vector<8x16x128xf32>
    %25 = arith.truncf %24 : vector<8x16x128xf32> to vector<8x16x128xbf16>
    %c1_15 = arith.constant 1 : index
    %c0_16 = arith.constant 0 : index
    %c0_17 = arith.constant 0 : index
    %c0_18 = arith.constant 0 : index
    %26 = vector.load %arg7[%c1_15, %c0_16, %c0_17, %c0_18] : memref<8x8x16x128xbf16, #tpu.memory_space<vmem>>, vector<1x8x16x128xbf16>
    %27 = vector.shape_cast %26 : vector<1x8x16x128xbf16> to vector<8x16x128xbf16>
    %28 = vector.shape_cast %25 : vector<8x16x128xbf16> to vector<1x8x16x128xbf16>
    tpu.vector_store %arg7[%c1_15, %c0_16, %c0_17, %c0_18], %28 {strides = array<i32>} : memref<8x8x16x128xbf16, #tpu.memory_space<vmem>>, vector<1x8x16x128xbf16>,
    %29 = vector.extract_strided_slice %5 {offsets = [0, 0, 32], sizes = [8, 128, 16], strides = [1, 1, 1]} : vector<8x128x128xf32> to vector<8x128x16xf32>
    %30 = arith.truncf %29 : vector<8x128x16xf32> to vector<8x128x16xbf16>
    %c2 = arith.constant 2 : index
    %c0_19 = arith.constant 0 : index
    %c0_20 = arith.constant 0 : index
    %c0_21 = arith.constant 0 : index
    %31 = vector.load %arg6[%c2, %c0_19, %c0_20, %c0_21] : memref<8x8x128x16xbf16, #tpu.memory_space<vmem>>, vector<1x8x128x16xbf16>
    %32 = vector.shape_cast %31 : vector<1x8x128x16xbf16> to vector<8x128x16xbf16>
    %33 = vector.shape_cast %30 : vector<8x128x16xbf16> to vector<1x8x128x16xbf16>
    tpu.vector_store %arg6[%c2, %c0_19, %c0_20, %c0_21], %33 {strides = array<i32>} : memref<8x8x128x16xbf16, #tpu.memory_space<vmem>>, vector<1x8x128x16xbf16>,
    %34 = vector.extract_strided_slice %8 {offsets = [0, 32, 0], sizes = [8, 16, 128], strides = [1, 1, 1]} : vector<8x128x128xf32> to vector<8x16x128xf32>
    %35 = arith.truncf %34 : vector<8x16x128xf32> to vector<8x16x128xbf16>
    %c2_22 = arith.constant 2 : index
    %c0_23 = arith.constant 0 : index
    %c0_24 = arith.constant 0 : index
    %c0_25 = arith.constant 0 : index
    %36 = vector.load %arg7[%c2_22, %c0_23, %c0_24, %c0_25] : memref<8x8x16x128xbf16, #tpu.memory_space<vmem>>, vector<1x8x16x128xbf16>
    %37 = vector.shape_cast %36 : vector<1x8x16x128xbf16> to vector<8x16x128xbf16>
    %38 = vector.shape_cast %35 : vector<8x16x128xbf16> to vector<1x8x16x128xbf16>
    tpu.vector_store %arg7[%c2_22, %c0_23, %c0_24, %c0_25], %38 {strides = array<i32>} : memref<8x8x16x128xbf16, #tpu.memory_space<vmem>>, vector<1x8x16x128xbf16>,
    %39 = vector.extract_strided_slice %5 {offsets = [0, 0, 48], sizes = [8, 128, 16], strides = [1, 1, 1]} : vector<8x128x128xf32> to vector<8x128x16xf32>
    %40 = arith.truncf %39 : vector<8x128x16xf32> to vector<8x128x16xbf16>
    %c3 = arith.constant 3 : index
    %c0_26 = arith.constant 0 : index
    %c0_27 = arith.constant 0 : index
    %c0_28 = arith.constant 0 : index
    %41 = vector.load %arg6[%c3, %c0_26, %c0_27, %c0_28] : memref<8x8x128x16xbf16, #tpu.memory_space<vmem>>, vector<1x8x128x16xbf16>
    %42 = vector.shape_cast %41 : vector<1x8x128x16xbf16> to vector<8x128x16xbf16>
    %43 = vector.shape_cast %40 : vector<8x128x16xbf16> to vector<1x8x128x16xbf16>
    tpu.vector_store %arg6[%c3, %c0_26, %c0_27, %c0_28], %43 {strides = array<i32>} : memref<8x8x128x16xbf16, #tpu.memory_space<vmem>>, vector<1x8x128x16xbf16>,
    %44 = vector.extract_strided_slice %8 {offsets = [0, 48, 0], sizes = [8, 16, 128], strides = [1, 1, 1]} : vector<8x128x128xf32> to vector<8x16x128xf32>
    %45 = arith.truncf %44 : vector<8x16x128xf32> to vector<8x16x128xbf16>
    %c3_29 = arith.constant 3 : index
    %c0_30 = arith.constant 0 : index
    %c0_31 = arith.constant 0 : index
    %c0_32 = arith.constant 0 : index
    %46 = vector.load %arg7[%c3_29, %c0_30, %c0_31, %c0_32] : memref<8x8x16x128xbf16, #tpu.memory_space<vmem>>, vector<1x8x16x128xbf16>
    %47 = vector.shape_cast %46 : vector<1x8x16x128xbf16> to vector<8x16x128xbf16>
    %48 = vector.shape_cast %45 : vector<8x16x128xbf16> to vector<1x8x16x128xbf16>
    tpu.vector_store %arg7[%c3_29, %c0_30, %c0_31, %c0_32], %48 {strides = array<i32>} : memref<8x8x16x128xbf16, #tpu.memory_space<vmem>>, vector<1x8x16x128xbf16>,
    %49 = vector.extract_strided_slice %5 {offsets = [0, 0, 64], sizes = [8, 128, 16], strides = [1, 1, 1]} : vector<8x128x128xf32> to vector<8x128x16xf32>
    %50 = arith.truncf %49 : vector<8x128x16xf32> to vector<8x128x16xbf16>
    %c4 = arith.constant 4 : index
    %c0_33 = arith.constant 0 : index
    %c0_34 = arith.constant 0 : index
    %c0_35 = arith.constant 0 : index
    %51 = vector.load %arg6[%c4, %c0_33, %c0_34, %c0_35] : memref<8x8x128x16xbf16, #tpu.memory_space<vmem>>, vector<1x8x128x16xbf16>
    %52 = vector.shape_cast %51 : vector<1x8x128x16xbf16> to vector<8x128x16xbf16>
    %53 = vector.shape_cast %50 : vector<8x128x16xbf16> to vector<1x8x128x16xbf16>
    tpu.vector_store %arg6[%c4, %c0_33, %c0_34, %c0_35], %53 {strides = array<i32>} : memref<8x8x128x16xbf16, #tpu.memory_space<vmem>>, vector<1x8x128x16xbf16>,
    %54 = vector.extract_strided_slice %8 {offsets = [0, 64, 0], sizes = [8, 16, 128], strides = [1, 1, 1]} : vector<8x128x128xf32> to vector<8x16x128xf32>
    %55 = arith.truncf %54 : vector<8x16x128xf32> to vector<8x16x128xbf16>
    %c4_36 = arith.constant 4 : index
    %c0_37 = arith.constant 0 : index
    %c0_38 = arith.constant 0 : index
    %c0_39 = arith.constant 0 : index
    %56 = vector.load %arg7[%c4_36, %c0_37, %c0_38, %c0_39] : memref<8x8x16x128xbf16, #tpu.memory_space<vmem>>, vector<1x8x16x128xbf16>
    %57 = vector.shape_cast %56 : vector<1x8x16x128xbf16> to vector<8x16x128xbf16>
    %58 = vector.shape_cast %55 : vector<8x16x128xbf16> to vector<1x8x16x128xbf16>
    tpu.vector_store %arg7[%c4_36, %c0_37, %c0_38, %c0_39], %58 {strides = array<i32>} : memref<8x8x16x128xbf16, #tpu.memory_space<vmem>>, vector<1x8x16x128xbf16>,
    %59 = vector.extract_strided_slice %5 {offsets = [0, 0, 80], sizes = [8, 128, 16], strides = [1, 1, 1]} : vector<8x128x128xf32> to vector<8x128x16xf32>
    %60 = arith.truncf %59 : vector<8x128x16xf32> to vector<8x128x16xbf16>
    %c5 = arith.constant 5 : index
    %c0_40 = arith.constant 0 : index
    %c0_41 = arith.constant 0 : index
    %c0_42 = arith.constant 0 : index
    %61 = vector.load %arg6[%c5, %c0_40, %c0_41, %c0_42] : memref<8x8x128x16xbf16, #tpu.memory_space<vmem>>, vector<1x8x128x16xbf16>
    %62 = vector.shape_cast %61 : vector<1x8x128x16xbf16> to vector<8x128x16xbf16>
    %63 = vector.shape_cast %60 : vector<8x128x16xbf16> to vector<1x8x128x16xbf16>
    tpu.vector_store %arg6[%c5, %c0_40, %c0_41, %c0_42], %63 {strides = array<i32>} : memref<8x8x128x16xbf16, #tpu.memory_space<vmem>>, vector<1x8x128x16xbf16>,
    %64 = vector.extract_strided_slice %8 {offsets = [0, 80, 0], sizes = [8, 16, 128], strides = [1, 1, 1]} : vector<8x128x128xf32> to vector<8x16x128xf32>
    %65 = arith.truncf %64 : vector<8x16x128xf32> to vector<8x16x128xbf16>
    %c5_43 = arith.constant 5 : index
    %c0_44 = arith.constant 0 : index
    %c0_45 = arith.constant 0 : index
    %c0_46 = arith.constant 0 : index
    %66 = vector.load %arg7[%c5_43, %c0_44, %c0_45, %c0_46] : memref<8x8x16x128xbf16, #tpu.memory_space<vmem>>, vector<1x8x16x128xbf16>
    %67 = vector.shape_cast %66 : vector<1x8x16x128xbf16> to vector<8x16x128xbf16>
    %68 = vector.shape_cast %65 : vector<8x16x128xbf16> to vector<1x8x16x128xbf16>
    tpu.vector_store %arg7[%c5_43, %c0_44, %c0_45, %c0_46], %68 {strides = array<i32>} : memref<8x8x16x128xbf16, #tpu.memory_space<vmem>>, vector<1x8x16x128xbf16>,
    %69 = vector.extract_strided_slice %5 {offsets = [0, 0, 96], sizes = [8, 128, 16], strides = [1, 1, 1]} : vector<8x128x128xf32> to vector<8x128x16xf32>
    %70 = arith.truncf %69 : vector<8x128x16xf32> to vector<8x128x16xbf16>
    %c6 = arith.constant 6 : index
    %c0_47 = arith.constant 0 : index
    %c0_48 = arith.constant 0 : index
    %c0_49 = arith.constant 0 : index
    %71 = vector.load %arg6[%c6, %c0_47, %c0_48, %c0_49] : memref<8x8x128x16xbf16, #tpu.memory_space<vmem>>, vector<1x8x128x16xbf16>
    %72 = vector.shape_cast %71 : vector<1x8x128x16xbf16> to vector<8x128x16xbf16>
    %73 = vector.shape_cast %70 : vector<8x128x16xbf16> to vector<1x8x128x16xbf16>
    tpu.vector_store %arg6[%c6, %c0_47, %c0_48, %c0_49], %73 {strides = array<i32>} : memref<8x8x128x16xbf16, #tpu.memory_space<vmem>>, vector<1x8x128x16xbf16>,
    %74 = vector.extract_strided_slice %8 {offsets = [0, 96, 0], sizes = [8, 16, 128], strides = [1, 1, 1]} : vector<8x128x128xf32> to vector<8x16x128xf32>
    %75 = arith.truncf %74 : vector<8x16x128xf32> to vector<8x16x128xbf16>
    %c6_50 = arith.constant 6 : index
    %c0_51 = arith.constant 0 : index
    %c0_52 = arith.constant 0 : index
    %c0_53 = arith.constant 0 : index
    %76 = vector.load %arg7[%c6_50, %c0_51, %c0_52, %c0_53] : memref<8x8x16x128xbf16, #tpu.memory_space<vmem>>, vector<1x8x16x128xbf16>
    %77 = vector.shape_cast %76 : vector<1x8x16x128xbf16> to vector<8x16x128xbf16>
    %78 = vector.shape_cast %75 : vector<8x16x128xbf16> to vector<1x8x16x128xbf16>
    tpu.vector_store %arg7[%c6_50, %c0_51, %c0_52, %c0_53], %78 {strides = array<i32>} : memref<8x8x16x128xbf16, #tpu.memory_space<vmem>>, vector<1x8x16x128xbf16>,
    %79 = vector.extract_strided_slice %5 {offsets = [0, 0, 112], sizes = [8, 128, 16], strides = [1, 1, 1]} : vector<8x128x128xf32> to vector<8x128x16xf32>
    %80 = arith.truncf %79 : vector<8x128x16xf32> to vector<8x128x16xbf16>
    %c7 = arith.constant 7 : index
    %c0_54 = arith.constant 0 : index
    %c0_55 = arith.constant 0 : index
    %c0_56 = arith.constant 0 : index
    %81 = vector.load %arg6[%c7, %c0_54, %c0_55, %c0_56] : memref<8x8x128x16xbf16, #tpu.memory_space<vmem>>, vector<1x8x128x16xbf16>
    %82 = vector.shape_cast %81 : vector<1x8x128x16xbf16> to vector<8x128x16xbf16>
    %83 = vector.shape_cast %80 : vector<8x128x16xbf16> to vector<1x8x128x16xbf16>
    tpu.vector_store %arg6[%c7, %c0_54, %c0_55, %c0_56], %83 {strides = array<i32>} : memref<8x8x128x16xbf16, #tpu.memory_space<vmem>>, vector<1x8x128x16xbf16>,
    %84 = vector.extract_strided_slice %8 {offsets = [0, 112, 0], sizes = [8, 16, 128], strides = [1, 1, 1]} : vector<8x128x128xf32> to vector<8x16x128xf32>
    %85 = arith.truncf %84 : vector<8x16x128xf32> to vector<8x16x128xbf16>
    %c7_57 = arith.constant 7 : index
    %c0_58 = arith.constant 0 : index
    %c0_59 = arith.constant 0 : index
    %c0_60 = arith.constant 0 : index
    %86 = vector.load %arg7[%c7_57, %c0_58, %c0_59, %c0_60] : memref<8x8x16x128xbf16, #tpu.memory_space<vmem>>, vector<1x8x16x128xbf16>
    %87 = vector.shape_cast %86 : vector<1x8x16x128xbf16> to vector<8x16x128xbf16>
    %88 = vector.shape_cast %85 : vector<8x16x128xbf16> to vector<1x8x16x128xbf16>
    tpu.vector_store %arg7[%c7_57, %c0_58, %c0_59, %c0_60], %88 {strides = array<i32>} : memref<8x8x16x128xbf16, #tpu.memory_space<vmem>>, vector<1x8x16x128xbf16>,
    %89 = tpu.iota {dimensions = array<i32: 0>} : vector<128x128xi32>
    %90 = tpu.iota {dimensions = array<i32: 1>} : vector<128x128xi32>
    %91 = arith.cmpi sle, %90, %89 : vector<128x128xi32>
    %cst_61 = arith.constant 0.000000e+00 : f32
    %cst_62 = arith.constant -1.000000e+30 : f32
    %92 = vector.broadcast %cst_61 : f32 to vector<128x128xf32>
    %93 = vector.broadcast %cst_62 : f32 to vector<128x128xf32>
    %94 = arith.select %91, %92, %93 : vector<128x128xi1>, vector<128x128xf32>
    %c0_63 = arith.constant 0 : index
    %c0_64 = arith.constant 0 : index
    %95 = vector.load %arg4[%c0_63, %c0_64] : memref<1x128xf32, #tpu.memory_space<vmem>>, vector<1x128xf32>
    %96 = vector.shape_cast %95 : vector<1x128xf32> to vector<1x1x128xf32>
    %97 = vector.shape_cast %96 : vector<1x1x128xf32> to vector<1x1x128xf32>
    %98 = vector.broadcast %97 : vector<1x1x128xf32> to vector<8x128x128xf32>
    %c0_65 = arith.constant 0 : index
    %c0_66 = arith.constant 0 : index
    %c0_67 = arith.constant 0 : index
    %99 = vector.load %arg5[%c0_65, %c0_66, %c0_67] : memref<8x128x128xf32, #tpu.memory_space<vmem>>, vector<8x128x128xf32>
    tpu.vector_store %arg5[%c0_65, %c0_66, %c0_67], %98 {strides = array<i32>} : memref<8x128x128xf32, #tpu.memory_space<vmem>>, vector<8x128x128xf32>,
    %c0_i32 = arith.constant 0 : i32
    %c8_i32 = arith.constant 8 : i32
    %100 = arith.addi %c0_i32, %c8_i32 : i32
    %c1_i32 = arith.constant 1 : i32
    scf.for %arg8 = %c0_i32 to %100 step %c1_i32  : i32 {
      %c1_i32_69 = arith.constant 1 : i32
      %101 = arith.muli %arg8, %c1_i32_69 : i32
      %c0_i32_70 = arith.constant 0 : i32
      %102 = arith.addi %c0_i32_70, %101 : i32
      %103 = arith.index_cast %102 : i32 to index
      %c0_71 = arith.constant 0 : index
      %c0_72 = arith.constant 0 : index
      %c0_73 = arith.constant 0 : index
      %104 = vector.load %arg6[%103, %c0_71, %c0_72, %c0_73] : memref<8x8x128x16xbf16, #tpu.memory_space<vmem>>, vector<1x8x128x16xbf16>
      %105 = vector.shape_cast %104 : vector<1x8x128x16xbf16> to vector<8x128x16xbf16>
      %106 = arith.index_cast %102 : i32 to index
      %c0_74 = arith.constant 0 : index
      %c0_75 = arith.constant 0 : index
      %c0_76 = arith.constant 0 : index
      %107 = vector.load %arg7[%106, %c0_74, %c0_75, %c0_76] : memref<8x8x16x128xbf16, #tpu.memory_space<vmem>>, vector<1x8x16x128xbf16>
      %108 = vector.shape_cast %107 : vector<1x8x16x128xbf16> to vector<8x16x128xbf16>
      "tpu.trace_start"() <{level = 10 : i32, message = "bqh,bhk->bqk"}> : () -> ()
      %cst_77 = arith.constant dense<0.000000e+00> : vector<8x128x128xf32>
      %109 = tpu.matmul %105, %108, %cst_77 {dimension_numbers = #tpu.dot_dimension_numbers<[2], [1], [1], [2], [0, 0, 0, 1, 1, 2], [0], [0]>} : vector<8x128x16xbf16>, vector<8x16x128xbf16>, vector<8x128x128xf32> -> vector<8x128x128xf32>
      "tpu.trace_stop"() : () -> ()
      %110 = vector.shape_cast %94 : vector<128x128xf32> to vector<1x128x128xf32>
      %111 = vector.broadcast %110 : vector<1x128x128xf32> to vector<8x128x128xf32>
      %112 = arith.addf %109, %111 : vector<8x128x128xf32>
      %cst_78 = arith.constant dense<0xFF800000> : vector<8x128xf32>
      %113 = vector.multi_reduction <maximumf>, %112, %cst_78 [2] : vector<8x128x128xf32> to vector<8x128xf32>
      %114 = vector.shape_cast %113 : vector<8x128xf32> to vector<8x128x1xf32>
      %115 = vector.broadcast %114 : vector<8x128x1xf32> to vector<8x128x128xf32>
      %116 = arith.subf %112, %115 : vector<8x128x128xf32>
      %117 = math.exp %116 : vector<8x128x128xf32>
      %cst_79 = arith.constant dense<0.000000e+00> : vector<8x128xf32>
      %118 = vector.multi_reduction <add>, %117, %cst_79 [2] : vector<8x128x128xf32> to vector<8x128xf32>
      %119 = vector.shape_cast %118 : vector<8x128xf32> to vector<8x128x1xf32>
      %120 = tpu.reciprocal %119 {approx = true} : vector<8x128x1xf32> -> vector<8x128x1xf32>
      %121 = vector.broadcast %120 : vector<8x128x1xf32> to vector<8x128x128xf32>
      %122 = arith.mulf %117, %121 : vector<8x128x128xf32>
      %123 = arith.truncf %122 : vector<8x128x128xf32> to vector<8x128x128xbf16>
      "tpu.trace_start"() <{level = 10 : i32, message = "bqk,bkj->bqj"}> : () -> ()
      %cst_80 = arith.constant dense<0.000000e+00> : vector<8x128x128xf32>
      %124 = tpu.matmul %123, %123, %cst_80 {dimension_numbers = #tpu.dot_dimension_numbers<[2], [1], [1], [2], [0, 0, 0, 1, 1, 2], [0], [0]>} : vector<8x128x128xbf16>, vector<8x128x128xbf16>, vector<8x128x128xf32> -> vector<8x128x128xf32>
      "tpu.trace_stop"() : () -> ()
      %125 = arith.truncf %124 : vector<8x128x128xf32> to vector<8x128x128xbf16>
      %126 = vector.shape_cast %125 : vector<8x128x128xbf16> to vector<1024x128xbf16>
      %127 = arith.index_cast %102 : i32 to index
      %c0_81 = arith.constant 0 : index
      %c0_82 = arith.constant 0 : index
      %128 = vector.load %arg3[%127, %c0_81, %c0_82] : memref<8x128x128xbf16, #tpu.memory_space<vmem>>, vector<1x128x128xbf16>
      %129 = vector.shape_cast %128 : vector<1x128x128xbf16> to vector<128x128xbf16>
      %cst_83 = arith.constant dense<0.000000e+00> : vector<1024x128xf32>
      %130 = tpu.matmul %126, %129, %cst_83 {dimension_numbers = #tpu.dot_dimension_numbers<[1], [0], [0], [1], [0, 0, 1, 1], [], []>} : vector<1024x128xbf16>, vector<128x128xbf16>, vector<1024x128xf32> -> vector<1024x128xf32>
      %c0_84 = arith.constant 0 : index
      %c0_85 = arith.constant 0 : index
      %c0_86 = arith.constant 0 : index
      %131 = vector.load %arg5[%c0_84, %c0_85, %c0_86] : memref<8x128x128xf32, #tpu.memory_space<vmem>>, vector<8x128x128xf32>
      %132 = vector.shape_cast %130 : vector<1024x128xf32> to vector<8x128x128xf32>
      %133 = arith.addf %131, %132 : vector<8x128x128xf32>
      %c0_87 = arith.constant 0 : index
      %c0_88 = arith.constant 0 : index
      %c0_89 = arith.constant 0 : index
      %134 = vector.load %arg5[%c0_87, %c0_88, %c0_89] : memref<8x128x128xf32, #tpu.memory_space<vmem>>, vector<8x128x128xf32>
      tpu.vector_store %arg5[%c0_87, %c0_88, %c0_89], %133 {strides = array<i32>} : memref<8x128x128xf32, #tpu.memory_space<vmem>>, vector<8x128x128xf32>,
    }
    %c8_i32_68 = arith.constant 8 : i32
    return
  }
  func.func @transform_0(%arg0: i32) -> (i32, i32, i32) {
    %c0_i32 = arith.constant 0 : i32
    %c0_i32_0 = arith.constant 0 : i32
    %c0_i32_1 = arith.constant 0 : i32
    return %arg0, %c0_i32, %c0_i32_0 : i32, i32, i32
  }
  func.func @transform_1(%arg0: i32) -> (i32, i32) {
    %c0_i32 = arith.constant 0 : i32
    %c0_i32_0 = arith.constant 0 : i32
    %c0_i32_1 = arith.constant 0 : i32
    return %c0_i32, %c0_i32_0 : i32, i32
  }
  func.func @transform_2(%arg0: i32) -> (i32, i32, i32) {
    %c0_i32 = arith.constant 0 : i32
    %c0_i32_0 = arith.constant 0 : i32
    %c0_i32_1 = arith.constant 0 : i32
    %c0_i32_2 = arith.constant 0 : i32
    return %c0_i32, %c0_i32_0, %c0_i32_1 : i32, i32, i32
  }
  func.func @transform_3(%arg0: i32) -> (i32, i32) {
    %c0_i32 = arith.constant 0 : i32
    %c0_i32_0 = arith.constant 0 : i32
    %c0_i32_1 = arith.constant 0 : i32
    return %c0_i32, %c0_i32_0 : i32, i32
  }
  func.func @transform_4(%arg0: i32) -> (i32, i32, i32) {
    %c0_i32 = arith.constant 0 : i32
    %c0_i32_0 = arith.constant 0 : i32
    %c0_i32_1 = arith.constant 0 : i32
    return %arg0, %c0_i32, %c0_i32_0 : i32, i32, i32
  }
}

</mosaic_0001>

<bundles_post_ra>
// kernel: tpu_custom_call.1
= control target key start
LH: loop header
LB: loop body
LE: loop exit
PB: predicated region body
PF: predicated region fallthrough
CT: control target
= control target key end

     0   :  { %9 = vsyncpa [#allocation5], 0  ;;  %s16224_s0 = inlined_call_operand.hbm [shape: bf16[32,128,128], index: 0, kind: input, shape index: {}]   ;;  %s16225_s1 = inlined_call_operand.hbm [shape: bf16[128,256], index: 1, kind: input, shape index: {}]   ;;  %s16226_s2 = inlined_call_operand.hbm [shape: bf16[8,128,128], index: 2, kind: input, shape index: {}]   ;;  %s16227_s3 = inlined_call_operand.hbm [shape: f32[1,128], index: 3, kind: input, shape index: {}]   ;;  %s16228_s4 = inlined_call_operand.hbm [shape: f32[32,128,128], index: 4, kind: output, shape index: {}]  }
   0x1   :  { %11 = vsyncpa [#allocation5 + $0x1], 0 }
   0x2   :  { %12 = vsyncpa [#allocation8], 0 }
   0x3   :  { %13 = vsyncpa [#allocation11], 0 }
   0x4   :  { %14 = vsyncpa [#allocation6], 0 }
   0x5   :  { %16 = vsyncpa [#allocation6 + $0x1], 0  ;;  %s10779_s15 = smov 0   ;;  %s10781_s16 = smov 0  }
   0x6   :  { %s10783_s17 = smov 0   ;;  %s10785_s18 = smov 0  }
   0x7 LB: > { %s10800_s19 = sadd.s32 4294967295, %s10728_s18   ;;  %s8344_s20 = sadd.s32 4294967294, %s10728_s18   ;;  %s10728_s18 = sphi %s10785_s18, %s17564_s18   ;;  %s10724_s17 = sphi %s10783_s17, %s17563_s17   ;;  %s10720_s16 = sphi %s10781_s16, %s17562_s16   ;;  %s10716_s15 = sphi %s10779_s15, %s17561_s15  }
   0x8   : > { %p42_p0 = scmp.ne.s32.totalorder %s10720_s16, %s10716_s15  ;;  %p16229_p1 = scmp.eq.s32.totalorder %s10800_s19, 0 }
   0x9   : > { %p135_p3 = scmp.eq.s32.totalorder %s8344_s20, 3  ;;  %p8345_p5 = scmp.ge.s32.totalorder %s10728_s18, 1 }
   0xa   : > { %p10809_p4 = por %p16229_p1, %p42_p0  ;;  %p142_p7 = scmp.lt.s32.totalorder %s10728_s18, 5 }
   0xb   : > { %p10814_p6 = por %p135_p3, %p42_p0  ;;  %s10734_s24 = smov [#allocation7]  }
   0xc   : > { %s16665_s21 = scalar_select %p10809_p4, 1, 0 }
   0xd   : > { %s16666_s22 = scalar_select %p10814_p6, 1, 0 }
   0xe   : > { %p10819_p8 = pnand %p8345_p5, %p142_p7  ;;  %s154_s25 = sshll.u32 %s10734_s24, 4  ;;  %s155_s25 = int_to_ptr.vmem [resolvable:$true] %s154_s25 }
   0xf   : > { %s10735_s27 = smov [#allocation9]   ;;  %s10536_s5 = scalar_lea.hbm %s16225_s1, 2048 }
  0x10   : > { %s16667_s23 = scalar_select %p10819_p8, 1, 0 }
  0x11   : > { %p9396_p9 = pneg %p10819_p8  ;;  %s167_s28 = sshll.u32 %s10735_s27, 4  ;;  %s10831_s28 = int_to_ptr.vmem [resolvable:$true] %s167_s28 }
  0x12   : > { %p10537_p11 = scmp.ne.s32.totalorder %s16225_s1, %s10536_s5  ;;  %p10543_p3 = scmp.lt.u32.totalorder %s10536_s5, %s16225_s1 }
  0x13   : > { %p10827_p10 = pnand %p9396_p9, %p16229_p1 }
  0x15   : > { %p10841_p12 = pneg %p10827_p10 }
  0x17   : > { %p10539_p13 = pnand %p10841_p12, %p10537_p11 }
  0x19   : > { %p10540_p0 = pneg %p10539_p13 }
  0x1b   : > { %p10545_p5 = pnand %p10543_p3, %p10540_p0 }
  0x1d   : > { %10548 = shalt.err (!%p10545_p5)
}
  0x1e   : > { %s10549_s11 = scalar_lea.vmem %s155_s25, 2048  ;;  %p10557_p2 = scmp.lt.s32.totalorder %s155_s25, %s155_s25 }
  0x1f   : > { %p10550_p7 = scmp.ne.s32.totalorder %s155_s25, %s10549_s11  ;;  %p10558_p6 = scmp.lt.s32.totalorder %s10549_s11, %s10549_s11 }
  0x21   : > { %p10552_p9 = pnand %p10550_p7, %p10841_p12  ;;  %p10559_p4 = por %p10558_p6, %p10557_p2 }
  0x23   : > { %p10553_p1 = pneg %p10552_p9 }
  0x25   : > { %p10560_p8 = pnand %p10559_p4, %p10553_p1 }
  0x27   : > { %10563 = shalt.err (!%p10560_p8)
}
  0x28   : > { %s10736_s12 = smov 128   ;;  %s10737_s13 = smov 8  }
  0x29   : > { %9399 = dma.hbm_to_vmem [thread:$0]  (!%p10827_p10), %s16225_s1, 2048, %s155_s25, [#allocation8], %s10736_s12, %s10736_s12, %s10737_s13  }
  0x2a   : > { %s10564_s29 = scalar_lea.hbm %s16226_s2, 8192 }
  0x2b   : > { %p10565_p11 = scmp.ne.s32.totalorder %s16226_s2, %s10564_s29  ;;  %p10571_p4 = scmp.lt.u32.totalorder %s10564_s29, %s16226_s2 }
  0x2d   : > { %p10567_p1 = pnand %p10565_p11, %p10841_p12 }
  0x2f   : > { %p10568_p2 = pneg %p10567_p1 }
  0x31   : > { %p10573_p6 = pnand %p10571_p4, %p10568_p2 }
  0x33   : > { %10576 = shalt.err (!%p10573_p6)
}
  0x34   : > { %s10577_s25 = scalar_lea.vmem %s10831_s28, 8192  ;;  %p10585_p3 = scmp.lt.s32.totalorder %s10831_s28, %s10831_s28 }
  0x35   : > { %p10578_p8 = scmp.ne.s32.totalorder %s10831_s28, %s10577_s25  ;;  %p10586_p5 = scmp.lt.s32.totalorder %s10577_s25, %s10577_s25 }
  0x37   : > { %p10580_p13 = pnand %p10578_p8, %p10841_p12  ;;  %p10587_p7 = por %p10586_p5, %p10585_p3 }
  0x39   : > { %p10581_p0 = pneg %p10580_p13 }
  0x3b   : > { %p10588_p9 = pnand %p10587_p7, %p10581_p0 }
  0x3d   : > { %10591 = shalt.err (!%p10588_p9)
}
  0x3e   : > { %s10738_s9 = smov 64   ;;  %s10739_s10 = smov 4  }
  0x3f   : > { %9402 = dma.hbm_to_vmem [thread:$0]  (!%p10827_p10), %s16226_s2, 8192, %s10831_s28, [#allocation8], %s10738_s9, %s10738_s9, %s10739_s10  }
  0x40   : > { %s10740_s13 = smov [#allocation10]   ;;  %s10884_s20 = sadd.s32 1, %s10728_s18  }
  0x41   : > { %s181_s14 = sshll.u32 %s10740_s13, 4  ;;  %s10592_s29 = scalar_lea.hbm %s16227_s3, 16  ;;  %s182_s14 = int_to_ptr.vmem [resolvable:$true] %s181_s14 }
  0x42   : > { %p10593_p11 = scmp.ne.s32.totalorder %s16227_s3, %s10592_s29  ;;  %p10599_p4 = scmp.lt.u32.totalorder %s10592_s29, %s16227_s3 }
  0x44   : > { %p10595_p1 = pnand %p10593_p11, %p10841_p12 }
  0x46   : > { %p10596_p2 = pneg %p10595_p1 }
  0x48   : > { %p10601_p6 = pnand %p10599_p4, %p10596_p2 }
  0x4a   : > { %10604 = shalt.err (!%p10601_p6)
}
  0x4b   : > { %s10605_s28 = scalar_lea.vmem %s182_s14, 16  ;;  %s10612_s25 = scalar_lea.vmem %s182_s14, 32 }
  0x4c   : > { %p10606_p8 = scmp.ne.s32.totalorder %s182_s14, %s10605_s28  ;;  %p10613_p3 = scmp.lt.s32.totalorder %s182_s14, %s182_s14 }
  0x4d   : > { %p10614_p5 = scmp.lt.s32.totalorder %s10612_s25, %s10605_s28 }
  0x4e   : > { %p10608_p13 = pnand %p10606_p8, %p10841_p12 }
  0x4f   : > { %p10615_p7 = por %p10614_p5, %p10613_p3 }
  0x50   : > { %p10609_p0 = pneg %p10608_p13 }
  0x52   : > { %p10616_p9 = pnand %p10615_p7, %p10609_p0 }
  0x54   : > { %10619 = shalt.err (!%p10616_p9)
}
  0x55   : > { %9405 = dma.hbm_to_vmem [thread:$0]  (!%p10827_p10), %s16227_s3, 16, %s182_s14, [#allocation11]  }
  0x56   : > { %s26_s8 = ssub.s32 %s10728_s18, %s10884_s20  ;;  %s29_s13 = sadd.s32 1, %s10724_s17 }
  0x57   : > { %p27_p12 = scmp.eq.s32.totalorder %s26_s8, 0  ;;  %p36_p11 = scmp.ne.s32.totalorder %s10724_s17, %s10720_s16 }
  0x58   : > { %p37_p1 = scmp.eq.s32.totalorder %s10728_s18, 0  ;;  %p9417_p2 = scmp.lt.s32.totalorder %s10728_s18, 4 }
  0x59   : > { %s10912_s26 = scalar_select %p27_p12, %s10724_s17, %s29_s13  }
  0x5a   : > { %p38_p4 = por %p37_p1, %p36_p11  ;;  %p16670_p6 = scmp.eq.s32.totalorder %s10800_s19, 3 }
  0x5b   : > { %s192_s27 = sand.u32 1, %s10724_s17   ;;  %s8526_s29 = sshll.u32 %s10728_s18, 13 }
  0x5c   : > { %p10916_p8 = por %p16670_p6, %p36_p11  ;;  %s8350_s30 = sshll.u32 %s192_s27, 9 }
  0x5d   : > { %s10925_s14 = scalar_lea.hbm %s16224_s0, %s8526_s29  ;;  %s196_s7 = scalar_lea.vmem [#allocation4], %s8350_s30 }
  0x5e   : > { %s204_s28 = sshll.u32 %s196_s7, 4  ;;  %p10927_p10 = pnand %p9417_p2, %p38_p4  ;;  %s10931_s28 = int_to_ptr.vmem [resolvable:$true] %s204_s28 }
  0x5f   : > { %s10933_s11 = scalar_lea.sflag [#allocation5], %s192_s27  ;;  %s10620_s12 = scalar_lea.hbm %s10925_s14, 8192 }
  0x60   : > { %p10621_p13 = scmp.ne.s32.totalorder %s10925_s14, %s10620_s12  ;;  %p10622_p0 = pneg %p10927_p10 }
  0x61   : > { %s10625_s29 = scalar_lea.hbm %s16224_s0, 32768  ;;  %p10626_p7 = scmp.lt.u32.totalorder %s10925_s14, %s16224_s0 }
  0x62   : > { %p10623_p3 = pnand %p10622_p0, %p10621_p13  ;;  %p10627_p9 = scmp.lt.u32.totalorder %s10625_s29, %s10620_s12 }
  0x63   : > { %p10629_p11 = scmp.lt.u32.totalorder %s10620_s12, %s10925_s14 }
  0x64   : > { %p10624_p5 = pneg %p10623_p3  ;;  %p10628_p12 = por %p10627_p9, %p10626_p7 }
  0x66   : > { %p10630_p1 = por %p10629_p11, %p10628_p12 }
  0x68   : > { %p10631_p2 = pnand %p10630_p1, %p10624_p5 }
  0x6a   : > { %10634 = shalt.err (!%p10631_p2)
}
  0x6b   : > { %s10635_s27 = scalar_lea.vmem %s10931_s28, 8192  ;;  %s10741_s6 = smov [#allocation4]  }
  0x6c   : > { %p10636_p4 = scmp.ne.s32.totalorder %s10931_s28, %s10635_s27  ;;  %s10640_s7 = sshll.u32 %s10741_s6, 4  ;;  %s10641_s7 = int_to_ptr.vmem [resolvable:$false] %s10640_s7 }
  0x6d   : > { %s10642_s8 = scalar_lea.vmem %s10641_s7, 16384  ;;  %p10643_p3 = scmp.lt.s32.totalorder %s10931_s28, %s10641_s7 }
  0x6e   : > { %p10638_p6 = pnand %p10636_p4, %p10622_p0  ;;  %p10644_p7 = scmp.lt.s32.totalorder %s10642_s8, %s10635_s27 }
  0x70   : > { %p10639_p13 = pneg %p10638_p6  ;;  %p10645_p9 = por %p10644_p7, %p10643_p3 }
  0x72   : > { %p10646_p12 = pnand %p10645_p9, %p10639_p13 }
  0x74   : > { %10649 = shalt.err (!%p10646_p12)
}
  0x75   : > { %9409 = dma.hbm_to_vmem [thread:$0]  (!%p10927_p10), %s10925_s14, 8192, %s10931_s28, %s10933_s11, %s10738_s9, %s10738_s9, %s10739_s10  }
  0x76   : > { %p16673_p0 = scmp.ne.s32.totalorder %s16667_s23, 0 }
  0x78   : > { %216 = sbr.rel (%p16673_p0) target bundleno = 3028 (0xbd4), region = 36 }
  0x7f   : > { %s10967_s12 = sand.u32 1, %s10720_s16   ;;  %p16674_p5 = scmp.ne.s32.totalorder %s16665_s21, 0 }
  0x80   : > { %s8355_s13 = sshll.u32 %s10967_s12, 9  ;;  %s219_s29 = scalar_lea.sflag [#allocation5], %s10967_s12 }
  0x81   : > { %s10971_s30 = scalar_lea.vmem [#allocation4], %s8355_s13 }
  0x82   : > { %10699 = dma.done.wait (%p16674_p5), %s219_s29, 8192  }
  0x83   : > { %10701 = vsyncadd (%p16674_p5), %s219_s29, 4294959104  ;;  %p16675_p10 = scmp.eq.s32.totalorder %s10800_s19, 0 }
  0x85   : > { %10703 = dma.done.wait (%p16675_p10), [#allocation8], 10240   ;;  %p16676_p11 = pmov %p16675_p10 }
  0x86   : > { %p16677_p1 = pmov %p16675_p10 }
  0x87   : > { %10705 = vsyncadd (%p16676_p11), [#allocation8], 4294957056 }
  0x88   : > { %10707 = dma.done.wait (%p16677_p1), [#allocation11], 16   ;;  %p16678_p2 = pmov %p16677_p1 }
  0x89   : > { %v10742_v0 = vmov 0   ;;  %s8359_s21 = sshll.u32 %s10967_s12, 10  ;;  %v10988_v1 = vld [vmem:[#allocation10] ss:$0 sm:$0xff]  ;;  %v9928_v2 = vld [vmem:[#allocation7 + $0x4] ss:$8 sps:$4 sm:$0xff]  }
  0x8a   : > { %10709 = vsyncadd (%p16678_p2), [#allocation11], 4294967280  ;;  %902 = vmatprep.mubr.bf16.mxu0 %v10742_v0  ;;  %1222 = vmatprep.mubr.bf16.mxu1 %v10742_v0  ;;  %s10990_s23 = scalar_lea.vmem [#allocation12], %s8359_s21  ;;  %v9930_v3 = vld [vmem:[#allocation7] ss:$8 sps:$4 sm:$0xff]   ;;  %v9956_v22 = vld [vmem:[%s10971_s30 + $0x10] sm:$0xff]  }
  0x8b   : > { %3984 = vst [vmem:[%s10990_s23] sm:$0xff] %v10988_v1  ;;  %3985 = vst [vmem:[%s10990_s23 + $0x8] sm:$0xff] %v10988_v1  ;;  %v9931_v4 = vld [vmem:[#allocation7 + $0x14] ss:$8 sps:$4 sm:$0xff]   ;;  %870 = vmatprep.subr.bf16.mxu0 %v9928_v2  ;;  %9348 = vmatprep.subr.bf16.mxu1 %v9928_v2  ;;  %v9933_v5 = vld [vmem:[#allocation7 + $0x10] ss:$8 sps:$4 sm:$0xff]   ;;  %vm1863_vm0 = vcmask 130048  }
  0x8c   : > { %3986 = vst [vmem:[%s10990_s23 + $0x10] sm:$0xff] %v10988_v1  ;;  %3987 = vst [vmem:[%s10990_s23 + $0x18] sm:$0xff] %v10988_v1  ;;  %871 = vmatpush1.bf16.msra.mxu0 %v9930_v3  ;;  %9356 = vmatpush1.bf16.msra.mxu1 %v9930_v3  ;;  %v9934_v6 = vld [vmem:[#allocation7 + $0x24] ss:$8 sps:$4 sm:$0xff]   ;;  %v9936_v7 = vld [vmem:[#allocation7 + $0x20] ss:$8 sps:$4 sm:$0xff]  }
  0x8d   : > { %3988 = vst [vmem:[%s10990_s23 + $0x20] sm:$0xff] %v10988_v1  ;;  %3989 = vst [vmem:[%s10990_s23 + $0x28] sm:$0xff] %v10988_v1  ;;  %872 = vmatprep.subr.bf16.mxu0 %v9931_v4  ;;  %9349 = vmatprep.subr.bf16.mxu1 %v9931_v4  ;;  %v9937_v8 = vld [vmem:[#allocation7 + $0x34] ss:$8 sps:$4 sm:$0xff]   ;;  %v9939_v9 = vld [vmem:[#allocation7 + $0x30] ss:$8 sps:$4 sm:$0xff]  }
  0x8e   : > { %3990 = vst [vmem:[%s10990_s23 + $0x30] sm:$0xff] %v10988_v1  ;;  %3991 = vst [vmem:[%s10990_s23 + $0x38] sm:$0xff] %v10988_v1  ;;  %v9940_v10 = vld [vmem:[#allocation7 + $0x44] ss:$8 sps:$4 sm:$0xff]   ;;  %v9942_v11 = vld [vmem:[#allocation7 + $0x40] ss:$8 sps:$4 sm:$0xff]  }
  0x8f   : > { %3992 = vst [vmem:[%s10990_s23 + $0x40] sm:$0xff] %v10988_v1  ;;  %3993 = vst [vmem:[%s10990_s23 + $0x48] sm:$0xff] %v10988_v1  ;;  %v9943_v12 = vld [vmem:[#allocation7 + $0x54] ss:$8 sps:$4 sm:$0xff]   ;;  %v9945_v13 = vld [vmem:[#allocation7 + $0x50] ss:$8 sps:$4 sm:$0xff]  }
  0x90   : > { %3994 = vst [vmem:[%s10990_s23 + $0x50] sm:$0xff] %v10988_v1  ;;  %3995 = vst [vmem:[%s10990_s23 + $0x58] sm:$0xff] %v10988_v1  ;;  %873 = vmatpush1.bf16.msra.mxu0 %v9933_v5  ;;  %9357 = vmatpush1.bf16.msra.mxu1 %v9933_v5  ;;  %v9946_v14 = vld [vmem:[#allocation7 + $0x64] ss:$8 sps:$4 sm:$0xff]   ;;  %v9948_v15 = vld [vmem:[#allocation7 + $0x60] ss:$8 sps:$4 sm:$0xff]  }
  0x91   : > { %3996 = vst [vmem:[%s10990_s23 + $0x60] sm:$0xff] %v10988_v1  ;;  %3997 = vst [vmem:[%s10990_s23 + $0x68] sm:$0xff] %v10988_v1  ;;  %874 = vmatprep.subr.bf16.mxu0 %v9934_v6  ;;  %9350 = vmatprep.subr.bf16.mxu1 %v9934_v6  ;;  %v9949_v16 = vld [vmem:[#allocation7 + $0x74] ss:$8 sps:$4 sm:$0xff]   ;;  %v9951_v17 = vld [vmem:[#allocation7 + $0x70] ss:$8 sps:$4 sm:$0xff]  }
  0x92   : > { %3998 = vst [vmem:[%s10990_s23 + $0x70] sm:$0xff] %v10988_v1  ;;  %3999 = vst [vmem:[%s10990_s23 + $0x78] sm:$0xff] %v10988_v1  ;;  %v9952_v18 = vld [vmem:[%s10971_s30] sm:$0xff]   ;;  %v9954_v20 = vld [vmem:[%s10971_s30 + $0x8] sm:$0xff]   ;;  %s10743_s9 = smov 112   ;;  %s10744_s10 = smov 96  }
  0x93   : > { %4000 = vst [vmem:[%s10990_s23 + $0x80] sm:$0xff] %v10988_v1  ;;  %4001 = vst [vmem:[%s10990_s23 + $0x88] sm:$0xff] %v10988_v1  ;;  %v9953_v19 = vld [vmem:[%s10971_s30 + $0x100] sm:$0xff]   ;;  %v9955_v21 = vld [vmem:[%s10971_s30 + $0x108] sm:$0xff]   ;;  %s10745_s14 = smov 80   ;;  %s10746_s28 = smov 64  }
  0x94   : > { %4002 = vst [vmem:[%s10990_s23 + $0x90] sm:$0xff] %v10988_v1  ;;  %4003 = vst [vmem:[%s10990_s23 + $0x98] sm:$0xff] %v10988_v1  ;;  %875 = vmatpush1.bf16.msra.mxu0 %v9936_v7  ;;  %9358 = vmatpush1.bf16.msra.mxu1 %v9936_v7  ;;  %v9957_v23 = vld [vmem:[%s10971_s30 + $0x110] sm:$0xff]   ;;  %v9958_v24 = vld [vmem:[%s10971_s30 + $0x18] sm:$0xff]   ;;  %s10747_s25 = smov 48   ;;  %s10748_s11 = smov 32  }
  0x95   : > { %4004 = vst [vmem:[%s10990_s23 + $0xa0] sm:$0xff] %v10988_v1  ;;  %4005 = vst [vmem:[%s10990_s23 + $0xa8] sm:$0xff] %v10988_v1  ;;  %876 = vmatprep.subr.bf16.mxu0 %v9937_v8  ;;  %9351 = vmatprep.subr.bf16.mxu1 %v9937_v8  ;;  %v9959_v25 = vld [vmem:[%s10971_s30 + $0x118] sm:$0xff]   ;;  %v9960_v26 = vld [vmem:[%s10971_s30 + $0x20] sm:$0xff]   ;;  %s10749_s5 = smov 16   ;;  %s13598_s27 = smov 0  }
  0x96   : > { %4006 = vst [vmem:[%s10990_s23 + $0xb0] sm:$0xff] %v10988_v1  ;;  %4007 = vst [vmem:[%s10990_s23 + $0xb8] sm:$0xff] %v10988_v1  ;;  %v9961_v27 = vld [vmem:[%s10971_s30 + $0x120] sm:$0xff]   ;;  %v9962_v28 = vld [vmem:[%s10971_s30 + $0x28] sm:$0xff]  }
  0x97   : > { %4008 = vst [vmem:[%s10990_s23 + $0xc0] sm:$0xff] %v10988_v1  ;;  %4009 = vst [vmem:[%s10990_s23 + $0xc8] sm:$0xff] %v10988_v1  ;;  %v9963_v29 = vld [vmem:[%s10971_s30 + $0x128] sm:$0xff]   ;;  %v9964_v30 = vld [vmem:[%s10971_s30 + $0x30] sm:$0xff]  }
  0x98   : > { %4010 = vst [vmem:[%s10990_s23 + $0xd0] sm:$0xff] %v10988_v1  ;;  %4011 = vst [vmem:[%s10990_s23 + $0xd8] sm:$0xff] %v10988_v1  ;;  %877 = vmatpush1.bf16.msra.mxu0 %v9939_v9  ;;  %9359 = vmatpush1.bf16.msra.mxu1 %v9939_v9  ;;  %v9965_v31 = vld [vmem:[%s10971_s30 + $0x130] sm:$0xff]   ;;  %v9966_v32 = vld [vmem:[%s10971_s30 + $0x38] sm:$0xff]  }
  0x99   : > { %4012 = vst [vmem:[%s10990_s23 + $0xe0] sm:$0xff] %v10988_v1  ;;  %4013 = vst [vmem:[%s10990_s23 + $0xe8] sm:$0xff] %v10988_v1  ;;  %878 = vmatprep.subr.bf16.mxu0 %v9940_v10  ;;  %9352 = vmatprep.subr.bf16.mxu1 %v9940_v10  ;;  %v9967_v33 = vld [vmem:[%s10971_s30 + $0x138] sm:$0xff]   ;;  %v9968_v34 = vld [vmem:[%s10971_s30 + $0x40] sm:$0xff]  }
  0x9a   : > { %4014 = vst [vmem:[%s10990_s23 + $0xf0] sm:$0xff] %v10988_v1  ;;  %4015 = vst [vmem:[%s10990_s23 + $0xf8] sm:$0xff] %v10988_v1  ;;  %v9969_v35 = vld [vmem:[%s10971_s30 + $0x140] sm:$0xff]   ;;  %v9970_v36 = vld [vmem:[%s10971_s30 + $0x48] sm:$0xff]  }
  0x9b   : > { %4016 = vst [vmem:[%s10990_s23 + $0x100] sm:$0xff] %v10988_v1  ;;  %4017 = vst [vmem:[%s10990_s23 + $0x108] sm:$0xff] %v10988_v1  ;;  %v9971_v37 = vld [vmem:[%s10971_s30 + $0x148] sm:$0xff]   ;;  %v9972_v38 = vld [vmem:[%s10971_s30 + $0x50] sm:$0xff]  }
  0x9c   : > { %4018 = vst [vmem:[%s10990_s23 + $0x110] sm:$0xff] %v10988_v1  ;;  %4019 = vst [vmem:[%s10990_s23 + $0x118] sm:$0xff] %v10988_v1  ;;  %879 = vmatpush1.bf16.msra.mxu0 %v9942_v11  ;;  %9360 = vmatpush1.bf16.msra.mxu1 %v9942_v11  ;;  %v9973_v39 = vld [vmem:[%s10971_s30 + $0x150] sm:$0xff]   ;;  %v9974_v40 = vld [vmem:[%s10971_s30 + $0x58] sm:$0xff]  }
  0x9d   : > { %4020 = vst [vmem:[%s10990_s23 + $0x120] sm:$0xff] %v10988_v1  ;;  %4021 = vst [vmem:[%s10990_s23 + $0x128] sm:$0xff] %v10988_v1  ;;  %880 = vmatprep.subr.bf16.mxu0 %v9943_v12  ;;  %9353 = vmatprep.subr.bf16.mxu1 %v9943_v12  ;;  %v9975_v41 = vld [vmem:[%s10971_s30 + $0x158] sm:$0xff]   ;;  %v9976_v42 = vld [vmem:[%s10971_s30 + $0x60] sm:$0xff]  }
  0x9e   : > { %4022 = vst [vmem:[%s10990_s23 + $0x130] sm:$0xff] %v10988_v1  ;;  %4023 = vst [vmem:[%s10990_s23 + $0x138] sm:$0xff] %v10988_v1  ;;  %v9977_v43 = vld [vmem:[%s10971_s30 + $0x160] sm:$0xff]   ;;  %v9978_v44 = vld [vmem:[%s10971_s30 + $0x68] sm:$0xff]  }
  0x9f   : > { %4024 = vst [vmem:[%s10990_s23 + $0x140] sm:$0xff] %v10988_v1  ;;  %4025 = vst [vmem:[%s10990_s23 + $0x148] sm:$0xff] %v10988_v1  ;;  %v9979_v45 = vld [vmem:[%s10971_s30 + $0x168] sm:$0xff]   ;;  %v9980_v46 = vld [vmem:[%s10971_s30 + $0x70] sm:$0xff]  }
  0xa0   : > { %4026 = vst [vmem:[%s10990_s23 + $0x150] sm:$0xff] %v10988_v1  ;;  %4027 = vst [vmem:[%s10990_s23 + $0x158] sm:$0xff] %v10988_v1  ;;  %881 = vmatpush1.bf16.msra.mxu0 %v9945_v13  ;;  %9361 = vmatpush1.bf16.msra.mxu1 %v9945_v13  ;;  %v9981_v47 = vld [vmem:[%s10971_s30 + $0x170] sm:$0xff]   ;;  %v9982_v48 = vld [vmem:[%s10971_s30 + $0x78] sm:$0xff]  }
  0xa1   : > { %4028 = vst [vmem:[%s10990_s23 + $0x160] sm:$0xff] %v10988_v1  ;;  %4029 = vst [vmem:[%s10990_s23 + $0x168] sm:$0xff] %v10988_v1  ;;  %882 = vmatprep.subr.bf16.mxu0 %v9946_v14  ;;  %9354 = vmatprep.subr.bf16.mxu1 %v9946_v14  ;;  %v9983_v49 = vld [vmem:[%s10971_s30 + $0x178] sm:$0xff]   ;;  %v9984_v50 = vld [vmem:[%s10971_s30 + $0x80] sm:$0xff]  }
  0xa2   : > { %4030 = vst [vmem:[%s10990_s23 + $0x170] sm:$0xff] %v10988_v1  ;;  %4031 = vst [vmem:[%s10990_s23 + $0x178] sm:$0xff] %v10988_v1  ;;  %v9985_v51 = vld [vmem:[%s10971_s30 + $0x180] sm:$0xff]   ;;  %v9986_v52 = vld [vmem:[%s10971_s30 + $0x88] sm:$0xff]  }
  0xa3   : > { %4032 = vst [vmem:[%s10990_s23 + $0x180] sm:$0xff] %v10988_v1  ;;  %4033 = vst [vmem:[%s10990_s23 + $0x188] sm:$0xff] %v10988_v1  ;;  %v9987_v53 = vld [vmem:[%s10971_s30 + $0x188] sm:$0xff]   ;;  %v9988_v54 = vld [vmem:[%s10971_s30 + $0x90] sm:$0xff]  }
  0xa4   : > { %4034 = vst [vmem:[%s10990_s23 + $0x190] sm:$0xff] %v10988_v1  ;;  %4035 = vst [vmem:[%s10990_s23 + $0x198] sm:$0xff] %v10988_v1  ;;  %883 = vmatpush1.bf16.msra.mxu0 %v9948_v15  ;;  %9362 = vmatpush1.bf16.msra.mxu1 %v9948_v15  ;;  %v9989_v55 = vld [vmem:[%s10971_s30 + $0x190] sm:$0xff]   ;;  %v9990_v56 = vld [vmem:[%s10971_s30 + $0x98] sm:$0xff]  }
  0xa5   : > { %4036 = vst [vmem:[%s10990_s23 + $0x1a0] sm:$0xff] %v10988_v1  ;;  %4037 = vst [vmem:[%s10990_s23 + $0x1a8] sm:$0xff] %v10988_v1  ;;  %884 = vmatprep.subr.bf16.mxu0 %v9949_v16  ;;  %9355 = vmatprep.subr.bf16.mxu1 %v9949_v16  ;;  %v9991_v57 = vld [vmem:[%s10971_s30 + $0x198] sm:$0xff]   ;;  %v9992_v58 = vld [vmem:[%s10971_s30 + $0xa0] sm:$0xff]  }
  0xa6   : > { %4038 = vst [vmem:[%s10990_s23 + $0x1b0] sm:$0xff] %v10988_v1  ;;  %4039 = vst [vmem:[%s10990_s23 + $0x1b8] sm:$0xff] %v10988_v1  ;;  %v9993_v59 = vld [vmem:[%s10971_s30 + $0x1a0] sm:$0xff]   ;;  %v9994_v60 = vld [vmem:[%s10971_s30 + $0xa8] sm:$0xff]  }
  0xa7   : > { %4040 = vst [vmem:[%s10990_s23 + $0x1c0] sm:$0xff] %v10988_v1  ;;  %4041 = vst [vmem:[%s10990_s23 + $0x1c8] sm:$0xff] %v10988_v1  ;;  %v9995_v61 = vld [vmem:[%s10971_s30 + $0x1a8] sm:$0xff]   ;;  %v9996_v62 = vld [vmem:[%s10971_s30 + $0xb0] sm:$0xff]  }
  0xa8   : > { %4042 = vst [vmem:[%s10990_s23 + $0x1d0] sm:$0xff] %v10988_v1  ;;  %4043 = vst [vmem:[%s10990_s23 + $0x1d8] sm:$0xff] %v10988_v1  ;;  %885 = vmatpush1.bf16.msra.mxu0 %v9951_v17  ;;  %9363 = vmatpush1.bf16.msra.mxu1 %v9951_v17  ;;  %v9997_v63 = vld [vmem:[%s10971_s30 + $0x1b0] sm:$0xff]   ;;  %v9999_v2 = vld [vmem:[%s10971_s30 + $0x1b8] sm:$0xff]  }
  0xa9   : > { %4044 = vst [vmem:[%s10990_s23 + $0x1e0] sm:$0xff] %v10988_v1  ;;  %4045 = vst [vmem:[%s10990_s23 + $0x1e8] sm:$0xff] %v10988_v1  ;;  %v10000_v3 = vld [vmem:[%s10971_s30 + $0xc0] sm:$0xff]   ;;  %v10002_v5 = vld [vmem:[%s10971_s30 + $0xc8] sm:$0xff]  }
  0xaa   : > { %4046 = vst [vmem:[%s10990_s23 + $0x1f0] sm:$0xff] %v10988_v1  ;;  %4047 = vst [vmem:[%s10990_s23 + $0x1f8] sm:$0xff] %v10988_v1  ;;  %v10001_v4 = vld [vmem:[%s10971_s30 + $0x1c0] sm:$0xff]   ;;  %v10003_v6 = vld [vmem:[%s10971_s30 + $0x1c8] sm:$0xff]  }
  0xab   : > { %4048 = vst [vmem:[%s10990_s23 + $0x200] sm:$0xff] %v10988_v1  ;;  %4049 = vst [vmem:[%s10990_s23 + $0x208] sm:$0xff] %v10988_v1  ;;  %903 = vmatmul.mubr.bf16.vlgmr.msra.gmra.mrb[0].mxu0 %v9952_v18  ;;  %1223 = vmatmul.mubr.bf16.vlgmr.msra.gmra.mrb[0].mxu1 %v9953_v19  ;;  %v10004_v7 = vld [vmem:[%s10971_s30 + $0xd0] sm:$0xff]   ;;  %v10006_v15 = vld [vmem:[%s10971_s30 + $0xd8] sm:$0xff]  }
  0xac   : > { %4050 = vst [vmem:[%s10990_s23 + $0x210] sm:$0xff] %v10988_v1  ;;  %4051 = vst [vmem:[%s10990_s23 + $0x218] sm:$0xff] %v10988_v1  ;;  %912 = vmatprep.mubr.bf16.mxu0 %v10742_v0  ;;  %1232 = vmatprep.mubr.bf16.mxu1 %v10742_v0  ;;  %v10005_v8 = vld [vmem:[%s10971_s30 + $0x1d0] sm:$0xff]   ;;  %v10007_v16 = vld [vmem:[%s10971_s30 + $0x1d8] sm:$0xff]  }
  0xad   : > { %4052 = vst [vmem:[%s10990_s23 + $0x220] sm:$0xff] %v10988_v1  ;;  %4053 = vst [vmem:[%s10990_s23 + $0x228] sm:$0xff] %v10988_v1 }
  0xae   : > { %4054 = vst [vmem:[%s10990_s23 + $0x230] sm:$0xff] %v10988_v1  ;;  %4055 = vst [vmem:[%s10990_s23 + $0x238] sm:$0xff] %v10988_v1 }
  0xaf   : > { %4056 = vst [vmem:[%s10990_s23 + $0x240] sm:$0xff] %v10988_v1  ;;  %4057 = vst [vmem:[%s10990_s23 + $0x248] sm:$0xff] %v10988_v1 }
  0xb0   : > { %4058 = vst [vmem:[%s10990_s23 + $0x250] sm:$0xff] %v10988_v1  ;;  %4059 = vst [vmem:[%s10990_s23 + $0x258] sm:$0xff] %v10988_v1 }
  0xb1   : > { %4060 = vst [vmem:[%s10990_s23 + $0x260] sm:$0xff] %v10988_v1  ;;  %4061 = vst [vmem:[%s10990_s23 + $0x268] sm:$0xff] %v10988_v1 }
  0xb2   : > { %4062 = vst [vmem:[%s10990_s23 + $0x270] sm:$0xff] %v10988_v1  ;;  %4063 = vst [vmem:[%s10990_s23 + $0x278] sm:$0xff] %v10988_v1 }
  0xb3   : > { %4064 = vst [vmem:[%s10990_s23 + $0x280] sm:$0xff] %v10988_v1  ;;  %4065 = vst [vmem:[%s10990_s23 + $0x288] sm:$0xff] %v10988_v1  ;;  %913 = vmatmul.mubr.bf16.gmra.mrb[4].mxu0 %v9954_v20  ;;  %1233 = vmatmul.mubr.bf16.gmra.mrb[4].mxu1 %v9955_v21 }
  0xb4   : > { %4066 = vst [vmem:[%s10990_s23 + $0x290] sm:$0xff] %v10988_v1  ;;  %4067 = vst [vmem:[%s10990_s23 + $0x298] sm:$0xff] %v10988_v1  ;;  %922 = vmatprep.mubr.bf16.mxu0 %v10742_v0  ;;  %1242 = vmatprep.mubr.bf16.mxu1 %v10742_v0 }
  0xb5   : > { %4068 = vst [vmem:[%s10990_s23 + $0x2a0] sm:$0xff] %v10988_v1  ;;  %4069 = vst [vmem:[%s10990_s23 + $0x2a8] sm:$0xff] %v10988_v1 }
  0xb6   : > { %4070 = vst [vmem:[%s10990_s23 + $0x2b0] sm:$0xff] %v10988_v1  ;;  %4071 = vst [vmem:[%s10990_s23 + $0x2b8] sm:$0xff] %v10988_v1 }
  0xb7   : > { %4072 = vst [vmem:[%s10990_s23 + $0x2c0] sm:$0xff] %v10988_v1  ;;  %4073 = vst [vmem:[%s10990_s23 + $0x2c8] sm:$0xff] %v10988_v1 }
  0xb8   : > { %4074 = vst [vmem:[%s10990_s23 + $0x2d0] sm:$0xff] %v10988_v1  ;;  %4075 = vst [vmem:[%s10990_s23 + $0x2d8] sm:$0xff] %v10988_v1 }
  0xb9   : > { %4076 = vst [vmem:[%s10990_s23 + $0x2e0] sm:$0xff] %v10988_v1  ;;  %4077 = vst [vmem:[%s10990_s23 + $0x2e8] sm:$0xff] %v10988_v1 }
  0xba   : > { %4078 = vst [vmem:[%s10990_s23 + $0x2f0] sm:$0xff] %v10988_v1  ;;  %4079 = vst [vmem:[%s10990_s23 + $0x2f8] sm:$0xff] %v10988_v1 }
  0xbb   : > { %4080 = vst [vmem:[%s10990_s23 + $0x300] sm:$0xff] %v10988_v1  ;;  %4081 = vst [vmem:[%s10990_s23 + $0x308] sm:$0xff] %v10988_v1  ;;  %923 = vmatmul.mubr.bf16.gmra.mrb[8].mxu0 %v9956_v22  ;;  %1243 = vmatmul.mubr.bf16.gmra.mrb[8].mxu1 %v9957_v23 }
  0xbc   : > { %4082 = vst [vmem:[%s10990_s23 + $0x310] sm:$0xff] %v10988_v1  ;;  %4083 = vst [vmem:[%s10990_s23 + $0x318] sm:$0xff] %v10988_v1  ;;  %932 = vmatprep.mubr.bf16.mxu0 %v10742_v0  ;;  %1252 = vmatprep.mubr.bf16.mxu1 %v10742_v0 }
  0xbd   : > { %4084 = vst [vmem:[%s10990_s23 + $0x320] sm:$0xff] %v10988_v1  ;;  %4085 = vst [vmem:[%s10990_s23 + $0x328] sm:$0xff] %v10988_v1 }
  0xbe   : > { %4086 = vst [vmem:[%s10990_s23 + $0x330] sm:$0xff] %v10988_v1  ;;  %4087 = vst [vmem:[%s10990_s23 + $0x338] sm:$0xff] %v10988_v1 }
  0xbf   : > { %4088 = vst [vmem:[%s10990_s23 + $0x340] sm:$0xff] %v10988_v1  ;;  %4089 = vst [vmem:[%s10990_s23 + $0x348] sm:$0xff] %v10988_v1 }
  0xc0   : > { %4090 = vst [vmem:[%s10990_s23 + $0x350] sm:$0xff] %v10988_v1  ;;  %4091 = vst [vmem:[%s10990_s23 + $0x358] sm:$0xff] %v10988_v1 }
  0xc1   : > { %4092 = vst [vmem:[%s10990_s23 + $0x360] sm:$0xff] %v10988_v1  ;;  %4093 = vst [vmem:[%s10990_s23 + $0x368] sm:$0xff] %v10988_v1 }
  0xc2   : > { %4094 = vst [vmem:[%s10990_s23 + $0x370] sm:$0xff] %v10988_v1  ;;  %4095 = vst [vmem:[%s10990_s23 + $0x378] sm:$0xff] %v10988_v1 }
  0xc3   : > { %4096 = vst [vmem:[%s10990_s23 + $0x380] sm:$0xff] %v10988_v1  ;;  %4097 = vst [vmem:[%s10990_s23 + $0x388] sm:$0xff] %v10988_v1  ;;  %933 = vmatmul.mubr.bf16.gmra.mrb[12].mxu0 %v9958_v24  ;;  %1253 = vmatmul.mubr.bf16.gmra.mrb[12].mxu1 %v9959_v25 }
  0xc4   : > { %4098 = vst [vmem:[%s10990_s23 + $0x390] sm:$0xff] %v10988_v1  ;;  %4099 = vst [vmem:[%s10990_s23 + $0x398] sm:$0xff] %v10988_v1  ;;  %942 = vmatprep.mubr.bf16.mxu0 %v10742_v0  ;;  %1262 = vmatprep.mubr.bf16.mxu1 %v10742_v0 }
  0xc5   : > { %4100 = vst [vmem:[%s10990_s23 + $0x3a0] sm:$0xff] %v10988_v1  ;;  %4101 = vst [vmem:[%s10990_s23 + $0x3a8] sm:$0xff] %v10988_v1 }
  0xc6   : > { %4102 = vst [vmem:[%s10990_s23 + $0x3b0] sm:$0xff] %v10988_v1  ;;  %4103 = vst [vmem:[%s10990_s23 + $0x3b8] sm:$0xff] %v10988_v1 }
  0xc7   : > { %4104 = vst [vmem:[%s10990_s23 + $0x3c0] sm:$0xff] %v10988_v1  ;;  %4105 = vst [vmem:[%s10990_s23 + $0x3c8] sm:$0xff] %v10988_v1 }
  0xc8   : > { %4106 = vst [vmem:[%s10990_s23 + $0x3d0] sm:$0xff] %v10988_v1  ;;  %4107 = vst [vmem:[%s10990_s23 + $0x3d8] sm:$0xff] %v10988_v1 }
  0xc9   : > { %4108 = vst [vmem:[%s10990_s23 + $0x3e0] sm:$0xff] %v10988_v1  ;;  %4109 = vst [vmem:[%s10990_s23 + $0x3e8] sm:$0xff] %v10988_v1 }
  0xca   : > { %4110 = vst [vmem:[%s10990_s23 + $0x3f0] sm:$0xff] %v10988_v1  ;;  %4111 = vst [vmem:[%s10990_s23 + $0x3f8] sm:$0xff] %v10988_v1  ;;  %v9998_v1 = vld [vmem:[%s10971_s30 + $0xb8] sm:$0xff]  }
  0xcb   : > { %943 = vmatmul.mubr.bf16.gmra.mrb[16].mxu0 %v9960_v26  ;;  %1263 = vmatmul.mubr.bf16.gmra.mrb[16].mxu1 %v9961_v27  ;;  %v10008_v27 = vld [vmem:[%s10971_s30 + $0xe0] sm:$0xff]  }
  0xcc   : > { %952 = vmatprep.mubr.bf16.mxu0 %v10742_v0  ;;  %1272 = vmatprep.mubr.bf16.mxu1 %v10742_v0 }
  0xd3   : > { %953 = vmatmul.mubr.bf16.gmra.mrb[20].mxu0 %v9962_v28  ;;  %1273 = vmatmul.mubr.bf16.gmra.mrb[20].mxu1 %v9963_v29  ;;  %v10009_v28 = vld [vmem:[%s10971_s30 + $0x1e0] sm:$0xff]  }
  0xd4   : > { %962 = vmatprep.mubr.bf16.mxu0 %v10742_v0  ;;  %1282 = vmatprep.mubr.bf16.mxu1 %v10742_v0 }
  0xdb   : > { %963 = vmatmul.mubr.bf16.gmra.mrb[24].mxu0 %v9964_v30  ;;  %1283 = vmatmul.mubr.bf16.gmra.mrb[24].mxu1 %v9965_v31 }
  0xdc   : > { %972 = vmatprep.mubr.bf16.mxu0 %v10742_v0  ;;  %1292 = vmatprep.mubr.bf16.mxu1 %v10742_v0 }
  0xe3   : > { %973 = vmatmul.mubr.bf16.gmra.mrb[28].mxu0 %v9966_v32  ;;  %1293 = vmatmul.mubr.bf16.gmra.mrb[28].mxu1 %v9967_v33 }
  0xe4   : > { %982 = vmatprep.mubr.bf16.mxu0 %v10742_v0  ;;  %1302 = vmatprep.mubr.bf16.mxu1 %v10742_v0 }
  0xeb   : > { %983 = vmatmul.mubr.bf16.gmra.mrb[32].mxu0 %v9968_v34  ;;  %1303 = vmatmul.mubr.bf16.gmra.mrb[32].mxu1 %v9969_v35 }
  0xec   : > { %992 = vmatprep.mubr.bf16.mxu0 %v10742_v0  ;;  %1312 = vmatprep.mubr.bf16.mxu1 %v10742_v0 }
  0xf3   : > { %993 = vmatmul.mubr.bf16.gmra.mrb[36].mxu0 %v9970_v36  ;;  %1313 = vmatmul.mubr.bf16.gmra.mrb[36].mxu1 %v9971_v37 }
  0xf4   : > { %1002 = vmatprep.mubr.bf16.mxu0 %v10742_v0  ;;  %1322 = vmatprep.mubr.bf16.mxu1 %v10742_v0 }
  0xfb   : > { %1003 = vmatmul.mubr.bf16.gmra.mrb[40].mxu0 %v9972_v38  ;;  %1323 = vmatmul.mubr.bf16.gmra.mrb[40].mxu1 %v9973_v39  ;;  %v10010_v39 = vld [vmem:[%s10971_s30 + $0xe8] sm:$0xff]  }
  0xfc   : > { %1012 = vmatprep.mubr.bf16.mxu0 %v10742_v0  ;;  %1332 = vmatprep.mubr.bf16.mxu1 %v10742_v0 }
 0x103   : > { %1013 = vmatmul.mubr.bf16.gmra.mrb[44].mxu0 %v9974_v40  ;;  %1333 = vmatmul.mubr.bf16.gmra.mrb[44].mxu1 %v9975_v41  ;;  %v10011_v40 = vld [vmem:[%s10971_s30 + $0x1e8] sm:$0xff]  }
 0x104   : > { %1022 = vmatprep.mubr.bf16.mxu0 %v10742_v0  ;;  %1342 = vmatprep.mubr.bf16.mxu1 %v10742_v0 }
 0x10b   : > { %1023 = vmatmul.mubr.bf16.gmra.mrb[48].mxu0 %v9976_v42  ;;  %1343 = vmatmul.mubr.bf16.gmra.mrb[48].mxu1 %v9977_v43 }
 0x10c   : > { %1032 = vmatprep.mubr.bf16.mxu0 %v10742_v0  ;;  %1352 = vmatprep.mubr.bf16.mxu1 %v10742_v0 }
 0x113   : > { %1033 = vmatmul.mubr.bf16.gmra.mrb[52].mxu0 %v9978_v44  ;;  %1353 = vmatmul.mubr.bf16.gmra.mrb[52].mxu1 %v9979_v45 }
 0x114   : > { %1042 = vmatprep.mubr.bf16.mxu0 %v10742_v0  ;;  %1362 = vmatprep.mubr.bf16.mxu1 %v10742_v0 }
 0x11b   : > { %1043 = vmatmul.mubr.bf16.gmra.mrb[56].mxu0 %v9980_v46  ;;  %1363 = vmatmul.mubr.bf16.gmra.mrb[56].mxu1 %v9981_v47 }
 0x11c   : > { %1052 = vmatprep.mubr.bf16.mxu0 %v10742_v0  ;;  %1372 = vmatprep.mubr.bf16.mxu1 %v10742_v0 }
 0x123   : > { %1053 = vmatmul.mubr.bf16.gmra.mrb[60].mxu0 %v9982_v48  ;;  %1373 = vmatmul.mubr.bf16.gmra.mrb[60].mxu1 %v9983_v49 }
 0x124   : > { %1062 = vmatprep.mubr.bf16.mxu0 %v10742_v0  ;;  %1382 = vmatprep.mubr.bf16.mxu1 %v10742_v0 }
 0x12b   : > { %1063 = vmatmul.mubr.bf16.gmra.mrb[64].mxu0 %v9984_v50  ;;  %1383 = vmatmul.mubr.bf16.gmra.mrb[64].mxu1 %v9985_v51  ;;  %v10012_v51 = vld [vmem:[%s10971_s30 + $0xf0] sm:$0xff]  }
 0x12c   : > { %1072 = vmatprep.mubr.bf16.mxu0 %v10742_v0  ;;  %1392 = vmatprep.mubr.bf16.mxu1 %v10742_v0 }
 0x133   : > { %1073 = vmatmul.mubr.bf16.gmra.mrb[68].mxu0 %v9986_v52  ;;  %1393 = vmatmul.mubr.bf16.gmra.mrb[68].mxu1 %v9987_v53  ;;  %v10013_v52 = vld [vmem:[%s10971_s30 + $0x1f0] sm:$0xff]  }
 0x134   : > { %1082 = vmatprep.mubr.bf16.mxu0 %v10742_v0  ;;  %1402 = vmatprep.mubr.bf16.mxu1 %v10742_v0 }
 0x13b   : > { %1083 = vmatmul.mubr.bf16.gmra.mrb[72].mxu0 %v9988_v54  ;;  %1403 = vmatmul.mubr.bf16.gmra.mrb[72].mxu1 %v9989_v55 }
 0x13c   : > { %1092 = vmatprep.mubr.bf16.mxu0 %v10742_v0  ;;  %1412 = vmatprep.mubr.bf16.mxu1 %v10742_v0 }
 0x143   : > { %1093 = vmatmul.mubr.bf16.gmra.mrb[76].mxu0 %v9990_v56  ;;  %1413 = vmatmul.mubr.bf16.gmra.mrb[76].mxu1 %v9991_v57 }
 0x144   : > { %1102 = vmatprep.mubr.bf16.mxu0 %v10742_v0  ;;  %1422 = vmatprep.mubr.bf16.mxu1 %v10742_v0 }
 0x14b   : > { %1103 = vmatmul.mubr.bf16.gmra.mrb[80].mxu0 %v9992_v58  ;;  %1423 = vmatmul.mubr.bf16.gmra.mrb[80].mxu1 %v9993_v59 }
 0x14c   : > { %1112 = vmatprep.mubr.bf16.mxu0 %v10742_v0  ;;  %1432 = vmatprep.mubr.bf16.mxu1 %v10742_v0 }
 0x153   : > { %1113 = vmatmul.mubr.bf16.gmra.mrb[84].mxu0 %v9994_v60  ;;  %1433 = vmatmul.mubr.bf16.gmra.mrb[84].mxu1 %v9995_v61 }
 0x154   : > { %1122 = vmatprep.mubr.bf16.mxu0 %v10742_v0  ;;  %1442 = vmatprep.mubr.bf16.mxu1 %v10742_v0 }
 0x15b   : > { %1123 = vmatmul.mubr.bf16.gmra.mrb[88].mxu0 %v9996_v62  ;;  %1443 = vmatmul.mubr.bf16.gmra.mrb[88].mxu1 %v9997_v63  ;;  %v10014_v63 = vld [vmem:[%s10971_s30 + $0xf8] sm:$0xff]  }
 0x15c   : > { %1132 = vmatprep.mubr.bf16.mxu0 %v10742_v0  ;;  %1452 = vmatprep.mubr.bf16.mxu1 %v10742_v0 }
 0x163   : > { %1133 = vmatmul.mubr.bf16.gmra.mrb[92].mxu0 %v9998_v1  ;;  %1453 = vmatmul.mubr.bf16.gmra.mrb[92].mxu1 %v9999_v2  ;;  %v10015_v1 = vld [vmem:[%s10971_s30 + $0x1f8] sm:$0xff]  }
 0x164   : > { %1142 = vmatprep.mubr.bf16.mxu0 %v10742_v0  ;;  %1462 = vmatprep.mubr.bf16.mxu1 %v10742_v0 }
 0x16b   : > { %1143 = vmatmul.mubr.bf16.gmra.mrb[96].mxu0 %v10000_v3  ;;  %1463 = vmatmul.mubr.bf16.gmra.mrb[96].mxu1 %v10001_v4 }
 0x16c   : > { %1152 = vmatprep.mubr.bf16.mxu0 %v10742_v0  ;;  %1472 = vmatprep.mubr.bf16.mxu1 %v10742_v0 }
 0x173   : > { %1153 = vmatmul.mubr.bf16.gmra.mrb[100].mxu0 %v10002_v5  ;;  %1473 = vmatmul.mubr.bf16.gmra.mrb[100].mxu1 %v10003_v6 }
 0x174   : > { %1162 = vmatprep.mubr.bf16.mxu0 %v10742_v0  ;;  %1482 = vmatprep.mubr.bf16.mxu1 %v10742_v0 }
 0x17b   : > { %1163 = vmatmul.mubr.bf16.gmra.mrb[104].mxu0 %v10004_v7  ;;  %1483 = vmatmul.mubr.bf16.gmra.mrb[104].mxu1 %v10005_v8 }
 0x17c   : > { %1172 = vmatprep.mubr.bf16.mxu0 %v10742_v0  ;;  %1492 = vmatprep.mubr.bf16.mxu1 %v10742_v0 }
 0x17e   : > { %v1224_v9 = vpop.f32.mrb[0].mxu1  ;;  %v904_v10 = vpop.f32.mrb[0].mxu0 }
 0x17f   : > { %v11356_v11 = vpop.f32.mrb[1].mxu1  ;;  %v11358_v12 = vpop.f32.mrb[1].mxu0 }
 0x180   : > { %16679 = vst [vmem:[#allocation17_spill] sm:$0xff] %v11356_v11  ;;  %v1228_v13 = vpop.f32.mrb[2].mxu1  ;;  %v908_v14 = vpop.f32.mrb[2].mxu0 }
 0x181   : > { %v11362_v17 = vpack.c.bf16 %v1228_v13, %v1224_v9  ;;  %v11364_v18 = vpack.c.bf16 %v908_v14, %v904_v10  ;;  %v11366_v19 = vpop.f32.mrb[3].mxu1  ;;  %v11368_v20 = vpop.f32.mrb[3].mxu0 }
 0x182   : > { %16682 = vst [vmem:[#allocation20_spill] sm:$0xff] %v11366_v19 }
 0x183   : > { %16680 = vst [vmem:[#allocation18_spill] sm:$0xff] %v11362_v17  ;;  %16681 = vst [vmem:[#allocation19_spill] sm:$0xff] %v11364_v18  ;;  %2072 = vrot.lane.b32.xlu1 %v11362_v17, %s10743_s9  ;;  %2008 = vrot.lane.b32.xlu0 %v11364_v18, %s10743_s9 }
 0x184   : > { %1896 = vst.msk [vmem:[#allocation2 + $0x100] sm:$0xff] %vm1863_vm0, %v11362_v17  ;;  %1864 = vst.msk [vmem:[#allocation2] sm:$0xff] %vm1863_vm0, %v11364_v18  ;;  %1173 = vmatmul.mubr.bf16.gmra.mrb[108].mxu0 %v10006_v15  ;;  %1493 = vmatmul.mubr.bf16.gmra.mrb[108].mxu1 %v10007_v16 }
 0x185   : > { %1182 = vmatprep.mubr.bf16.mxu0 %v10742_v0  ;;  %1502 = vmatprep.mubr.bf16.mxu1 %v10742_v0 }
 0x186   : > { %v1234_v21 = vpop.f32.mrb[4].mxu1  ;;  %v914_v22 = vpop.f32.mrb[4].mxu0 }
 0x187   : > { %v11380_v23 = vpop.f32.mrb[5].mxu1  ;;  %2282 = vrot.lane.b32.xlu1 %v11364_v18, %s10744_s10  ;;  %v11384_v24 = vpop.f32.mrb[5].mxu0 }
 0x188   : > { %16683 = vst [vmem:[#allocation21_spill] sm:$0xff] %v11380_v23  ;;  %v1238_v25 = vpop.f32.mrb[6].mxu1  ;;  %v918_v26 = vpop.f32.mrb[6].mxu0 }
 0x189   : > { %v11388_v29 = vpack.c.bf16 %v1238_v25, %v1234_v21  ;;  %v11390_v30 = vpop.f32.mrb[7].mxu1  ;;  %v11392_v31 = vpack.c.bf16 %v918_v26, %v914_v22  ;;  %v11394_v32 = vpop.f32.mrb[7].mxu0 }
 0x18a   : > { %16685 = vst [vmem:[#allocation23_spill] sm:$0xff] %v11390_v30 }
 0x18b   : > { %16684 = vst [vmem:[#allocation22_spill] sm:$0xff] %v11388_v29  ;;  %16686 = vst [vmem:[#allocation24_spill] sm:$0xff] %v11392_v31  ;;  %2346 = vrot.lane.b32.xlu1 %v11362_v17, %s10744_s10  ;;  %2074 = vrot.lane.b32.xlu0 %v11388_v29, %s10743_s9 }
 0x18c   : > { %1897 = vst.msk [vmem:[#allocation2 + $0x108] sm:$0xff] %vm1863_vm0, %v11388_v29  ;;  %1865 = vst.msk [vmem:[#allocation2 + $0x8] sm:$0xff] %vm1863_vm0, %v11392_v31  ;;  %1183 = vmatmul.mubr.bf16.gmra.mrb[112].mxu0 %v10008_v27  ;;  %1503 = vmatmul.mubr.bf16.gmra.mrb[112].mxu1 %v10009_v28 }
 0x18d   : > { %1192 = vmatprep.mubr.bf16.mxu0 %v10742_v0  ;;  %1512 = vmatprep.mubr.bf16.mxu1 %v10742_v0 }
 0x18e   : > { %v1244_v33 = vpop.f32.mrb[8].mxu1  ;;  %v924_v34 = vpop.f32.mrb[8].mxu0 }
 0x18f   : > { %2556 = vrot.lane.b32.xlu1 %v11364_v18, %s10745_s14  ;;  %2284 = vrot.lane.b32.xlu0 %v11392_v31, %s10744_s10  ;;  %v11410_v35 = vpop.f32.mrb[9].mxu0  ;;  %v11412_v36 = vpop.f32.mrb[9].mxu1 }
 0x190   : > { %16687 = vst [vmem:[#allocation25_spill] sm:$0xff] %v11412_v36  ;;  %v928_v37 = vpop.f32.mrb[10].mxu0  ;;  %v1248_v38 = vpop.f32.mrb[10].mxu1 }
 0x191   : > { %v11416_v41 = vpack.c.bf16 %v928_v37, %v924_v34  ;;  %v11418_v42 = vpack.c.bf16 %v1248_v38, %v1244_v33  ;;  %v11420_v43 = vpop.f32.mrb[11].mxu0  ;;  %v11422_v44 = vpop.f32.mrb[11].mxu1 }
 0x192   : > { %16690 = vst [vmem:[#allocation28_spill] sm:$0xff] %v11422_v44 }
 0x193   : > { %16688 = vst [vmem:[#allocation26_spill] sm:$0xff] %v11416_v41  ;;  %16689 = vst [vmem:[#allocation27_spill] sm:$0xff] %v11418_v42  ;;  %2620 = vrot.lane.b32.xlu1 %v11362_v17, %s10745_s14  ;;  %2348 = vrot.lane.b32.xlu0 %v11388_v29, %s10744_s10 }
 0x194   : > { %1866 = vst.msk [vmem:[#allocation2 + $0x10] sm:$0xff] %vm1863_vm0, %v11416_v41  ;;  %1898 = vst.msk [vmem:[#allocation2 + $0x110] sm:$0xff] %vm1863_vm0, %v11418_v42  ;;  %1193 = vmatmul.mubr.bf16.gmra.mrb[116].mxu0 %v10010_v39  ;;  %1513 = vmatmul.mubr.bf16.gmra.mrb[116].mxu1 %v10011_v40 }
 0x195   : > { %1202 = vmatprep.mubr.bf16.mxu0 %v10742_v0  ;;  %1522 = vmatprep.mubr.bf16.mxu1 %v10742_v0 }
 0x196   : > { %v1254_v45 = vpop.f32.mrb[12].mxu1  ;;  %v934_v46 = vpop.f32.mrb[12].mxu0 }
 0x197   : > { %2558 = vrot.lane.b32.xlu0 %v11392_v31, %s10745_s14  ;;  %2010 = vrot.lane.b32.xlu1 %v11392_v31, %s10743_s9  ;;  %v11438_v47 = vpop.f32.mrb[13].mxu1  ;;  %v11440_v48 = vpop.f32.mrb[13].mxu0 }
 0x198   : > { %16691 = vst [vmem:[#allocation29_spill] sm:$0xff] %v11438_v47  ;;  %v1258_v49 = vpop.f32.mrb[14].mxu1  ;;  %v938_v50 = vpop.f32.mrb[14].mxu0 }
 0x199   : > { %v11444_v53 = vpack.c.bf16 %v1258_v49, %v1254_v45  ;;  %v11446_v54 = vpop.f32.mrb[15].mxu1  ;;  %v11448_v55 = vpack.c.bf16 %v938_v50, %v934_v46  ;;  %v11450_v56 = vpop.f32.mrb[15].mxu0 }
 0x19a   : > { %16693 = vst [vmem:[#allocation31_spill] sm:$0xff] %v11446_v54  ;;  %16695 = vst [vmem:[#allocation33_spill] sm:$0xff] %v11450_v56 }
 0x19b   : > { %16692 = vst [vmem:[#allocation30_spill] sm:$0xff] %v11444_v53  ;;  %16694 = vst [vmem:[#allocation32_spill] sm:$0xff] %v11448_v55  ;;  %2622 = vrot.lane.b32.xlu0 %v11388_v29, %s10745_s14  ;;  %2012 = vrot.lane.b32.xlu1 %v11416_v41, %s10743_s9 }
 0x19c   : > { %1899 = vst.msk [vmem:[#allocation2 + $0x118] sm:$0xff] %vm1863_vm0, %v11444_v53  ;;  %1867 = vst.msk [vmem:[#allocation2 + $0x18] sm:$0xff] %vm1863_vm0, %v11448_v55  ;;  %1203 = vmatmul.mubr.bf16.gmra.mrb[120].mxu0 %v10012_v51  ;;  %1523 = vmatmul.mubr.bf16.gmra.mrb[120].mxu1 %v10013_v52 }
 0x19d   : > { %1212 = vmatprep.mubr.bf16.mxu0 %v10742_v0  ;;  %1532 = vmatprep.mubr.bf16.mxu1 %v10742_v0 }
 0x19e   : > { %v944_v57 = vpop.f32.mrb[16].mxu0  ;;  %v1264_v58 = vpop.f32.mrb[16].mxu1 }
 0x19f   : > { %2078 = vrot.lane.b32.xlu0 %v11444_v53, %s10743_s9  ;;  %2076 = vrot.lane.b32.xlu1 %v11418_v42, %s10743_s9  ;;  %v11466_v59 = vpop.f32.mrb[17].mxu0  ;;  %v11468_v60 = vpop.f32.mrb[17].mxu1 }
 0x1a0   : > { %16696 = vst [vmem:[#allocation34_spill] sm:$0xff] %v11466_v59  ;;  %16697 = vst [vmem:[#allocation35_spill] sm:$0xff] %v11468_v60  ;;  %v948_v61 = vpop.f32.mrb[18].mxu0  ;;  %v1268_v62 = vpop.f32.mrb[18].mxu1 }
 0x1a1   : > { %v11472_v2 = vpack.c.bf16 %v948_v61, %v944_v57  ;;  %v11474_v3 = vpop.f32.mrb[19].mxu0  ;;  %v11476_v0 = vpack.c.bf16 %v1268_v62, %v1264_v58  ;;  %v11478_v4 = vpop.f32.mrb[19].mxu1 }
 0x1a2   : > { %16699 = vst [vmem:[#allocation37_spill] sm:$0xff] %v11474_v3  ;;  %16701 = vst [vmem:[#allocation39_spill] sm:$0xff] %v11478_v4 }
 0x1a3   : > { %16698 = vst [vmem:[#allocation36_spill] sm:$0xff] %v11472_v2  ;;  %16700 = vst [vmem:[#allocation38_spill] sm:$0xff] %v11476_v0  ;;  %2286 = vrot.lane.b32.xlu1 %v11416_v41, %s10744_s10  ;;  %2288 = vrot.lane.b32.xlu0 %v11448_v55, %s10744_s10 }
 0x1a4   : > { %1868 = vst.msk [vmem:[#allocation2 + $0x20] sm:$0xff] %vm1863_vm0, %v11472_v2  ;;  %1900 = vst.msk [vmem:[#allocation2 + $0x120] sm:$0xff] %vm1863_vm0, %v11476_v0  ;;  %1213 = vmatmul.mubr.bf16.gmra.mrb[124].mxu0 %v10014_v63  ;;  %1533 = vmatmul.mubr.bf16.gmra.mrb[124].mxu1 %v10015_v1 }
 0x1a6   : > { %v954_v5 = vpop.f32.mrb[20].mxu0  ;;  %v1274_v6 = vpop.f32.mrb[20].mxu1 }
 0x1a7   : > { %2350 = vrot.lane.b32.xlu1 %v11418_v42, %s10744_s10  ;;  %2352 = vrot.lane.b32.xlu0 %v11444_v53, %s10744_s10  ;;  %v11492_v7 = vpop.f32.mrb[21].mxu0  ;;  %v11494_v8 = vpop.f32.mrb[21].mxu1 }
 0x1a8   : > { %16702 = vst [vmem:[#allocation40_spill] sm:$0xff] %v11492_v7  ;;  %16703 = vst [vmem:[#allocation41_spill] sm:$0xff] %v11494_v8  ;;  %v958_v9 = vpop.f32.mrb[22].mxu0  ;;  %v1278_v10 = vpop.f32.mrb[22].mxu1 }
 0x1a9   : > { %v11496_v13 = vpack.c.bf16 %v958_v9, %v954_v5  ;;  %v11498_v14 = vpop.f32.mrb[23].mxu0  ;;  %v11500_v15 = vpack.c.bf16 %v1278_v10, %v1274_v6  ;;  %v11502_v16 = vpop.f32.mrb[23].mxu1 }
 0x1aa   : > { %16705 = vst [vmem:[#allocation43_spill] sm:$0xff] %v11498_v14  ;;  %16707 = vst [vmem:[#allocation45_spill] sm:$0xff] %v11502_v16 }
 0x1ab   : > { %16704 = vst [vmem:[#allocation42_spill] sm:$0xff] %v11496_v13  ;;  %16706 = vst [vmem:[#allocation44_spill] sm:$0xff] %v11500_v15  ;;  %2560 = vrot.lane.b32.xlu1 %v11416_v41, %s10745_s14  ;;  %2562 = vrot.lane.b32.xlu0 %v11448_v55, %s10745_s14 }
 0x1ac   : > { %1869 = vst.msk [vmem:[#allocation2 + $0x28] sm:$0xff] %vm1863_vm0, %v11496_v13  ;;  %1901 = vst.msk [vmem:[#allocation2 + $0x128] sm:$0xff] %vm1863_vm0, %v11500_v15 }
 0x1ae   : > { %v964_v21 = vpop.f32.mrb[24].mxu0  ;;  %v1284_v22 = vpop.f32.mrb[24].mxu1 }
 0x1af   : > { %2624 = vrot.lane.b32.xlu1 %v11418_v42, %s10745_s14  ;;  %2626 = vrot.lane.b32.xlu0 %v11444_v53, %s10745_s14  ;;  %v11516_v25 = vpop.f32.mrb[25].mxu1  ;;  %v11518_v26 = vpop.f32.mrb[25].mxu0 }
 0x1b0   : > { %16708 = vst [vmem:[#allocation46_spill] sm:$0xff] %v11516_v25  ;;  %16709 = vst [vmem:[#allocation47_spill] sm:$0xff] %v11518_v26  ;;  %v968_v27 = vpop.f32.mrb[26].mxu0  ;;  %v1288_v28 = vpop.f32.mrb[26].mxu1 }
 0x1b1   : > { %v11520_v33 = vpack.c.bf16 %v968_v27, %v964_v21  ;;  %v11522_v34 = vpack.c.bf16 %v1288_v28, %v1284_v22  ;;  %v11524_v37 = vpop.f32.mrb[27].mxu0  ;;  %v11526_v38 = vpop.f32.mrb[27].mxu1 }
 0x1b2   : > { %16712 = vst [vmem:[#allocation50_spill] sm:$0xff] %v11524_v37  ;;  %16713 = vst [vmem:[#allocation51_spill] sm:$0xff] %v11526_v38 }
 0x1b3   : > { %16710 = vst [vmem:[#allocation48_spill] sm:$0xff] %v11520_v33  ;;  %16711 = vst [vmem:[#allocation49_spill] sm:$0xff] %v11522_v34  ;;  %2014 = vrot.lane.b32.xlu1 %v11448_v55, %s10743_s9  ;;  %2018 = vrot.lane.b32.xlu0 %v11496_v13, %s10743_s9 }
 0x1b4   : > { %1870 = vst.msk [vmem:[#allocation2 + $0x30] sm:$0xff] %vm1863_vm0, %v11520_v33  ;;  %1902 = vst.msk [vmem:[#allocation2 + $0x130] sm:$0xff] %vm1863_vm0, %v11522_v34 }
 0x1b6   : > { %v974_v39 = vpop.f32.mrb[28].mxu0  ;;  %v1294_v40 = vpop.f32.mrb[28].mxu1 }
 0x1b7   : > { %2016 = vrot.lane.b32.xlu1 %v11472_v2, %s10743_s9  ;;  %2082 = vrot.lane.b32.xlu0 %v11500_v15, %s10743_s9  ;;  %v11540_v45 = vpop.f32.mrb[29].mxu1  ;;  %v11542_v46 = vpop.f32.mrb[29].mxu0 }
 0x1b8   : > { %16714 = vst [vmem:[#allocation52_spill] sm:$0xff] %v11540_v45  ;;  %16715 = vst [vmem:[#allocation53_spill] sm:$0xff] %v11542_v46  ;;  %v978_v49 = vpop.f32.mrb[30].mxu0  ;;  %v1298_v50 = vpop.f32.mrb[30].mxu1 }
 0x1b9   : > { %v11544_v51 = vpack.c.bf16 %v978_v49, %v974_v39  ;;  %v11546_v52 = vpack.c.bf16 %v1298_v50, %v1294_v40  ;;  %v11548_v57 = vpop.f32.mrb[31].mxu0  ;;  %v11550_v58 = vpop.f32.mrb[31].mxu1 }
 0x1ba   : > { %16718 = vst [vmem:[#allocation56_spill] sm:$0xff] %v11548_v57  ;;  %16719 = vst [vmem:[#allocation57_spill] sm:$0xff] %v11550_v58 }
 0x1bb   : > { %16716 = vst [vmem:[#allocation54_spill] sm:$0xff] %v11544_v51  ;;  %16717 = vst [vmem:[#allocation55_spill] sm:$0xff] %v11546_v52  ;;  %2080 = vrot.lane.b32.xlu1 %v11476_v0, %s10743_s9  ;;  %2292 = vrot.lane.b32.xlu0 %v11496_v13, %s10744_s10 }
 0x1bc   : > { %1871 = vst.msk [vmem:[#allocation2 + $0x38] sm:$0xff] %vm1863_vm0, %v11544_v51  ;;  %1903 = vst.msk [vmem:[#allocation2 + $0x138] sm:$0xff] %vm1863_vm0, %v11546_v52 }
 0x1be   : > { %v984_v61 = vpop.f32.mrb[32].mxu0  ;;  %v1304_v62 = vpop.f32.mrb[32].mxu1 }
 0x1bf   : > { %v11560_v63 = vpop.f32.mrb[33].mxu1  ;;  %2290 = vrot.lane.b32.xlu1 %v11472_v2, %s10744_s10  ;;  %2356 = vrot.lane.b32.xlu0 %v11500_v15, %s10744_s10  ;;  %v11566_v1 = vpop.f32.mrb[33].mxu0 }
 0x1c0   : > { %16720 = vst [vmem:[#allocation58_spill] sm:$0xff] %v11560_v63  ;;  %v988_v9 = vpop.f32.mrb[34].mxu0  ;;  %v1308_v10 = vpop.f32.mrb[34].mxu1 }
 0x1c1   : > { %v11572_v21 = vpack.c.bf16 %v988_v9, %v984_v61  ;;  %v11574_v22 = vpack.c.bf16 %v1308_v10, %v1304_v62  ;;  %v11576_v27 = vpop.f32.mrb[35].mxu0  ;;  %v11578_v28 = vpop.f32.mrb[35].mxu1 }
 0x1c2   : > { %16723 = vst [vmem:[#allocation61_spill] sm:$0xff] %v11578_v28 }
 0x1c3   : > { %16721 = vst [vmem:[#allocation59_spill] sm:$0xff] %v11572_v21  ;;  %16722 = vst [vmem:[#allocation60_spill] sm:$0xff] %v11574_v22  ;;  %2354 = vrot.lane.b32.xlu1 %v11476_v0, %s10744_s10  ;;  %2566 = vrot.lane.b32.xlu0 %v11496_v13, %s10745_s14 }
 0x1c4   : > { %1872 = vst.msk [vmem:[#allocation2 + $0x40] sm:$0xff] %vm1863_vm0, %v11572_v21  ;;  %1904 = vst.msk [vmem:[#allocation2 + $0x140] sm:$0xff] %vm1863_vm0, %v11574_v22 }
 0x1c6   : > { %v994_v49 = vpop.f32.mrb[36].mxu0  ;;  %v1314_v50 = vpop.f32.mrb[36].mxu1 }
 0x1c7   : > { %v11592_v61 = vpop.f32.mrb[37].mxu1  ;;  %2564 = vrot.lane.b32.xlu1 %v11472_v2, %s10745_s14  ;;  %2630 = vrot.lane.b32.xlu0 %v11500_v15, %s10745_s14  ;;  %v11598_v62 = vpop.f32.mrb[37].mxu0 }
 0x1c8   : > { %16724 = vst [vmem:[#allocation62_spill] sm:$0xff] %v11592_v61  ;;  %v998_v40 = vpop.f32.mrb[38].mxu0  ;;  %v1318_v5 = vpop.f32.mrb[38].mxu1 }
 0x1c9   : > { %v11604_v39 = vpack.c.bf16 %v998_v40, %v994_v49  ;;  %v11606_v6 = vpack.c.bf16 %v1318_v5, %v1314_v50  ;;  %v11608_v42 = vpop.f32.mrb[39].mxu0  ;;  %v11610_v17 = vpop.f32.mrb[39].mxu1 }
 0x1ca   : > { %16727 = vst [vmem:[#allocation65_spill] sm:$0xff] %v11610_v17 }
 0x1cb   : > { %16725 = vst [vmem:[#allocation63_spill] sm:$0xff] %v11604_v39  ;;  %16726 = vst [vmem:[#allocation64_spill] sm:$0xff] %v11606_v6  ;;  %2628 = vrot.lane.b32.xlu1 %v11476_v0, %s10745_s14  ;;  %2022 = vrot.lane.b32.xlu0 %v11544_v51, %s10743_s9 }
 0x1cc   : > { %1873 = vst.msk [vmem:[#allocation2 + $0x48] sm:$0xff] %vm1863_vm0, %v11604_v39  ;;  %1905 = vst.msk [vmem:[#allocation2 + $0x148] sm:$0xff] %vm1863_vm0, %v11606_v6 }
 0x1ce   : > { %v1004_v5 = vpop.f32.mrb[40].mxu0  ;;  %v1324_v40 = vpop.f32.mrb[40].mxu1 }
 0x1cf   : > { %v11624_v49 = vpop.f32.mrb[41].mxu1  ;;  %2020 = vrot.lane.b32.xlu1 %v11520_v33, %s10743_s9  ;;  %2086 = vrot.lane.b32.xlu0 %v11546_v52, %s10743_s9  ;;  %v11630_v50 = vpop.f32.mrb[41].mxu0 }
 0x1d0   : > { %16728 = vst [vmem:[#allocation66_spill] sm:$0xff] %v11624_v49  ;;  %v1008_v15 = vpop.f32.mrb[42].mxu0  ;;  %v1328_v10 = vpop.f32.mrb[42].mxu1 }
 0x1d1   : > { %v11636_v0 = vpack.c.bf16 %v1008_v15, %v1004_v5  ;;  %v11638_v29 = vpack.c.bf16 %v1328_v10, %v1324_v40  ;;  %v11640_v2 = vpop.f32.mrb[43].mxu0  ;;  %v11642_v41 = vpop.f32.mrb[43].mxu1 }
 0x1d2   : > { %16731 = vst [vmem:[#allocation69_spill] sm:$0xff] %v11642_v41 }
 0x1d3   : > { %16729 = vst [vmem:[#allocation67_spill] sm:$0xff] %v11636_v0  ;;  %16730 = vst [vmem:[#allocation68_spill] sm:$0xff] %v11638_v29  ;;  %2084 = vrot.lane.b32.xlu1 %v11522_v34, %s10743_s9  ;;  %2296 = vrot.lane.b32.xlu0 %v11544_v51, %s10744_s10 }
 0x1d4   : > { %1874 = vst.msk [vmem:[#allocation2 + $0x50] sm:$0xff] %vm1863_vm0, %v11636_v0  ;;  %1906 = vst.msk [vmem:[#allocation2 + $0x150] sm:$0xff] %vm1863_vm0, %v11638_v29 }
 0x1d6   : > { %v1014_v15 = vpop.f32.mrb[44].mxu0  ;;  %v1334_v10 = vpop.f32.mrb[44].mxu1 }
 0x1d7   : > { %v11656_v5 = vpop.f32.mrb[45].mxu1  ;;  %2294 = vrot.lane.b32.xlu1 %v11520_v33, %s10744_s10  ;;  %2360 = vrot.lane.b32.xlu0 %v11546_v52, %s10744_s10  ;;  %v11662_v40 = vpop.f32.mrb[45].mxu0 }
 0x1d8   : > { %16732 = vst [vmem:[#allocation70_spill] sm:$0xff] %v11656_v5  ;;  %v1018_v13 = vpop.f32.mrb[46].mxu0  ;;  %v1338_v9 = vpop.f32.mrb[46].mxu1 }
 0x1d9   : > { %v11668_v55 = vpack.c.bf16 %v1018_v13, %v1014_v15  ;;  %v11670_v31 = vpack.c.bf16 %v1338_v9, %v1334_v10  ;;  %v11672_v44 = vpop.f32.mrb[47].mxu0  ;;  %v11674_v41 = vpop.f32.mrb[47].mxu1 }
 0x1da   : > { %16735 = vst [vmem:[#allocation73_spill] sm:$0xff] %v11672_v44  ;;  %16736 = vst [vmem:[#allocation74_spill] sm:$0xff] %v11674_v41 }
 0x1db   : > { %16733 = vst [vmem:[#allocation71_spill] sm:$0xff] %v11668_v55  ;;  %16734 = vst [vmem:[#allocation72_spill] sm:$0xff] %v11670_v31  ;;  %2358 = vrot.lane.b32.xlu1 %v11522_v34, %s10744_s10  ;;  %2570 = vrot.lane.b32.xlu0 %v11544_v51, %s10745_s14 }
 0x1dc   : > { %1875 = vst.msk [vmem:[#allocation2 + $0x58] sm:$0xff] %vm1863_vm0, %v11668_v55  ;;  %1907 = vst.msk [vmem:[#allocation2 + $0x158] sm:$0xff] %vm1863_vm0, %v11670_v31 }
 0x1de   : > { %v1024_v13 = vpop.f32.mrb[48].mxu0  ;;  %v1344_v9 = vpop.f32.mrb[48].mxu1 }
 0x1df   : > { %v11688_v15 = vpop.f32.mrb[49].mxu1  ;;  %2568 = vrot.lane.b32.xlu1 %v11520_v33, %s10745_s14  ;;  %2634 = vrot.lane.b32.xlu0 %v11546_v52, %s10745_s14  ;;  %v11694_v10 = vpop.f32.mrb[49].mxu0 }
 0x1e0   : > { %16737 = vst [vmem:[#allocation75_spill] sm:$0xff] %v11688_v15  ;;  %16738 = vst [vmem:[#allocation76_spill] sm:$0xff] %v11694_v10  ;;  %v1028_v36 = vpop.f32.mrb[50].mxu0  ;;  %v1348_v53 = vpop.f32.mrb[50].mxu1 }
 0x1e1   : > { %v11700_v51 = vpack.c.bf16 %v1028_v36, %v1024_v13  ;;  %v11702_v54 = vpack.c.bf16 %v1348_v53, %v1344_v9  ;;  %v11704_v41 = vpop.f32.mrb[51].mxu0  ;;  %v11706_v33 = vpop.f32.mrb[51].mxu1 }
 0x1e2   : > { %16741 = vst [vmem:[#allocation79_spill] sm:$0xff] %v11704_v41  ;;  %16742 = vst [vmem:[#allocation80_spill] sm:$0xff] %v11706_v33 }
 0x1e3   : > { %16739 = vst [vmem:[#allocation77_spill] sm:$0xff] %v11700_v51  ;;  %16740 = vst [vmem:[#allocation78_spill] sm:$0xff] %v11702_v54  ;;  %2632 = vrot.lane.b32.xlu1 %v11522_v34, %s10745_s14  ;;  %2026 = vrot.lane.b32.xlu0 %v11604_v39, %s10743_s9 }
 0x1e4   : > { %1876 = vst.msk [vmem:[#allocation2 + $0x60] sm:$0xff] %vm1863_vm0, %v11700_v51  ;;  %1908 = vst.msk [vmem:[#allocation2 + $0x160] sm:$0xff] %vm1863_vm0, %v11702_v54 }
 0x1e6   : > { %v1034_v36 = vpop.f32.mrb[52].mxu0  ;;  %v1354_v53 = vpop.f32.mrb[52].mxu1 }
 0x1e7   : > { %v11720_v13 = vpop.f32.mrb[53].mxu1  ;;  %2024 = vrot.lane.b32.xlu1 %v11572_v21, %s10743_s9  ;;  %2090 = vrot.lane.b32.xlu0 %v11606_v6, %s10743_s9  ;;  %v11726_v9 = vpop.f32.mrb[53].mxu0 }
 0x1e8   : > { %16743 = vst [vmem:[#allocation81_spill] sm:$0xff] %v11720_v13  ;;  %16744 = vst [vmem:[#allocation82_spill] sm:$0xff] %v11726_v9  ;;  %v1038_v52 = vpop.f32.mrb[54].mxu0  ;;  %v1358_v18 = vpop.f32.mrb[54].mxu1 }
 0x1e9   : > { %v11732_v34 = vpack.c.bf16 %v1038_v52, %v1034_v36  ;;  %v11734_v4 = vpack.c.bf16 %v1358_v18, %v1354_v53  ;;  %v11736_v33 = vpop.f32.mrb[55].mxu0  ;;  %v11738_v60 = vpop.f32.mrb[55].mxu1 }
 0x1ea   : > { %16747 = vst [vmem:[#allocation85_spill] sm:$0xff] %v11736_v33  ;;  %16748 = vst [vmem:[#allocation86_spill] sm:$0xff] %v11738_v60 }
 0x1eb   : > { %16745 = vst [vmem:[#allocation83_spill] sm:$0xff] %v11732_v34  ;;  %16746 = vst [vmem:[#allocation84_spill] sm:$0xff] %v11734_v4  ;;  %2088 = vrot.lane.b32.xlu1 %v11574_v22, %s10743_s9  ;;  %2300 = vrot.lane.b32.xlu0 %v11604_v39, %s10744_s10 }
 0x1ec   : > { %1877 = vst.msk [vmem:[#allocation2 + $0x68] sm:$0xff] %vm1863_vm0, %v11732_v34  ;;  %1909 = vst.msk [vmem:[#allocation2 + $0x168] sm:$0xff] %vm1863_vm0, %v11734_v4 }
 0x1ee   : > { %v1044_v18 = vpop.f32.mrb[56].mxu0  ;;  %v1364_v52 = vpop.f32.mrb[56].mxu1 }
 0x1ef   : > { %v11752_v36 = vpop.f32.mrb[57].mxu1  ;;  %2298 = vrot.lane.b32.xlu1 %v11572_v21, %s10744_s10  ;;  %2364 = vrot.lane.b32.xlu0 %v11606_v6, %s10744_s10  ;;  %v11758_v53 = vpop.f32.mrb[57].mxu0 }
 0x1f0   : > { %16749 = vst [vmem:[#allocation87_spill] sm:$0xff] %v11752_v36  ;;  %16750 = vst [vmem:[#allocation88_spill] sm:$0xff] %v11758_v53  ;;  %v1048_v15 = vpop.f32.mrb[58].mxu0  ;;  %v1368_v49 = vpop.f32.mrb[58].mxu1 }
 0x1f1   : > { %v11764_v16 = vpack.c.bf16 %v1048_v15, %v1044_v18  ;;  %v11766_v60 = vpack.c.bf16 %v1368_v49, %v1364_v52  ;;  %v11768_v8 = vpop.f32.mrb[59].mxu0  ;;  %v11770_v13 = vpop.f32.mrb[59].mxu1 }
 0x1f2   : > { %16753 = vst [vmem:[#allocation91_spill] sm:$0xff] %v11768_v8  ;;  %16754 = vst [vmem:[#allocation92_spill] sm:$0xff] %v11770_v13 }
 0x1f3   : > { %16751 = vst [vmem:[#allocation89_spill] sm:$0xff] %v11764_v16  ;;  %16752 = vst [vmem:[#allocation90_spill] sm:$0xff] %v11766_v60  ;;  %2362 = vrot.lane.b32.xlu1 %v11574_v22, %s10744_s10  ;;  %2574 = vrot.lane.b32.xlu0 %v11604_v39, %s10745_s14 }
 0x1f4   : > { %1878 = vst.msk [vmem:[#allocation2 + $0x70] sm:$0xff] %vm1863_vm0, %v11764_v16  ;;  %1910 = vst.msk [vmem:[#allocation2 + $0x170] sm:$0xff] %vm1863_vm0, %v11766_v60 }
 0x1f5   : > { %v2073_v49 = vpop.permute.xlu1 %2072  ;;  %v2009_v15 = vpop.permute.xlu0 %2008 }
 0x1f6   : > { %2233 = vst.msk [vmem:[#allocation2 + $0x300] sm:$0xff] %vm1863_vm0, %v2073_v49  ;;  %v1054_v18 = vpop.f32.mrb[60].mxu0  ;;  %v1374_v52 = vpop.f32.mrb[60].mxu1  ;;  %2201 = vst.msk [vmem:[#allocation2 + $0x200] sm:$0xff] %vm1863_vm0, %v2009_v15 }
 0x1f7   : > { %v11786_v17 = vpop.f32.mrb[61].mxu1  ;;  %2572 = vrot.lane.b32.xlu1 %v11572_v21, %s10745_s14  ;;  %2638 = vrot.lane.b32.xlu0 %v11606_v6, %s10745_s14  ;;  %v11792_v5 = vpop.f32.mrb[61].mxu0 }
 0x1f8   : > { %16755 = vst [vmem:[#allocation93_spill] sm:$0xff] %v11786_v17  ;;  %16756 = vst [vmem:[#allocation94_spill] sm:$0xff] %v11792_v5  ;;  %v1058_v47 = vpop.f32.mrb[62].mxu0  ;;  %v1378_v39 = vpop.f32.mrb[62].mxu1 }
 0x1f9   : > { %v11798_v38 = vpack.c.bf16 %v1058_v47, %v1054_v18  ;;  %v11800_v15 = vpack.c.bf16 %v1378_v39, %v1374_v52  ;;  %v11802_v13 = vpop.f32.mrb[63].mxu1  ;;  %v2283_v21 = vpop.permute.xlu1 %2282 }
 0x1fa   : > { %16759 = vst [vmem:[#allocation97_spill] sm:$0xff] %v11802_v13  ;;  %2475 = vst.msk [vmem:[#allocation2 + $0x400] sm:$0xff] %vm1863_vm0, %v2283_v21  ;;  %v11807_v25 = vpop.f32.mrb[63].mxu0 }
 0x1fb   : > { %16757 = vst [vmem:[#allocation95_spill] sm:$0xff] %v11798_v38  ;;  %16758 = vst [vmem:[#allocation96_spill] sm:$0xff] %v11800_v15  ;;  %2636 = vrot.lane.b32.xlu1 %v11574_v22, %s10745_s14  ;;  %2030 = vrot.lane.b32.xlu0 %v11668_v55, %s10743_s9 }
 0x1fc   : > { %16760 = vst [vmem:[#allocation98_spill] sm:$0xff] %v11807_v25  ;;  %1879 = vst.msk [vmem:[#allocation2 + $0x78] sm:$0xff] %vm1863_vm0, %v11798_v38 }
 0x1fd   : > { %1911 = vst.msk [vmem:[#allocation2 + $0x178] sm:$0xff] %vm1863_vm0, %v11800_v15  ;;  %v2347_v39 = vpop.permute.xlu1 %2346  ;;  %v2075_v18 = vpop.permute.xlu0 %2074 }
 0x1fe   : > { %2507 = vst.msk [vmem:[#allocation2 + $0x500] sm:$0xff] %vm1863_vm0, %v2347_v39  ;;  %2234 = vst.msk [vmem:[#allocation2 + $0x308] sm:$0xff] %vm1863_vm0, %v2075_v18  ;;  %v1064_v21 = vpop.f32.mrb[64].mxu0  ;;  %v1384_v52 = vpop.f32.mrb[64].mxu1 }
 0x1ff   : > { %2028 = vrot.lane.b32.xlu1 %v11636_v0, %s10743_s9  ;;  %2094 = vrot.lane.b32.xlu0 %v11670_v31, %s10743_s9  ;;  %v11825_v6 = vpop.f32.mrb[65].mxu0  ;;  %v11827_v30 = vpop.f32.mrb[65].mxu1 }
 0x200   : > { %16761 = vst [vmem:[#allocation99_spill] sm:$0xff] %v11827_v30  ;;  %v1068_v47 = vpop.f32.mrb[66].mxu0  ;;  %v1388_v49 = vpop.f32.mrb[66].mxu1 }
 0x201   : > { %v2557_v22 = vpop.permute.xlu1 %2556  ;;  %v2285_v58 = vpop.permute.xlu0 %2284  ;;  %v11829_v13 = vpack.c.bf16 %v1068_v47, %v1064_v21  ;;  %v11831_v39 = vpack.c.bf16 %v1388_v49, %v1384_v52 }
 0x202   : > { %2749 = vst.msk [vmem:[#allocation2 + $0x600] sm:$0xff] %vm1863_vm0, %v2557_v22  ;;  %2476 = vst.msk [vmem:[#allocation2 + $0x408] sm:$0xff] %vm1863_vm0, %v2285_v58  ;;  %v11835_v18 = vpop.f32.mrb[67].mxu0  ;;  %v11837_v45 = vpop.f32.mrb[67].mxu1 }
 0x203   : > { %16762 = vst [vmem:[#allocation100_spill] sm:$0xff] %v11829_v13  ;;  %16763 = vst [vmem:[#allocation101_spill] sm:$0xff] %v11831_v39  ;;  %2092 = vrot.lane.b32.xlu1 %v11638_v29, %s10743_s9  ;;  %2304 = vrot.lane.b32.xlu0 %v11668_v55, %s10744_s10 }
 0x204   : > { %16764 = vst [vmem:[#allocation102_spill] sm:$0xff] %v11835_v18  ;;  %16765 = vst [vmem:[#allocation103_spill] sm:$0xff] %v11837_v45 }
 0x205   : > { %1880 = vst.msk [vmem:[#allocation2 + $0x80] sm:$0xff] %vm1863_vm0, %v11829_v13  ;;  %1912 = vst.msk [vmem:[#allocation2 + $0x180] sm:$0xff] %vm1863_vm0, %v11831_v39  ;;  %v2621_v49 = vpop.permute.xlu1 %2620  ;;  %v2349_v22 = vpop.permute.xlu0 %2348 }
 0x206   : > { %2781 = vst.msk [vmem:[#allocation2 + $0x700] sm:$0xff] %vm1863_vm0, %v2621_v49  ;;  %2508 = vst.msk [vmem:[#allocation2 + $0x508] sm:$0xff] %vm1863_vm0, %v2349_v22  ;;  %v1074_v58 = vpop.f32.mrb[68].mxu0  ;;  %v1394_v47 = vpop.f32.mrb[68].mxu1 }
 0x207   : > { %2302 = vrot.lane.b32.xlu1 %v11636_v0, %s10744_s10  ;;  %2368 = vrot.lane.b32.xlu0 %v11670_v31, %s10744_s10  ;;  %v11853_v21 = vpop.f32.mrb[69].mxu0  ;;  %v11855_v52 = vpop.f32.mrb[69].mxu1 }
 0x208   : > { %16766 = vst [vmem:[#allocation104_spill] sm:$0xff] %v11855_v52  ;;  %v1078_v17 = vpop.f32.mrb[70].mxu0  ;;  %v1398_v36 = vpop.f32.mrb[70].mxu1 }
 0x209   : > { %v2559_v23 = vpop.permute.xlu0 %2558  ;;  %v2011_v61 = vpop.permute.xlu1 %2010  ;;  %v11857_v19 = vpack.c.bf16 %v1078_v17, %v1074_v58  ;;  %v11859_v49 = vpack.c.bf16 %v1398_v36, %v1394_v47 }
 0x20a   : > { %2750 = vst.msk [vmem:[#allocation2 + $0x608] sm:$0xff] %vm1863_vm0, %v2559_v23  ;;  %2202 = vst.msk [vmem:[#allocation2 + $0x208] sm:$0xff] %vm1863_vm0, %v2011_v61  ;;  %v11863_v22 = vpop.f32.mrb[71].mxu0  ;;  %v11865_v28 = vpop.f32.mrb[71].mxu1 }
 0x20b   : > { %16767 = vst [vmem:[#allocation105_spill] sm:$0xff] %v11857_v19  ;;  %16768 = vst [vmem:[#allocation106_spill] sm:$0xff] %v11859_v49  ;;  %2366 = vrot.lane.b32.xlu1 %v11638_v29, %s10744_s10  ;;  %2578 = vrot.lane.b32.xlu0 %v11668_v55, %s10745_s14 }
 0x20c   : > { %16769 = vst [vmem:[#allocation107_spill] sm:$0xff] %v11865_v28  ;;  %1881 = vst.msk [vmem:[#allocation2 + $0x88] sm:$0xff] %vm1863_vm0, %v11857_v19 }
 0x20d   : > { %1913 = vst.msk [vmem:[#allocation2 + $0x188] sm:$0xff] %vm1863_vm0, %v11859_v49  ;;  %v2623_v17 = vpop.permute.xlu0 %2622  ;;  %v2013_v23 = vpop.permute.xlu1 %2012 }
 0x20e   : > { %2782 = vst.msk [vmem:[#allocation2 + $0x708] sm:$0xff] %vm1863_vm0, %v2623_v17  ;;  %2203 = vst.msk [vmem:[#allocation2 + $0x210] sm:$0xff] %vm1863_vm0, %v2013_v23  ;;  %v1084_v61 = vpop.f32.mrb[72].mxu0  ;;  %v1404_v36 = vpop.f32.mrb[72].mxu1 }
 0x20f   : > { %2576 = vrot.lane.b32.xlu1 %v11636_v0, %s10745_s14  ;;  %2642 = vrot.lane.b32.xlu0 %v11670_v31, %s10745_s14  ;;  %v11881_v58 = vpop.f32.mrb[73].mxu0  ;;  %v11883_v47 = vpop.f32.mrb[73].mxu1 }
 0x210   : > { %16770 = vst [vmem:[#allocation108_spill] sm:$0xff] %v11883_v47  ;;  %v1088_v55 = vpop.f32.mrb[74].mxu0  ;;  %v1408_v49 = vpop.f32.mrb[74].mxu1 }
 0x211   : > { %v2079_v19 = vpop.permute.xlu0 %2078  ;;  %v2077_v11 = vpop.permute.xlu1 %2076  ;;  %v11885_v63 = vpack.c.bf16 %v1088_v55, %v1084_v61  ;;  %v11887_v17 = vpack.c.bf16 %v1408_v49, %v1404_v36 }
 0x212   : > { %2236 = vst.msk [vmem:[#allocation2 + $0x318] sm:$0xff] %vm1863_vm0, %v2079_v19  ;;  %2235 = vst.msk [vmem:[#allocation2 + $0x310] sm:$0xff] %vm1863_vm0, %v2077_v11  ;;  %v11891_v23 = vpop.f32.mrb[75].mxu0  ;;  %v11893_v0 = vpop.f32.mrb[75].mxu1 }
 0x213   : > { %16771 = vst [vmem:[#allocation109_spill] sm:$0xff] %v11885_v63  ;;  %16772 = vst [vmem:[#allocation110_spill] sm:$0xff] %v11887_v17  ;;  %2640 = vrot.lane.b32.xlu1 %v11638_v29, %s10745_s14  ;;  %2034 = vrot.lane.b32.xlu0 %v11732_v34, %s10743_s9 }
 0x214   : > { %16773 = vst [vmem:[#allocation111_spill] sm:$0xff] %v11893_v0  ;;  %1882 = vst.msk [vmem:[#allocation2 + $0x90] sm:$0xff] %vm1863_vm0, %v11885_v63 }
 0x215   : > { %1914 = vst.msk [vmem:[#allocation2 + $0x190] sm:$0xff] %vm1863_vm0, %v11887_v17  ;;  %v2287_v55 = vpop.permute.xlu1 %2286  ;;  %v2289_v19 = vpop.permute.xlu0 %2288 }
 0x216   : > { %2477 = vst.msk [vmem:[#allocation2 + $0x410] sm:$0xff] %vm1863_vm0, %v2287_v55  ;;  %2478 = vst.msk [vmem:[#allocation2 + $0x418] sm:$0xff] %vm1863_vm0, %v2289_v19  ;;  %v1094_v11 = vpop.f32.mrb[76].mxu0  ;;  %v1414_v49 = vpop.f32.mrb[76].mxu1 }
 0x217   : > { %2032 = vrot.lane.b32.xlu1 %v11700_v51, %s10743_s9  ;;  %2098 = vrot.lane.b32.xlu0 %v11734_v4, %s10743_s9  ;;  %v11909_v61 = vpop.f32.mrb[77].mxu0  ;;  %v11911_v36 = vpop.f32.mrb[77].mxu1 }
 0x218   : > { %v1098_v29 = vpop.f32.mrb[78].mxu0  ;;  %v1418_v31 = vpop.f32.mrb[78].mxu1 }
 0x219   : > { %v2351_v57 = vpop.permute.xlu1 %2350  ;;  %v2353_v25 = vpop.permute.xlu0 %2352  ;;  %v11913_v46 = vpack.c.bf16 %v1098_v29, %v1094_v11  ;;  %v11915_v55 = vpack.c.bf16 %v1418_v31, %v1414_v49 }
 0x21a   : > { %2509 = vst.msk [vmem:[#allocation2 + $0x510] sm:$0xff] %vm1863_vm0, %v2351_v57  ;;  %2510 = vst.msk [vmem:[#allocation2 + $0x518] sm:$0xff] %vm1863_vm0, %v2353_v25  ;;  %v11919_v19 = vpop.f32.mrb[79].mxu0  ;;  %v11921_v5 = vpop.f32.mrb[79].mxu1 }
 0x21b   : > { %16774 = vst [vmem:[#allocation112_spill] sm:$0xff] %v11913_v46  ;;  %16775 = vst [vmem:[#allocation113_spill] sm:$0xff] %v11915_v55  ;;  %2096 = vrot.lane.b32.xlu1 %v11702_v54, %s10743_s9  ;;  %2308 = vrot.lane.b32.xlu0 %v11732_v34, %s10744_s10 }
 0x21c   : > { %16776 = vst [vmem:[#allocation114_spill] sm:$0xff] %v11921_v5  ;;  %1883 = vst.msk [vmem:[#allocation2 + $0x98] sm:$0xff] %vm1863_vm0, %v11913_v46 }
 0x21d   : > { %1915 = vst.msk [vmem:[#allocation2 + $0x198] sm:$0xff] %vm1863_vm0, %v11915_v55  ;;  %v2561_v29 = vpop.permute.xlu1 %2560  ;;  %v2563_v31 = vpop.permute.xlu0 %2562 }
 0x21e   : > { %2751 = vst.msk [vmem:[#allocation2 + $0x610] sm:$0xff] %vm1863_vm0, %v2561_v29  ;;  %2752 = vst.msk [vmem:[#allocation2 + $0x618] sm:$0xff] %vm1863_vm0, %v2563_v31  ;;  %v1104_v25 = vpop.f32.mrb[80].mxu0  ;;  %v1424_v57 = vpop.f32.mrb[80].mxu1 }
 0x21f   : > { %2306 = vrot.lane.b32.xlu1 %v11700_v51, %s10744_s10  ;;  %2372 = vrot.lane.b32.xlu0 %v11734_v4, %s10744_s10  ;;  %v11937_v11 = vpop.f32.mrb[81].mxu0  ;;  %v11939_v49 = vpop.f32.mrb[81].mxu1 }
 0x220   : > { %v1108_v46 = vpop.f32.mrb[82].mxu0  ;;  %v1428_v55 = vpop.f32.mrb[82].mxu1 }
 0x221   : > { %v2625_v37 = vpop.permute.xlu1 %2624  ;;  %v2627_v8 = vpop.permute.xlu0 %2626  ;;  %v11941_v26 = vpack.c.bf16 %v1108_v46, %v1104_v25  ;;  %v11943_v29 = vpack.c.bf16 %v1428_v55, %v1424_v57 }
 0x222   : > { %2783 = vst.msk [vmem:[#allocation2 + $0x710] sm:$0xff] %vm1863_vm0, %v2625_v37  ;;  %2784 = vst.msk [vmem:[#allocation2 + $0x718] sm:$0xff] %vm1863_vm0, %v2627_v8  ;;  %v11947_v31 = vpop.f32.mrb[83].mxu0  ;;  %v11949_v53 = vpop.f32.mrb[83].mxu1 }
 0x223   : > { %16777 = vst [vmem:[#allocation115_spill] sm:$0xff] %v11941_v26  ;;  %16778 = vst [vmem:[#allocation116_spill] sm:$0xff] %v11949_v53  ;;  %2370 = vrot.lane.b32.xlu1 %v11702_v54, %s10744_s10  ;;  %2582 = vrot.lane.b32.xlu0 %v11732_v34, %s10745_s14 }
 0x224   : > { %1884 = vst.msk [vmem:[#allocation2 + $0xa0] sm:$0xff] %vm1863_vm0, %v11941_v26  ;;  %1916 = vst.msk [vmem:[#allocation2 + $0x1a0] sm:$0xff] %vm1863_vm0, %v11943_v29 }
 0x225   : > { %v2015_v46 = vpop.permute.xlu1 %2014  ;;  %v2019_v37 = vpop.permute.xlu0 %2018 }
 0x226   : > { %2204 = vst.msk [vmem:[#allocation2 + $0x218] sm:$0xff] %vm1863_vm0, %v2015_v46  ;;  %2206 = vst.msk [vmem:[#allocation2 + $0x228] sm:$0xff] %vm1863_vm0, %v2019_v37  ;;  %v1114_v8 = vpop.f32.mrb[84].mxu0  ;;  %v1434_v55 = vpop.f32.mrb[84].mxu1 }
 0x227   : > { %2580 = vrot.lane.b32.xlu1 %v11700_v51, %s10745_s14  ;;  %2646 = vrot.lane.b32.xlu0 %v11734_v4, %s10745_s14  ;;  %v11965_v25 = vpop.f32.mrb[85].mxu0  ;;  %v11967_v57 = vpop.f32.mrb[85].mxu1 }
 0x228   : > { %16779 = vst [vmem:[#allocation117_spill] sm:$0xff] %v11967_v57  ;;  %v1118_v34 = vpop.f32.mrb[86].mxu0  ;;  %v1438_v14 = vpop.f32.mrb[86].mxu1  ;;  %v16831_v57 = vld [vmem:[#allocation37_spill] sm:$0xff] }
 0x229   : > { %v2017_v33 = vpop.permute.xlu1 %2016  ;;  %v2083_v7 = vpop.permute.xlu0 %2082  ;;  %v11969_v9 = vpack.c.bf16 %v1118_v34, %v1114_v8  ;;  %v11971_v46 = vpack.c.bf16 %v1438_v14, %v1434_v55 }
 0x22a   : > { %2205 = vst.msk [vmem:[#allocation2 + $0x220] sm:$0xff] %vm1863_vm0, %v2017_v33  ;;  %2238 = vst.msk [vmem:[#allocation2 + $0x328] sm:$0xff] %vm1863_vm0, %v2083_v7  ;;  %v11975_v37 = vpop.f32.mrb[87].mxu0  ;;  %v11977_v51 = vpop.f32.mrb[87].mxu1 }
 0x22b   : > { %16780 = vst [vmem:[#allocation118_spill] sm:$0xff] %v11969_v9  ;;  %16781 = vst [vmem:[#allocation119_spill] sm:$0xff] %v11971_v46  ;;  %2644 = vrot.lane.b32.xlu1 %v11702_v54, %s10745_s14  ;;  %2038 = vrot.lane.b32.xlu0 %v11798_v38, %s10743_s9 }
 0x22c   : > { %16782 = vst [vmem:[#allocation120_spill] sm:$0xff] %v11977_v51  ;;  %1885 = vst.msk [vmem:[#allocation2 + $0xa8] sm:$0xff] %vm1863_vm0, %v11969_v9 }
 0x22d   : > { %1917 = vst.msk [vmem:[#allocation2 + $0x1a8] sm:$0xff] %vm1863_vm0, %v11971_v46  ;;  %v2081_v14 = vpop.permute.xlu1 %2080  ;;  %v2293_v33 = vpop.permute.xlu0 %2292 }
 0x22e   : > { %2237 = vst.msk [vmem:[#allocation2 + $0x320] sm:$0xff] %vm1863_vm0, %v2081_v14  ;;  %2480 = vst.msk [vmem:[#allocation2 + $0x428] sm:$0xff] %vm1863_vm0, %v2293_v33  ;;  %v1124_v7 = vpop.f32.mrb[88].mxu0  ;;  %v1444_v34 = vpop.f32.mrb[88].mxu1 }
 0x22f   : > { %2036 = vrot.lane.b32.xlu1 %v11764_v16, %s10743_s9  ;;  %2102 = vrot.lane.b32.xlu0 %v11800_v15, %s10743_s9  ;;  %v11993_v8 = vpop.f32.mrb[89].mxu0  ;;  %v11995_v55 = vpop.f32.mrb[89].mxu1 }
 0x230   : > { %16783 = vst [vmem:[#allocation121_spill] sm:$0xff] %v11995_v55  ;;  %v1128_v54 = vpop.f32.mrb[90].mxu0  ;;  %v1448_v4 = vpop.f32.mrb[90].mxu1  ;;  %v16821_v55 = vld [vmem:[#allocation33_spill] sm:$0xff] }
 0x231   : > { %v2291_v46 = vpop.permute.xlu1 %2290  ;;  %v2357_v9 = vpop.permute.xlu0 %2356  ;;  %v11997_v3 = vpack.c.bf16 %v1128_v54, %v1124_v7  ;;  %v11999_v14 = vpack.c.bf16 %v1448_v4, %v1444_v34 }
 0x232   : > { %2479 = vst.msk [vmem:[#allocation2 + $0x420] sm:$0xff] %vm1863_vm0, %v2291_v46  ;;  %2512 = vst.msk [vmem:[#allocation2 + $0x528] sm:$0xff] %vm1863_vm0, %v2357_v9  ;;  %v12003_v33 = vpop.f32.mrb[91].mxu0  ;;  %v12005_v41 = vpop.f32.mrb[91].mxu1 }
 0x233   : > { %16784 = vst [vmem:[#allocation122_spill] sm:$0xff] %v11997_v3  ;;  %16785 = vst [vmem:[#allocation123_spill] sm:$0xff] %v11999_v14  ;;  %2100 = vrot.lane.b32.xlu1 %v11766_v60, %s10743_s9  ;;  %2312 = vrot.lane.b32.xlu0 %v11798_v38, %s10744_s10 }
 0x234   : > { %16786 = vst [vmem:[#allocation124_spill] sm:$0xff] %v12005_v41  ;;  %1886 = vst.msk [vmem:[#allocation2 + $0xb0] sm:$0xff] %vm1863_vm0, %v11997_v3 }
 0x235   : > { %1918 = vst.msk [vmem:[#allocation2 + $0x1b0] sm:$0xff] %vm1863_vm0, %v11999_v14  ;;  %v2355_v54 = vpop.permute.xlu1 %2354  ;;  %v2567_v4 = vpop.permute.xlu0 %2566 }
 0x236   : > { %2511 = vst.msk [vmem:[#allocation2 + $0x520] sm:$0xff] %vm1863_vm0, %v2355_v54  ;;  %2754 = vst.msk [vmem:[#allocation2 + $0x628] sm:$0xff] %vm1863_vm0, %v2567_v4  ;;  %v1134_v9 = vpop.f32.mrb[92].mxu0  ;;  %v1454_v46 = vpop.f32.mrb[92].mxu1 }
 0x237   : > { %2310 = vrot.lane.b32.xlu1 %v11764_v16, %s10744_s10  ;;  %2376 = vrot.lane.b32.xlu0 %v11800_v15, %s10744_s10  ;;  %v12021_v7 = vpop.f32.mrb[93].mxu0  ;;  %v12023_v34 = vpop.f32.mrb[93].mxu1 }
 0x238   : > { %16787 = vst [vmem:[#allocation125_spill] sm:$0xff] %v12023_v34  ;;  %v1138_v3 = vpop.f32.mrb[94].mxu0  ;;  %v1458_v14 = vpop.f32.mrb[94].mxu1 }
 0x239   : > { %v2565_v59 = vpop.permute.xlu1 %2564  ;;  %v2631_v10 = vpop.permute.xlu0 %2630  ;;  %v12025_v56 = vpack.c.bf16 %v1138_v3, %v1134_v9  ;;  %v12027_v54 = vpack.c.bf16 %v1458_v14, %v1454_v46 }
 0x23a   : > { %2753 = vst.msk [vmem:[#allocation2 + $0x620] sm:$0xff] %vm1863_vm0, %v2565_v59  ;;  %2786 = vst.msk [vmem:[#allocation2 + $0x728] sm:$0xff] %vm1863_vm0, %v2631_v10  ;;  %v12031_v4 = vpop.f32.mrb[95].mxu0  ;;  %v12033_v44 = vpop.f32.mrb[95].mxu1 }
 0x23b   : > { %16788 = vst [vmem:[#allocation126_spill] sm:$0xff] %v12025_v56  ;;  %16789 = vst [vmem:[#allocation127_spill] sm:$0xff] %v12027_v54  ;;  %2374 = vrot.lane.b32.xlu1 %v11766_v60, %s10744_s10  ;;  %2586 = vrot.lane.b32.xlu0 %v11798_v38, %s10745_s14 }
 0x23c   : > { %16790 = vst [vmem:[#allocation128_spill] sm:$0xff] %v12031_v4  ;;  %16791 = vst [vmem:[#allocation129_spill] sm:$0xff] %v12033_v44 }
 0x23d   : > { %1887 = vst.msk [vmem:[#allocation2 + $0xb8] sm:$0xff] %vm1863_vm0, %v12025_v56  ;;  %1919 = vst.msk [vmem:[#allocation2 + $0x1b8] sm:$0xff] %vm1863_vm0, %v12027_v54  ;;  %v2629_v3 = vpop.permute.xlu1 %2628  ;;  %v2023_v59 = vpop.permute.xlu0 %2022 }
 0x23e   : > { %2785 = vst.msk [vmem:[#allocation2 + $0x720] sm:$0xff] %vm1863_vm0, %v2629_v3  ;;  %2208 = vst.msk [vmem:[#allocation2 + $0x238] sm:$0xff] %vm1863_vm0, %v2023_v59  ;;  %v1144_v10 = vpop.f32.mrb[96].mxu0  ;;  %v1464_v14 = vpop.f32.mrb[96].mxu1 }
 0x23f   : > { %2584 = vrot.lane.b32.xlu1 %v11764_v16, %s10745_s14  ;;  %v12047_v9 = vpop.f32.mrb[97].mxu0  ;;  %v12049_v46 = vpop.f32.mrb[97].mxu1 }
 0x240   : > { %16792 = vst [vmem:[#allocation130_spill] sm:$0xff] %v12049_v46  ;;  %v1148_v15 = vpop.f32.mrb[98].mxu0  ;;  %v1468_v56 = vpop.f32.mrb[98].mxu1 }
 0x241   : > { %v2021_v3 = vpop.permute.xlu1 %2020  ;;  %v2087_v44 = vpop.permute.xlu0 %2086  ;;  %v12055_v59 = vpack.c.bf16 %v1148_v15, %v1144_v10  ;;  %v12057_v4 = vpack.c.bf16 %v1468_v56, %v1464_v14 }
 0x242   : > { %2207 = vst.msk [vmem:[#allocation2 + $0x230] sm:$0xff] %vm1863_vm0, %v2021_v3  ;;  %2240 = vst.msk [vmem:[#allocation2 + $0x338] sm:$0xff] %vm1863_vm0, %v2087_v44  ;;  %v12061_v16 = vpop.f32.mrb[99].mxu0  ;;  %v12063_v34 = vpop.f32.mrb[99].mxu1 }
 0x243   : > { %16793 = vst [vmem:[#allocation131_spill] sm:$0xff] %v12055_v59  ;;  %16794 = vst [vmem:[#allocation132_spill] sm:$0xff] %v12063_v34  ;;  %2648 = vrot.lane.b32.xlu1 %v11766_v60, %s10745_s14 }
 0x244   : > { %1888 = vst.msk [vmem:[#allocation2 + $0xc0] sm:$0xff] %vm1863_vm0, %v12055_v59  ;;  %1920 = vst.msk [vmem:[#allocation2 + $0x1c0] sm:$0xff] %vm1863_vm0, %v12057_v4 }
 0x245   : > { %v2085_v44 = vpop.permute.xlu1 %2084  ;;  %v2297_v15 = vpop.permute.xlu0 %2296 }
 0x246   : > { %2239 = vst.msk [vmem:[#allocation2 + $0x330] sm:$0xff] %vm1863_vm0, %v2085_v44  ;;  %2482 = vst.msk [vmem:[#allocation2 + $0x438] sm:$0xff] %vm1863_vm0, %v2297_v15  ;;  %v1154_v10 = vpop.f32.mrb[100].mxu0  ;;  %v1474_v14 = vpop.f32.mrb[100].mxu1 }
 0x247   : > { %2040 = vrot.lane.b32.xlu1 %v11829_v13, %s10743_s9  ;;  %v12079_v3 = vpop.f32.mrb[101].mxu0  ;;  %v12081_v54 = vpop.f32.mrb[101].mxu1 }
 0x248   : > { %16795 = vst [vmem:[#allocation133_spill] sm:$0xff] %v12081_v54  ;;  %v1158_v60 = vpop.f32.mrb[102].mxu0  ;;  %v1478_v45 = vpop.f32.mrb[102].mxu1 }
 0x249   : > { %v2295_v44 = vpop.permute.xlu1 %2294  ;;  %v2361_v34 = vpop.permute.xlu0 %2360  ;;  %v12087_v15 = vpack.c.bf16 %v1158_v60, %v1154_v10  ;;  %v12089_v30 = vpack.c.bf16 %v1478_v45, %v1474_v14 }
 0x24a   : > { %2481 = vst.msk [vmem:[#allocation2 + $0x430] sm:$0xff] %vm1863_vm0, %v2295_v44  ;;  %2514 = vst.msk [vmem:[#allocation2 + $0x538] sm:$0xff] %vm1863_vm0, %v2361_v34  ;;  %v12093_v46 = vpop.f32.mrb[103].mxu0  ;;  %v12095_v18 = vpop.f32.mrb[103].mxu1 }
 0x24b   : > { %16796 = vst [vmem:[#allocation134_spill] sm:$0xff] %v12087_v15  ;;  %16797 = vst [vmem:[#allocation135_spill] sm:$0xff] %v12089_v30  ;;  %2104 = vrot.lane.b32.xlu1 %v11831_v39, %s10743_s9 }
 0x24c   : > { %16798 = vst [vmem:[#allocation136_spill] sm:$0xff] %v12095_v18  ;;  %1889 = vst.msk [vmem:[#allocation2 + $0xc8] sm:$0xff] %vm1863_vm0, %v12087_v15 }
 0x24d   : > { %1921 = vst.msk [vmem:[#allocation2 + $0x1c8] sm:$0xff] %vm1863_vm0, %v12089_v30  ;;  %v2359_v34 = vpop.permute.xlu1 %2358  ;;  %v2571_v10 = vpop.permute.xlu0 %2570 }
 0x24e   : > { %2513 = vst.msk [vmem:[#allocation2 + $0x530] sm:$0xff] %vm1863_vm0, %v2359_v34  ;;  %2756 = vst.msk [vmem:[#allocation2 + $0x638] sm:$0xff] %vm1863_vm0, %v2571_v10  ;;  %v1164_v14 = vpop.f32.mrb[104].mxu0  ;;  %v1484_v44 = vpop.f32.mrb[104].mxu1 }
 0x24f   : > { %2314 = vrot.lane.b32.xlu1 %v11829_v13, %s10744_s10  ;;  %v12111_v56 = vpop.f32.mrb[105].mxu0  ;;  %v12113_v60 = vpop.f32.mrb[105].mxu1 }
 0x250   : > { %v1168_v52 = vpop.f32.mrb[106].mxu0  ;;  %v1488_v28 = vpop.f32.mrb[106].mxu1 }
 0x251   : > { %v2569_v34 = vpop.permute.xlu1 %2568  ;;  %v2635_v18 = vpop.permute.xlu0 %2634  ;;  %v12119_v10 = vpack.c.bf16 %v1168_v52, %v1164_v14  ;;  %v12121_v54 = vpack.c.bf16 %v1488_v28, %v1484_v44  ;;  %v16802_v28 = vpack.i.bf16 %v11566_v1, %v11358_v12 }
 0x252   : > { %2755 = vst.msk [vmem:[#allocation2 + $0x630] sm:$0xff] %vm1863_vm0, %v2569_v34  ;;  %2788 = vst.msk [vmem:[#allocation2 + $0x738] sm:$0xff] %vm1863_vm0, %v2635_v18  ;;  %v12125_v30 = vpop.f32.mrb[107].mxu0  ;;  %v12127_v15 = vpop.f32.mrb[107].mxu1 }
 0x253   : > { %16799 = vst [vmem:[#allocation137_spill] sm:$0xff] %v12119_v10  ;;  %16800 = vst [vmem:[#allocation138_spill] sm:$0xff] %v12121_v54  ;;  %2378 = vrot.lane.b32.xlu1 %v11831_v39, %s10744_s10 }
 0x254   : > { %16801 = vst [vmem:[#allocation139_spill] sm:$0xff] %v12127_v15  ;;  %1890 = vst.msk [vmem:[#allocation2 + $0xd0] sm:$0xff] %vm1863_vm0, %v12119_v10 }
 0x255   : > { %1922 = vst.msk [vmem:[#allocation2 + $0x1d0] sm:$0xff] %vm1863_vm0, %v12121_v54  ;;  %v2633_v18 = vpop.permute.xlu1 %2632  ;;  %v2027_v14 = vpop.permute.xlu0 %2026 }
 0x256   : > { %2787 = vst.msk [vmem:[#allocation2 + $0x730] sm:$0xff] %vm1863_vm0, %v2633_v18  ;;  %2210 = vst.msk [vmem:[#allocation2 + $0x248] sm:$0xff] %vm1863_vm0, %v2027_v14  ;;  %v16804_v18 = vpack.i.bf16 %v11576_v27, %v11368_v20 }
 0x257   : > { %2588 = vrot.lane.b32.xlu1 %v11829_v13, %s10745_s14  ;;  %v1174_v44 = vpop.f32.mrb[108].mxu0  ;;  %v1494_v34 = vpop.f32.mrb[108].mxu1 }
 0x258   : > { %v12143_v45 = vpop.f32.mrb[109].mxu0  ;;  %v12145_v52 = vpop.f32.mrb[109].mxu1 }
 0x259   : > { %v2025_v38 = vpop.permute.xlu1 %2024  ;;  %v2091_v39 = vpop.permute.xlu0 %2090  ;;  %9481 = vxpose.xlu0.b32.start [1/16] %v16802_v28, 128 }
 0x25a   : > { %2209 = vst.msk [vmem:[#allocation2 + $0x240] sm:$0xff] %vm1863_vm0, %v2025_v38  ;;  %2242 = vst.msk [vmem:[#allocation2 + $0x348] sm:$0xff] %vm1863_vm0, %v2091_v39  ;;  %v1178_v13 = vpop.f32.mrb[110].mxu0  ;;  %v1498_v0 = vpop.f32.mrb[110].mxu1 }
 0x25b   : > { %2044 = vrot.lane.b32.xlu1 %v11885_v63, %s10743_s9  ;;  %v12158_v15 = vpack.c.bf16 %v1178_v13, %v1174_v44  ;;  %v12160_v47 = vpop.f32.mrb[111].mxu0  ;;  %v12162_v12 = vpack.c.bf16 %v1498_v0, %v1494_v34  ;;  %v12164_v1 = vpop.f32.mrb[111].mxu1 }
 0x25c   : > { %16803 = vst [vmem:[#allocation140_spill] sm:$0xff] %v12164_v1 }
 0x25d   : > { %v2089_v39 = vpop.permute.xlu1 %2088  ;;  %v2301_v14 = vpop.permute.xlu0 %2300  ;;  %9483 = vxpose.xlu0.b32.cont [2/16] %v16804_v18, 128  ;;  %1891 = vst.msk [vmem:[#allocation2 + $0xd8] sm:$0xff] %vm1863_vm0, %v12158_v15  ;;  %1923 = vst.msk [vmem:[#allocation2 + $0x1d8] sm:$0xff] %vm1863_vm0, %v12162_v12  ;;  %v16805_v18 = vpack.i.bf16 %v11598_v62, %v11384_v24 }
 0x25e   : > { %2241 = vst.msk [vmem:[#allocation2 + $0x340] sm:$0xff] %vm1863_vm0, %v2089_v39  ;;  %2484 = vst.msk [vmem:[#allocation2 + $0x448] sm:$0xff] %vm1863_vm0, %v2301_v14  ;;  %v16808_v39 = vpack.i.bf16 %v11608_v42, %v11394_v32 }
 0x25f   : > { %2108 = vrot.lane.b32.xlu1 %v11887_v17, %s10743_s9  ;;  %v1184_v0 = vpop.f32.mrb[112].mxu0  ;;  %v1504_v13 = vpop.f32.mrb[112].mxu1 }
 0x260   : > { %v12181_v44 = vpop.f32.mrb[113].mxu0  ;;  %v12183_v34 = vpop.f32.mrb[113].mxu1 }
 0x261   : > { %v2299_v20 = vpop.permute.xlu1 %2298  ;;  %v2365_v27 = vpop.permute.xlu0 %2364  ;;  %9485 = vxpose.xlu0.b32.cont [3/16] %v16805_v18, 128 }
 0x262   : > { %2483 = vst.msk [vmem:[#allocation2 + $0x440] sm:$0xff] %vm1863_vm0, %v2299_v20  ;;  %2516 = vst.msk [vmem:[#allocation2 + $0x548] sm:$0xff] %vm1863_vm0, %v2365_v27  ;;  %v1188_v38 = vpop.f32.mrb[114].mxu0  ;;  %v1508_v28 = vpop.f32.mrb[114].mxu1 }
 0x263   : > { %2318 = vrot.lane.b32.xlu1 %v11885_v63, %s10744_s10  ;;  %v12196_v5 = vpack.c.bf16 %v1188_v38, %v1184_v0  ;;  %v12198_v1 = vpop.f32.mrb[115].mxu0  ;;  %v12200_v24 = vpack.c.bf16 %v1508_v28, %v1504_v13  ;;  %v12202_v62 = vpop.f32.mrb[115].mxu1 }
 0x265   : > { %16806 = vst [vmem:[#allocation141_spill] sm:$0xff] %v12196_v5  ;;  %16807 = vst [vmem:[#allocation142_spill] sm:$0xff] %v12200_v24  ;;  %v2363_v27 = vpop.permute.xlu1 %2362  ;;  %v2575_v14 = vpop.permute.xlu0 %2574  ;;  %9487 = vxpose.xlu0.b32.cont [4/16] %v16808_v39, 128  ;;  %v16810_v39 = vpack.i.bf16 %v11630_v50, %v11410_v35 }
 0x266   : > { %1892 = vst.msk [vmem:[#allocation2 + $0xe0] sm:$0xff] %vm1863_vm0, %v12196_v5  ;;  %1924 = vst.msk [vmem:[#allocation2 + $0x1e0] sm:$0xff] %vm1863_vm0, %v12200_v24 }
 0x267   : > { %2515 = vst.msk [vmem:[#allocation2 + $0x540] sm:$0xff] %vm1863_vm0, %v2363_v27  ;;  %2758 = vst.msk [vmem:[#allocation2 + $0x648] sm:$0xff] %vm1863_vm0, %v2575_v14  ;;  %2382 = vrot.lane.b32.xlu1 %v11887_v17, %s10744_s10  ;;  %v1194_v28 = vpop.f32.mrb[116].mxu0  ;;  %v1514_v38 = vpop.f32.mrb[116].mxu1  ;;  %v16814_v27 = vpack.i.bf16 %v11640_v2, %v11420_v43 }
 0x268   : > { %v12219_v0 = vpop.f32.mrb[117].mxu0  ;;  %v12221_v13 = vpop.f32.mrb[117].mxu1 }
 0x269   : > { %16809 = vst [vmem:[#allocation143_spill] sm:$0xff] %v12221_v13  ;;  %v2573_v32 = vpop.permute.xlu1 %2572  ;;  %v2639_v42 = vpop.permute.xlu0 %2638  ;;  %9489 = vxpose.xlu0.b32.cont [5/16] %v16810_v39, 128 }
 0x26a   : > { %2757 = vst.msk [vmem:[#allocation2 + $0x640] sm:$0xff] %vm1863_vm0, %v2573_v32  ;;  %2790 = vst.msk [vmem:[#allocation2 + $0x748] sm:$0xff] %vm1863_vm0, %v2639_v42  ;;  %v1198_v20 = vpop.f32.mrb[118].mxu0  ;;  %v1518_v18 = vpop.f32.mrb[118].mxu1 }
 0x26b   : > { %2592 = vrot.lane.b32.xlu1 %v11885_v63, %s10745_s14  ;;  %v12234_v17 = vpack.c.bf16 %v1198_v20, %v1194_v28  ;;  %v12236_v53 = vpop.f32.mrb[119].mxu0  ;;  %v12238_v35 = vpack.c.bf16 %v1518_v18, %v1514_v38  ;;  %v12240_v50 = vpop.f32.mrb[119].mxu1 }
 0x26c   : > { %16813 = vst [vmem:[#allocation146_spill] sm:$0xff] %v12240_v50 }
 0x26d   : > { %16811 = vst [vmem:[#allocation144_spill] sm:$0xff] %v12234_v17  ;;  %16812 = vst [vmem:[#allocation145_spill] sm:$0xff] %v12238_v35  ;;  %v2637_v42 = vpop.permute.xlu1 %2636  ;;  %v2031_v14 = vpop.permute.xlu0 %2030  ;;  %9491 = vxpose.xlu0.b32.cont [6/16] %v16814_v27, 128  ;;  %v16816_v27 = vpack.i.bf16 %v11662_v40, %v11440_v48 }
 0x26e   : > { %1893 = vst.msk [vmem:[#allocation2 + $0xe8] sm:$0xff] %vm1863_vm0, %v12234_v17  ;;  %1925 = vst.msk [vmem:[#allocation2 + $0x1e8] sm:$0xff] %vm1863_vm0, %v12238_v35 }
 0x26f   : > { %2789 = vst.msk [vmem:[#allocation2 + $0x740] sm:$0xff] %vm1863_vm0, %v2637_v42  ;;  %2212 = vst.msk [vmem:[#allocation2 + $0x258] sm:$0xff] %vm1863_vm0, %v2031_v14  ;;  %2048 = vrot.lane.b32.xlu1 %v11941_v26, %s10743_s9  ;;  %v1204_v18 = vpop.f32.mrb[120].mxu0  ;;  %v1524_v20 = vpop.f32.mrb[120].mxu1  ;;  %v16820_v42 = vld [vmem:[#allocation73_spill] sm:$0xff] }
 0x270   : > { %v12257_v28 = vpop.f32.mrb[121].mxu0  ;;  %v12259_v38 = vpop.f32.mrb[121].mxu1 }
 0x271   : > { %16815 = vst [vmem:[#allocation147_spill] sm:$0xff] %v12259_v38  ;;  %v2029_v43 = vpop.permute.xlu1 %2028  ;;  %v2095_v2 = vpop.permute.xlu0 %2094  ;;  %9493 = vxpose.xlu0.b32.cont [7/16] %v16816_v27, 128  ;;  %v16822_v38 = vpack.i.bf16 %v16820_v42, %v16821_v55  ;;  %v16824_v42 = vld [vmem:[#allocation76_spill] sm:$0xff] }
 0x272   : > { %2211 = vst.msk [vmem:[#allocation2 + $0x250] sm:$0xff] %vm1863_vm0, %v2029_v43  ;;  %2244 = vst.msk [vmem:[#allocation2 + $0x358] sm:$0xff] %vm1863_vm0, %v2095_v2  ;;  %v1208_v32 = vpop.f32.mrb[122].mxu0  ;;  %v1528_v39 = vpop.f32.mrb[122].mxu1  ;;  %v16825_v43 = vld [vmem:[#allocation34_spill] sm:$0xff] }
 0x273   : > { %2112 = vrot.lane.b32.xlu1 %v11943_v29, %s10743_s9  ;;  %v12272_v63 = vpack.c.bf16 %v1208_v32, %v1204_v18  ;;  %v12274_v35 = vpop.f32.mrb[123].mxu0  ;;  %v12276_v48 = vpack.c.bf16 %v1528_v39, %v1524_v20  ;;  %v12278_v40 = vpop.f32.mrb[123].mxu1  ;;  %v16826_v27 = vpack.i.bf16 %v16824_v42, %v16825_v43  ;;  %v16828_v42 = vld [vmem:[#allocation128_spill] sm:$0xff] }
 0x274   : > { %16819 = vst [vmem:[#allocation150_spill] sm:$0xff] %v12278_v40 }
 0x275   : > { %16817 = vst [vmem:[#allocation148_spill] sm:$0xff] %v12272_v63  ;;  %16818 = vst [vmem:[#allocation149_spill] sm:$0xff] %v12276_v48  ;;  %v2093_v2 = vpop.permute.xlu1 %2092  ;;  %v2305_v14 = vpop.permute.xlu0 %2304  ;;  %9495 = vxpose.xlu0.b32.cont [8/16] %v16822_v38, 128 }
 0x276   : > { %1894 = vst.msk [vmem:[#allocation2 + $0xf0] sm:$0xff] %vm1863_vm0, %v12272_v63  ;;  %1926 = vst.msk [vmem:[#allocation2 + $0x1f0] sm:$0xff] %vm1863_vm0, %v12276_v48 }
 0x277   : > { %2243 = vst.msk [vmem:[#allocation2 + $0x350] sm:$0xff] %vm1863_vm0, %v2093_v2  ;;  %2486 = vst.msk [vmem:[#allocation2 + $0x458] sm:$0xff] %vm1863_vm0, %v2305_v14  ;;  %2322 = vrot.lane.b32.xlu1 %v11941_v26, %s10744_s10  ;;  %v1214_v39 = vpop.f32.mrb[124].mxu0  ;;  %v1534_v32 = vpop.f32.mrb[124].mxu1  ;;  %v16829_v2 = vld [vmem:[#allocation129_spill] sm:$0xff] }
 0x278   : > { %v12295_v18 = vpop.f32.mrb[125].mxu0  ;;  %v12297_v20 = vpop.f32.mrb[125].mxu1 }
 0x279   : > { %16823 = vst [vmem:[#allocation73_spill] sm:$0xff] %v12297_v20  ;;  %v2303_v55 = vpop.permute.xlu1 %2302  ;;  %v2369_v38 = vpop.permute.xlu0 %2368  ;;  %9497 = vxpose.xlu0.b32.cont [9/16] %v16826_v27, 128  ;;  %v16830_v20 = vld [vmem:[#allocation79_spill] sm:$0xff] }
 0x27a   : > { %2485 = vst.msk [vmem:[#allocation2 + $0x450] sm:$0xff] %vm1863_vm0, %v2303_v55  ;;  %2518 = vst.msk [vmem:[#allocation2 + $0x558] sm:$0xff] %vm1863_vm0, %v2369_v38  ;;  %v1218_v40 = vpop.f32.mrb[126].mxu0  ;;  %v1538_v51 = vpop.f32.mrb[126].mxu1  ;;  %v16832_v13 = vpack.i.bf16 %v16830_v20, %v16831_v57  ;;  %v16836_v57 = vld [vmem:[#allocation122_spill] sm:$0xff] }
 0x27b   : > { %2386 = vrot.lane.b32.xlu1 %v11943_v29, %s10744_s10  ;;  %v12310_v50 = vpack.c.bf16 %v1218_v40, %v1214_v39  ;;  %v12312_v17 = vpop.f32.mrb[127].mxu0  ;;  %v12314_v27 = vpack.c.bf16 %v1538_v51, %v1534_v32  ;;  %v12316_v43 = vpop.f32.mrb[127].mxu1  ;;  %v16833_v39 = vld [vmem:[#allocation82_spill] sm:$0xff]  ;;  %v16834_v32 = vld [vmem:[#allocation40_spill] sm:$0xff] }
 0x27c   : > { %v16835_v55 = vpack.i.bf16 %v16833_v39, %v16834_v32  ;;  %v16840_v39 = vld [vmem:[#allocation123_spill] sm:$0xff]  ;;  %v16841_v32 = vld [vmem:[#allocation88_spill] sm:$0xff] }
 0x27d   : > { %v2367_v38 = vpop.permute.xlu1 %2366  ;;  %v2579_v41 = vpop.permute.xlu0 %2578  ;;  %9499 = vxpose.xlu0.b32.cont [10/16] %v16832_v13, 128  ;;  %1895 = vst.msk [vmem:[#allocation2 + $0xf8] sm:$0xff] %vm1863_vm0, %v12310_v50  ;;  %1927 = vst.msk [vmem:[#allocation2 + $0x1f8] sm:$0xff] %vm1863_vm0, %v12314_v27 }
 0x27e   : > { %2517 = vst.msk [vmem:[#allocation2 + $0x550] sm:$0xff] %vm1863_vm0, %v2367_v38  ;;  %2760 = vst.msk [vmem:[#allocation2 + $0x658] sm:$0xff] %vm1863_vm0, %v2579_v41  ;;  %v16837_v38 = vld [vmem:[#allocation85_spill] sm:$0xff]  ;;  %v16838_v41 = vld [vmem:[#allocation43_spill] sm:$0xff] }
 0x27f   : > { %2596 = vrot.lane.b32.xlu1 %v11941_v26, %s10745_s14  ;;  %v16839_v14 = vpack.i.bf16 %v16837_v38, %v16838_v41  ;;  %v16844_v38 = vld [vmem:[#allocation91_spill] sm:$0xff] }
 0x281   : > { %v2577_v51 = vpop.permute.xlu1 %2576  ;;  %v2643_v40 = vpop.permute.xlu0 %2642  ;;  %9501 = vxpose.xlu0.b32.cont [11/16] %v16835_v55, 128 }
 0x282   : > { %2759 = vst.msk [vmem:[#allocation2 + $0x650] sm:$0xff] %vm1863_vm0, %v2577_v51  ;;  %2792 = vst.msk [vmem:[#allocation2 + $0x758] sm:$0xff] %vm1863_vm0, %v2643_v40  ;;  %v16842_v40 = vld [vmem:[#allocation47_spill] sm:$0xff] }
 0x283   : > { %2052 = vrot.lane.b32.xlu1 %v16836_v57, %s10743_s9  ;;  %v16843_v26 = vpack.i.bf16 %v16841_v32, %v16842_v40  ;;  %v16847_v32 = vld [vmem:[#allocation94_spill] sm:$0xff] }
 0x285   : > { %v2641_v13 = vpop.permute.xlu1 %2640  ;;  %v2035_v20 = vpop.permute.xlu0 %2034  ;;  %9503 = vxpose.xlu0.b32.cont [12/16] %v16839_v14, 128 }
 0x286   : > { %2791 = vst.msk [vmem:[#allocation2 + $0x750] sm:$0xff] %vm1863_vm0, %v2641_v13  ;;  %2214 = vst.msk [vmem:[#allocation2 + $0x268] sm:$0xff] %vm1863_vm0, %v2035_v20  ;;  %v16845_v20 = vld [vmem:[#allocation50_spill] sm:$0xff] }
 0x287   : > { %2116 = vrot.lane.b32.xlu1 %v16840_v39, %s10743_s9  ;;  %v16846_v41 = vpack.i.bf16 %v16844_v38, %v16845_v20  ;;  %v16850_v20 = vld [vmem:[#allocation98_spill] sm:$0xff] }
 0x289   : > { %v2033_v55 = vpop.permute.xlu1 %2032  ;;  %v2099_v51 = vpop.permute.xlu0 %2098  ;;  %9505 = vxpose.xlu0.b32.cont [13/16] %v16843_v26, 128 }
 0x28a   : > { %2213 = vst.msk [vmem:[#allocation2 + $0x260] sm:$0xff] %vm1863_vm0, %v2033_v55  ;;  %2246 = vst.msk [vmem:[#allocation2 + $0x368] sm:$0xff] %vm1863_vm0, %v2099_v51  ;;  %v16848_v51 = vld [vmem:[#allocation53_spill] sm:$0xff] }
 0x28b   : > { %2326 = vrot.lane.b32.xlu1 %v16836_v57, %s10744_s10  ;;  %v16849_v40 = vpack.i.bf16 %v16847_v32, %v16848_v51  ;;  %v16853_v51 = vld [vmem:[#allocation58_spill] sm:$0xff] }
 0x28d   : > { %v2097_v14 = vpop.permute.xlu1 %2096  ;;  %v2309_v13 = vpop.permute.xlu0 %2308  ;;  %9507 = vxpose.xlu0.b32.cont [14/16] %v16846_v41, 128 }
 0x28e   : > { %2245 = vst.msk [vmem:[#allocation2 + $0x360] sm:$0xff] %vm1863_vm0, %v2097_v14  ;;  %2488 = vst.msk [vmem:[#allocation2 + $0x468] sm:$0xff] %vm1863_vm0, %v2309_v13  ;;  %v16851_v13 = vld [vmem:[#allocation56_spill] sm:$0xff] }
 0x28f   : > { %2390 = vrot.lane.b32.xlu1 %v16840_v39, %s10744_s10  ;;  %v16852_v41 = vpack.i.bf16 %v16850_v20, %v16851_v13  ;;  %v16856_v13 = vld [vmem:[#allocation61_spill] sm:$0xff] }
 0x291   : > { %v2307_v26 = vpop.permute.xlu1 %2306  ;;  %v2373_v55 = vpop.permute.xlu0 %2372  ;;  %9509 = vxpose.xlu0.b32.cont [15/16] %v16849_v40, 128 }
 0x292   : > { %2487 = vst.msk [vmem:[#allocation2 + $0x460] sm:$0xff] %vm1863_vm0, %v2307_v26  ;;  %2520 = vst.msk [vmem:[#allocation2 + $0x568] sm:$0xff] %vm1863_vm0, %v2373_v55  ;;  %v16854_v55 = vld [vmem:[#allocation17_spill] sm:$0xff] }
 0x293   : > { %2600 = vrot.lane.b32.xlu1 %v16836_v57, %s10745_s14  ;;  %v16855_v40 = vpack.i.bf16 %v16853_v51, %v16854_v55  ;;  %v16859_v55 = vld [vmem:[#allocation62_spill] sm:$0xff] }
 0x295   : > { %v2371_v38 = vpop.permute.xlu1 %2370  ;;  %v2583_v14 = vpop.permute.xlu0 %2582  ;;  %9511 = vxpose.xlu0.b32.end [16/16] %v16852_v41, 128 }
 0x296   : > { %2519 = vst.msk [vmem:[#allocation2 + $0x560] sm:$0xff] %vm1863_vm0, %v2371_v38  ;;  %2762 = vst.msk [vmem:[#allocation2 + $0x668] sm:$0xff] %vm1863_vm0, %v2583_v14  ;;  %v16857_v14 = vld [vmem:[#allocation20_spill] sm:$0xff] }
 0x297   : > { %2056 = vrot.lane.b32.xlu1 %v12055_v59, %s10743_s9  ;;  %v16858_v41 = vpack.i.bf16 %v16856_v13, %v16857_v14  ;;  %v16862_v14 = vld [vmem:[#allocation65_spill] sm:$0xff] }
 0x299   : > { %v2581_v32 = vpop.permute.xlu1 %2580  ;;  %v2647_v26 = vpop.permute.xlu0 %2646  ;;  %9593 = vxpose.xlu0.b32.start [1/16] %v16855_v40, 128 }
 0x29a   : > { %2761 = vst.msk [vmem:[#allocation2 + $0x660] sm:$0xff] %vm1863_vm0, %v2581_v32  ;;  %2794 = vst.msk [vmem:[#allocation2 + $0x768] sm:$0xff] %vm1863_vm0, %v2647_v26  ;;  %v16860_v26 = vld [vmem:[#allocation21_spill] sm:$0xff] }
 0x29b   : > { %2120 = vrot.lane.b32.xlu1 %v12057_v4, %s10743_s9  ;;  %v16861_v40 = vpack.i.bf16 %v16859_v55, %v16860_v26  ;;  %v16865_v26 = vld [vmem:[#allocation66_spill] sm:$0xff] }
 0x29d   : > { %v2645_v20 = vpop.permute.xlu1 %2644  ;;  %v2039_v38 = vpop.permute.xlu0 %2038  ;;  %9595 = vxpose.xlu0.b32.cont [2/16] %v16858_v41, 128 }
 0x29e   : > { %2793 = vst.msk [vmem:[#allocation2 + $0x760] sm:$0xff] %vm1863_vm0, %v2645_v20  ;;  %2216 = vst.msk [vmem:[#allocation2 + $0x278] sm:$0xff] %vm1863_vm0, %v2039_v38  ;;  %v16863_v38 = vld [vmem:[#allocation23_spill] sm:$0xff] }
 0x29f   : > { %2330 = vrot.lane.b32.xlu1 %v12055_v59, %s10744_s10  ;;  %v16864_v41 = vpack.i.bf16 %v16862_v14, %v16863_v38  ;;  %v16868_v38 = vld [vmem:[#allocation69_spill] sm:$0xff] }
 0x2a1   : > { %v2037_v51 = vpop.permute.xlu1 %2036  ;;  %v2103_v32 = vpop.permute.xlu0 %2102  ;;  %9597 = vxpose.xlu0.b32.cont [3/16] %v16861_v40, 128 }
 0x2a2   : > { %2215 = vst.msk [vmem:[#allocation2 + $0x270] sm:$0xff] %vm1863_vm0, %v2037_v51  ;;  %2248 = vst.msk [vmem:[#allocation2 + $0x378] sm:$0xff] %vm1863_vm0, %v2103_v32  ;;  %v16866_v32 = vld [vmem:[#allocation25_spill] sm:$0xff] }
 0x2a3   : > { %2394 = vrot.lane.b32.xlu1 %v12057_v4, %s10744_s10  ;;  %v16867_v40 = vpack.i.bf16 %v16865_v26, %v16866_v32  ;;  %v16872_v32 = vld [vmem:[#allocation29_spill] sm:$0xff] }
 0x2a5   : > { %v2101_v13 = vpop.permute.xlu1 %2100  ;;  %v2313_v20 = vpop.permute.xlu0 %2312  ;;  %9599 = vxpose.xlu0.b32.cont [4/16] %v16864_v41, 128 }
 0x2a6   : > { %2247 = vst.msk [vmem:[#allocation2 + $0x370] sm:$0xff] %vm1863_vm0, %v2101_v13  ;;  %2490 = vst.msk [vmem:[#allocation2 + $0x478] sm:$0xff] %vm1863_vm0, %v2313_v20  ;;  %v16869_v20 = vld [vmem:[#allocation28_spill] sm:$0xff] }
 0x2a7   : > { %2604 = vrot.lane.b32.xlu1 %v12055_v59, %s10745_s14  ;;  %v16870_v41 = vpack.i.bf16 %v16868_v38, %v16869_v20  ;;  %v16874_v38 = vld [vmem:[#allocation74_spill] sm:$0xff]  ;;  %v16875_v20 = vld [vmem:[#allocation31_spill] sm:$0xff] }
 0x2a9   : > { %v2311_v55 = vpop.permute.xlu1 %2310  ;;  %v2377_v51 = vpop.permute.xlu0 %2376  ;;  %9601 = vxpose.xlu0.b32.cont [5/16] %v16867_v40, 128 }
 0x2aa   : > { %2489 = vst.msk [vmem:[#allocation2 + $0x470] sm:$0xff] %vm1863_vm0, %v2311_v55  ;;  %2522 = vst.msk [vmem:[#allocation2 + $0x578] sm:$0xff] %vm1863_vm0, %v2377_v51  ;;  %v16871_v55 = vld [vmem:[#allocation70_spill] sm:$0xff] }
 0x2ab   : > { %2060 = vrot.lane.b32.xlu1 %v12119_v10, %s10743_s9  ;;  %v16873_v51 = vpack.i.bf16 %v16871_v55, %v16872_v32  ;;  %v16881_v32 = vld [vmem:[#allocation39_spill] sm:$0xff] }
 0x2ad   : > { %v2375_v14 = vpop.permute.xlu1 %2374  ;;  %v2587_v13 = vpop.permute.xlu0 %2586  ;;  %9603 = vxpose.xlu0.b32.cont [6/16] %v16870_v41, 128  ;;  %v16876_v41 = vpack.i.bf16 %v16874_v38, %v16875_v20  ;;  %v16884_v20 = vld [vmem:[#allocation41_spill] sm:$0xff] }
 0x2ae   : > { %2521 = vst.msk [vmem:[#allocation2 + $0x570] sm:$0xff] %vm1863_vm0, %v2375_v14  ;;  %2764 = vst.msk [vmem:[#allocation2 + $0x678] sm:$0xff] %vm1863_vm0, %v2587_v13  ;;  %v16877_v14 = vld [vmem:[#allocation75_spill] sm:$0xff] }
 0x2af   : > { %2124 = vrot.lane.b32.xlu1 %v12121_v54, %s10743_s9  ;;  %v16878_v13 = vld [vmem:[#allocation35_spill] sm:$0xff] }
 0x2b0   : > { %v16879_v59 = vpack.i.bf16 %v16877_v14, %v16878_v13  ;;  %v16886_v14 = vld [vmem:[#allocation86_spill] sm:$0xff]  ;;  %v16887_v13 = vld [vmem:[#allocation45_spill] sm:$0xff] }
 0x2b1   : > { %v2585_v26 = vpop.permute.xlu1 %2584  ;;  %9605 = vxpose.xlu0.b32.cont [7/16] %v16873_v51, 128 }
 0x2b2   : > { %2763 = vst.msk [vmem:[#allocation2 + $0x670] sm:$0xff] %vm1863_vm0, %v2585_v26  ;;  %v16880_v26 = vld [vmem:[#allocation80_spill] sm:$0xff] }
 0x2b3   : > { %2334 = vrot.lane.b32.xlu1 %v12119_v10, %s10744_s10  ;;  %v16882_v51 = vpack.i.bf16 %v16880_v26, %v16881_v32  ;;  %v16889_v32 = vld [vmem:[#allocation87_spill] sm:$0xff] }
 0x2b5   : > { %v2649_v40 = vpop.permute.xlu1 %2648  ;;  %9607 = vxpose.xlu0.b32.cont [8/16] %v16876_v41, 128 }
 0x2b6   : > { %2795 = vst.msk [vmem:[#allocation2 + $0x770] sm:$0xff] %vm1863_vm0, %v2649_v40  ;;  %v16883_v40 = vld [vmem:[#allocation81_spill] sm:$0xff] }
 0x2b7   : > { %2398 = vrot.lane.b32.xlu1 %v12121_v54, %s10744_s10  ;;  %v16885_v41 = vpack.i.bf16 %v16883_v40, %v16884_v20  ;;  %v16892_v20 = vld [vmem:[#allocation92_spill] sm:$0xff] }
 0x2b9   : > { %9609 = vxpose.xlu0.b32.cont [9/16] %v16879_v59, 128  ;;  %v2041_v55 = vpop.permute.xlu1 %2040 }
 0x2ba   : > { %2217 = vst.msk [vmem:[#allocation2 + $0x280] sm:$0xff] %vm1863_vm0, %v2041_v55  ;;  %v16888_v55 = vpack.i.bf16 %v16886_v14, %v16887_v13  ;;  %v16895_v13 = vld [vmem:[#allocation93_spill] sm:$0xff] }
 0x2bb   : > { %2608 = vrot.lane.b32.xlu1 %v12119_v10, %s10745_s14 }
 0x2bd   : > { %9611 = vxpose.xlu0.b32.cont [10/16] %v16882_v51, 128  ;;  %v2105_v38 = vpop.permute.xlu1 %2104  ;;  %v16890_v51 = vld [vmem:[#allocation46_spill] sm:$0xff] }
 0x2be   : > { %2249 = vst.msk [vmem:[#allocation2 + $0x380] sm:$0xff] %vm1863_vm0, %v2105_v38  ;;  %v16891_v38 = vpack.i.bf16 %v16889_v32, %v16890_v51  ;;  %v16898_v51 = vld [vmem:[#allocation97_spill] sm:$0xff] }
 0x2bf   : > { %2064 = vrot.lane.b32.xlu1 %v12196_v5, %s10743_s9 }
 0x2c1   : > { %9613 = vxpose.xlu0.b32.cont [11/16] %v16885_v41, 128  ;;  %v2315_v59 = vpop.permute.xlu1 %2314  ;;  %v16893_v41 = vld [vmem:[#allocation51_spill] sm:$0xff] }
 0x2c2   : > { %2491 = vst.msk [vmem:[#allocation2 + $0x480] sm:$0xff] %vm1863_vm0, %v2315_v59  ;;  %v16894_v59 = vpack.i.bf16 %v16892_v20, %v16893_v41 }
 0x2c3   : > { %2128 = vrot.lane.b32.xlu1 %v12200_v24, %s10743_s9 }
 0x2c5   : > { %9615 = vxpose.xlu0.b32.cont [12/16] %v16888_v55, 128  ;;  %v2379_v26 = vpop.permute.xlu1 %2378  ;;  %v16896_v55 = vld [vmem:[#allocation52_spill] sm:$0xff] }
 0x2c6   : > { %2523 = vst.msk [vmem:[#allocation2 + $0x580] sm:$0xff] %vm1863_vm0, %v2379_v26  ;;  %v16897_v26 = vpack.i.bf16 %v16895_v13, %v16896_v55 }
 0x2c7   : > { %2338 = vrot.lane.b32.xlu1 %v12196_v5, %s10744_s10 }
 0x2c9   : > { %9617 = vxpose.xlu0.b32.cont [13/16] %v16891_v38, 128  ;;  %v2589_v40 = vpop.permute.xlu1 %2588  ;;  %v16899_v38 = vld [vmem:[#allocation57_spill] sm:$0xff] }
 0x2ca   : > { %2765 = vst.msk [vmem:[#allocation2 + $0x680] sm:$0xff] %vm1863_vm0, %v2589_v40  ;;  %v16900_v40 = vpack.i.bf16 %v16898_v51, %v16899_v38 }
 0x2cb   : > { %2402 = vrot.lane.b32.xlu1 %v12200_v24, %s10744_s10 }
 0x2cd   : > { %9619 = vxpose.xlu0.b32.cont [14/16] %v16894_v59, 128  ;;  %v2045_v14 = vpop.permute.xlu1 %2044 }
 0x2ce   : > { %2219 = vst.msk [vmem:[#allocation2 + $0x290] sm:$0xff] %vm1863_vm0, %v2045_v14 }
 0x2cf   : > { %2612 = vrot.lane.b32.xlu1 %v12196_v5, %s10745_s14 }
 0x2d1   : > { %9621 = vxpose.xlu0.b32.cont [15/16] %v16897_v26, 128  ;;  %v2109_v32 = vpop.permute.xlu1 %2108 }
 0x2d2   : > { %2251 = vst.msk [vmem:[#allocation2 + $0x390] sm:$0xff] %vm1863_vm0, %v2109_v32 }
 0x2d3   : > { %2068 = vrot.lane.b32.xlu1 %v12272_v63, %s10743_s9 }
 0x2d5   : > { %9623 = vxpose.xlu0.b32.end [16/16] %v16900_v40, 128  ;;  %v2319_v20 = vpop.permute.xlu1 %2318 }
 0x2d6   : > { %2493 = vst.msk [vmem:[#allocation2 + $0x490] sm:$0xff] %vm1863_vm0, %v2319_v20 }
 0x2d7   : > { %2132 = vrot.lane.b32.xlu1 %v12276_v48, %s10743_s9 }
 0x2d9   : > { %v2383_v41 = vpop.permute.xlu1 %2382  ;;  %v9512_v59 = vpop.trf.xlu0 }
 0x2da   : > { %2525 = vst.msk [vmem:[#allocation2 + $0x590] sm:$0xff] %vm1863_vm0, %v2383_v41  ;;  %v9516_v14 = vunpack.i.h.bf16 %v9512_v59  ;;  %v9513_v13 = vunpack.i.l.bf16 %v9512_v59 }
 0x2db   : > { %2342 = vrot.lane.b32.xlu1 %v12272_v63, %s10744_s10 }
 0x2dd   : > { %v2593_v55 = vpop.permute.xlu1 %2592  ;;  %v9517_v26 = vpop.trf.xlu0 }
 0x2de   : > { %2767 = vst.msk [vmem:[#allocation2 + $0x690] sm:$0xff] %vm1863_vm0, %v2593_v55  ;;  %v9521_v32 = vunpack.i.h.bf16 %v9517_v26  ;;  %v9518_v51 = vunpack.i.l.bf16 %v9517_v26 }
 0x2df   : > { %2406 = vrot.lane.b32.xlu1 %v12276_v48, %s10744_s10 }
 0x2e0   : > { %v1928_v38 = vpack.c.bf16 %v9518_v51, %v9513_v13  ;;  %v1929_v40 = vpack.c.bf16 %v9521_v32, %v9516_v14 }
 0x2e1   : > { %v2049_v20 = vpop.permute.xlu1 %2048  ;;  %v9522_v5 = vpop.trf.xlu0 }
 0x2e2   : > { %2221 = vst.msk [vmem:[#allocation2 + $0x2a0] sm:$0xff] %vm1863_vm0, %v2049_v20  ;;  %1936 = vst [vmem:[#allocation3] sm:$0xff] %v1928_v38  ;;  %v9526_v41 = vunpack.i.h.bf16 %v9522_v5  ;;  %v9523_v59 = vunpack.i.l.bf16 %v9522_v5 }
 0x2e3   : > { %1937 = vst [vmem:[#allocation3 + $0x8] sm:$0xff] %v1929_v40  ;;  %2616 = vrot.lane.b32.xlu1 %v12272_v63, %s10745_s14 }
 0x2e5   : > { %v2113_v10 = vpop.permute.xlu1 %2112  ;;  %v9527_v55 = vpop.trf.xlu0 }
 0x2e6   : > { %2253 = vst.msk [vmem:[#allocation2 + $0x3a0] sm:$0xff] %vm1863_vm0, %v2113_v10  ;;  %v9531_v26 = vunpack.i.h.bf16 %v9527_v55  ;;  %v9528_v57 = vunpack.i.l.bf16 %v9527_v55 }
 0x2e8   : > { %v2265_v48 = vpack.c.bf16 %v9528_v57, %v9523_v59  ;;  %v2266_v13 = vpack.c.bf16 %v9531_v26, %v9526_v41 }
 0x2e9   : > { %v2323_v14 = vpop.permute.xlu1 %2322  ;;  %v9532_v32 = vpop.trf.xlu0 }
 0x2ea   : > { %2495 = vst.msk [vmem:[#allocation2 + $0x4a0] sm:$0xff] %vm1863_vm0, %v2323_v14  ;;  %2274 = vst [vmem:[#allocation3 + $0x40] sm:$0xff] %v2265_v48  ;;  %v9536_v51 = vunpack.i.h.bf16 %v9532_v32  ;;  %v9533_v38 = vunpack.i.l.bf16 %v9532_v32 }
 0x2eb   : > { %2275 = vst [vmem:[#allocation3 + $0x48] sm:$0xff] %v2266_v13 }
 0x2ed   : > { %v2387_v40 = vpop.permute.xlu1 %2386  ;;  %v9537_v20 = vpop.trf.xlu0 }
 0x2ee   : > { %2527 = vst.msk [vmem:[#allocation2 + $0x5a0] sm:$0xff] %vm1863_vm0, %v2387_v40  ;;  %v9541_v5 = vunpack.i.h.bf16 %v9537_v20  ;;  %v9538_v63 = vunpack.i.l.bf16 %v9537_v20 }
 0x2f0   : > { %v2539_v24 = vpack.c.bf16 %v9538_v63, %v9533_v38  ;;  %v2540_v10 = vpack.c.bf16 %v9541_v5, %v9536_v51  ;;  %v16901_v38 = vld [vmem:[#allocation105_spill] sm:$0xff] }
 0x2f1   : > { %v2597_v54 = vpop.permute.xlu1 %2596  ;;  %v9542_v55 = vpop.trf.xlu0 }
 0x2f2   : > { %2769 = vst.msk [vmem:[#allocation2 + $0x6a0] sm:$0xff] %vm1863_vm0, %v2597_v54  ;;  %2548 = vst [vmem:[#allocation3 + $0x80] sm:$0xff] %v2539_v24  ;;  %v9546_v57 = vunpack.i.h.bf16 %v9542_v55  ;;  %v9543_v41 = vunpack.i.l.bf16 %v9542_v55 }
 0x2f3   : > { %2549 = vst [vmem:[#allocation3 + $0x88] sm:$0xff] %v2540_v10 }
 0x2f5   : > { %v2053_v48 = vpop.permute.xlu1 %2052  ;;  %v9547_v59 = vpop.trf.xlu0 }
 0x2f6   : > { %2223 = vst.msk [vmem:[#allocation2 + $0x2b0] sm:$0xff] %vm1863_vm0, %v2053_v48  ;;  %v9551_v26 = vunpack.i.h.bf16 %v9547_v59  ;;  %v9548_v13 = vunpack.i.l.bf16 %v9547_v59  ;;  %v16902_v59 = vld [vmem:[#allocation106_spill] sm:$0xff] }
 0x2f8   : > { %v2813_v14 = vpack.c.bf16 %v9548_v13, %v9543_v41  ;;  %v2814_v32 = vpack.c.bf16 %v9551_v26, %v9546_v57 }
 0x2f9   : > { %v2117_v40 = vpop.permute.xlu1 %2116  ;;  %v9552_v20 = vpop.trf.xlu0 }
 0x2fa   : > { %2255 = vst.msk [vmem:[#allocation2 + $0x3b0] sm:$0xff] %vm1863_vm0, %v2117_v40  ;;  %2822 = vst [vmem:[#allocation3 + $0xc0] sm:$0xff] %v2813_v14  ;;  %v9556_v63 = vunpack.i.h.bf16 %v9552_v20  ;;  %v9553_v54 = vunpack.i.l.bf16 %v9552_v20 }
 0x2fb   : > { %2823 = vst [vmem:[#allocation3 + $0xc8] sm:$0xff] %v2814_v32 }
 0x2fd   : > { %v2327_v24 = vpop.permute.xlu1 %2326  ;;  %v9557_v51 = vpop.trf.xlu0 }
 0x2fe   : > { %2497 = vst.msk [vmem:[#allocation2 + $0x4b0] sm:$0xff] %vm1863_vm0, %v2327_v24  ;;  %2042 = vrot.lane.b32.xlu0 %v16901_v38, %s10743_s9  ;;  %v9561_v5 = vunpack.i.h.bf16 %v9557_v51  ;;  %v9558_v10 = vunpack.i.l.bf16 %v9557_v51 }
 0x300   : > { %v3087_v55 = vpack.c.bf16 %v9558_v10, %v9553_v54  ;;  %v3088_v41 = vpack.c.bf16 %v9561_v5, %v9556_v63  ;;  %v16903_v5 = vpack.i.bf16 %v12047_v9, %v11825_v6  ;;  %v16906_v9 = vld [vmem:[#allocation112_spill] sm:$0xff] }
 0x301   : > { %v2391_v57 = vpop.permute.xlu1 %2390  ;;  %v9562_v48 = vpop.trf.xlu0 }
 0x302   : > { %2529 = vst.msk [vmem:[#allocation2 + $0x5b0] sm:$0xff] %vm1863_vm0, %v2391_v57  ;;  %2106 = vrot.lane.b32.xlu0 %v16902_v59, %s10743_s9  ;;  %3096 = vst [vmem:[#allocation3 + $0x100] sm:$0xff] %v3087_v55  ;;  %v9566_v26 = vunpack.i.h.bf16 %v9562_v48  ;;  %v9563_v13 = vunpack.i.l.bf16 %v9562_v48 }
 0x303   : > { %3097 = vst [vmem:[#allocation3 + $0x108] sm:$0xff] %v3088_v41 }
 0x305   : > { %v2601_v14 = vpop.permute.xlu1 %2600  ;;  %v9567_v32 = vpop.trf.xlu0 }
 0x306   : > { %2771 = vst.msk [vmem:[#allocation2 + $0x6b0] sm:$0xff] %vm1863_vm0, %v2601_v14  ;;  %2316 = vrot.lane.b32.xlu0 %v16901_v38, %s10744_s10  ;;  %v9571_v40 = vunpack.i.h.bf16 %v9567_v32  ;;  %v9568_v20 = vunpack.i.l.bf16 %v9567_v32 }
 0x308   : > { %v3361_v63 = vpack.c.bf16 %v9568_v20, %v9563_v13  ;;  %v3362_v54 = vpack.c.bf16 %v9571_v40, %v9566_v26  ;;  %v16904_v13 = vld [vmem:[#allocation102_spill] sm:$0xff] }
 0x309   : > { %v2057_v24 = vpop.permute.xlu1 %2056  ;;  %v9572_v51 = vpop.trf.xlu0  ;;  %v16905_v14 = vpack.i.bf16 %v12061_v16, %v16904_v13 }
 0x30a   : > { %2225 = vst.msk [vmem:[#allocation2 + $0x2c0] sm:$0xff] %vm1863_vm0, %v2057_v24  ;;  %2380 = vrot.lane.b32.xlu0 %v16902_v59, %s10744_s10  ;;  %3370 = vst [vmem:[#allocation3 + $0x140] sm:$0xff] %v3361_v63  ;;  %v9576_v10 = vunpack.i.h.bf16 %v9572_v51  ;;  %v9573_v55 = vunpack.i.l.bf16 %v9572_v51  ;;  %v16907_v63 = vpack.i.bf16 %v12079_v3, %v11853_v21  ;;  %v16910_v3 = vpack.i.bf16 %v12111_v56, %v11881_v58 }
 0x30b   : > { %3371 = vst [vmem:[#allocation3 + $0x148] sm:$0xff] %v3362_v54  ;;  %v16912_v56 = vpack.i.bf16 %v12143_v45, %v11909_v61  ;;  %v16915_v45 = vld [vmem:[#allocation119_spill] sm:$0xff] }
 0x30c   : > { %9705 = vxpose.xlu1.b32.start [1/16] %v16903_v5, 128  ;;  %v16908_v5 = vld [vmem:[#allocation113_spill] sm:$0xff] }
 0x30d   : > { %v2121_v41 = vpop.permute.xlu1 %2120  ;;  %v9577_v57 = vpop.trf.xlu0 }
 0x30e   : > { %2257 = vst.msk [vmem:[#allocation2 + $0x3c0] sm:$0xff] %vm1863_vm0, %v2121_v41  ;;  %2590 = vrot.lane.b32.xlu0 %v16901_v38, %s10745_s14  ;;  %v9581_v48 = vunpack.i.h.bf16 %v9577_v57  ;;  %v9578_v26 = vunpack.i.l.bf16 %v9577_v57  ;;  %v16909_v41 = vpack.i.bf16 %v12093_v46, %v11863_v22 }
 0x310   : > { %9707 = vxpose.xlu1.b32.cont [2/16] %v16905_v14, 128  ;;  %v3635_v32 = vpack.c.bf16 %v9578_v26, %v9573_v55  ;;  %v3636_v40 = vpack.c.bf16 %v9581_v48, %v9576_v10 }
 0x311   : > { %v2331_v20 = vpop.permute.xlu1 %2330  ;;  %v9582_v6 = vpop.trf.xlu0 }
 0x312   : > { %2499 = vst.msk [vmem:[#allocation2 + $0x4c0] sm:$0xff] %vm1863_vm0, %v2331_v20  ;;  %2046 = vrot.lane.b32.xlu0 %v16906_v9, %s10743_s9  ;;  %3644 = vst [vmem:[#allocation3 + $0x180] sm:$0xff] %v3635_v32  ;;  %v9586_v54 = vunpack.i.h.bf16 %v9582_v6  ;;  %v9583_v24 = vunpack.i.l.bf16 %v9582_v6  ;;  %v16911_v20 = vpack.i.bf16 %v12125_v30, %v11891_v23  ;;  %v16913_v23 = vld [vmem:[#allocation118_spill] sm:$0xff] }
 0x313   : > { %3645 = vst [vmem:[#allocation3 + $0x188] sm:$0xff] %v3636_v40 }
 0x314   : > { %9709 = vxpose.xlu1.b32.cont [3/16] %v16907_v63, 128 }
 0x315   : > { %v2395_v51 = vpop.permute.xlu1 %2394  ;;  %v9587_v16 = vpop.trf.xlu0 }
 0x316   : > { %2531 = vst.msk [vmem:[#allocation2 + $0x5c0] sm:$0xff] %vm1863_vm0, %v2395_v51  ;;  %2110 = vrot.lane.b32.xlu0 %v16908_v5, %s10743_s9  ;;  %v9591_v10 = vunpack.i.h.bf16 %v9587_v16  ;;  %v9588_v55 = vunpack.i.l.bf16 %v9587_v16 }
 0x318   : > { %9711 = vxpose.xlu1.b32.cont [4/16] %v16909_v41, 128  ;;  %v3909_v57 = vpack.c.bf16 %v9588_v55, %v9583_v24  ;;  %v3910_v48 = vpack.c.bf16 %v9591_v10, %v9586_v54  ;;  %v16914_v41 = vpack.i.bf16 %v12160_v47, %v11919_v19 }
 0x319   : > { %v2605_v26 = vpop.permute.xlu1 %2604  ;;  %v9624_v21 = vpop.trf.xlu0 }
 0x31a   : > { %2773 = vst.msk [vmem:[#allocation2 + $0x6c0] sm:$0xff] %vm1863_vm0, %v2605_v26  ;;  %2320 = vrot.lane.b32.xlu0 %v16906_v9, %s10744_s10  ;;  %3918 = vst [vmem:[#allocation3 + $0x1c0] sm:$0xff] %v3909_v57  ;;  %v9628_v13 = vunpack.i.h.bf16 %v9624_v21  ;;  %v9625_v14 = vunpack.i.l.bf16 %v9624_v21  ;;  %v16916_v21 = vpack.i.bf16 %v12181_v44, %v11937_v11  ;;  %v16918_v44 = vpack.i.bf16 %v12219_v0, %v11965_v25  ;;  %v16920_v0 = vld [vmem:[#allocation126_spill] sm:$0xff] }
 0x31b   : > { %3919 = vst [vmem:[#allocation3 + $0x1c8] sm:$0xff] %v3910_v48 }
 0x31c   : > { %9713 = vxpose.xlu1.b32.cont [5/16] %v16910_v3, 128 }
 0x31d   : > { %v2061_v32 = vpop.permute.xlu1 %2060  ;;  %v9629_v22 = vpop.trf.xlu0 }
 0x31e   : > { %2227 = vst.msk [vmem:[#allocation2 + $0x2d0] sm:$0xff] %vm1863_vm0, %v2061_v32  ;;  %2384 = vrot.lane.b32.xlu0 %v16908_v5, %s10744_s10  ;;  %v9633_v46 = vunpack.i.h.bf16 %v9629_v22  ;;  %v9630_v40 = vunpack.i.l.bf16 %v9629_v22  ;;  %v16917_v22 = vpack.i.bf16 %v12198_v1, %v11947_v31 }
 0x320   : > { %9715 = vxpose.xlu1.b32.cont [6/16] %v16911_v20, 128  ;;  %v1932_v6 = vpack.c.bf16 %v9630_v40, %v9625_v14  ;;  %v1933_v63 = vpack.c.bf16 %v9633_v46, %v9628_v13 }
 0x321   : > { %v2125_v54 = vpop.permute.xlu1 %2124  ;;  %v9634_v58 = vpop.trf.xlu0 }
 0x322   : > { %2259 = vst.msk [vmem:[#allocation2 + $0x3d0] sm:$0xff] %vm1863_vm0, %v2125_v54  ;;  %2594 = vrot.lane.b32.xlu0 %v16906_v9, %s10745_s14  ;;  %1940 = vst [vmem:[#allocation3 + $0x20] sm:$0xff] %v1932_v6  ;;  %v9638_v24 = vunpack.i.h.bf16 %v9634_v58  ;;  %v9635_v51 = vunpack.i.l.bf16 %v9634_v58 }
 0x323   : > { %1941 = vst [vmem:[#allocation3 + $0x28] sm:$0xff] %v1933_v63 }
 0x324   : > { %9717 = vxpose.xlu1.b32.cont [7/16] %v16912_v56, 128  ;;  %v16919_v56 = vpack.i.bf16 %v12236_v53, %v11975_v37  ;;  %v16922_v37 = vld [vmem:[#allocation127_spill] sm:$0xff] }
 0x325   : > { %v2335_v16 = vpop.permute.xlu1 %2334  ;;  %v9639_v30 = vpop.trf.xlu0 }
 0x326   : > { %2501 = vst.msk [vmem:[#allocation2 + $0x4d0] sm:$0xff] %vm1863_vm0, %v2335_v16  ;;  %2050 = vrot.lane.b32.xlu0 %v16913_v23, %s10743_s9  ;;  %v9643_v10 = vunpack.i.h.bf16 %v9639_v30  ;;  %v9640_v55 = vunpack.i.l.bf16 %v9639_v30  ;;  %v16921_v30 = vpack.i.bf16 %v12257_v28, %v11993_v8  ;;  %v16924_v28 = vpack.i.bf16 %v12295_v18, %v12021_v7  ;;  %v16926_v18 = vld [vmem:[#allocation130_spill] sm:$0xff] }
 0x328   : > { %9719 = vxpose.xlu1.b32.cont [8/16] %v16914_v41, 128  ;;  %v2269_v57 = vpack.c.bf16 %v9640_v55, %v9635_v51  ;;  %v2270_v48 = vpack.c.bf16 %v9643_v10, %v9638_v24 }
 0x329   : > { %v2399_v26 = vpop.permute.xlu1 %2398  ;;  %v9644_v61 = vpop.trf.xlu0 }
 0x32a   : > { %2533 = vst.msk [vmem:[#allocation2 + $0x5d0] sm:$0xff] %vm1863_vm0, %v2399_v26  ;;  %2114 = vrot.lane.b32.xlu0 %v16915_v45, %s10743_s9  ;;  %2278 = vst [vmem:[#allocation3 + $0x60] sm:$0xff] %v2269_v57  ;;  %v9648_v3 = vunpack.i.h.bf16 %v9644_v61  ;;  %v9645_v13 = vunpack.i.l.bf16 %v9644_v61  ;;  %v16923_v26 = vpack.i.bf16 %v12274_v35, %v12003_v33 }
 0x32b   : > { %2279 = vst [vmem:[#allocation3 + $0x68] sm:$0xff] %v2270_v48 }
 0x32c   : > { %9721 = vxpose.xlu1.b32.cont [9/16] %v16916_v21, 128 }
 0x32d   : > { %v2609_v14 = vpop.permute.xlu1 %2608  ;;  %v9649_v47 = vpop.trf.xlu0 }
 0x32e   : > { %2775 = vst.msk [vmem:[#allocation2 + $0x6d0] sm:$0xff] %vm1863_vm0, %v2609_v14  ;;  %2324 = vrot.lane.b32.xlu0 %v16913_v23, %s10744_s10  ;;  %v9653_v19 = vunpack.i.h.bf16 %v9649_v47  ;;  %v9650_v32 = vunpack.i.l.bf16 %v9649_v47 }
 0x330   : > { %9723 = vxpose.xlu1.b32.cont [10/16] %v16917_v22, 128  ;;  %v2543_v46 = vpack.c.bf16 %v9650_v32, %v9645_v13  ;;  %v2544_v40 = vpack.c.bf16 %v9653_v19, %v9648_v3  ;;  %v16925_v32 = vpack.i.bf16 %v12312_v17, %v16828_v42  ;;  %v16929_v42 = vld [vmem:[#allocation134_spill] sm:$0xff] }
 0x331   : > { %v2065_v20 = vpop.permute.xlu1 %2064  ;;  %v9654_v11 = vpop.trf.xlu0 }
 0x332   : > { %2229 = vst.msk [vmem:[#allocation2 + $0x2e0] sm:$0xff] %vm1863_vm0, %v2065_v20  ;;  %2388 = vrot.lane.b32.xlu0 %v16915_v45, %s10744_s10  ;;  %2552 = vst [vmem:[#allocation3 + $0xa0] sm:$0xff] %v2543_v46  ;;  %v9658_v6 = vunpack.i.h.bf16 %v9654_v11  ;;  %v9655_v63 = vunpack.i.l.bf16 %v9654_v11  ;;  %v16927_v20 = vld [vmem:[#allocation99_spill] sm:$0xff] }
 0x333   : > { %2553 = vst [vmem:[#allocation3 + $0xa8] sm:$0xff] %v2544_v40  ;;  %v16928_v11 = vpack.i.bf16 %v16926_v18, %v16927_v20 }
 0x334   : > { %9725 = vxpose.xlu1.b32.cont [11/16] %v16918_v44, 128 }
 0x335   : > { %v2129_v54 = vpop.permute.xlu1 %2128  ;;  %v9659_v31 = vpop.trf.xlu0 }
 0x336   : > { %2261 = vst.msk [vmem:[#allocation2 + $0x3e0] sm:$0xff] %vm1863_vm0, %v2129_v54  ;;  %2598 = vrot.lane.b32.xlu0 %v16913_v23, %s10745_s14  ;;  %v9663_v1 = vunpack.i.h.bf16 %v9659_v31  ;;  %v9660_v58 = vunpack.i.l.bf16 %v9659_v31 }
 0x338   : > { %9727 = vxpose.xlu1.b32.cont [12/16] %v16919_v56, 128  ;;  %v2817_v24 = vpack.c.bf16 %v9660_v58, %v9655_v63  ;;  %v2818_v51 = vpack.c.bf16 %v9663_v1, %v9658_v6  ;;  %v16930_v1 = vld [vmem:[#allocation132_spill] sm:$0xff]  ;;  %v16931_v58 = vld [vmem:[#allocation103_spill] sm:$0xff] }
 0x339   : > { %v2339_v16 = vpop.permute.xlu1 %2338  ;;  %v9664_v25 = vpop.trf.xlu0  ;;  %v16932_v56 = vpack.i.bf16 %v16930_v1, %v16931_v58  ;;  %v16960_v1 = vld [vmem:[#allocation147_spill] sm:$0xff]  ;;  %v16961_v58 = vld [vmem:[#allocation121_spill] sm:$0xff] }
 0x33a   : > { %2503 = vst.msk [vmem:[#allocation2 + $0x4e0] sm:$0xff] %vm1863_vm0, %v2339_v16  ;;  %2054 = vrot.lane.b32.xlu0 %v16920_v0, %s10743_s9  ;;  %2826 = vst [vmem:[#allocation3 + $0xe0] sm:$0xff] %v2817_v24  ;;  %v9668_v10 = vunpack.i.h.bf16 %v9664_v25  ;;  %v9665_v55 = vunpack.i.l.bf16 %v9664_v25 }
 0x33b   : > { %2827 = vst [vmem:[#allocation3 + $0xe8] sm:$0xff] %v2818_v51 }
 0x33c   : > { %9729 = vxpose.xlu1.b32.cont [13/16] %v16921_v30, 128  ;;  %v16933_v30 = vld [vmem:[#allocation135_spill] sm:$0xff] }
 0x33d   : > { %v2403_v41 = vpop.permute.xlu1 %2402  ;;  %v9669_v53 = vpop.trf.xlu0 }
 0x33e   : > { %2535 = vst.msk [vmem:[#allocation2 + $0x5e0] sm:$0xff] %vm1863_vm0, %v2403_v41  ;;  %2118 = vrot.lane.b32.xlu0 %v16922_v37, %s10743_s9  ;;  %v9673_v57 = vunpack.i.h.bf16 %v9669_v53  ;;  %v9670_v48 = vunpack.i.l.bf16 %v9669_v53 }
 0x340   : > { %9731 = vxpose.xlu1.b32.cont [14/16] %v16923_v26, 128  ;;  %v3091_v61 = vpack.c.bf16 %v9670_v48, %v9665_v55  ;;  %v3092_v21 = vpack.c.bf16 %v9673_v57, %v9668_v10  ;;  %v16934_v10 = vld [vmem:[#allocation133_spill] sm:$0xff]  ;;  %v16935_v55 = vld [vmem:[#allocation104_spill] sm:$0xff] }
 0x341   : > { %v2613_v3 = vpop.permute.xlu1 %2612  ;;  %v9674_v8 = vpop.trf.xlu0  ;;  %v16936_v41 = vpack.i.bf16 %v16934_v10, %v16935_v55  ;;  %v16966_v55 = vld [vmem:[#allocation73_spill] sm:$0xff] }
 0x342   : > { %2777 = vst.msk [vmem:[#allocation2 + $0x6e0] sm:$0xff] %vm1863_vm0, %v2613_v3  ;;  %2328 = vrot.lane.b32.xlu0 %v16920_v0, %s10744_s10  ;;  %3100 = vst [vmem:[#allocation3 + $0x120] sm:$0xff] %v3091_v61  ;;  %v9678_v13 = vunpack.i.h.bf16 %v9674_v8  ;;  %v9675_v14 = vunpack.i.l.bf16 %v9674_v8  ;;  %v16937_v3 = vld [vmem:[#allocation136_spill] sm:$0xff]  ;;  %v16938_v8 = vld [vmem:[#allocation107_spill] sm:$0xff] }
 0x343   : > { %3101 = vst [vmem:[#allocation3 + $0x128] sm:$0xff] %v3092_v21 }
 0x344   : > { %9733 = vxpose.xlu1.b32.cont [15/16] %v16924_v28, 128  ;;  %v16939_v28 = vpack.i.bf16 %v16937_v3, %v16938_v8 }
 0x345   : > { %v2069_v47 = vpop.permute.xlu1 %2068  ;;  %v9679_v33 = vpop.trf.xlu0 }
 0x346   : > { %2231 = vst.msk [vmem:[#allocation2 + $0x2f0] sm:$0xff] %vm1863_vm0, %v2069_v47  ;;  %2392 = vrot.lane.b32.xlu0 %v16922_v37, %s10744_s10  ;;  %v9683_v35 = vunpack.i.h.bf16 %v9679_v33  ;;  %v9680_v19 = vunpack.i.l.bf16 %v9679_v33  ;;  %v16940_v47 = vld [vmem:[#allocation108_spill] sm:$0xff] }
 0x347   : > { %v16941_v33 = vpack.i.bf16 %v12113_v60, %v16940_v47  ;;  %v16947_v60 = vld [vmem:[#allocation114_spill] sm:$0xff] }
 0x348   : > { %9735 = vxpose.xlu1.b32.end [16/16] %v16925_v32, 128  ;;  %v3365_v22 = vpack.c.bf16 %v9680_v19, %v9675_v14  ;;  %v3366_v46 = vpack.c.bf16 %v9683_v35, %v9678_v13  ;;  %v16942_v35 = vld [vmem:[#allocation139_spill] sm:$0xff] }
 0x349   : > { %v2133_v40 = vpop.permute.xlu1 %2132  ;;  %v9684_v7 = vpop.trf.xlu0  ;;  %v16943_v19 = vld [vmem:[#allocation111_spill] sm:$0xff] }
 0x34a   : > { %2263 = vst.msk [vmem:[#allocation2 + $0x3f0] sm:$0xff] %vm1863_vm0, %v2133_v40  ;;  %2602 = vrot.lane.b32.xlu0 %v16920_v0, %s10745_s14  ;;  %3374 = vst [vmem:[#allocation3 + $0x160] sm:$0xff] %v3365_v22  ;;  %v9688_v44 = vunpack.i.h.bf16 %v9684_v7  ;;  %v9685_v6 = vunpack.i.l.bf16 %v9684_v7  ;;  %v16944_v32 = vpack.i.bf16 %v16942_v35, %v16943_v19  ;;  %v16945_v22 = vpack.i.bf16 %v12145_v52, %v11911_v36  ;;  %v16950_v36 = vld [vmem:[#allocation116_spill] sm:$0xff] }
 0x34b   : > { %3375 = vst [vmem:[#allocation3 + $0x168] sm:$0xff] %v3366_v46  ;;  %v16946_v46 = vld [vmem:[#allocation140_spill] sm:$0xff]  ;;  %v16949_v7 = vpack.i.bf16 %v12183_v34, %v11939_v49  ;;  %v16951_v52 = vpack.i.bf16 %v12202_v62, %v16950_v36 }
 0x34c   : > { %9817 = vxpose.xlu1.b32.start [1/16] %v16928_v11, 128  ;;  %v16948_v40 = vpack.i.bf16 %v16946_v46, %v16947_v60  ;;  %v16952_v11 = vld [vmem:[#allocation143_spill] sm:$0xff]  ;;  %v16955_v49 = vld [vmem:[#allocation144_spill] sm:$0xff] }
 0x34d   : > { %v2343_v63 = vpop.permute.xlu1 %2342  ;;  %v9689_v17 = vpop.trf.xlu0 }
 0x34e   : > { %2505 = vst.msk [vmem:[#allocation2 + $0x4f0] sm:$0xff] %vm1863_vm0, %v2343_v63  ;;  %2058 = vrot.lane.b32.xlu0 %v16929_v42, %s10743_s9  ;;  %v9693_v54 = vunpack.i.h.bf16 %v9689_v17  ;;  %v9690_v31 = vunpack.i.l.bf16 %v9689_v17  ;;  %v16956_v63 = vld [vmem:[#allocation146_spill] sm:$0xff]  ;;  %v16957_v17 = vld [vmem:[#allocation120_spill] sm:$0xff] }
 0x34f   : > { %v16958_v62 = vpack.i.bf16 %v16956_v63, %v16957_v17 }
 0x350   : > { %9819 = vxpose.xlu1.b32.cont [2/16] %v16932_v56, 128  ;;  %v3639_v24 = vpack.c.bf16 %v9690_v31, %v9685_v6  ;;  %v3640_v51 = vpack.c.bf16 %v9693_v54, %v9688_v44  ;;  %v16953_v44 = vld [vmem:[#allocation117_spill] sm:$0xff]  ;;  %v16962_v56 = vpack.i.bf16 %v16960_v1, %v16961_v58 }
 0x351   : > { %v2407_v16 = vpop.permute.xlu1 %2406  ;;  %v9694_v25 = vpop.trf.xlu0  ;;  %v16954_v6 = vpack.i.bf16 %v16952_v11, %v16953_v44  ;;  %v16959_v54 = vld [vmem:[#allocation145_spill] sm:$0xff] }
 0x352   : > { %2537 = vst.msk [vmem:[#allocation2 + $0x5f0] sm:$0xff] %vm1863_vm0, %v2407_v16  ;;  %2122 = vrot.lane.b32.xlu0 %v16933_v30, %s10743_s9  ;;  %3648 = vst [vmem:[#allocation3 + $0x1a0] sm:$0xff] %v3639_v24  ;;  %v9698_v53 = vunpack.i.h.bf16 %v9694_v25  ;;  %v9695_v57 = vunpack.i.l.bf16 %v9694_v25  ;;  %v16964_v16 = vld [vmem:[#allocation124_spill] sm:$0xff]  ;;  %v16971_v58 = vld [vmem:[#allocation101_spill] sm:$0xff] }
 0x353   : > { %3649 = vst [vmem:[#allocation3 + $0x1a8] sm:$0xff] %v3640_v51  ;;  %v16963_v51 = vld [vmem:[#allocation150_spill] sm:$0xff] }
 0x354   : > { %9821 = vxpose.xlu1.b32.cont [3/16] %v16936_v41, 128  ;;  %v16965_v25 = vpack.i.bf16 %v16963_v51, %v16964_v16  ;;  %v16967_v41 = vld [vmem:[#allocation125_spill] sm:$0xff] }
 0x355   : > { %v2617_v48 = vpop.permute.xlu1 %2616  ;;  %v9699_v26 = vpop.trf.xlu0 }
 0x356   : > { %2779 = vst.msk [vmem:[#allocation2 + $0x6f0] sm:$0xff] %vm1863_vm0, %v2617_v48  ;;  %2332 = vrot.lane.b32.xlu0 %v16929_v42, %s10744_s10  ;;  %v9703_v61 = vunpack.i.h.bf16 %v9699_v26  ;;  %v9700_v21 = vunpack.i.l.bf16 %v9699_v26  ;;  %v16969_v48 = vpack.i.bf16 %v12316_v43, %v16829_v2 }
 0x358   : > { %9823 = vxpose.xlu1.b32.cont [4/16] %v16939_v28, 128  ;;  %v3913_v13 = vpack.c.bf16 %v9700_v21, %v9695_v57  ;;  %v3914_v14 = vpack.c.bf16 %v9703_v61, %v9698_v53  ;;  %v16968_v53 = vpack.i.bf16 %v16966_v55, %v16967_v41  ;;  %v16972_v55 = vld [vmem:[#allocation110_spill] sm:$0xff] }
 0x35a   : > { %2396 = vrot.lane.b32.xlu0 %v16933_v30, %s10744_s10  ;;  %3922 = vst [vmem:[#allocation3 + $0x1e0] sm:$0xff] %v3913_v13  ;;  %3923 = vst [vmem:[#allocation3 + $0x1e8] sm:$0xff] %v3914_v14 }
 0x35c   : > { %9825 = vxpose.xlu1.b32.cont [5/16] %v16941_v33, 128 }
 0x35e   : > { %2606 = vrot.lane.b32.xlu0 %v16929_v42, %s10745_s14 }
 0x360   : > { %9827 = vxpose.xlu1.b32.cont [6/16] %v16944_v32, 128 }
 0x362   : > { %2062 = vrot.lane.b32.xlu0 %v12158_v15, %s10743_s9 }
 0x364   : > { %9829 = vxpose.xlu1.b32.cont [7/16] %v16945_v22, 128 }
 0x366   : > { %2126 = vrot.lane.b32.xlu0 %v12162_v12, %s10743_s9 }
 0x368   : > { %9831 = vxpose.xlu1.b32.cont [8/16] %v16948_v40, 128 }
 0x36a   : > { %2336 = vrot.lane.b32.xlu0 %v12158_v15, %s10744_s10 }
 0x36c   : > { %9833 = vxpose.xlu1.b32.cont [9/16] %v16949_v7, 128 }
 0x36e   : > { %2400 = vrot.lane.b32.xlu0 %v12162_v12, %s10744_s10 }
 0x370   : > { %v2043_v18 = vpop.permute.xlu0 %2042  ;;  %9835 = vxpose.xlu1.b32.cont [10/16] %v16951_v52, 128  ;;  %v16970_v52 = vld [vmem:[#allocation96_spill] sm:$0xff] }
 0x371   : > { %2218 = vst.msk [vmem:[#allocation2 + $0x288] sm:$0xff] %vm1863_vm0, %v2043_v18 }
 0x372   : > { %2610 = vrot.lane.b32.xlu0 %v12158_v15, %s10745_s14 }
 0x374   : > { %v2107_v20 = vpop.permute.xlu0 %2106  ;;  %9837 = vxpose.xlu1.b32.cont [11/16] %v16954_v6, 128 }
 0x375   : > { %2250 = vst.msk [vmem:[#allocation2 + $0x388] sm:$0xff] %vm1863_vm0, %v2107_v20 }
 0x376   : > { %2066 = vrot.lane.b32.xlu0 %v16955_v49, %s10743_s9 }
 0x378   : > { %v2317_v34 = vpop.permute.xlu0 %2316  ;;  %9839 = vxpose.xlu1.b32.cont [12/16] %v16958_v62, 128 }
 0x379   : > { %2492 = vst.msk [vmem:[#allocation2 + $0x488] sm:$0xff] %vm1863_vm0, %v2317_v34 }
 0x37a   : > { %2130 = vrot.lane.b32.xlu0 %v16959_v54, %s10743_s9 }
 0x37c   : > { %v2381_v31 = vpop.permute.xlu0 %2380  ;;  %9841 = vxpose.xlu1.b32.cont [13/16] %v16962_v56, 128 }
 0x37d   : > { %2524 = vst.msk [vmem:[#allocation2 + $0x588] sm:$0xff] %vm1863_vm0, %v2381_v31 }
 0x37e   : > { %2340 = vrot.lane.b32.xlu0 %v16955_v49, %s10744_s10 }
 0x380   : > { %v2591_v24 = vpop.permute.xlu0 %2590  ;;  %9843 = vxpose.xlu1.b32.cont [14/16] %v16965_v25, 128 }
 0x381   : > { %2766 = vst.msk [vmem:[#allocation2 + $0x688] sm:$0xff] %vm1863_vm0, %v2591_v24 }
 0x382   : > { %2404 = vrot.lane.b32.xlu0 %v16959_v54, %s10744_s10 }
 0x384   : > { %v2047_v10 = vpop.permute.xlu0 %2046  ;;  %9845 = vxpose.xlu1.b32.cont [15/16] %v16968_v53, 128 }
 0x385   : > { %2220 = vst.msk [vmem:[#allocation2 + $0x298] sm:$0xff] %vm1863_vm0, %v2047_v10 }
 0x386   : > { %2614 = vrot.lane.b32.xlu0 %v16955_v49, %s10745_s14 }
 0x388   : > { %v2111_v57 = vpop.permute.xlu0 %2110  ;;  %9847 = vxpose.xlu1.b32.end [16/16] %v16969_v48, 128 }
 0x389   : > { %2252 = vst.msk [vmem:[#allocation2 + $0x398] sm:$0xff] %vm1863_vm0, %v2111_v57 }
 0x38a   : > { %2070 = vrot.lane.b32.xlu0 %v12310_v50, %s10743_s9 }
 0x38c   : > { %v2321_v26 = vpop.permute.xlu0 %2320  ;;  %v9736_v61 = vpop.trf.xlu1 }
 0x38d   : > { %2494 = vst.msk [vmem:[#allocation2 + $0x498] sm:$0xff] %vm1863_vm0, %v2321_v26  ;;  %v9740_v21 = vunpack.i.h.bf16 %v9736_v61  ;;  %v9737_v3 = vunpack.i.l.bf16 %v9736_v61 }
 0x38e   : > { %2134 = vrot.lane.b32.xlu0 %v12314_v27, %s10743_s9 }
 0x390   : > { %v2385_v8 = vpop.permute.xlu0 %2384  ;;  %v9741_v28 = vpop.trf.xlu1 }
 0x391   : > { %2526 = vst.msk [vmem:[#allocation2 + $0x598] sm:$0xff] %vm1863_vm0, %v2385_v8  ;;  %v9745_v2 = vunpack.i.h.bf16 %v9741_v28  ;;  %v9742_v43 = vunpack.i.l.bf16 %v9741_v28 }
 0x392   : > { %2344 = vrot.lane.b32.xlu0 %v12310_v50, %s10744_s10 }
 0x393   : > { %v1930_v13 = vpack.c.bf16 %v9742_v43, %v9737_v3  ;;  %v1931_v14 = vpack.c.bf16 %v9745_v2, %v9740_v21 }
 0x394   : > { %v2595_v47 = vpop.permute.xlu0 %2594  ;;  %v9746_v33 = vpop.trf.xlu1 }
 0x395   : > { %2768 = vst.msk [vmem:[#allocation2 + $0x698] sm:$0xff] %vm1863_vm0, %v2595_v47  ;;  %1938 = vst [vmem:[#allocation3 + $0x10] sm:$0xff] %v1930_v13  ;;  %v9750_v35 = vunpack.i.h.bf16 %v9746_v33  ;;  %v9747_v19 = vunpack.i.l.bf16 %v9746_v33 }
 0x396   : > { %1939 = vst [vmem:[#allocation3 + $0x18] sm:$0xff] %v1931_v14  ;;  %2408 = vrot.lane.b32.xlu0 %v12314_v27, %s10744_s10 }
 0x398   : > { %v2051_v32 = vpop.permute.xlu0 %2050  ;;  %v9751_v22 = vpop.trf.xlu1 }
 0x399   : > { %2222 = vst.msk [vmem:[#allocation2 + $0x2a8] sm:$0xff] %vm1863_vm0, %v2051_v32  ;;  %v9755_v46 = vunpack.i.h.bf16 %v9751_v22  ;;  %v9752_v60 = vunpack.i.l.bf16 %v9751_v22 }
 0x39a   : > { %2618 = vrot.lane.b32.xlu0 %v12310_v50, %s10745_s14 }
 0x39b   : > { %v2267_v40 = vpack.c.bf16 %v9752_v60, %v9747_v19  ;;  %v2268_v7 = vpack.c.bf16 %v9755_v46, %v9750_v35  ;;  %v16973_v46 = vld [vmem:[#allocation138_spill] sm:$0xff] }
 0x39c   : > { %v2115_v18 = vpop.permute.xlu0 %2114  ;;  %v9756_v36 = vpop.trf.xlu1 }
 0x39d   : > { %2254 = vst.msk [vmem:[#allocation2 + $0x3a8] sm:$0xff] %vm1863_vm0, %v2115_v18  ;;  %2276 = vst [vmem:[#allocation3 + $0x50] sm:$0xff] %v2267_v40  ;;  %v9760_v20 = vunpack.i.h.bf16 %v9756_v36  ;;  %v9757_v11 = vunpack.i.l.bf16 %v9756_v36  ;;  %v16974_v36 = vld [vmem:[#allocation142_spill] sm:$0xff] }
 0x39e   : > { %2277 = vst [vmem:[#allocation3 + $0x58] sm:$0xff] %v2268_v7  ;;  %2650 = vrot.lane.b32.xlu0 %v16970_v52, %s10745_s14 }
 0x3a0   : > { %v2325_v44 = vpop.permute.xlu0 %2324  ;;  %v9761_v6 = vpop.trf.xlu1 }
 0x3a1   : > { %2496 = vst.msk [vmem:[#allocation2 + $0x4a8] sm:$0xff] %vm1863_vm0, %v2325_v44  ;;  %v9765_v34 = vunpack.i.h.bf16 %v9761_v6  ;;  %v9762_v63 = vunpack.i.l.bf16 %v9761_v6 }
 0x3a2   : > { %2654 = vrot.lane.b32.xlu0 %v16902_v59, %s10745_s14 }
 0x3a3   : > { %v2541_v17 = vpack.c.bf16 %v9762_v63, %v9757_v11  ;;  %v2542_v62 = vpack.c.bf16 %v9765_v34, %v9760_v20 }
 0x3a4   : > { %v2389_v31 = vpop.permute.xlu0 %2388  ;;  %v9766_v1 = vpop.trf.xlu1 }
 0x3a5   : > { %2528 = vst.msk [vmem:[#allocation2 + $0x5a8] sm:$0xff] %vm1863_vm0, %v2389_v31  ;;  %2550 = vst [vmem:[#allocation3 + $0x90] sm:$0xff] %v2541_v17  ;;  %v9770_v56 = vunpack.i.h.bf16 %v9766_v1  ;;  %v9767_v24 = vunpack.i.l.bf16 %v9766_v1  ;;  %v16975_v17 = vld [vmem:[#allocation24_spill] sm:$0xff] }
 0x3a6   : > { %2551 = vst [vmem:[#allocation3 + $0x98] sm:$0xff] %v2542_v62  ;;  %2658 = vrot.lane.b32.xlu0 %v16908_v5, %s10745_s14  ;;  %2652 = vrot.lane.b32.xlu1 %v16971_v58, %s10745_s14  ;;  %v16976_v62 = vld [vmem:[#allocation149_spill] sm:$0xff] }
 0x3a8   : > { %v2599_v51 = vpop.permute.xlu0 %2598  ;;  %v9771_v16 = vpop.trf.xlu1 }
 0x3a9   : > { %2770 = vst.msk [vmem:[#allocation2 + $0x6a8] sm:$0xff] %vm1863_vm0, %v2599_v51  ;;  %v9775_v25 = vunpack.i.h.bf16 %v9771_v16  ;;  %v9772_v10 = vunpack.i.l.bf16 %v9771_v16  ;;  %v16977_v51 = vld [vmem:[#allocation32_spill] sm:$0xff]  ;;  %v16978_v16 = vld [vmem:[#allocation19_spill] sm:$0xff] }
 0x3aa   : > { %2662 = vrot.lane.b32.xlu0 %v16915_v45, %s10745_s14  ;;  %2656 = vrot.lane.b32.xlu1 %v16972_v55, %s10745_s14 }
 0x3ab   : > { %v2815_v41 = vpack.c.bf16 %v9772_v10, %v9767_v24  ;;  %v2816_v53 = vpack.c.bf16 %v9775_v25, %v9770_v56 }
 0x3ac   : > { %v2055_v57 = vpop.permute.xlu0 %2054  ;;  %v9776_v48 = vpop.trf.xlu1 }
 0x3ad   : > { %2224 = vst.msk [vmem:[#allocation2 + $0x2b8] sm:$0xff] %vm1863_vm0, %v2055_v57  ;;  %2824 = vst [vmem:[#allocation3 + $0xd0] sm:$0xff] %v2815_v41  ;;  %v9780_v26 = vunpack.i.h.bf16 %v9776_v48  ;;  %v9777_v61 = vunpack.i.l.bf16 %v9776_v48 }
 0x3ae   : > { %2825 = vst [vmem:[#allocation3 + $0xd8] sm:$0xff] %v2816_v53  ;;  %2666 = vrot.lane.b32.xlu0 %v16922_v37, %s10745_s14  ;;  %2660 = vrot.lane.b32.xlu1 %v11943_v29, %s10745_s14 }
 0x3b0   : > { %v2119_v21 = vpop.permute.xlu0 %2118  ;;  %v9781_v3 = vpop.trf.xlu1 }
 0x3b1   : > { %2256 = vst.msk [vmem:[#allocation2 + $0x3b8] sm:$0xff] %vm1863_vm0, %v2119_v21  ;;  %v9785_v8 = vunpack.i.h.bf16 %v9781_v3  ;;  %v9782_v28 = vunpack.i.l.bf16 %v9781_v3 }
 0x3b2   : > { %2670 = vrot.lane.b32.xlu0 %v16933_v30, %s10745_s14  ;;  %2664 = vrot.lane.b32.xlu1 %v16840_v39, %s10745_s14 }
 0x3b3   : > { %v3089_v2 = vpack.c.bf16 %v9782_v28, %v9777_v61  ;;  %v3090_v43 = vpack.c.bf16 %v9785_v8, %v9780_v26  ;;  %v16979_v26 = vld [vmem:[#allocation42_spill] sm:$0xff] }
 0x3b4   : > { %v2329_v13 = vpop.permute.xlu0 %2328  ;;  %v9786_v14 = vpop.trf.xlu1  ;;  %v16980_v61 = vld [vmem:[#allocation26_spill] sm:$0xff] }
 0x3b5   : > { %2498 = vst.msk [vmem:[#allocation2 + $0x4b8] sm:$0xff] %vm1863_vm0, %v2329_v13  ;;  %3098 = vst [vmem:[#allocation3 + $0x110] sm:$0xff] %v3089_v2  ;;  %v9790_v47 = vunpack.i.h.bf16 %v9786_v14  ;;  %v9787_v33 = vunpack.i.l.bf16 %v9786_v14  ;;  %v16981_v2 = vld [vmem:[#allocation54_spill] sm:$0xff] }
 0x3b6   : > { %3099 = vst [vmem:[#allocation3 + $0x118] sm:$0xff] %v3090_v43  ;;  %2674 = vrot.lane.b32.xlu0 %v12162_v12, %s10745_s14  ;;  %2668 = vrot.lane.b32.xlu1 %v12057_v4, %s10745_s14  ;;  %v16982_v43 = vld [vmem:[#allocation36_spill] sm:$0xff] }
 0x3b8   : > { %v2393_v35 = vpop.permute.xlu0 %2392  ;;  %v9791_v19 = vpop.trf.xlu1 }
 0x3b9   : > { %2530 = vst.msk [vmem:[#allocation2 + $0x5b8] sm:$0xff] %vm1863_vm0, %v2393_v35  ;;  %v9795_v32 = vunpack.i.h.bf16 %v9791_v19  ;;  %v9792_v22 = vunpack.i.l.bf16 %v9791_v19 }
 0x3ba   : > { %2678 = vrot.lane.b32.xlu0 %v16959_v54, %s10745_s14  ;;  %2672 = vrot.lane.b32.xlu1 %v16973_v46, %s10745_s14 }
 0x3bb   : > { %v3363_v60 = vpack.c.bf16 %v9792_v22, %v9787_v33  ;;  %v3364_v40 = vpack.c.bf16 %v9795_v32, %v9790_v47  ;;  %v16983_v32 = vld [vmem:[#allocation63_spill] sm:$0xff]  ;;  %v16984_v22 = vld [vmem:[#allocation48_spill] sm:$0xff] }
 0x3bc   : > { %v2603_v7 = vpop.permute.xlu0 %2602  ;;  %v9796_v18 = vpop.trf.xlu1 }
 0x3bd   : > { %2772 = vst.msk [vmem:[#allocation2 + $0x6b8] sm:$0xff] %vm1863_vm0, %v2603_v7  ;;  %3372 = vst [vmem:[#allocation3 + $0x150] sm:$0xff] %v3363_v60  ;;  %v9800_v20 = vunpack.i.h.bf16 %v9796_v18  ;;  %v9797_v11 = vunpack.i.l.bf16 %v9796_v18 }
 0x3be   : > { %3373 = vst [vmem:[#allocation3 + $0x158] sm:$0xff] %v3364_v40  ;;  %2682 = vrot.lane.b32.xlu0 %v12314_v27, %s10745_s14  ;;  %2676 = vrot.lane.b32.xlu1 %v16974_v36, %s10745_s14 }
 0x3c0   : > { %v2059_v44 = vpop.permute.xlu0 %2058  ;;  %v9801_v6 = vpop.trf.xlu1 }
 0x3c1   : > { %2226 = vst.msk [vmem:[#allocation2 + $0x2c8] sm:$0xff] %vm1863_vm0, %v2059_v44  ;;  %v9805_v34 = vunpack.i.h.bf16 %v9801_v6  ;;  %v9802_v63 = vunpack.i.l.bf16 %v9801_v6 }
 0x3c2   : > { %2832 = vrot.lane.b32.xlu0 %v16975_v17, %s10746_s28  ;;  %2680 = vrot.lane.b32.xlu1 %v16976_v62, %s10745_s14 }
 0x3c3   : > { %v3637_v31 = vpack.c.bf16 %v9802_v63, %v9797_v11  ;;  %v3638_v1 = vpack.c.bf16 %v9805_v34, %v9800_v20  ;;  %v16985_v20 = vld [vmem:[#allocation71_spill] sm:$0xff] }
 0x3c4   : > { %v2123_v56 = vpop.permute.xlu0 %2122  ;;  %v9806_v24 = vpop.trf.xlu1  ;;  %v16986_v11 = vld [vmem:[#allocation59_spill] sm:$0xff] }
 0x3c5   : > { %2258 = vst.msk [vmem:[#allocation2 + $0x3c8] sm:$0xff] %vm1863_vm0, %v2123_v56  ;;  %3646 = vst [vmem:[#allocation3 + $0x190] sm:$0xff] %v3637_v31  ;;  %v9810_v25 = vunpack.i.h.bf16 %v9806_v24  ;;  %v9807_v10 = vunpack.i.l.bf16 %v9806_v24  ;;  %v16987_v56 = vld [vmem:[#allocation83_spill] sm:$0xff] }
 0x3c6   : > { %3647 = vst [vmem:[#allocation3 + $0x198] sm:$0xff] %v3638_v1  ;;  %2836 = vrot.lane.b32.xlu0 %v16977_v51, %s10746_s28  ;;  %2830 = vrot.lane.b32.xlu1 %v16978_v16, %s10746_s28  ;;  %v16988_v24 = vld [vmem:[#allocation67_spill] sm:$0xff] }
 0x3c8   : > { %v2333_v41 = vpop.permute.xlu0 %2332  ;;  %v9811_v53 = vpop.trf.xlu1 }
 0x3c9   : > { %2500 = vst.msk [vmem:[#allocation2 + $0x4c8] sm:$0xff] %vm1863_vm0, %v2333_v41  ;;  %v9815_v57 = vunpack.i.h.bf16 %v9811_v53  ;;  %v9812_v48 = vunpack.i.l.bf16 %v9811_v53 }
 0x3ca   : > { %2840 = vrot.lane.b32.xlu0 %v16979_v26, %s10746_s28  ;;  %2834 = vrot.lane.b32.xlu1 %v16980_v61, %s10746_s28 }
 0x3cb   : > { %v3911_v21 = vpack.c.bf16 %v9812_v48, %v9807_v10  ;;  %v3912_v3 = vpack.c.bf16 %v9815_v57, %v9810_v25  ;;  %v16989_v57 = vld [vmem:[#allocation95_spill] sm:$0xff]  ;;  %v16990_v48 = vld [vmem:[#allocation77_spill] sm:$0xff] }
 0x3cc   : > { %v2397_v8 = vpop.permute.xlu0 %2396  ;;  %v9848_v28 = vpop.trf.xlu1 }
 0x3cd   : > { %2532 = vst.msk [vmem:[#allocation2 + $0x5c8] sm:$0xff] %vm1863_vm0, %v2397_v8  ;;  %3920 = vst [vmem:[#allocation3 + $0x1d0] sm:$0xff] %v3911_v21  ;;  %v9852_v13 = vunpack.i.h.bf16 %v9848_v28  ;;  %v9849_v14 = vunpack.i.l.bf16 %v9848_v28 }
 0x3ce   : > { %3921 = vst [vmem:[#allocation3 + $0x1d8] sm:$0xff] %v3912_v3  ;;  %2844 = vrot.lane.b32.xlu0 %v16981_v2, %s10746_s28  ;;  %2838 = vrot.lane.b32.xlu1 %v16982_v43, %s10746_s28 }
 0x3d0   : > { %v2607_v47 = vpop.permute.xlu0 %2606  ;;  %v9853_v33 = vpop.trf.xlu1 }
 0x3d1   : > { %2774 = vst.msk [vmem:[#allocation2 + $0x6c8] sm:$0xff] %vm1863_vm0, %v2607_v47  ;;  %v9857_v35 = vunpack.i.h.bf16 %v9853_v33  ;;  %v9854_v19 = vunpack.i.l.bf16 %v9853_v33  ;;  %v16991_v47 = vld [vmem:[#allocation89_spill] sm:$0xff] }
 0x3d2   : > { %2848 = vrot.lane.b32.xlu0 %v16983_v32, %s10746_s28  ;;  %2842 = vrot.lane.b32.xlu1 %v16984_v22, %s10746_s28 }
 0x3d3   : > { %v1934_v60 = vpack.c.bf16 %v9854_v19, %v9849_v14  ;;  %v1935_v40 = vpack.c.bf16 %v9857_v35, %v9852_v13 }
 0x3d4   : > { %v2063_v7 = vpop.permute.xlu0 %2062  ;;  %v9858_v18 = vpop.trf.xlu1 }
 0x3d5   : > { %2228 = vst.msk [vmem:[#allocation2 + $0x2d8] sm:$0xff] %vm1863_vm0, %v2063_v7  ;;  %1942 = vst [vmem:[#allocation3 + $0x30] sm:$0xff] %v1934_v60  ;;  %v9862_v44 = vunpack.i.h.bf16 %v9858_v18  ;;  %v9859_v6 = vunpack.i.l.bf16 %v9858_v18 }
 0x3d6   : > { %1943 = vst [vmem:[#allocation3 + $0x38] sm:$0xff] %v1935_v40  ;;  %2852 = vrot.lane.b32.xlu0 %v16985_v20, %s10746_s28  ;;  %2846 = vrot.lane.b32.xlu1 %v16986_v11, %s10746_s28  ;;  %v16992_v40 = vld [vmem:[#allocation100_spill] sm:$0xff] }
 0x3d8   : > { %v2127_v34 = vpop.permute.xlu0 %2126  ;;  %v9863_v63 = vpop.trf.xlu1 }
 0x3d9   : > { %2260 = vst.msk [vmem:[#allocation2 + $0x3d8] sm:$0xff] %vm1863_vm0, %v2127_v34  ;;  %v9867_v31 = vunpack.i.h.bf16 %v9863_v63  ;;  %v9864_v1 = vunpack.i.l.bf16 %v9863_v63 }
 0x3da   : > { %2856 = vrot.lane.b32.xlu0 %v16987_v56, %s10746_s28  ;;  %2850 = vrot.lane.b32.xlu1 %v16988_v24, %s10746_s28 }
 0x3db   : > { %v2271_v25 = vpack.c.bf16 %v9864_v1, %v9859_v6  ;;  %v2272_v10 = vpack.c.bf16 %v9867_v31, %v9862_v44  ;;  %v16993_v31 = vld [vmem:[#allocation109_spill] sm:$0xff] }
 0x3dc   : > { %v2337_v41 = vpop.permute.xlu0 %2336  ;;  %v9868_v53 = vpop.trf.xlu1 }
 0x3dd   : > { %2502 = vst.msk [vmem:[#allocation2 + $0x4d8] sm:$0xff] %vm1863_vm0, %v2337_v41  ;;  %2280 = vst [vmem:[#allocation3 + $0x70] sm:$0xff] %v2271_v25  ;;  %v9872_v21 = vunpack.i.h.bf16 %v9868_v53  ;;  %v9869_v3 = vunpack.i.l.bf16 %v9868_v53  ;;  %v16994_v53 = vld [vmem:[#allocation115_spill] sm:$0xff] }
 0x3de   : > { %2281 = vst [vmem:[#allocation3 + $0x78] sm:$0xff] %v2272_v10  ;;  %2860 = vrot.lane.b32.xlu0 %v16989_v57, %s10746_s28  ;;  %2854 = vrot.lane.b32.xlu1 %v16990_v48, %s10746_s28 }
 0x3e0   : > { %v2401_v8 = vpop.permute.xlu0 %2400  ;;  %v9873_v28 = vpop.trf.xlu1 }
 0x3e1   : > { %2534 = vst.msk [vmem:[#allocation2 + $0x5d8] sm:$0xff] %vm1863_vm0, %v2401_v8  ;;  %v9877_v13 = vunpack.i.h.bf16 %v9873_v28  ;;  %v9874_v14 = vunpack.i.l.bf16 %v9873_v28 }
 0x3e2   : > { %2864 = vrot.lane.b32.xlu0 %v16901_v38, %s10746_s28  ;;  %2858 = vrot.lane.b32.xlu1 %v16991_v47, %s10746_s28 }
 0x3e3   : > { %v2545_v33 = vpack.c.bf16 %v9874_v14, %v9869_v3  ;;  %v2546_v35 = vpack.c.bf16 %v9877_v13, %v9872_v21 }
 0x3e4   : > { %v2611_v19 = vpop.permute.xlu0 %2610  ;;  %v9878_v60 = vpop.trf.xlu1 }
 0x3e5   : > { %2776 = vst.msk [vmem:[#allocation2 + $0x6d8] sm:$0xff] %vm1863_vm0, %v2611_v19  ;;  %2554 = vst [vmem:[#allocation3 + $0xb0] sm:$0xff] %v2545_v33  ;;  %v9882_v7 = vunpack.i.h.bf16 %v9878_v60  ;;  %v9879_v18 = vunpack.i.l.bf16 %v9878_v60  ;;  %v16995_v33 = vld [vmem:[#allocation122_spill] sm:$0xff] }
 0x3e6   : > { %2555 = vst [vmem:[#allocation3 + $0xb8] sm:$0xff] %v2546_v35  ;;  %2868 = vrot.lane.b32.xlu0 %v16906_v9, %s10746_s28  ;;  %2862 = vrot.lane.b32.xlu1 %v16992_v40, %s10746_s28 }
 0x3e8   : > { %v2067_v44 = vpop.permute.xlu0 %2066  ;;  %v9883_v6 = vpop.trf.xlu1 }
 0x3e9   : > { %2230 = vst.msk [vmem:[#allocation2 + $0x2e8] sm:$0xff] %vm1863_vm0, %v2067_v44  ;;  %v9887_v34 = vunpack.i.h.bf16 %v9883_v6  ;;  %v9884_v63 = vunpack.i.l.bf16 %v9883_v6 }
 0x3ea   : > { %2872 = vrot.lane.b32.xlu0 %v16913_v23, %s10746_s28  ;;  %2866 = vrot.lane.b32.xlu1 %v16993_v31, %s10746_s28 }
 0x3eb   : > { %v2819_v1 = vpack.c.bf16 %v9884_v63, %v9879_v18  ;;  %v2820_v25 = vpack.c.bf16 %v9887_v34, %v9882_v7  ;;  %v16996_v18 = vld [vmem:[#allocation131_spill] sm:$0xff] }
 0x3ec   : > { %v2131_v10 = vpop.permute.xlu0 %2130  ;;  %v9888_v41 = vpop.trf.xlu1 }
 0x3ed   : > { %2262 = vst.msk [vmem:[#allocation2 + $0x3e8] sm:$0xff] %vm1863_vm0, %v2131_v10  ;;  %2828 = vst [vmem:[#allocation3 + $0xf0] sm:$0xff] %v2819_v1  ;;  %v9892_v21 = vunpack.i.h.bf16 %v9888_v41  ;;  %v9889_v3 = vunpack.i.l.bf16 %v9888_v41  ;;  %v16997_v10 = vld [vmem:[#allocation137_spill] sm:$0xff] }
 0x3ee   : > { %2829 = vst [vmem:[#allocation3 + $0xf8] sm:$0xff] %v2820_v25  ;;  %2876 = vrot.lane.b32.xlu0 %v16920_v0, %s10746_s28  ;;  %2870 = vrot.lane.b32.xlu1 %v16994_v53, %s10746_s28 }
 0x3f0   : > { %v2341_v8 = vpop.permute.xlu0 %2340  ;;  %v9893_v28 = vpop.trf.xlu1 }
 0x3f1   : > { %2504 = vst.msk [vmem:[#allocation2 + $0x4e8] sm:$0xff] %vm1863_vm0, %v2341_v8  ;;  %v9897_v13 = vunpack.i.h.bf16 %v9893_v28  ;;  %v9894_v14 = vunpack.i.l.bf16 %v9893_v28  ;;  %v16998_v28 = vld [vmem:[#allocation141_spill] sm:$0xff] }
 0x3f2   : > { %2880 = vrot.lane.b32.xlu0 %v16929_v42, %s10746_s28  ;;  %2874 = vrot.lane.b32.xlu1 %v16995_v33, %s10746_s28 }
 0x3f3   : > { %v3093_v35 = vpack.c.bf16 %v9894_v14, %v9889_v3  ;;  %v3094_v19 = vpack.c.bf16 %v9897_v13, %v9892_v21 }
 0x3f4   : > { %v2405_v60 = vpop.permute.xlu0 %2404  ;;  %v9898_v7 = vpop.trf.xlu1 }
 0x3f5   : > { %2536 = vst.msk [vmem:[#allocation2 + $0x5e8] sm:$0xff] %vm1863_vm0, %v2405_v60  ;;  %3102 = vst [vmem:[#allocation3 + $0x130] sm:$0xff] %v3093_v35  ;;  %v9902_v44 = vunpack.i.h.bf16 %v9898_v7  ;;  %v9899_v6 = vunpack.i.l.bf16 %v9898_v7 }
 0x3f6   : > { %3103 = vst [vmem:[#allocation3 + $0x138] sm:$0xff] %v3094_v19  ;;  %2884 = vrot.lane.b32.xlu0 %v12158_v15, %s10746_s28  ;;  %2878 = vrot.lane.b32.xlu1 %v16996_v18, %s10746_s28 }
 0x3f8   : > { %v2615_v34 = vpop.permute.xlu0 %2614  ;;  %v9903_v63 = vpop.trf.xlu1 }
 0x3f9   : > { %2778 = vst.msk [vmem:[#allocation2 + $0x6e8] sm:$0xff] %vm1863_vm0, %v2615_v34  ;;  %v9907_v1 = vunpack.i.h.bf16 %v9903_v63  ;;  %v9904_v25 = vunpack.i.l.bf16 %v9903_v63 }
 0x3fa   : > { %2888 = vrot.lane.b32.xlu0 %v16955_v49, %s10746_s28  ;;  %2882 = vrot.lane.b32.xlu1 %v16997_v10, %s10746_s28 }
 0x3fb   : > { %v3367_v41 = vpack.c.bf16 %v9904_v25, %v9899_v6  ;;  %v3368_v21 = vpack.c.bf16 %v9907_v1, %v9902_v44  ;;  %v16999_v44 = vld [vmem:[#allocation22_spill] sm:$0xff]  ;;  %v17000_v6 = vld [vmem:[#allocation148_spill] sm:$0xff] }
 0x3fc   : > { %v2071_v3 = vpop.permute.xlu0 %2070  ;;  %v9908_v8 = vpop.trf.xlu1 }
 0x3fd   : > { %2232 = vst.msk [vmem:[#allocation2 + $0x2f8] sm:$0xff] %vm1863_vm0, %v2071_v3  ;;  %3376 = vst [vmem:[#allocation3 + $0x170] sm:$0xff] %v3367_v41  ;;  %v9912_v13 = vunpack.i.h.bf16 %v9908_v8  ;;  %v9909_v14 = vunpack.i.l.bf16 %v9908_v8  ;;  %v17001_v41 = vld [vmem:[#allocation30_spill] sm:$0xff] }
 0x3fe   : > { %3377 = vst [vmem:[#allocation3 + $0x178] sm:$0xff] %v3368_v21  ;;  %2892 = vrot.lane.b32.xlu0 %v12310_v50, %s10746_s28  ;;  %2886 = vrot.lane.b32.xlu1 %v16998_v28, %s10746_s28  ;;  %v17002_v21 = vld [vmem:[#allocation18_spill] sm:$0xff] }
 0x400   : > { %v2135_v35 = vpop.permute.xlu0 %2134  ;;  %v9913_v19 = vpop.trf.xlu1 }
 0x401   : > { %2264 = vst.msk [vmem:[#allocation2 + $0x3f8] sm:$0xff] %vm1863_vm0, %v2135_v35  ;;  %v9917_v60 = vunpack.i.h.bf16 %v9913_v19  ;;  %v9914_v7 = vunpack.i.l.bf16 %v9913_v19 }
 0x402   : > { %2896 = vrot.lane.b32.xlu0 %v16999_v44, %s10746_s28  ;;  %2890 = vrot.lane.b32.xlu1 %v17000_v6, %s10746_s28 }
 0x403   : > { %v3641_v34 = vpack.c.bf16 %v9914_v7, %v9909_v14  ;;  %v3642_v63 = vpack.c.bf16 %v9917_v60, %v9912_v13  ;;  %v17003_v60 = vld [vmem:[#allocation44_spill] sm:$0xff]  ;;  %v17004_v7 = vld [vmem:[#allocation27_spill] sm:$0xff] }
 0x404   : > { %v2345_v1 = vpop.permute.xlu0 %2344  ;;  %v9918_v25 = vpop.trf.xlu1 }
 0x405   : > { %2506 = vst.msk [vmem:[#allocation2 + $0x4f8] sm:$0xff] %vm1863_vm0, %v2345_v1  ;;  %3650 = vst [vmem:[#allocation3 + $0x1b0] sm:$0xff] %v3641_v34  ;;  %v9922_v3 = vunpack.i.h.bf16 %v9918_v25  ;;  %v9919_v8 = vunpack.i.l.bf16 %v9918_v25  ;;  %v17005_v25 = vld [vmem:[#allocation55_spill] sm:$0xff] }
 0x406   : > { %3651 = vst [vmem:[#allocation3 + $0x1b8] sm:$0xff] %v3642_v63  ;;  %2900 = vrot.lane.b32.xlu0 %v17001_v41, %s10746_s28  ;;  %2894 = vrot.lane.b32.xlu1 %v17002_v21, %s10746_s28 }
 0x408   : > { %v2409_v35 = vpop.permute.xlu0 %2408  ;;  %v9923_v19 = vpop.trf.xlu1 }
 0x409   : > { %2538 = vst.msk [vmem:[#allocation2 + $0x5f8] sm:$0xff] %vm1863_vm0, %v2409_v35  ;;  %v9927_v14 = vunpack.i.h.bf16 %v9923_v19  ;;  %v9924_v13 = vunpack.i.l.bf16 %v9923_v19  ;;  %v17006_v35 = vld [vmem:[#allocation38_spill] sm:$0xff] }
 0x40a   : > { %2904 = vrot.lane.b32.xlu0 %v17003_v60, %s10746_s28  ;;  %2898 = vrot.lane.b32.xlu1 %v17004_v7, %s10746_s28  ;;  %v17007_v60 = vld [vmem:[#allocation64_spill] sm:$0xff] }
 0x40b   : > { %v3915_v34 = vpack.c.bf16 %v9924_v13, %v9919_v8  ;;  %v3916_v63 = vpack.c.bf16 %v9927_v14, %v9922_v3  ;;  %v17008_v8 = vld [vmem:[#allocation49_spill] sm:$0xff]  ;;  %v17009_v14 = vld [vmem:[#allocation72_spill] sm:$0xff] }
 0x40c   : > { %v2619_v1 = vpop.permute.xlu0 %2618  ;;  %v17010_v13 = vld [vmem:[#allocation60_spill] sm:$0xff] }
 0x40d   : > { %2780 = vst.msk [vmem:[#allocation2 + $0x6f8] sm:$0xff] %vm1863_vm0, %v2619_v1  ;;  %3924 = vst [vmem:[#allocation3 + $0x1f0] sm:$0xff] %v3915_v34  ;;  %v17011_v1 = vld [vmem:[#allocation84_spill] sm:$0xff] }
 0x40e   : > { %3925 = vst [vmem:[#allocation3 + $0x1f8] sm:$0xff] %v3916_v63  ;;  %2908 = vrot.lane.b32.xlu0 %v17005_v25, %s10746_s28  ;;  %2902 = vrot.lane.b32.xlu1 %v17006_v35, %s10746_s28 }
 0x410   : > { %v2651_v19 = vpop.permute.xlu0 %2650 }
 0x411   : > { %2796 = vst.msk [vmem:[#allocation2 + $0x778] sm:$0xff] %vm1863_vm0, %v2651_v19  ;;  %v17012_v19 = vld [vmem:[#allocation68_spill] sm:$0xff] }
 0x412   : > { %2912 = vrot.lane.b32.xlu0 %v17007_v60, %s10746_s28  ;;  %2906 = vrot.lane.b32.xlu1 %v17008_v8, %s10746_s28 }
 0x414   : > { %v2655_v3 = vpop.permute.xlu0 %2654 }
 0x415   : > { %2798 = vst.msk [vmem:[#allocation2 + $0x788] sm:$0xff] %vm1863_vm0, %v2655_v3 }
 0x416   : > { %2916 = vrot.lane.b32.xlu0 %v17009_v14, %s10746_s28  ;;  %2910 = vrot.lane.b32.xlu1 %v17010_v13, %s10746_s28  ;;  %v17013_v13 = vld [vmem:[#allocation78_spill] sm:$0xff] }
 0x418   : > { %v2659_v34 = vpop.permute.xlu0 %2658  ;;  %v2653_v63 = vpop.permute.xlu1 %2652 }
 0x419   : > { %2800 = vst.msk [vmem:[#allocation2 + $0x798] sm:$0xff] %vm1863_vm0, %v2659_v34  ;;  %2797 = vst.msk [vmem:[#allocation2 + $0x780] sm:$0xff] %vm1863_vm0, %v2653_v63 }
 0x41a   : > { %2920 = vrot.lane.b32.xlu0 %v17011_v1, %s10746_s28  ;;  %2914 = vrot.lane.b32.xlu1 %v17012_v19, %s10746_s28  ;;  %v17014_v19 = vld [vmem:[#allocation90_spill] sm:$0xff] }
 0x41c   : > { %v2663_v8 = vpop.permute.xlu0 %2662  ;;  %v2657_v3 = vpop.permute.xlu1 %2656 }
 0x41d   : > { %2802 = vst.msk [vmem:[#allocation2 + $0x7a8] sm:$0xff] %vm1863_vm0, %v2663_v8  ;;  %2799 = vst.msk [vmem:[#allocation2 + $0x790] sm:$0xff] %vm1863_vm0, %v2657_v3 }
 0x41e   : > { %2924 = vrot.lane.b32.xlu0 %v16970_v52, %s10746_s28  ;;  %2918 = vrot.lane.b32.xlu1 %v17013_v13, %s10746_s28 }
 0x420   : > { %v2667_v34 = vpop.permute.xlu0 %2666  ;;  %v2661_v63 = vpop.permute.xlu1 %2660 }
 0x421   : > { %2804 = vst.msk [vmem:[#allocation2 + $0x7b8] sm:$0xff] %vm1863_vm0, %v2667_v34  ;;  %2801 = vst.msk [vmem:[#allocation2 + $0x7a0] sm:$0xff] %vm1863_vm0, %v2661_v63 }
 0x422   : > { %2928 = vrot.lane.b32.xlu0 %v16902_v59, %s10746_s28  ;;  %2922 = vrot.lane.b32.xlu1 %v17014_v19, %s10746_s28 }
 0x424   : > { %v2671_v8 = vpop.permute.xlu0 %2670  ;;  %v2665_v3 = vpop.permute.xlu1 %2664 }
 0x425   : > { %2806 = vst.msk [vmem:[#allocation2 + $0x7c8] sm:$0xff] %vm1863_vm0, %v2671_v8  ;;  %2803 = vst.msk [vmem:[#allocation2 + $0x7b0] sm:$0xff] %vm1863_vm0, %v2665_v3 }
 0x426   : > { %2932 = vrot.lane.b32.xlu0 %v16908_v5, %s10746_s28  ;;  %2926 = vrot.lane.b32.xlu1 %v16971_v58, %s10746_s28 }
 0x428   : > { %v2675_v34 = vpop.permute.xlu0 %2674  ;;  %v2669_v63 = vpop.permute.xlu1 %2668 }
 0x429   : > { %2808 = vst.msk [vmem:[#allocation2 + $0x7d8] sm:$0xff] %vm1863_vm0, %v2675_v34  ;;  %2805 = vst.msk [vmem:[#allocation2 + $0x7c0] sm:$0xff] %vm1863_vm0, %v2669_v63 }
 0x42a   : > { %2936 = vrot.lane.b32.xlu0 %v16915_v45, %s10746_s28  ;;  %2930 = vrot.lane.b32.xlu1 %v16972_v55, %s10746_s28 }
 0x42c   : > { %v2679_v8 = vpop.permute.xlu0 %2678  ;;  %v2673_v3 = vpop.permute.xlu1 %2672 }
 0x42d   : > { %2810 = vst.msk [vmem:[#allocation2 + $0x7e8] sm:$0xff] %vm1863_vm0, %v2679_v8  ;;  %2807 = vst.msk [vmem:[#allocation2 + $0x7d0] sm:$0xff] %vm1863_vm0, %v2673_v3 }
 0x42e   : > { %2940 = vrot.lane.b32.xlu0 %v16922_v37, %s10746_s28  ;;  %2934 = vrot.lane.b32.xlu1 %v11943_v29, %s10746_s28 }
 0x430   : > { %v2683_v34 = vpop.permute.xlu0 %2682  ;;  %v2677_v63 = vpop.permute.xlu1 %2676 }
 0x431   : > { %2812 = vst.msk [vmem:[#allocation2 + $0x7f8] sm:$0xff] %vm1863_vm0, %v2683_v34  ;;  %2809 = vst.msk [vmem:[#allocation2 + $0x7e0] sm:$0xff] %vm1863_vm0, %v2677_v63 }
 0x432   : > { %2944 = vrot.lane.b32.xlu0 %v16933_v30, %s10746_s28  ;;  %2938 = vrot.lane.b32.xlu1 %v16840_v39, %s10746_s28 }
 0x434   : > { %v2833_v8 = vpop.permute.xlu0 %2832  ;;  %v2681_v3 = vpop.permute.xlu1 %2680 }
 0x435   : > { %3024 = vst.msk [vmem:[#allocation2 + $0x808] sm:$0xff] %vm1863_vm0, %v2833_v8  ;;  %2811 = vst.msk [vmem:[#allocation2 + $0x7f0] sm:$0xff] %vm1863_vm0, %v2681_v3 }
 0x436   : > { %2948 = vrot.lane.b32.xlu0 %v12162_v12, %s10746_s28  ;;  %2942 = vrot.lane.b32.xlu1 %v12057_v4, %s10746_s28 }
 0x438   : > { %v2837_v34 = vpop.permute.xlu0 %2836  ;;  %v2831_v63 = vpop.permute.xlu1 %2830 }
 0x439   : > { %3026 = vst.msk [vmem:[#allocation2 + $0x818] sm:$0xff] %vm1863_vm0, %v2837_v34  ;;  %3023 = vst.msk [vmem:[#allocation2 + $0x800] sm:$0xff] %vm1863_vm0, %v2831_v63 }
 0x43a   : > { %2952 = vrot.lane.b32.xlu0 %v16959_v54, %s10746_s28  ;;  %2946 = vrot.lane.b32.xlu1 %v16973_v46, %s10746_s28 }
 0x43c   : > { %v2841_v8 = vpop.permute.xlu0 %2840  ;;  %v2835_v3 = vpop.permute.xlu1 %2834 }
 0x43d   : > { %3028 = vst.msk [vmem:[#allocation2 + $0x828] sm:$0xff] %vm1863_vm0, %v2841_v8  ;;  %3025 = vst.msk [vmem:[#allocation2 + $0x810] sm:$0xff] %vm1863_vm0, %v2835_v3 }
 0x43e   : > { %2956 = vrot.lane.b32.xlu0 %v12314_v27, %s10746_s28  ;;  %2950 = vrot.lane.b32.xlu1 %v16974_v36, %s10746_s28 }
 0x440   : > { %v2845_v34 = vpop.permute.xlu0 %2844  ;;  %v2839_v63 = vpop.permute.xlu1 %2838 }
 0x441   : > { %3030 = vst.msk [vmem:[#allocation2 + $0x838] sm:$0xff] %vm1863_vm0, %v2845_v34  ;;  %3027 = vst.msk [vmem:[#allocation2 + $0x820] sm:$0xff] %vm1863_vm0, %v2839_v63 }
 0x442   : > { %3106 = vrot.lane.b32.xlu0 %v16975_v17, %s10747_s25  ;;  %2954 = vrot.lane.b32.xlu1 %v16976_v62, %s10746_s28 }
 0x444   : > { %v2849_v8 = vpop.permute.xlu0 %2848  ;;  %v2843_v3 = vpop.permute.xlu1 %2842 }
 0x445   : > { %3032 = vst.msk [vmem:[#allocation2 + $0x848] sm:$0xff] %vm1863_vm0, %v2849_v8  ;;  %3029 = vst.msk [vmem:[#allocation2 + $0x830] sm:$0xff] %vm1863_vm0, %v2843_v3 }
 0x446   : > { %3110 = vrot.lane.b32.xlu0 %v16977_v51, %s10747_s25  ;;  %3104 = vrot.lane.b32.xlu1 %v16978_v16, %s10747_s25 }
 0x448   : > { %v2853_v34 = vpop.permute.xlu0 %2852  ;;  %v2847_v63 = vpop.permute.xlu1 %2846 }
 0x449   : > { %3034 = vst.msk [vmem:[#allocation2 + $0x858] sm:$0xff] %vm1863_vm0, %v2853_v34  ;;  %3031 = vst.msk [vmem:[#allocation2 + $0x840] sm:$0xff] %vm1863_vm0, %v2847_v63 }
 0x44a   : > { %3114 = vrot.lane.b32.xlu0 %v16979_v26, %s10747_s25  ;;  %3108 = vrot.lane.b32.xlu1 %v16980_v61, %s10747_s25 }
 0x44c   : > { %v2857_v8 = vpop.permute.xlu0 %2856  ;;  %v2851_v3 = vpop.permute.xlu1 %2850 }
 0x44d   : > { %3036 = vst.msk [vmem:[#allocation2 + $0x868] sm:$0xff] %vm1863_vm0, %v2857_v8  ;;  %3033 = vst.msk [vmem:[#allocation2 + $0x850] sm:$0xff] %vm1863_vm0, %v2851_v3 }
 0x44e   : > { %3118 = vrot.lane.b32.xlu0 %v16981_v2, %s10747_s25  ;;  %3112 = vrot.lane.b32.xlu1 %v16982_v43, %s10747_s25 }
 0x450   : > { %v2861_v34 = vpop.permute.xlu0 %2860  ;;  %v2855_v63 = vpop.permute.xlu1 %2854 }
 0x451   : > { %3038 = vst.msk [vmem:[#allocation2 + $0x878] sm:$0xff] %vm1863_vm0, %v2861_v34  ;;  %3035 = vst.msk [vmem:[#allocation2 + $0x860] sm:$0xff] %vm1863_vm0, %v2855_v63 }
 0x452   : > { %3122 = vrot.lane.b32.xlu0 %v16983_v32, %s10747_s25  ;;  %3116 = vrot.lane.b32.xlu1 %v16984_v22, %s10747_s25 }
 0x454   : > { %v2865_v8 = vpop.permute.xlu0 %2864  ;;  %v2859_v3 = vpop.permute.xlu1 %2858 }
 0x455   : > { %3040 = vst.msk [vmem:[#allocation2 + $0x888] sm:$0xff] %vm1863_vm0, %v2865_v8  ;;  %3037 = vst.msk [vmem:[#allocation2 + $0x870] sm:$0xff] %vm1863_vm0, %v2859_v3 }
 0x456   : > { %3126 = vrot.lane.b32.xlu0 %v16985_v20, %s10747_s25  ;;  %3120 = vrot.lane.b32.xlu1 %v16986_v11, %s10747_s25 }
 0x458   : > { %v2869_v34 = vpop.permute.xlu0 %2868  ;;  %v2863_v63 = vpop.permute.xlu1 %2862 }
 0x459   : > { %3042 = vst.msk [vmem:[#allocation2 + $0x898] sm:$0xff] %vm1863_vm0, %v2869_v34  ;;  %3039 = vst.msk [vmem:[#allocation2 + $0x880] sm:$0xff] %vm1863_vm0, %v2863_v63 }
 0x45a   : > { %3130 = vrot.lane.b32.xlu0 %v16987_v56, %s10747_s25  ;;  %3124 = vrot.lane.b32.xlu1 %v16988_v24, %s10747_s25 }
 0x45c   : > { %v2873_v8 = vpop.permute.xlu0 %2872  ;;  %v2867_v3 = vpop.permute.xlu1 %2866 }
 0x45d   : > { %3044 = vst.msk [vmem:[#allocation2 + $0x8a8] sm:$0xff] %vm1863_vm0, %v2873_v8  ;;  %3041 = vst.msk [vmem:[#allocation2 + $0x890] sm:$0xff] %vm1863_vm0, %v2867_v3 }
 0x45e   : > { %3134 = vrot.lane.b32.xlu0 %v16989_v57, %s10747_s25  ;;  %3128 = vrot.lane.b32.xlu1 %v16990_v48, %s10747_s25 }
 0x460   : > { %v2877_v34 = vpop.permute.xlu0 %2876  ;;  %v2871_v63 = vpop.permute.xlu1 %2870 }
 0x461   : > { %3046 = vst.msk [vmem:[#allocation2 + $0x8b8] sm:$0xff] %vm1863_vm0, %v2877_v34  ;;  %3043 = vst.msk [vmem:[#allocation2 + $0x8a0] sm:$0xff] %vm1863_vm0, %v2871_v63 }
 0x462   : > { %3138 = vrot.lane.b32.xlu0 %v16901_v38, %s10747_s25  ;;  %3132 = vrot.lane.b32.xlu1 %v16991_v47, %s10747_s25 }
 0x464   : > { %v2881_v8 = vpop.permute.xlu0 %2880  ;;  %v2875_v3 = vpop.permute.xlu1 %2874 }
 0x465   : > { %3048 = vst.msk [vmem:[#allocation2 + $0x8c8] sm:$0xff] %vm1863_vm0, %v2881_v8  ;;  %3045 = vst.msk [vmem:[#allocation2 + $0x8b0] sm:$0xff] %vm1863_vm0, %v2875_v3 }
 0x466   : > { %3142 = vrot.lane.b32.xlu0 %v16906_v9, %s10747_s25  ;;  %3136 = vrot.lane.b32.xlu1 %v16992_v40, %s10747_s25 }
 0x468   : > { %v2885_v34 = vpop.permute.xlu0 %2884  ;;  %v2879_v63 = vpop.permute.xlu1 %2878 }
 0x469   : > { %3050 = vst.msk [vmem:[#allocation2 + $0x8d8] sm:$0xff] %vm1863_vm0, %v2885_v34  ;;  %3047 = vst.msk [vmem:[#allocation2 + $0x8c0] sm:$0xff] %vm1863_vm0, %v2879_v63 }
 0x46a   : > { %3146 = vrot.lane.b32.xlu0 %v16913_v23, %s10747_s25  ;;  %3140 = vrot.lane.b32.xlu1 %v16993_v31, %s10747_s25 }
 0x46c   : > { %v2889_v8 = vpop.permute.xlu0 %2888  ;;  %v2883_v3 = vpop.permute.xlu1 %2882 }
 0x46d   : > { %3052 = vst.msk [vmem:[#allocation2 + $0x8e8] sm:$0xff] %vm1863_vm0, %v2889_v8  ;;  %3049 = vst.msk [vmem:[#allocation2 + $0x8d0] sm:$0xff] %vm1863_vm0, %v2883_v3 }
 0x46e   : > { %3150 = vrot.lane.b32.xlu0 %v16920_v0, %s10747_s25  ;;  %3144 = vrot.lane.b32.xlu1 %v16994_v53, %s10747_s25 }
 0x470   : > { %v2893_v34 = vpop.permute.xlu0 %2892  ;;  %v2887_v63 = vpop.permute.xlu1 %2886 }
 0x471   : > { %3054 = vst.msk [vmem:[#allocation2 + $0x8f8] sm:$0xff] %vm1863_vm0, %v2893_v34  ;;  %3051 = vst.msk [vmem:[#allocation2 + $0x8e0] sm:$0xff] %vm1863_vm0, %v2887_v63 }
 0x472   : > { %3154 = vrot.lane.b32.xlu0 %v16929_v42, %s10747_s25  ;;  %3148 = vrot.lane.b32.xlu1 %v16995_v33, %s10747_s25 }
 0x474   : > { %v2897_v8 = vpop.permute.xlu0 %2896  ;;  %v2891_v3 = vpop.permute.xlu1 %2890 }
 0x475   : > { %3056 = vst.msk [vmem:[#allocation2 + $0x908] sm:$0xff] %vm1863_vm0, %v2897_v8  ;;  %3053 = vst.msk [vmem:[#allocation2 + $0x8f0] sm:$0xff] %vm1863_vm0, %v2891_v3 }
 0x476   : > { %3158 = vrot.lane.b32.xlu0 %v12158_v15, %s10747_s25  ;;  %3152 = vrot.lane.b32.xlu1 %v16996_v18, %s10747_s25 }
 0x478   : > { %v2901_v34 = vpop.permute.xlu0 %2900  ;;  %v2895_v63 = vpop.permute.xlu1 %2894 }
 0x479   : > { %3058 = vst.msk [vmem:[#allocation2 + $0x918] sm:$0xff] %vm1863_vm0, %v2901_v34  ;;  %3055 = vst.msk [vmem:[#allocation2 + $0x900] sm:$0xff] %vm1863_vm0, %v2895_v63 }
 0x47a   : > { %3162 = vrot.lane.b32.xlu0 %v16955_v49, %s10747_s25  ;;  %3156 = vrot.lane.b32.xlu1 %v16997_v10, %s10747_s25 }
 0x47c   : > { %v2905_v8 = vpop.permute.xlu0 %2904  ;;  %v2899_v3 = vpop.permute.xlu1 %2898 }
 0x47d   : > { %3060 = vst.msk [vmem:[#allocation2 + $0x928] sm:$0xff] %vm1863_vm0, %v2905_v8  ;;  %3057 = vst.msk [vmem:[#allocation2 + $0x910] sm:$0xff] %vm1863_vm0, %v2899_v3 }
 0x47e   : > { %3166 = vrot.lane.b32.xlu0 %v12310_v50, %s10747_s25  ;;  %3160 = vrot.lane.b32.xlu1 %v16998_v28, %s10747_s25 }
 0x480   : > { %v2909_v34 = vpop.permute.xlu0 %2908  ;;  %v2903_v63 = vpop.permute.xlu1 %2902 }
 0x481   : > { %3062 = vst.msk [vmem:[#allocation2 + $0x938] sm:$0xff] %vm1863_vm0, %v2909_v34  ;;  %3059 = vst.msk [vmem:[#allocation2 + $0x920] sm:$0xff] %vm1863_vm0, %v2903_v63 }
 0x482   : > { %3170 = vrot.lane.b32.xlu0 %v16999_v44, %s10747_s25  ;;  %3164 = vrot.lane.b32.xlu1 %v17000_v6, %s10747_s25  ;;  %v17015_v6 = vld [vmem:[#allocation44_spill] sm:$0xff] }
 0x484   : > { %v2913_v8 = vpop.permute.xlu0 %2912  ;;  %v2907_v3 = vpop.permute.xlu1 %2906 }
 0x485   : > { %3064 = vst.msk [vmem:[#allocation2 + $0x948] sm:$0xff] %vm1863_vm0, %v2913_v8  ;;  %3061 = vst.msk [vmem:[#allocation2 + $0x930] sm:$0xff] %vm1863_vm0, %v2907_v3 }
 0x486   : > { %3174 = vrot.lane.b32.xlu0 %v17001_v41, %s10747_s25  ;;  %3168 = vrot.lane.b32.xlu1 %v17002_v21, %s10747_s25 }
 0x488   : > { %v2917_v34 = vpop.permute.xlu0 %2916  ;;  %v2911_v63 = vpop.permute.xlu1 %2910 }
 0x489   : > { %3066 = vst.msk [vmem:[#allocation2 + $0x958] sm:$0xff] %vm1863_vm0, %v2917_v34  ;;  %3063 = vst.msk [vmem:[#allocation2 + $0x940] sm:$0xff] %vm1863_vm0, %v2911_v63 }
 0x48a   : > { %3178 = vrot.lane.b32.xlu0 %v17015_v6, %s10747_s25  ;;  %3172 = vrot.lane.b32.xlu1 %v17004_v7, %s10747_s25  ;;  %v17016_v7 = vld [vmem:[#allocation49_spill] sm:$0xff] }
 0x48c   : > { %v2921_v8 = vpop.permute.xlu0 %2920  ;;  %v2915_v3 = vpop.permute.xlu1 %2914 }
 0x48d   : > { %3068 = vst.msk [vmem:[#allocation2 + $0x968] sm:$0xff] %vm1863_vm0, %v2921_v8  ;;  %3065 = vst.msk [vmem:[#allocation2 + $0x950] sm:$0xff] %vm1863_vm0, %v2915_v3 }
 0x48e   : > { %3182 = vrot.lane.b32.xlu0 %v17005_v25, %s10747_s25  ;;  %3176 = vrot.lane.b32.xlu1 %v17006_v35, %s10747_s25  ;;  %v17017_v35 = vld [vmem:[#allocation60_spill] sm:$0xff] }
 0x490   : > { %v2925_v34 = vpop.permute.xlu0 %2924  ;;  %v2919_v63 = vpop.permute.xlu1 %2918 }
 0x491   : > { %3070 = vst.msk [vmem:[#allocation2 + $0x978] sm:$0xff] %vm1863_vm0, %v2925_v34  ;;  %3067 = vst.msk [vmem:[#allocation2 + $0x960] sm:$0xff] %vm1863_vm0, %v2919_v63 }
 0x492   : > { %3186 = vrot.lane.b32.xlu0 %v17007_v60, %s10747_s25  ;;  %3180 = vrot.lane.b32.xlu1 %v17016_v7, %s10747_s25  ;;  %v17018_v7 = vld [vmem:[#allocation68_spill] sm:$0xff] }
 0x494   : > { %v2929_v8 = vpop.permute.xlu0 %2928  ;;  %v2923_v3 = vpop.permute.xlu1 %2922 }
 0x495   : > { %3072 = vst.msk [vmem:[#allocation2 + $0x988] sm:$0xff] %vm1863_vm0, %v2929_v8  ;;  %3069 = vst.msk [vmem:[#allocation2 + $0x970] sm:$0xff] %vm1863_vm0, %v2923_v3 }
 0x496   : > { %3190 = vrot.lane.b32.xlu0 %v17009_v14, %s10747_s25  ;;  %3184 = vrot.lane.b32.xlu1 %v17017_v35, %s10747_s25 }
 0x498   : > { %v2933_v34 = vpop.permute.xlu0 %2932  ;;  %v2927_v63 = vpop.permute.xlu1 %2926 }
 0x499   : > { %3074 = vst.msk [vmem:[#allocation2 + $0x998] sm:$0xff] %vm1863_vm0, %v2933_v34  ;;  %3071 = vst.msk [vmem:[#allocation2 + $0x980] sm:$0xff] %vm1863_vm0, %v2927_v63 }
 0x49a   : > { %3194 = vrot.lane.b32.xlu0 %v17011_v1, %s10747_s25  ;;  %3188 = vrot.lane.b32.xlu1 %v17018_v7, %s10747_s25 }
 0x49c   : > { %v2937_v8 = vpop.permute.xlu0 %2936  ;;  %v2931_v3 = vpop.permute.xlu1 %2930 }
 0x49d   : > { %3076 = vst.msk [vmem:[#allocation2 + $0x9a8] sm:$0xff] %vm1863_vm0, %v2937_v8  ;;  %3073 = vst.msk [vmem:[#allocation2 + $0x990] sm:$0xff] %vm1863_vm0, %v2931_v3 }
 0x49e   : > { %3198 = vrot.lane.b32.xlu0 %v16970_v52, %s10747_s25  ;;  %3192 = vrot.lane.b32.xlu1 %v17013_v13, %s10747_s25 }
 0x4a0   : > { %v2941_v34 = vpop.permute.xlu0 %2940  ;;  %v2935_v63 = vpop.permute.xlu1 %2934 }
 0x4a1   : > { %3078 = vst.msk [vmem:[#allocation2 + $0x9b8] sm:$0xff] %vm1863_vm0, %v2941_v34  ;;  %3075 = vst.msk [vmem:[#allocation2 + $0x9a0] sm:$0xff] %vm1863_vm0, %v2935_v63 }
 0x4a2   : > { %3202 = vrot.lane.b32.xlu0 %v16902_v59, %s10747_s25  ;;  %3196 = vrot.lane.b32.xlu1 %v17014_v19, %s10747_s25 }
 0x4a4   : > { %v2945_v8 = vpop.permute.xlu0 %2944  ;;  %v2939_v3 = vpop.permute.xlu1 %2938 }
 0x4a5   : > { %3080 = vst.msk [vmem:[#allocation2 + $0x9c8] sm:$0xff] %vm1863_vm0, %v2945_v8  ;;  %3077 = vst.msk [vmem:[#allocation2 + $0x9b0] sm:$0xff] %vm1863_vm0, %v2939_v3 }
 0x4a6   : > { %3206 = vrot.lane.b32.xlu0 %v16908_v5, %s10747_s25  ;;  %3200 = vrot.lane.b32.xlu1 %v16971_v58, %s10747_s25 }
 0x4a8   : > { %v2949_v34 = vpop.permute.xlu0 %2948  ;;  %v2943_v63 = vpop.permute.xlu1 %2942 }
 0x4a9   : > { %3082 = vst.msk [vmem:[#allocation2 + $0x9d8] sm:$0xff] %vm1863_vm0, %v2949_v34  ;;  %3079 = vst.msk [vmem:[#allocation2 + $0x9c0] sm:$0xff] %vm1863_vm0, %v2943_v63 }
 0x4aa   : > { %3210 = vrot.lane.b32.xlu0 %v16915_v45, %s10747_s25  ;;  %3204 = vrot.lane.b32.xlu1 %v16972_v55, %s10747_s25 }
 0x4ac   : > { %v2953_v8 = vpop.permute.xlu0 %2952  ;;  %v2947_v3 = vpop.permute.xlu1 %2946 }
 0x4ad   : > { %3084 = vst.msk [vmem:[#allocation2 + $0x9e8] sm:$0xff] %vm1863_vm0, %v2953_v8  ;;  %3081 = vst.msk [vmem:[#allocation2 + $0x9d0] sm:$0xff] %vm1863_vm0, %v2947_v3 }
 0x4ae   : > { %3214 = vrot.lane.b32.xlu0 %v16922_v37, %s10747_s25  ;;  %3208 = vrot.lane.b32.xlu1 %v11943_v29, %s10747_s25 }
 0x4b0   : > { %v2957_v34 = vpop.permute.xlu0 %2956  ;;  %v2951_v63 = vpop.permute.xlu1 %2950 }
 0x4b1   : > { %3086 = vst.msk [vmem:[#allocation2 + $0x9f8] sm:$0xff] %vm1863_vm0, %v2957_v34  ;;  %3083 = vst.msk [vmem:[#allocation2 + $0x9e0] sm:$0xff] %vm1863_vm0, %v2951_v63 }
 0x4b2   : > { %3218 = vrot.lane.b32.xlu0 %v16933_v30, %s10747_s25  ;;  %3212 = vrot.lane.b32.xlu1 %v16840_v39, %s10747_s25 }
 0x4b4   : > { %v3107_v8 = vpop.permute.xlu0 %3106  ;;  %v2955_v3 = vpop.permute.xlu1 %2954 }
 0x4b5   : > { %3298 = vst.msk [vmem:[#allocation2 + $0xa08] sm:$0xff] %vm1863_vm0, %v3107_v8  ;;  %3085 = vst.msk [vmem:[#allocation2 + $0x9f0] sm:$0xff] %vm1863_vm0, %v2955_v3 }
 0x4b6   : > { %3222 = vrot.lane.b32.xlu0 %v12162_v12, %s10747_s25  ;;  %3216 = vrot.lane.b32.xlu1 %v12057_v4, %s10747_s25 }
 0x4b8   : > { %v3111_v34 = vpop.permute.xlu0 %3110  ;;  %v3105_v63 = vpop.permute.xlu1 %3104 }
 0x4b9   : > { %3300 = vst.msk [vmem:[#allocation2 + $0xa18] sm:$0xff] %vm1863_vm0, %v3111_v34  ;;  %3297 = vst.msk [vmem:[#allocation2 + $0xa00] sm:$0xff] %vm1863_vm0, %v3105_v63 }
 0x4ba   : > { %3226 = vrot.lane.b32.xlu0 %v16959_v54, %s10747_s25  ;;  %3220 = vrot.lane.b32.xlu1 %v16973_v46, %s10747_s25 }
 0x4bc   : > { %v3115_v8 = vpop.permute.xlu0 %3114  ;;  %v3109_v3 = vpop.permute.xlu1 %3108 }
 0x4bd   : > { %3302 = vst.msk [vmem:[#allocation2 + $0xa28] sm:$0xff] %vm1863_vm0, %v3115_v8  ;;  %3299 = vst.msk [vmem:[#allocation2 + $0xa10] sm:$0xff] %vm1863_vm0, %v3109_v3 }
 0x4be   : > { %3230 = vrot.lane.b32.xlu0 %v12314_v27, %s10747_s25  ;;  %3224 = vrot.lane.b32.xlu1 %v16974_v36, %s10747_s25 }
 0x4c0   : > { %v3119_v34 = vpop.permute.xlu0 %3118  ;;  %v3113_v63 = vpop.permute.xlu1 %3112 }
 0x4c1   : > { %3304 = vst.msk [vmem:[#allocation2 + $0xa38] sm:$0xff] %vm1863_vm0, %v3119_v34  ;;  %3301 = vst.msk [vmem:[#allocation2 + $0xa20] sm:$0xff] %vm1863_vm0, %v3113_v63 }
 0x4c2   : > { %3380 = vrot.lane.b32.xlu0 %v16975_v17, %s10748_s11  ;;  %3228 = vrot.lane.b32.xlu1 %v16976_v62, %s10747_s25 }
 0x4c4   : > { %v3123_v8 = vpop.permute.xlu0 %3122  ;;  %v3117_v3 = vpop.permute.xlu1 %3116 }
 0x4c5   : > { %3306 = vst.msk [vmem:[#allocation2 + $0xa48] sm:$0xff] %vm1863_vm0, %v3123_v8  ;;  %3303 = vst.msk [vmem:[#allocation2 + $0xa30] sm:$0xff] %vm1863_vm0, %v3117_v3 }
 0x4c6   : > { %3384 = vrot.lane.b32.xlu0 %v16977_v51, %s10748_s11  ;;  %3378 = vrot.lane.b32.xlu1 %v16978_v16, %s10748_s11 }
 0x4c8   : > { %v3127_v34 = vpop.permute.xlu0 %3126  ;;  %v3121_v63 = vpop.permute.xlu1 %3120 }
 0x4c9   : > { %3308 = vst.msk [vmem:[#allocation2 + $0xa58] sm:$0xff] %vm1863_vm0, %v3127_v34  ;;  %3305 = vst.msk [vmem:[#allocation2 + $0xa40] sm:$0xff] %vm1863_vm0, %v3121_v63 }
 0x4ca   : > { %3388 = vrot.lane.b32.xlu0 %v16979_v26, %s10748_s11  ;;  %3382 = vrot.lane.b32.xlu1 %v16980_v61, %s10748_s11 }
 0x4cc   : > { %v3131_v8 = vpop.permute.xlu0 %3130  ;;  %v3125_v3 = vpop.permute.xlu1 %3124 }
 0x4cd   : > { %3310 = vst.msk [vmem:[#allocation2 + $0xa68] sm:$0xff] %vm1863_vm0, %v3131_v8  ;;  %3307 = vst.msk [vmem:[#allocation2 + $0xa50] sm:$0xff] %vm1863_vm0, %v3125_v3 }
 0x4ce   : > { %3392 = vrot.lane.b32.xlu0 %v16981_v2, %s10748_s11  ;;  %3386 = vrot.lane.b32.xlu1 %v16982_v43, %s10748_s11 }
 0x4d0   : > { %v3135_v34 = vpop.permute.xlu0 %3134  ;;  %v3129_v63 = vpop.permute.xlu1 %3128 }
 0x4d1   : > { %3312 = vst.msk [vmem:[#allocation2 + $0xa78] sm:$0xff] %vm1863_vm0, %v3135_v34  ;;  %3309 = vst.msk [vmem:[#allocation2 + $0xa60] sm:$0xff] %vm1863_vm0, %v3129_v63 }
 0x4d2   : > { %3396 = vrot.lane.b32.xlu0 %v16983_v32, %s10748_s11  ;;  %3390 = vrot.lane.b32.xlu1 %v16984_v22, %s10748_s11 }
 0x4d4   : > { %v3139_v8 = vpop.permute.xlu0 %3138  ;;  %v3133_v3 = vpop.permute.xlu1 %3132 }
 0x4d5   : > { %3314 = vst.msk [vmem:[#allocation2 + $0xa88] sm:$0xff] %vm1863_vm0, %v3139_v8  ;;  %3311 = vst.msk [vmem:[#allocation2 + $0xa70] sm:$0xff] %vm1863_vm0, %v3133_v3 }
 0x4d6   : > { %3400 = vrot.lane.b32.xlu0 %v16985_v20, %s10748_s11  ;;  %3394 = vrot.lane.b32.xlu1 %v16986_v11, %s10748_s11 }
 0x4d8   : > { %v3143_v34 = vpop.permute.xlu0 %3142  ;;  %v3137_v63 = vpop.permute.xlu1 %3136 }
 0x4d9   : > { %3316 = vst.msk [vmem:[#allocation2 + $0xa98] sm:$0xff] %vm1863_vm0, %v3143_v34  ;;  %3313 = vst.msk [vmem:[#allocation2 + $0xa80] sm:$0xff] %vm1863_vm0, %v3137_v63 }
 0x4da   : > { %3404 = vrot.lane.b32.xlu0 %v16987_v56, %s10748_s11  ;;  %3398 = vrot.lane.b32.xlu1 %v16988_v24, %s10748_s11 }
 0x4dc   : > { %v3147_v8 = vpop.permute.xlu0 %3146  ;;  %v3141_v3 = vpop.permute.xlu1 %3140 }
 0x4dd   : > { %3318 = vst.msk [vmem:[#allocation2 + $0xaa8] sm:$0xff] %vm1863_vm0, %v3147_v8  ;;  %3315 = vst.msk [vmem:[#allocation2 + $0xa90] sm:$0xff] %vm1863_vm0, %v3141_v3 }
 0x4de   : > { %3408 = vrot.lane.b32.xlu0 %v16989_v57, %s10748_s11  ;;  %3402 = vrot.lane.b32.xlu1 %v16990_v48, %s10748_s11 }
 0x4e0   : > { %v3151_v34 = vpop.permute.xlu0 %3150  ;;  %v3145_v63 = vpop.permute.xlu1 %3144 }
 0x4e1   : > { %3320 = vst.msk [vmem:[#allocation2 + $0xab8] sm:$0xff] %vm1863_vm0, %v3151_v34  ;;  %3317 = vst.msk [vmem:[#allocation2 + $0xaa0] sm:$0xff] %vm1863_vm0, %v3145_v63 }
 0x4e2   : > { %3412 = vrot.lane.b32.xlu0 %v16901_v38, %s10748_s11  ;;  %3406 = vrot.lane.b32.xlu1 %v16991_v47, %s10748_s11 }
 0x4e4   : > { %v3155_v8 = vpop.permute.xlu0 %3154  ;;  %v3149_v3 = vpop.permute.xlu1 %3148 }
 0x4e5   : > { %3322 = vst.msk [vmem:[#allocation2 + $0xac8] sm:$0xff] %vm1863_vm0, %v3155_v8  ;;  %3319 = vst.msk [vmem:[#allocation2 + $0xab0] sm:$0xff] %vm1863_vm0, %v3149_v3 }
 0x4e6   : > { %3416 = vrot.lane.b32.xlu0 %v16906_v9, %s10748_s11  ;;  %3410 = vrot.lane.b32.xlu1 %v16992_v40, %s10748_s11 }
 0x4e8   : > { %v3159_v34 = vpop.permute.xlu0 %3158  ;;  %v3153_v63 = vpop.permute.xlu1 %3152 }
 0x4e9   : > { %3324 = vst.msk [vmem:[#allocation2 + $0xad8] sm:$0xff] %vm1863_vm0, %v3159_v34  ;;  %3321 = vst.msk [vmem:[#allocation2 + $0xac0] sm:$0xff] %vm1863_vm0, %v3153_v63 }
 0x4ea   : > { %3420 = vrot.lane.b32.xlu0 %v16913_v23, %s10748_s11  ;;  %3414 = vrot.lane.b32.xlu1 %v16993_v31, %s10748_s11 }
 0x4ec   : > { %v3163_v8 = vpop.permute.xlu0 %3162  ;;  %v3157_v3 = vpop.permute.xlu1 %3156 }
 0x4ed   : > { %3326 = vst.msk [vmem:[#allocation2 + $0xae8] sm:$0xff] %vm1863_vm0, %v3163_v8  ;;  %3323 = vst.msk [vmem:[#allocation2 + $0xad0] sm:$0xff] %vm1863_vm0, %v3157_v3 }
 0x4ee   : > { %3424 = vrot.lane.b32.xlu0 %v16920_v0, %s10748_s11  ;;  %3418 = vrot.lane.b32.xlu1 %v16994_v53, %s10748_s11 }
 0x4f0   : > { %v3167_v34 = vpop.permute.xlu0 %3166  ;;  %v3161_v63 = vpop.permute.xlu1 %3160 }
 0x4f1   : > { %3328 = vst.msk [vmem:[#allocation2 + $0xaf8] sm:$0xff] %vm1863_vm0, %v3167_v34  ;;  %3325 = vst.msk [vmem:[#allocation2 + $0xae0] sm:$0xff] %vm1863_vm0, %v3161_v63 }
 0x4f2   : > { %3428 = vrot.lane.b32.xlu0 %v16929_v42, %s10748_s11  ;;  %3422 = vrot.lane.b32.xlu1 %v16995_v33, %s10748_s11 }
 0x4f4   : > { %v3171_v8 = vpop.permute.xlu0 %3170  ;;  %v3165_v3 = vpop.permute.xlu1 %3164 }
 0x4f5   : > { %3330 = vst.msk [vmem:[#allocation2 + $0xb08] sm:$0xff] %vm1863_vm0, %v3171_v8  ;;  %3327 = vst.msk [vmem:[#allocation2 + $0xaf0] sm:$0xff] %vm1863_vm0, %v3165_v3 }
 0x4f6   : > { %3432 = vrot.lane.b32.xlu0 %v12158_v15, %s10748_s11  ;;  %3426 = vrot.lane.b32.xlu1 %v16996_v18, %s10748_s11 }
 0x4f8   : > { %v3175_v34 = vpop.permute.xlu0 %3174  ;;  %v3169_v63 = vpop.permute.xlu1 %3168 }
 0x4f9   : > { %3332 = vst.msk [vmem:[#allocation2 + $0xb18] sm:$0xff] %vm1863_vm0, %v3175_v34  ;;  %3329 = vst.msk [vmem:[#allocation2 + $0xb00] sm:$0xff] %vm1863_vm0, %v3169_v63 }
 0x4fa   : > { %3436 = vrot.lane.b32.xlu0 %v16955_v49, %s10748_s11  ;;  %3430 = vrot.lane.b32.xlu1 %v16997_v10, %s10748_s11  ;;  %v17019_v10 = vld [vmem:[#allocation148_spill] sm:$0xff] }
 0x4fc   : > { %v3179_v8 = vpop.permute.xlu0 %3178  ;;  %v3173_v3 = vpop.permute.xlu1 %3172 }
 0x4fd   : > { %3334 = vst.msk [vmem:[#allocation2 + $0xb28] sm:$0xff] %vm1863_vm0, %v3179_v8  ;;  %3331 = vst.msk [vmem:[#allocation2 + $0xb10] sm:$0xff] %vm1863_vm0, %v3173_v3 }
 0x4fe   : > { %3440 = vrot.lane.b32.xlu0 %v12310_v50, %s10748_s11  ;;  %3434 = vrot.lane.b32.xlu1 %v16998_v28, %s10748_s11 }
 0x500   : > { %v3183_v34 = vpop.permute.xlu0 %3182  ;;  %v3177_v63 = vpop.permute.xlu1 %3176 }
 0x501   : > { %3336 = vst.msk [vmem:[#allocation2 + $0xb38] sm:$0xff] %vm1863_vm0, %v3183_v34  ;;  %3333 = vst.msk [vmem:[#allocation2 + $0xb20] sm:$0xff] %vm1863_vm0, %v3177_v63 }
 0x502   : > { %3444 = vrot.lane.b32.xlu0 %v16999_v44, %s10748_s11  ;;  %3438 = vrot.lane.b32.xlu1 %v17019_v10, %s10748_s11  ;;  %v17020_v10 = vld [vmem:[#allocation27_spill] sm:$0xff] }
 0x504   : > { %v3187_v8 = vpop.permute.xlu0 %3186  ;;  %v3181_v3 = vpop.permute.xlu1 %3180 }
 0x505   : > { %3338 = vst.msk [vmem:[#allocation2 + $0xb48] sm:$0xff] %vm1863_vm0, %v3187_v8  ;;  %3335 = vst.msk [vmem:[#allocation2 + $0xb30] sm:$0xff] %vm1863_vm0, %v3181_v3 }
 0x506   : > { %3448 = vrot.lane.b32.xlu0 %v17001_v41, %s10748_s11  ;;  %3442 = vrot.lane.b32.xlu1 %v17002_v21, %s10748_s11  ;;  %v17021_v21 = vld [vmem:[#allocation38_spill] sm:$0xff] }
 0x508   : > { %v3191_v34 = vpop.permute.xlu0 %3190  ;;  %v3185_v63 = vpop.permute.xlu1 %3184 }
 0x509   : > { %3340 = vst.msk [vmem:[#allocation2 + $0xb58] sm:$0xff] %vm1863_vm0, %v3191_v34  ;;  %3337 = vst.msk [vmem:[#allocation2 + $0xb40] sm:$0xff] %vm1863_vm0, %v3185_v63 }
 0x50a   : > { %3452 = vrot.lane.b32.xlu0 %v17015_v6, %s10748_s11  ;;  %3446 = vrot.lane.b32.xlu1 %v17020_v10, %s10748_s11  ;;  %v17022_v10 = vld [vmem:[#allocation49_spill] sm:$0xff] }
 0x50c   : > { %v3195_v8 = vpop.permute.xlu0 %3194  ;;  %v3189_v3 = vpop.permute.xlu1 %3188 }
 0x50d   : > { %3342 = vst.msk [vmem:[#allocation2 + $0xb68] sm:$0xff] %vm1863_vm0, %v3195_v8  ;;  %3339 = vst.msk [vmem:[#allocation2 + $0xb50] sm:$0xff] %vm1863_vm0, %v3189_v3 }
 0x50e   : > { %3456 = vrot.lane.b32.xlu0 %v17005_v25, %s10748_s11  ;;  %3450 = vrot.lane.b32.xlu1 %v17021_v21, %s10748_s11 }
 0x510   : > { %v3199_v34 = vpop.permute.xlu0 %3198  ;;  %v3193_v63 = vpop.permute.xlu1 %3192 }
 0x511   : > { %3344 = vst.msk [vmem:[#allocation2 + $0xb78] sm:$0xff] %vm1863_vm0, %v3199_v34  ;;  %3341 = vst.msk [vmem:[#allocation2 + $0xb60] sm:$0xff] %vm1863_vm0, %v3193_v63 }
 0x512   : > { %3460 = vrot.lane.b32.xlu0 %v17007_v60, %s10748_s11  ;;  %3454 = vrot.lane.b32.xlu1 %v17022_v10, %s10748_s11 }
 0x514   : > { %v3203_v8 = vpop.permute.xlu0 %3202  ;;  %v3197_v3 = vpop.permute.xlu1 %3196 }
 0x515   : > { %3346 = vst.msk [vmem:[#allocation2 + $0xb88] sm:$0xff] %vm1863_vm0, %v3203_v8  ;;  %3343 = vst.msk [vmem:[#allocation2 + $0xb70] sm:$0xff] %vm1863_vm0, %v3197_v3 }
 0x516   : > { %3464 = vrot.lane.b32.xlu0 %v17009_v14, %s10748_s11  ;;  %3458 = vrot.lane.b32.xlu1 %v17017_v35, %s10748_s11 }
 0x518   : > { %v3207_v34 = vpop.permute.xlu0 %3206  ;;  %v3201_v63 = vpop.permute.xlu1 %3200 }
 0x519   : > { %3348 = vst.msk [vmem:[#allocation2 + $0xb98] sm:$0xff] %vm1863_vm0, %v3207_v34  ;;  %3345 = vst.msk [vmem:[#allocation2 + $0xb80] sm:$0xff] %vm1863_vm0, %v3201_v63 }
 0x51a   : > { %3468 = vrot.lane.b32.xlu0 %v17011_v1, %s10748_s11  ;;  %3462 = vrot.lane.b32.xlu1 %v17018_v7, %s10748_s11 }
 0x51c   : > { %v3211_v8 = vpop.permute.xlu0 %3210  ;;  %v3205_v3 = vpop.permute.xlu1 %3204 }
 0x51d   : > { %3350 = vst.msk [vmem:[#allocation2 + $0xba8] sm:$0xff] %vm1863_vm0, %v3211_v8  ;;  %3347 = vst.msk [vmem:[#allocation2 + $0xb90] sm:$0xff] %vm1863_vm0, %v3205_v3 }
 0x51e   : > { %3472 = vrot.lane.b32.xlu0 %v16970_v52, %s10748_s11  ;;  %3466 = vrot.lane.b32.xlu1 %v17013_v13, %s10748_s11 }
 0x520   : > { %v3215_v34 = vpop.permute.xlu0 %3214  ;;  %v3209_v63 = vpop.permute.xlu1 %3208 }
 0x521   : > { %3352 = vst.msk [vmem:[#allocation2 + $0xbb8] sm:$0xff] %vm1863_vm0, %v3215_v34  ;;  %3349 = vst.msk [vmem:[#allocation2 + $0xba0] sm:$0xff] %vm1863_vm0, %v3209_v63 }
 0x522   : > { %3476 = vrot.lane.b32.xlu0 %v16902_v59, %s10748_s11  ;;  %3470 = vrot.lane.b32.xlu1 %v17014_v19, %s10748_s11 }
 0x524   : > { %v3219_v8 = vpop.permute.xlu0 %3218  ;;  %v3213_v3 = vpop.permute.xlu1 %3212 }
 0x525   : > { %3354 = vst.msk [vmem:[#allocation2 + $0xbc8] sm:$0xff] %vm1863_vm0, %v3219_v8  ;;  %3351 = vst.msk [vmem:[#allocation2 + $0xbb0] sm:$0xff] %vm1863_vm0, %v3213_v3 }
 0x526   : > { %3480 = vrot.lane.b32.xlu0 %v16908_v5, %s10748_s11  ;;  %3474 = vrot.lane.b32.xlu1 %v16971_v58, %s10748_s11 }
 0x528   : > { %v3223_v34 = vpop.permute.xlu0 %3222  ;;  %v3217_v63 = vpop.permute.xlu1 %3216 }
 0x529   : > { %3356 = vst.msk [vmem:[#allocation2 + $0xbd8] sm:$0xff] %vm1863_vm0, %v3223_v34  ;;  %3353 = vst.msk [vmem:[#allocation2 + $0xbc0] sm:$0xff] %vm1863_vm0, %v3217_v63 }
 0x52a   : > { %3484 = vrot.lane.b32.xlu0 %v16915_v45, %s10748_s11  ;;  %3478 = vrot.lane.b32.xlu1 %v16972_v55, %s10748_s11 }
 0x52c   : > { %v3227_v8 = vpop.permute.xlu0 %3226  ;;  %v3221_v3 = vpop.permute.xlu1 %3220 }
 0x52d   : > { %3358 = vst.msk [vmem:[#allocation2 + $0xbe8] sm:$0xff] %vm1863_vm0, %v3227_v8  ;;  %3355 = vst.msk [vmem:[#allocation2 + $0xbd0] sm:$0xff] %vm1863_vm0, %v3221_v3 }
 0x52e   : > { %3488 = vrot.lane.b32.xlu0 %v16922_v37, %s10748_s11  ;;  %3482 = vrot.lane.b32.xlu1 %v11943_v29, %s10748_s11 }
 0x530   : > { %v3231_v34 = vpop.permute.xlu0 %3230  ;;  %v3225_v63 = vpop.permute.xlu1 %3224 }
 0x531   : > { %3360 = vst.msk [vmem:[#allocation2 + $0xbf8] sm:$0xff] %vm1863_vm0, %v3231_v34  ;;  %3357 = vst.msk [vmem:[#allocation2 + $0xbe0] sm:$0xff] %vm1863_vm0, %v3225_v63 }
 0x532   : > { %3492 = vrot.lane.b32.xlu0 %v16933_v30, %s10748_s11  ;;  %3486 = vrot.lane.b32.xlu1 %v16840_v39, %s10748_s11 }
 0x534   : > { %v3381_v8 = vpop.permute.xlu0 %3380  ;;  %v3229_v3 = vpop.permute.xlu1 %3228 }
 0x535   : > { %3572 = vst.msk [vmem:[#allocation2 + $0xc08] sm:$0xff] %vm1863_vm0, %v3381_v8  ;;  %3359 = vst.msk [vmem:[#allocation2 + $0xbf0] sm:$0xff] %vm1863_vm0, %v3229_v3 }
 0x536   : > { %3496 = vrot.lane.b32.xlu0 %v12162_v12, %s10748_s11  ;;  %3490 = vrot.lane.b32.xlu1 %v12057_v4, %s10748_s11 }
 0x538   : > { %v3385_v34 = vpop.permute.xlu0 %3384  ;;  %v3379_v63 = vpop.permute.xlu1 %3378 }
 0x539   : > { %3574 = vst.msk [vmem:[#allocation2 + $0xc18] sm:$0xff] %vm1863_vm0, %v3385_v34  ;;  %3571 = vst.msk [vmem:[#allocation2 + $0xc00] sm:$0xff] %vm1863_vm0, %v3379_v63 }
 0x53a   : > { %3500 = vrot.lane.b32.xlu0 %v16959_v54, %s10748_s11  ;;  %3494 = vrot.lane.b32.xlu1 %v16973_v46, %s10748_s11 }
 0x53c   : > { %v3389_v8 = vpop.permute.xlu0 %3388  ;;  %v3383_v3 = vpop.permute.xlu1 %3382 }
 0x53d   : > { %3576 = vst.msk [vmem:[#allocation2 + $0xc28] sm:$0xff] %vm1863_vm0, %v3389_v8  ;;  %3573 = vst.msk [vmem:[#allocation2 + $0xc10] sm:$0xff] %vm1863_vm0, %v3383_v3 }
 0x53e   : > { %3504 = vrot.lane.b32.xlu0 %v12314_v27, %s10748_s11  ;;  %3498 = vrot.lane.b32.xlu1 %v16974_v36, %s10748_s11 }
 0x540   : > { %v3393_v34 = vpop.permute.xlu0 %3392  ;;  %v3387_v63 = vpop.permute.xlu1 %3386 }
 0x541   : > { %3578 = vst.msk [vmem:[#allocation2 + $0xc38] sm:$0xff] %vm1863_vm0, %v3393_v34  ;;  %3575 = vst.msk [vmem:[#allocation2 + $0xc20] sm:$0xff] %vm1863_vm0, %v3387_v63 }
 0x542   : > { %3654 = vrot.lane.b32.xlu0 %v16975_v17, %s10749_s5  ;;  %3502 = vrot.lane.b32.xlu1 %v16976_v62, %s10748_s11 }
 0x544   : > { %v3397_v8 = vpop.permute.xlu0 %3396  ;;  %v3391_v3 = vpop.permute.xlu1 %3390 }
 0x545   : > { %3580 = vst.msk [vmem:[#allocation2 + $0xc48] sm:$0xff] %vm1863_vm0, %v3397_v8  ;;  %3577 = vst.msk [vmem:[#allocation2 + $0xc30] sm:$0xff] %vm1863_vm0, %v3391_v3 }
 0x546   : > { %3658 = vrot.lane.b32.xlu0 %v16977_v51, %s10749_s5  ;;  %3652 = vrot.lane.b32.xlu1 %v16978_v16, %s10749_s5 }
 0x548   : > { %v3401_v34 = vpop.permute.xlu0 %3400  ;;  %v3395_v63 = vpop.permute.xlu1 %3394 }
 0x549   : > { %3582 = vst.msk [vmem:[#allocation2 + $0xc58] sm:$0xff] %vm1863_vm0, %v3401_v34  ;;  %3579 = vst.msk [vmem:[#allocation2 + $0xc40] sm:$0xff] %vm1863_vm0, %v3395_v63 }
 0x54a   : > { %3662 = vrot.lane.b32.xlu0 %v16979_v26, %s10749_s5  ;;  %3656 = vrot.lane.b32.xlu1 %v16980_v61, %s10749_s5 }
 0x54c   : > { %v3405_v17 = vpop.permute.xlu0 %3404  ;;  %v3399_v8 = vpop.permute.xlu1 %3398 }
 0x54d   : > { %3584 = vst.msk [vmem:[#allocation2 + $0xc68] sm:$0xff] %vm1863_vm0, %v3405_v17  ;;  %3581 = vst.msk [vmem:[#allocation2 + $0xc50] sm:$0xff] %vm1863_vm0, %v3399_v8 }
 0x54e   : > { %3666 = vrot.lane.b32.xlu0 %v16981_v2, %s10749_s5  ;;  %3660 = vrot.lane.b32.xlu1 %v16982_v43, %s10749_s5 }
 0x550   : > { %v3409_v51 = vpop.permute.xlu0 %3408  ;;  %v3403_v16 = vpop.permute.xlu1 %3402 }
 0x551   : > { %3586 = vst.msk [vmem:[#allocation2 + $0xc78] sm:$0xff] %vm1863_vm0, %v3409_v51  ;;  %3583 = vst.msk [vmem:[#allocation2 + $0xc60] sm:$0xff] %vm1863_vm0, %v3403_v16 }
 0x552   : > { %3670 = vrot.lane.b32.xlu0 %v16983_v32, %s10749_s5  ;;  %3664 = vrot.lane.b32.xlu1 %v16984_v22, %s10749_s5 }
 0x554   : > { %v3413_v26 = vpop.permute.xlu0 %3412  ;;  %v3407_v61 = vpop.permute.xlu1 %3406 }
 0x555   : > { %3588 = vst.msk [vmem:[#allocation2 + $0xc88] sm:$0xff] %vm1863_vm0, %v3413_v26  ;;  %3585 = vst.msk [vmem:[#allocation2 + $0xc70] sm:$0xff] %vm1863_vm0, %v3407_v61 }
 0x556   : > { %3674 = vrot.lane.b32.xlu0 %v16985_v20, %s10749_s5  ;;  %3668 = vrot.lane.b32.xlu1 %v16986_v11, %s10749_s5 }
 0x558   : > { %v3417_v2 = vpop.permute.xlu0 %3416  ;;  %v3411_v43 = vpop.permute.xlu1 %3410 }
 0x559   : > { %3590 = vst.msk [vmem:[#allocation2 + $0xc98] sm:$0xff] %vm1863_vm0, %v3417_v2  ;;  %3587 = vst.msk [vmem:[#allocation2 + $0xc80] sm:$0xff] %vm1863_vm0, %v3411_v43 }
 0x55a   : > { %3678 = vrot.lane.b32.xlu0 %v16987_v56, %s10749_s5  ;;  %3672 = vrot.lane.b32.xlu1 %v16988_v24, %s10749_s5 }
 0x55c   : > { %v3421_v32 = vpop.permute.xlu0 %3420  ;;  %v3415_v22 = vpop.permute.xlu1 %3414 }
 0x55d   : > { %3592 = vst.msk [vmem:[#allocation2 + $0xca8] sm:$0xff] %vm1863_vm0, %v3421_v32  ;;  %3589 = vst.msk [vmem:[#allocation2 + $0xc90] sm:$0xff] %vm1863_vm0, %v3415_v22 }
 0x55e   : > { %3682 = vrot.lane.b32.xlu0 %v16989_v57, %s10749_s5  ;;  %3676 = vrot.lane.b32.xlu1 %v16990_v48, %s10749_s5 }
 0x560   : > { %v3425_v20 = vpop.permute.xlu0 %3424  ;;  %v3419_v11 = vpop.permute.xlu1 %3418 }
 0x561   : > { %3594 = vst.msk [vmem:[#allocation2 + $0xcb8] sm:$0xff] %vm1863_vm0, %v3425_v20  ;;  %3591 = vst.msk [vmem:[#allocation2 + $0xca0] sm:$0xff] %vm1863_vm0, %v3419_v11 }
 0x562   : > { %3686 = vrot.lane.b32.xlu0 %v16901_v38, %s10749_s5  ;;  %3680 = vrot.lane.b32.xlu1 %v16991_v47, %s10749_s5 }
 0x564   : > { %v3429_v56 = vpop.permute.xlu0 %3428  ;;  %v3423_v24 = vpop.permute.xlu1 %3422 }
 0x565   : > { %3596 = vst.msk [vmem:[#allocation2 + $0xcc8] sm:$0xff] %vm1863_vm0, %v3429_v56  ;;  %3593 = vst.msk [vmem:[#allocation2 + $0xcb0] sm:$0xff] %vm1863_vm0, %v3423_v24 }
 0x566   : > { %3690 = vrot.lane.b32.xlu0 %v16906_v9, %s10749_s5  ;;  %3684 = vrot.lane.b32.xlu1 %v16992_v40, %s10749_s5 }
 0x568   : > { %v3433_v57 = vpop.permute.xlu0 %3432  ;;  %v3427_v48 = vpop.permute.xlu1 %3426 }
 0x569   : > { %3598 = vst.msk [vmem:[#allocation2 + $0xcd8] sm:$0xff] %vm1863_vm0, %v3433_v57  ;;  %3595 = vst.msk [vmem:[#allocation2 + $0xcc0] sm:$0xff] %vm1863_vm0, %v3427_v48 }
 0x56a   : > { %3694 = vrot.lane.b32.xlu0 %v16913_v23, %s10749_s5  ;;  %3688 = vrot.lane.b32.xlu1 %v16993_v31, %s10749_s5 }
 0x56c   : > { %v3437_v38 = vpop.permute.xlu0 %3436  ;;  %v3431_v47 = vpop.permute.xlu1 %3430 }
 0x56d   : > { %3600 = vst.msk [vmem:[#allocation2 + $0xce8] sm:$0xff] %vm1863_vm0, %v3437_v38  ;;  %3597 = vst.msk [vmem:[#allocation2 + $0xcd0] sm:$0xff] %vm1863_vm0, %v3431_v47 }
 0x56e   : > { %3698 = vrot.lane.b32.xlu0 %v16920_v0, %s10749_s5  ;;  %3692 = vrot.lane.b32.xlu1 %v16994_v53, %s10749_s5 }
 0x570   : > { %v3441_v9 = vpop.permute.xlu0 %3440  ;;  %v3435_v40 = vpop.permute.xlu1 %3434 }
 0x571   : > { %3602 = vst.msk [vmem:[#allocation2 + $0xcf8] sm:$0xff] %vm1863_vm0, %v3441_v9  ;;  %3599 = vst.msk [vmem:[#allocation2 + $0xce0] sm:$0xff] %vm1863_vm0, %v3435_v40 }
 0x572   : > { %3702 = vrot.lane.b32.xlu0 %v16929_v42, %s10749_s5  ;;  %3696 = vrot.lane.b32.xlu1 %v16995_v33, %s10749_s5  ;;  %v17023_v42 = vld [vmem:[#allocation137_spill] sm:$0xff] }
 0x574   : > { %v3445_v23 = vpop.permute.xlu0 %3444  ;;  %v3439_v31 = vpop.permute.xlu1 %3438 }
 0x575   : > { %3604 = vst.msk [vmem:[#allocation2 + $0xd08] sm:$0xff] %vm1863_vm0, %v3445_v23  ;;  %3601 = vst.msk [vmem:[#allocation2 + $0xcf0] sm:$0xff] %vm1863_vm0, %v3439_v31 }
 0x576   : > { %3706 = vrot.lane.b32.xlu0 %v12158_v15, %s10749_s5  ;;  %3700 = vrot.lane.b32.xlu1 %v16996_v18, %s10749_s5 }
 0x578   : > { %v3449_v0 = vpop.permute.xlu0 %3448  ;;  %v3443_v53 = vpop.permute.xlu1 %3442 }
 0x579   : > { %3606 = vst.msk [vmem:[#allocation2 + $0xd18] sm:$0xff] %vm1863_vm0, %v3449_v0  ;;  %3603 = vst.msk [vmem:[#allocation2 + $0xd00] sm:$0xff] %vm1863_vm0, %v3443_v53 }
 0x57a   : > { %3710 = vrot.lane.b32.xlu0 %v16955_v49, %s10749_s5  ;;  %3704 = vrot.lane.b32.xlu1 %v17023_v42, %s10749_s5  ;;  %v17024_v49 = vld [vmem:[#allocation148_spill] sm:$0xff] }
 0x57c   : > { %v3453_v33 = vpop.permute.xlu0 %3452  ;;  %v3447_v3 = vpop.permute.xlu1 %3446 }
 0x57d   : > { %3608 = vst.msk [vmem:[#allocation2 + $0xd28] sm:$0xff] %vm1863_vm0, %v3453_v33  ;;  %3605 = vst.msk [vmem:[#allocation2 + $0xd10] sm:$0xff] %vm1863_vm0, %v3447_v3 }
 0x57e   : > { %3714 = vrot.lane.b32.xlu0 %v12310_v50, %s10749_s5  ;;  %3708 = vrot.lane.b32.xlu1 %v16998_v28, %s10749_s5  ;;  %v17025_v50 = vld [vmem:[#allocation18_spill] sm:$0xff] }
 0x580   : > { %v3457_v15 = vpop.permute.xlu0 %3456  ;;  %v3451_v18 = vpop.permute.xlu1 %3450 }
 0x581   : > { %3610 = vst.msk [vmem:[#allocation2 + $0xd38] sm:$0xff] %vm1863_vm0, %v3457_v15  ;;  %3607 = vst.msk [vmem:[#allocation2 + $0xd20] sm:$0xff] %vm1863_vm0, %v3451_v18 }
 0x582   : > { %3718 = vrot.lane.b32.xlu0 %v16999_v44, %s10749_s5  ;;  %3712 = vrot.lane.b32.xlu1 %v17024_v49, %s10749_s5  ;;  %v17026_v44 = vld [vmem:[#allocation27_spill] sm:$0xff] }
 0x584   : > { %v3461_v34 = vpop.permute.xlu0 %3460  ;;  %v3455_v63 = vpop.permute.xlu1 %3454 }
 0x585   : > { %3612 = vst.msk [vmem:[#allocation2 + $0xd48] sm:$0xff] %vm1863_vm0, %v3461_v34  ;;  %3609 = vst.msk [vmem:[#allocation2 + $0xd30] sm:$0xff] %vm1863_vm0, %v3455_v63 }
 0x586   : > { %3722 = vrot.lane.b32.xlu0 %v17001_v41, %s10749_s5  ;;  %3716 = vrot.lane.b32.xlu1 %v17025_v50, %s10749_s5 }
 0x588   : > { %v3465_v28 = vpop.permute.xlu0 %3464  ;;  %v3459_v17 = vpop.permute.xlu1 %3458 }
 0x589   : > { %3614 = vst.msk [vmem:[#allocation2 + $0xd58] sm:$0xff] %vm1863_vm0, %v3465_v28  ;;  %3611 = vst.msk [vmem:[#allocation2 + $0xd40] sm:$0xff] %vm1863_vm0, %v3459_v17 }
 0x58a   : > { %3726 = vrot.lane.b32.xlu0 %v17015_v6, %s10749_s5  ;;  %3720 = vrot.lane.b32.xlu1 %v17026_v44, %s10749_s5 }
 0x58c   : > { %v3469_v8 = vpop.permute.xlu0 %3468  ;;  %v3463_v51 = vpop.permute.xlu1 %3462 }
 0x58d   : > { %3616 = vst.msk [vmem:[#allocation2 + $0xd68] sm:$0xff] %vm1863_vm0, %v3469_v8  ;;  %3613 = vst.msk [vmem:[#allocation2 + $0xd50] sm:$0xff] %vm1863_vm0, %v3463_v51 }
 0x58e   : > { %3730 = vrot.lane.b32.xlu0 %v17005_v25, %s10749_s5  ;;  %3724 = vrot.lane.b32.xlu1 %v17021_v21, %s10749_s5 }
 0x590   : > { %v3473_v41 = vpop.permute.xlu0 %3472  ;;  %v3467_v16 = vpop.permute.xlu1 %3466 }
 0x591   : > { %3618 = vst.msk [vmem:[#allocation2 + $0xd78] sm:$0xff] %vm1863_vm0, %v3473_v41  ;;  %3615 = vst.msk [vmem:[#allocation2 + $0xd60] sm:$0xff] %vm1863_vm0, %v3467_v16 }
 0x592   : > { %3734 = vrot.lane.b32.xlu0 %v17007_v60, %s10749_s5  ;;  %3728 = vrot.lane.b32.xlu1 %v17022_v10, %s10749_s5 }
 0x594   : > { %v3477_v6 = vpop.permute.xlu0 %3476  ;;  %v3471_v26 = vpop.permute.xlu1 %3470 }
 0x595   : > { %3620 = vst.msk [vmem:[#allocation2 + $0xd88] sm:$0xff] %vm1863_vm0, %v3477_v6  ;;  %3617 = vst.msk [vmem:[#allocation2 + $0xd70] sm:$0xff] %vm1863_vm0, %v3471_v26 }
 0x596   : > { %3738 = vrot.lane.b32.xlu0 %v17009_v14, %s10749_s5  ;;  %3732 = vrot.lane.b32.xlu1 %v17017_v35, %s10749_s5 }
 0x598   : > { %v3481_v21 = vpop.permute.xlu0 %3480  ;;  %v3475_v25 = vpop.permute.xlu1 %3474 }
 0x599   : > { %3622 = vst.msk [vmem:[#allocation2 + $0xd98] sm:$0xff] %vm1863_vm0, %v3481_v21  ;;  %3619 = vst.msk [vmem:[#allocation2 + $0xd80] sm:$0xff] %vm1863_vm0, %v3475_v25 }
 0x59a   : > { %3742 = vrot.lane.b32.xlu0 %v17011_v1, %s10749_s5  ;;  %3736 = vrot.lane.b32.xlu1 %v17018_v7, %s10749_s5 }
 0x59c   : > { %v3485_v10 = vpop.permute.xlu0 %3484  ;;  %v3479_v60 = vpop.permute.xlu1 %3478 }
 0x59d   : > { %3624 = vst.msk [vmem:[#allocation2 + $0xda8] sm:$0xff] %vm1863_vm0, %v3485_v10  ;;  %3621 = vst.msk [vmem:[#allocation2 + $0xd90] sm:$0xff] %vm1863_vm0, %v3479_v60 }
 0x59e   : > { %3746 = vrot.lane.b32.xlu0 %v16970_v52, %s10749_s5  ;;  %3740 = vrot.lane.b32.xlu1 %v17013_v13, %s10749_s5 }
 0x5a0   : > { %v3489_v35 = vpop.permute.xlu0 %3488  ;;  %v3483_v14 = vpop.permute.xlu1 %3482 }
 0x5a1   : > { %3626 = vst.msk [vmem:[#allocation2 + $0xdb8] sm:$0xff] %vm1863_vm0, %v3489_v35  ;;  %3623 = vst.msk [vmem:[#allocation2 + $0xda0] sm:$0xff] %vm1863_vm0, %v3483_v14 }
 0x5a2   : > { %3750 = vrot.lane.b32.xlu0 %v16902_v59, %s10749_s5  ;;  %3744 = vrot.lane.b32.xlu1 %v17014_v19, %s10749_s5 }
 0x5a4   : > { %v3493_v7 = vpop.permute.xlu0 %3492  ;;  %v3487_v1 = vpop.permute.xlu1 %3486 }
 0x5a5   : > { %3628 = vst.msk [vmem:[#allocation2 + $0xdc8] sm:$0xff] %vm1863_vm0, %v3493_v7  ;;  %3625 = vst.msk [vmem:[#allocation2 + $0xdb0] sm:$0xff] %vm1863_vm0, %v3487_v1 }
 0x5a6   : > { %3754 = vrot.lane.b32.xlu0 %v16908_v5, %s10749_s5  ;;  %3748 = vrot.lane.b32.xlu1 %v16971_v58, %s10749_s5  ;;  %v3926_v5 = vlaneseq }
 0x5a8   : > { %v3497_v52 = vpop.permute.xlu0 %3496  ;;  %v3491_v13 = vpop.permute.xlu1 %3490  ;;  %v3944_v48 = vand.u32 127, %v3926_v5 }
 0x5a9   : > { %3630 = vst.msk [vmem:[#allocation2 + $0xdd8] sm:$0xff] %vm1863_vm0, %v3497_v52  ;;  %3627 = vst.msk [vmem:[#allocation2 + $0xdc0] sm:$0xff] %vm1863_vm0, %v3491_v13 }
 0x5aa   : > { %3758 = vrot.lane.b32.xlu0 %v16915_v45, %s10749_s5  ;;  %3752 = vrot.lane.b32.xlu1 %v16972_v55, %s10749_s5  ;;  %v3927_v45 = vshrl.u32 %v3926_v5, 7 }
 0x5ac   : > { %v3501_v59 = vpop.permute.xlu0 %3500  ;;  %v3495_v19 = vpop.permute.xlu1 %3494  ;;  %v3928_v55 = vadd.s32 8, %v3927_v45  ;;  %v3929_v43 = vadd.s32 16, %v3927_v45  ;;  %v3930_v32 = vadd.s32 24, %v3927_v45  ;;  %v3932_v22 = vadd.s32 40, %v3927_v45 }
 0x5ad   : > { %3632 = vst.msk [vmem:[#allocation2 + $0xde8] sm:$0xff] %vm1863_vm0, %v3501_v59  ;;  %3629 = vst.msk [vmem:[#allocation2 + $0xdd0] sm:$0xff] %vm1863_vm0, %v3495_v19  ;;  %v3933_v20 = vadd.s32 48, %v3927_v45  ;;  %v3934_v11 = vadd.s32 56, %v3927_v45  ;;  %v3935_v56 = vadd.s32 64, %v3927_v45  ;;  %v3936_v24 = vadd.s32 72, %v3927_v45 }
 0x5ae   : > { %3762 = vrot.lane.b32.xlu0 %v16922_v37, %s10749_s5  ;;  %3756 = vrot.lane.b32.xlu1 %v11943_v29, %s10749_s5  ;;  %v3931_v29 = vadd.s32 32, %v3927_v45  ;;  %v3939_v57 = vadd.s32 96, %v3927_v45  ;;  %v3940_v38 = vadd.s32 104, %v3927_v45  ;;  %v3941_v47 = vadd.s32 112, %v3927_v45 }
 0x5af   : > { %v3942_v9 = vadd.s32 120, %v3927_v45  ;;  %vm3945_vm1 = vcmp.le.s32.totalorder %v3944_v48, %v3927_v45  ;;  %vm3946_vm2 = vcmp.le.s32.totalorder %v3944_v48, %v3928_v55  ;;  %vm3947_vm3 = vcmp.le.s32.totalorder %v3944_v48, %v3929_v43 }
 0x5b0   : > { %v3505_v58 = vpop.permute.xlu0 %3504  ;;  %v3499_v61 = vpop.permute.xlu1 %3498  ;;  %vm3948_vm4 = vcmp.le.s32.totalorder %v3944_v48, %v3930_v32  ;;  %vm3949_vm5 = vcmp.le.s32.totalorder %v3944_v48, %v3931_v29  ;;  %vm3950_vm6 = vcmp.le.s32.totalorder %v3944_v48, %v3932_v22  ;;  %vm3951_vm7 = vcmp.le.s32.totalorder %v3944_v48, %v3933_v20 }
 0x5b1   : > { %3634 = vst.msk [vmem:[#allocation2 + $0xdf8] sm:$0xff] %vm1863_vm0, %v3505_v58  ;;  %3631 = vst.msk [vmem:[#allocation2 + $0xde0] sm:$0xff] %vm1863_vm0, %v3499_v61  ;;  %vm3953_vm9 = vcmp.le.s32.totalorder %v3944_v48, %v3935_v56  ;;  %vm3954_vm10 = vcmp.le.s32.totalorder %v3944_v48, %v3936_v24  ;;  %vm3957_vm13 = vcmp.le.s32.totalorder %v3944_v48, %v3939_v57 }
 0x5b2   : > { %3766 = vrot.lane.b32.xlu0 %v16933_v30, %s10749_s5  ;;  %3760 = vrot.lane.b32.xlu1 %v16840_v39, %s10749_s5  ;;  %v3937_v39 = vadd.s32 80, %v3927_v45  ;;  %v3938_v30 = vadd.s32 88, %v3927_v45  ;;  %vm3958_vm14 = vcmp.le.s32.totalorder %v3944_v48, %v3940_v38  ;;  %vm3959_vm15 = vcmp.le.s32.totalorder %v3944_v48, %v3941_v47 }
 0x5b3   : > { %vm3960_vm8 = vcmp.le.s32.totalorder %v3944_v48, %v3942_v9 }
 0x5b4   : > { %v3655_v2 = vpop.permute.xlu0 %3654  ;;  %v3503_v37 = vpop.permute.xlu1 %3502  ;;  %vm3955_vm11 = vcmp.le.s32.totalorder %v3944_v48, %v3937_v39  ;;  %vm3956_vm12 = vcmp.le.s32.totalorder %v3944_v48, %v3938_v30 }
 0x5b5   : > { %3846 = vst.msk [vmem:[#allocation2 + $0xe08] sm:$0xff] %vm1863_vm0, %v3655_v2  ;;  %3633 = vst.msk [vmem:[#allocation2 + $0xdf0] sm:$0xff] %vm1863_vm0, %v3503_v37 }
 0x5b6   : > { %3770 = vrot.lane.b32.xlu0 %v12162_v12, %s10749_s5  ;;  %3764 = vrot.lane.b32.xlu1 %v12057_v4, %s10749_s5  ;;  %v10750_v4 = vmov -1e+30  }
 0x5b7   : > { %v13484_v12 = vsel %vm3945_vm1, 0.0, %v10750_v4  ;;  %v13487_v53 = vsel %vm3946_vm2, 0.0, %v10750_v4  ;;  %v13498_v42 = vsel %vm3949_vm5, 0.0, %v10750_v4  ;;  %v13501_v33 = vsel %vm3950_vm6, 0.0, %v10750_v4 }
 0x5b8   : > { %v3659_v40 = vpop.permute.xlu0 %3658  ;;  %v3653_v23 = vpop.permute.xlu1 %3652  ;;  %17027 = vst [vmem:[#allocation33_spill] sm:$0xff] %v13484_v12  ;;  %17028 = vst [vmem:[#allocation76_spill] sm:$0xff] %v13487_v53  ;;  %v13504_v3 = vsel %vm3951_vm7, 0.0, %v10750_v4  ;;  %vm17034_vm1 = vcmp.le.s32.totalorder %v3944_v48, %v3934_v11  ;;  %v13514_v18 = vsel %vm3953_vm9, 0.0, %v10750_v4  ;;  %v13517_v49 = vsel %vm3954_vm10, 0.0, %v10750_v4 }
 0x5b9   : > { %3848 = vst.msk [vmem:[#allocation2 + $0xe18] sm:$0xff] %vm1863_vm0, %v3659_v40  ;;  %3845 = vst.msk [vmem:[#allocation2 + $0xe00] sm:$0xff] %vm1863_vm0, %v3653_v23  ;;  %v13507_v15 = vsel %vm17034_vm1, 0.0, %v10750_v4  ;;  %v13520_v34 = vsel %vm3955_vm11, 0.0, %v10750_v4  ;;  %v13523_v63 = vsel %vm3956_vm12, 0.0, %v10750_v4  ;;  %v13526_v50 = vsel %vm3957_vm13, 0.0, %v10750_v4 }
 0x5ba   : > { %3774 = vrot.lane.b32.xlu0 %v16959_v54, %s10749_s5  ;;  %3768 = vrot.lane.b32.xlu1 %v16973_v46, %s10749_s5  ;;  %v13490_v54 = vsel %vm3947_vm3, 0.0, %v10750_v4  ;;  %v13493_v46 = vsel %vm3948_vm4, 0.0, %v10750_v4  ;;  %17031 = vst [vmem:[#allocation129_spill] sm:$0xff] %v13498_v42  ;;  %17032 = vst [vmem:[#allocation79_spill] sm:$0xff] %v13501_v33  ;;  %v13535_v28 = vsel %vm3960_vm8, 0.0, %v10750_v4 }
 0x5bb   : > { %17029 = vst [vmem:[#allocation34_spill] sm:$0xff] %v13490_v54  ;;  %17030 = vst [vmem:[#allocation128_spill] sm:$0xff] %v13493_v46 }
 0x5bc   : > { %v3663_v31 = vpop.permute.xlu0 %3662  ;;  %v3657_v0 = vpop.permute.xlu1 %3656  ;;  %17033 = vst [vmem:[#allocation37_spill] sm:$0xff] %v13504_v3  ;;  %17035 = vst [vmem:[#allocation82_spill] sm:$0xff] %v13507_v15 }
 0x5bd   : > { %3850 = vst.msk [vmem:[#allocation2 + $0xe28] sm:$0xff] %vm1863_vm0, %v3663_v31  ;;  %3847 = vst.msk [vmem:[#allocation2 + $0xe10] sm:$0xff] %vm1863_vm0, %v3657_v0 }
 0x5be   : > { %3778 = vrot.lane.b32.xlu0 %v12314_v27, %s10749_s5  ;;  %3772 = vrot.lane.b32.xlu1 %v16974_v36, %s10749_s5  ;;  %17036 = vst [vmem:[#allocation40_spill] sm:$0xff] %v13514_v18  ;;  %17037 = vst [vmem:[#allocation85_spill] sm:$0xff] %v13517_v49  ;;  %v13529_v27 = vsel %vm3958_vm14, 0.0, %v10750_v4  ;;  %v13532_v36 = vsel %vm3959_vm15, 0.0, %v10750_v4 }
 0x5bf   : > { %17038 = vst [vmem:[#allocation43_spill] sm:$0xff] %v13520_v34  ;;  %17039 = vst [vmem:[#allocation123_spill] sm:$0xff] %v13523_v63 }
 0x5c0   : > { %17040 = vst [vmem:[#allocation88_spill] sm:$0xff] %v13526_v50  ;;  %17041 = vst [vmem:[#allocation47_spill] sm:$0xff] %v13529_v27  ;;  %v3667_v17 = vpop.permute.xlu0 %3666  ;;  %v3661_v44 = vpop.permute.xlu1 %3660 }
 0x5c1   : > { %17042 = vst [vmem:[#allocation91_spill] sm:$0xff] %v13532_v36  ;;  %17043 = vst [vmem:[#allocation50_spill] sm:$0xff] %v13535_v28 }
 0x5c2   : > { %3852 = vst.msk [vmem:[#allocation2 + $0xe38] sm:$0xff] %vm1863_vm0, %v3667_v17  ;;  %3849 = vst.msk [vmem:[#allocation2 + $0xe20] sm:$0xff] %vm1863_vm0, %v3661_v44  ;;  %3776 = vrot.lane.b32.xlu1 %v16976_v62, %s10749_s5 }
 0x5c4   : > { %v3671_v8 = vpop.permute.xlu0 %3670  ;;  %v3665_v51 = vpop.permute.xlu1 %3664 }
 0x5c5   : > { %3854 = vst.msk [vmem:[#allocation2 + $0xe48] sm:$0xff] %vm1863_vm0, %v3671_v8  ;;  %3851 = vst.msk [vmem:[#allocation2 + $0xe30] sm:$0xff] %vm1863_vm0, %v3665_v51 }
 0x5c8   : > { %v3675_v41 = vpop.permute.xlu0 %3674  ;;  %v3669_v16 = vpop.permute.xlu1 %3668 }
 0x5c9   : > { %3856 = vst.msk [vmem:[#allocation2 + $0xe58] sm:$0xff] %vm1863_vm0, %v3675_v41  ;;  %3853 = vst.msk [vmem:[#allocation2 + $0xe40] sm:$0xff] %vm1863_vm0, %v3669_v16 }
 0x5cc   : > { %v3679_v6 = vpop.permute.xlu0 %3678  ;;  %v3673_v26 = vpop.permute.xlu1 %3672 }
 0x5cd   : > { %3858 = vst.msk [vmem:[#allocation2 + $0xe68] sm:$0xff] %vm1863_vm0, %v3679_v6  ;;  %3855 = vst.msk [vmem:[#allocation2 + $0xe50] sm:$0xff] %vm1863_vm0, %v3673_v26 }
 0x5d0   : > { %v3683_v21 = vpop.permute.xlu0 %3682  ;;  %v3677_v62 = vpop.permute.xlu1 %3676 }
 0x5d1   : > { %3860 = vst.msk [vmem:[#allocation2 + $0xe78] sm:$0xff] %vm1863_vm0, %v3683_v21  ;;  %3857 = vst.msk [vmem:[#allocation2 + $0xe60] sm:$0xff] %vm1863_vm0, %v3677_v62 }
 0x5d4   : > { %v3687_v25 = vpop.permute.xlu0 %3686  ;;  %v3681_v10 = vpop.permute.xlu1 %3680 }
 0x5d5   : > { %3862 = vst.msk [vmem:[#allocation2 + $0xe88] sm:$0xff] %vm1863_vm0, %v3687_v25  ;;  %3859 = vst.msk [vmem:[#allocation2 + $0xe70] sm:$0xff] %vm1863_vm0, %v3681_v10 }
 0x5d8   : > { %v3691_v60 = vpop.permute.xlu0 %3690  ;;  %v3685_v35 = vpop.permute.xlu1 %3684 }
 0x5d9   : > { %3864 = vst.msk [vmem:[#allocation2 + $0xe98] sm:$0xff] %vm1863_vm0, %v3691_v60  ;;  %3861 = vst.msk [vmem:[#allocation2 + $0xe80] sm:$0xff] %vm1863_vm0, %v3685_v35 }
 0x5dc   : > { %v3695_v14 = vpop.permute.xlu0 %3694  ;;  %v3689_v7 = vpop.permute.xlu1 %3688 }
 0x5dd   : > { %3866 = vst.msk [vmem:[#allocation2 + $0xea8] sm:$0xff] %vm1863_vm0, %v3695_v14  ;;  %3863 = vst.msk [vmem:[#allocation2 + $0xe90] sm:$0xff] %vm1863_vm0, %v3689_v7 }
 0x5e0   : > { %v3699_v1 = vpop.permute.xlu0 %3698  ;;  %v3693_v52 = vpop.permute.xlu1 %3692 }
 0x5e1   : > { %3868 = vst.msk [vmem:[#allocation2 + $0xeb8] sm:$0xff] %vm1863_vm0, %v3699_v1  ;;  %3865 = vst.msk [vmem:[#allocation2 + $0xea0] sm:$0xff] %vm1863_vm0, %v3693_v52 }
 0x5e4   : > { %v3703_v13 = vpop.permute.xlu0 %3702  ;;  %v3697_v59 = vpop.permute.xlu1 %3696 }
 0x5e5   : > { %3870 = vst.msk [vmem:[#allocation2 + $0xec8] sm:$0xff] %vm1863_vm0, %v3703_v13  ;;  %3867 = vst.msk [vmem:[#allocation2 + $0xeb0] sm:$0xff] %vm1863_vm0, %v3697_v59 }
 0x5e8   : > { %v3707_v19 = vpop.permute.xlu0 %3706  ;;  %v3701_v5 = vpop.permute.xlu1 %3700 }
 0x5e9   : > { %3872 = vst.msk [vmem:[#allocation2 + $0xed8] sm:$0xff] %vm1863_vm0, %v3707_v19  ;;  %3869 = vst.msk [vmem:[#allocation2 + $0xec0] sm:$0xff] %vm1863_vm0, %v3701_v5 }
 0x5ec   : > { %v3711_v58 = vpop.permute.xlu0 %3710  ;;  %v3705_v61 = vpop.permute.xlu1 %3704 }
 0x5ed   : > { %3874 = vst.msk [vmem:[#allocation2 + $0xee8] sm:$0xff] %vm1863_vm0, %v3711_v58  ;;  %3871 = vst.msk [vmem:[#allocation2 + $0xed0] sm:$0xff] %vm1863_vm0, %v3705_v61 }
 0x5f0   : > { %v3715_v45 = vpop.permute.xlu0 %3714  ;;  %v3709_v55 = vpop.permute.xlu1 %3708 }
 0x5f1   : > { %3876 = vst.msk [vmem:[#allocation2 + $0xef8] sm:$0xff] %vm1863_vm0, %v3715_v45  ;;  %3873 = vst.msk [vmem:[#allocation2 + $0xee0] sm:$0xff] %vm1863_vm0, %v3709_v55 }
 0x5f4   : > { %v3719_v2 = vpop.permute.xlu0 %3718  ;;  %v3713_v37 = vpop.permute.xlu1 %3712 }
 0x5f5   : > { %3878 = vst.msk [vmem:[#allocation2 + $0xf08] sm:$0xff] %vm1863_vm0, %v3719_v2  ;;  %3875 = vst.msk [vmem:[#allocation2 + $0xef0] sm:$0xff] %vm1863_vm0, %v3713_v37 }
 0x5f8   : > { %v3723_v43 = vpop.permute.xlu0 %3722  ;;  %v3717_v32 = vpop.permute.xlu1 %3716 }
 0x5f9   : > { %3880 = vst.msk [vmem:[#allocation2 + $0xf18] sm:$0xff] %vm1863_vm0, %v3723_v43  ;;  %3877 = vst.msk [vmem:[#allocation2 + $0xf00] sm:$0xff] %vm1863_vm0, %v3717_v32 }
 0x5fc   : > { %v3727_v29 = vpop.permute.xlu0 %3726  ;;  %v3721_v22 = vpop.permute.xlu1 %3720 }
 0x5fd   : > { %3882 = vst.msk [vmem:[#allocation2 + $0xf28] sm:$0xff] %vm1863_vm0, %v3727_v29  ;;  %3879 = vst.msk [vmem:[#allocation2 + $0xf10] sm:$0xff] %vm1863_vm0, %v3721_v22 }
 0x600   : > { %v3731_v20 = vpop.permute.xlu0 %3730  ;;  %v3725_v11 = vpop.permute.xlu1 %3724 }
 0x601   : > { %3884 = vst.msk [vmem:[#allocation2 + $0xf38] sm:$0xff] %vm1863_vm0, %v3731_v20  ;;  %3881 = vst.msk [vmem:[#allocation2 + $0xf20] sm:$0xff] %vm1863_vm0, %v3725_v11 }
 0x604   : > { %v3735_v56 = vpop.permute.xlu0 %3734  ;;  %v3729_v24 = vpop.permute.xlu1 %3728 }
 0x605   : > { %3886 = vst.msk [vmem:[#allocation2 + $0xf48] sm:$0xff] %vm1863_vm0, %v3735_v56  ;;  %3883 = vst.msk [vmem:[#allocation2 + $0xf30] sm:$0xff] %vm1863_vm0, %v3729_v24 }
 0x608   : > { %v3739_v39 = vpop.permute.xlu0 %3738  ;;  %v3733_v30 = vpop.permute.xlu1 %3732 }
 0x609   : > { %3888 = vst.msk [vmem:[#allocation2 + $0xf58] sm:$0xff] %vm1863_vm0, %v3739_v39  ;;  %3885 = vst.msk [vmem:[#allocation2 + $0xf40] sm:$0xff] %vm1863_vm0, %v3733_v30 }
 0x60c   : > { %v3743_v57 = vpop.permute.xlu0 %3742  ;;  %v3737_v48 = vpop.permute.xlu1 %3736 }
 0x60d   : > { %3890 = vst.msk [vmem:[#allocation2 + $0xf68] sm:$0xff] %vm1863_vm0, %v3743_v57  ;;  %3887 = vst.msk [vmem:[#allocation2 + $0xf50] sm:$0xff] %vm1863_vm0, %v3737_v48 }
 0x610   : > { %v3747_v38 = vpop.permute.xlu0 %3746  ;;  %v3741_v47 = vpop.permute.xlu1 %3740 }
 0x611   : > { %3892 = vst.msk [vmem:[#allocation2 + $0xf78] sm:$0xff] %vm1863_vm0, %v3747_v38  ;;  %3889 = vst.msk [vmem:[#allocation2 + $0xf60] sm:$0xff] %vm1863_vm0, %v3741_v47 }
 0x614   : > { %v3751_v9 = vpop.permute.xlu0 %3750  ;;  %v3745_v40 = vpop.permute.xlu1 %3744 }
 0x615   : > { %3894 = vst.msk [vmem:[#allocation2 + $0xf88] sm:$0xff] %vm1863_vm0, %v3751_v9  ;;  %3891 = vst.msk [vmem:[#allocation2 + $0xf70] sm:$0xff] %vm1863_vm0, %v3745_v40 }
 0x618   : > { %v3755_v23 = vpop.permute.xlu0 %3754  ;;  %v3749_v4 = vpop.permute.xlu1 %3748 }
 0x619   : > { %3896 = vst.msk [vmem:[#allocation2 + $0xf98] sm:$0xff] %vm1863_vm0, %v3755_v23  ;;  %3893 = vst.msk [vmem:[#allocation2 + $0xf80] sm:$0xff] %vm1863_vm0, %v3749_v4 }
 0x61c   : > { %v3759_v31 = vpop.permute.xlu0 %3758  ;;  %v3753_v0 = vpop.permute.xlu1 %3752 }
 0x61d   : > { %3898 = vst.msk [vmem:[#allocation2 + $0xfa8] sm:$0xff] %vm1863_vm0, %v3759_v31  ;;  %3895 = vst.msk [vmem:[#allocation2 + $0xf90] sm:$0xff] %vm1863_vm0, %v3753_v0 }
 0x620   : > { %v3763_v17 = vpop.permute.xlu0 %3762  ;;  %v3757_v44 = vpop.permute.xlu1 %3756 }
 0x621   : > { %3900 = vst.msk [vmem:[#allocation2 + $0xfb8] sm:$0xff] %vm1863_vm0, %v3763_v17  ;;  %3897 = vst.msk [vmem:[#allocation2 + $0xfa0] sm:$0xff] %vm1863_vm0, %v3757_v44 }
 0x624   : > { %v3767_v8 = vpop.permute.xlu0 %3766  ;;  %v3761_v51 = vpop.permute.xlu1 %3760 }
 0x625   : > { %3902 = vst.msk [vmem:[#allocation2 + $0xfc8] sm:$0xff] %vm1863_vm0, %v3767_v8  ;;  %3899 = vst.msk [vmem:[#allocation2 + $0xfb0] sm:$0xff] %vm1863_vm0, %v3761_v51 }
 0x628   : > { %v3771_v41 = vpop.permute.xlu0 %3770  ;;  %v3765_v16 = vpop.permute.xlu1 %3764 }
 0x629   : > { %3904 = vst.msk [vmem:[#allocation2 + $0xfd8] sm:$0xff] %vm1863_vm0, %v3771_v41  ;;  %3901 = vst.msk [vmem:[#allocation2 + $0xfc0] sm:$0xff] %vm1863_vm0, %v3765_v16 }
 0x62c   : > { %v3775_v6 = vpop.permute.xlu0 %3774  ;;  %v3769_v26 = vpop.permute.xlu1 %3768 }
 0x62d   : > { %3906 = vst.msk [vmem:[#allocation2 + $0xfe8] sm:$0xff] %vm1863_vm0, %v3775_v6  ;;  %3903 = vst.msk [vmem:[#allocation2 + $0xfd0] sm:$0xff] %vm1863_vm0, %v3769_v26 }
 0x630   : > { %v3779_v21 = vpop.permute.xlu0 %3778  ;;  %v3773_v62 = vpop.permute.xlu1 %3772 }
 0x631   : > { %3908 = vst.msk [vmem:[#allocation2 + $0xff8] sm:$0xff] %vm1863_vm0, %v3779_v21  ;;  %3905 = vst.msk [vmem:[#allocation2 + $0xfe0] sm:$0xff] %vm1863_vm0, %v3773_v62 }
 0x634   : > { %v3777_v25 = vpop.permute.xlu1 %3776 }
 0x635   : > { %3907 = vst.msk [vmem:[#allocation2 + $0xff0] sm:$0xff] %vm1863_vm0, %v3777_v25 }
 0x636 LB: >> { %v17044_v27 = vld [vmem:[#allocation47_spill] sm:$0xff]  ;;  %v17045_v50 = vld [vmem:[#allocation88_spill] sm:$0xff]  ;;  %v17046_v28 = vld [vmem:[#allocation50_spill] sm:$0xff]  ;;  %s8527_s6 = sshll.u32 %s10732_s27, 9  ;;  %s8528_s7 = sshll.u32 %s10732_s27, 6  ;;  %s10732_s27 = sphi %s13598_s27, %s4117_s27  }
 0x637   : >> { %v17047_v36 = vld [vmem:[#allocation91_spill] sm:$0xff]  ;;  %v17048_v49 = vld [vmem:[#allocation85_spill] sm:$0xff]  ;;  %v17049_v18 = vld [vmem:[#allocation40_spill] sm:$0xff]  ;;  %s13607_s8 = scalar_lea.vmem [#allocation3], %s8528_s7  ;;  %s13611_s13 = scalar_lea.vmem [#allocation2], %s8527_s6 }
 0x638   : >> { %v17050_v63 = vld [vmem:[#allocation123_spill] sm:$0xff]  ;;  %v17052_v42 = vld [vmem:[#allocation129_spill] sm:$0xff]  ;;  %v17054_v15 = vld [vmem:[#allocation82_spill] sm:$0xff]  ;;  %s13645_s29 = scalar_lea.vmem [#allocation9], %s8528_s7  ;;  %s4117_s27 = sadd.s32 1, %s10732_s27  }
 0x639   : >> { %v17051_v34 = vld [vmem:[#allocation43_spill] sm:$0xff]  ;;  %v17055_v3 = vld [vmem:[#allocation37_spill] sm:$0xff]  ;;  %v17056_v53 = vld [vmem:[#allocation76_spill] sm:$0xff]  ;;  %p4114_p4 = scmp.ge.s32.totalorder %s4117_s27, 8  }
 0x63a   : >> { %v17053_v33 = vld [vmem:[#allocation79_spill] sm:$0xff]  ;;  %v17057_v12 = vld [vmem:[#allocation33_spill] sm:$0xff]  ;;  %v17058_v54 = vld [vmem:[#allocation34_spill] sm:$0xff]  ;;  %s8531_s30 = sshll.u32 (%p4114_p4), %s10800_s19, 14  ;;  %s8231_s14 = sshll.u32 (%p4114_p4), %s10990_s23, 4  ;;  %s16181_s14 = int_to_ptr.vmem [resolvable:$true] %s8231_s14 }
 0x63b   : >> { %v17059_v46 = vld [vmem:[#allocation128_spill] sm:$0xff]  ;;  %v4189_v60 = vld [vmem:[%s13607_s8 + $0x8] sm:$0xff]  ;;  %v4190_v59 = vld [vmem:[%s13607_s8 + $0x10] sm:$0xff]  ;;  %s16178_s10 = scalar_lea.hbm (%p4114_p4), %s16228_s4, %s8531_s30  ;;  %s8217_s28 = scalar_lea.sflag (%p4114_p4), [#allocation6], %s10967_s12 }
 0x63c   : >> { %v4188_v10 = vld [vmem:[%s13607_s8] sm:$0xff]  ;;  %8822 = vmatprep.subr.bf16.mxu1 %v4189_v60  ;;  %v4122_v7 = vld [vmem:[%s13611_s13 + $0x8] sm:$0xff]  ;;  %v4123_v52 = vld [vmem:[%s13611_s13 + $0x10] sm:$0xff]  ;;  %s10650_s25 = scalar_lea.vmem (%p4114_p4), %s16181_s14, 16384  ;;  %s10751_s11 = smov (%p4114_p4), [#allocation12]  }
 0x63d   : >> { %v4121_v35 = vld [vmem:[%s13611_s13] sm:$0xff]  ;;  %8804 = vmatprep.subr.bf16.mxu0 %v4188_v10  ;;  %8823 = vmatpush3.bf16.msra.mxu1 %v4189_v60  ;;  %v4130_v1 = vld [vmem:[%s13611_s13 + $0x48] sm:$0xff]  ;;  %v4131_v13 = vld [vmem:[%s13611_s13 + $0x50] sm:$0xff]  ;;  %p10651_p6 = scmp.ne.s32.totalorder (%p4114_p4), %s16181_s14, %s10650_s25  ;;  %s10654_s5 = sshll.u32 (%p4114_p4), %s10751_s11, 4  ;;  %s10655_s5 = int_to_ptr.vmem [resolvable:$false] %s10654_s5 }
 0x63e   : >> { %v4129_v14 = vld [vmem:[%s13611_s13 + $0x40] sm:$0xff]  ;;  %8805 = vmatpush3.bf16.msra.mxu0 %v4188_v10  ;;  %8806 = vmatprep.mubr.msk.bf16.mxu0 %vm1863_vm0, %v4121_v35  ;;  %v4191_v19 = vld [vmem:[%s13607_s8 + $0x18] sm:$0xff]  ;;  %v4193_v2 = vld [vmem:[%s13607_s8 + $0x28] sm:$0xff]  ;;  %s10656_s19 = scalar_lea.vmem (%p4114_p4), %s10655_s5, 32768  ;;  %p10657_p7 = scmp.lt.s32.totalorder (%p4114_p4), %s16181_s14, %s10655_s5 }
 0x63f   : >> { %8824 = vmatprep.mubr.msk.bf16.mxu1 %vm1863_vm0, %v4129_v14  ;;  %8840 = vmatprep.subr.bf16.mxu0 %v4190_v59  ;;  %v4124_v5 = vld [vmem:[%s13611_s13 + $0x18] sm:$0xff]  ;;  %v4192_v61 = vld [vmem:[%s13607_s8 + $0x20] sm:$0xff]  ;;  %v4126_v37 = vld [vmem:[%s13611_s13 + $0x28] sm:$0xff]  ;;  %p10652_p13 = pnand (%p4114_p4), %p10651_p6, %p10916_p8  ;;  %p10658_p9 = scmp.lt.s32.totalorder (%p4114_p4), %s10656_s19, %s10650_s25 }
 0x640   : >> { %8825 = vmatmul.mubr.msk.bf16.vlgmr.msra.gmra.mrb[0].mxu1 %vm1863_vm0, %v4130_v1  ;;  %8858 = vmatprep.subr.bf16.mxu1 %v4191_v19  ;;  %v4132_v58 = vld [vmem:[%s13611_s13 + $0x58] sm:$0xff]  ;;  %v4125_v45 = vld [vmem:[%s13611_s13 + $0x20] sm:$0xff]  ;;  %v4134_v43 = vld [vmem:[%s13611_s13 + $0x68] sm:$0xff] }
 0x641   : >> { %8807 = vmatmul.mubr.msk.bf16.vlgmr.msra.gmra.mrb[0].mxu0 %vm1863_vm0, %v4122_v7  ;;  %8828 = vmatprep.mubr.msk.bf16.mxu1 %vm1863_vm0, %v4131_v13  ;;  %v4133_v55 = vld [vmem:[%s13611_s13 + $0x60] sm:$0xff]  ;;  %v4127_v32 = vld [vmem:[%s13611_s13 + $0x30] sm:$0xff]  ;;  %v4128_v22 = vld [vmem:[%s13611_s13 + $0x38] sm:$0xff]  ;;  %p10653_p3 = pneg (%p4114_p4), %p10652_p13  ;;  %p10659_p12 = por (%p4114_p4), %p10658_p9, %p10657_p7 }
 0x642   : >> { %8810 = vmatprep.mubr.msk.bf16.mxu0 %vm1863_vm0, %v4123_v52  ;;  %8841 = vmatpush3.bf16.msra.mxu0 %v4190_v59  ;;  %v4135_v29 = vld [vmem:[%s13611_s13 + $0x70] sm:$0xff]  ;;  %v4136_v20 = vld [vmem:[%s13611_s13 + $0x78] sm:$0xff]  ;;  %v4137_v11 = vld [vmem:[%s13611_s13 + $0x80] sm:$0xff] }
 0x643   : >> { %8859 = vmatpush3.bf16.msra.mxu1 %v4191_v19  ;;  %8876 = vmatprep.subr.bf16.mxu0 %v4192_v61  ;;  %v4145_v56 = vld [vmem:[%s13611_s13 + $0xc0] sm:$0xff]  ;;  %v4138_v24 = vld [vmem:[%s13611_s13 + $0x88] sm:$0xff]  ;;  %v4139_v30 = vld [vmem:[%s13611_s13 + $0x90] sm:$0xff]  ;;  %p10660_p0 = pnand (%p4114_p4), %p10659_p12, %p10653_p3 }
 0x644   : >> { %8894 = vmatprep.subr.bf16.mxu1 %v4193_v2  ;;  %v4146_v39 = vld [vmem:[%s13611_s13 + $0xc8] sm:$0xff]  ;;  %v4147_v57 = vld [vmem:[%s13611_s13 + $0xd0] sm:$0xff]  ;;  %v4195_v38 = vld [vmem:[%s13607_s8 + $0x38] sm:$0xff] }
 0x645   : >> { %v4194_v48 = vld [vmem:[%s13607_s8 + $0x30] sm:$0xff]  ;;  %v4140_v47 = vld [vmem:[%s13611_s13 + $0x98] sm:$0xff]  ;;  %v4141_v40 = vld [vmem:[%s13611_s13 + $0xa0] sm:$0xff] }
 0x646   : >> { %v4148_v9 = vld [vmem:[%s13611_s13 + $0xd8] sm:$0xff]  ;;  %v4149_v23 = vld [vmem:[%s13611_s13 + $0xe0] sm:$0xff]  ;;  %v4142_v4 = vld [vmem:[%s13611_s13 + $0xa8] sm:$0xff] }
 0x647   : >> { %v4150_v31 = vld [vmem:[%s13611_s13 + $0xe8] sm:$0xff]  ;;  %v4143_v0 = vld [vmem:[%s13611_s13 + $0xb0] sm:$0xff]  ;;  %v4144_v44 = vld [vmem:[%s13611_s13 + $0xb8] sm:$0xff] }
 0x648   : >> { %8829 = vmatmul.mubr.msk.bf16.gmra.mrb[4].mxu1 %vm1863_vm0, %v4132_v58  ;;  %v4151_v17 = vld [vmem:[%s13611_s13 + $0xf0] sm:$0xff]  ;;  %v4152_v8 = vld [vmem:[%s13611_s13 + $0xf8] sm:$0xff]  ;;  %v4153_v51 = vld [vmem:[%s13611_s13 + $0x100] sm:$0xff] }
 0x649   : >> { %8811 = vmatmul.mubr.msk.bf16.gmra.mrb[4].mxu0 %vm1863_vm0, %v4124_v5  ;;  %8832 = vmatprep.mubr.msk.bf16.mxu1 %vm1863_vm0, %v4133_v55  ;;  %v4161_v41 = vld [vmem:[%s13611_s13 + $0x140] sm:$0xff]  ;;  %v4154_v16 = vld [vmem:[%s13611_s13 + $0x108] sm:$0xff]  ;;  %v4155_v26 = vld [vmem:[%s13611_s13 + $0x110] sm:$0xff] }
 0x64a   : >> { %8814 = vmatprep.mubr.msk.bf16.mxu0 %vm1863_vm0, %v4125_v45  ;;  %v4162_v6 = vld [vmem:[%s13611_s13 + $0x148] sm:$0xff]  ;;  %v4163_v21 = vld [vmem:[%s13611_s13 + $0x150] sm:$0xff]  ;;  %v4156_v62 = vld [vmem:[%s13611_s13 + $0x118] sm:$0xff] }
 0x64b   : >> { %v4164_v25 = vld [vmem:[%s13611_s13 + $0x158] sm:$0xff]  ;;  %v4157_v10 = vld [vmem:[%s13611_s13 + $0x120] sm:$0xff]  ;;  %v4158_v35 = vld [vmem:[%s13611_s13 + $0x128] sm:$0xff] }
 0x64c   : >> { %v4165_v60 = vld [vmem:[%s13611_s13 + $0x160] sm:$0xff]  ;;  %v4166_v14 = vld [vmem:[%s13611_s13 + $0x168] sm:$0xff]  ;;  %v4159_v7 = vld [vmem:[%s13611_s13 + $0x130] sm:$0xff] }
 0x64d   : >> { %v4167_v1 = vld [vmem:[%s13611_s13 + $0x170] sm:$0xff]  ;;  %v4160_v52 = vld [vmem:[%s13611_s13 + $0x138] sm:$0xff]  ;;  %v4169_v59 = vld [vmem:[%s13611_s13 + $0x180] sm:$0xff] }
 0x64e   : >> { %v4168_v13 = vld [vmem:[%s13611_s13 + $0x178] sm:$0xff]  ;;  %v4177_v19 = vld [vmem:[%s13611_s13 + $0x1c0] sm:$0xff]  ;;  %v4170_v5 = vld [vmem:[%s13611_s13 + $0x188] sm:$0xff] }
 0x64f   : >> { %v4178_v58 = vld [vmem:[%s13611_s13 + $0x1c8] sm:$0xff]  ;;  %v4179_v45 = vld [vmem:[%s13611_s13 + $0x1d0] sm:$0xff]  ;;  %v4172_v55 = vld [vmem:[%s13611_s13 + $0x198] sm:$0xff] }
 0x650   : >> { %8833 = vmatmul.mubr.msk.bf16.gmra.mrb[8].mxu1 %vm1863_vm0, %v4134_v43  ;;  %v4181_v43 = vld [vmem:[%s13611_s13 + $0x1e0] sm:$0xff] }
 0x651   : >> { %8815 = vmatmul.mubr.msk.bf16.gmra.mrb[8].mxu0 %vm1863_vm0, %v4126_v37  ;;  %8836 = vmatprep.mubr.msk.bf16.mxu1 %vm1863_vm0, %v4135_v29  ;;  %v4173_v37 = vld [vmem:[%s13611_s13 + $0x1a0] sm:$0xff]  ;;  %v4182_v29 = vld [vmem:[%s13611_s13 + $0x1e8] sm:$0xff] }
 0x652   : >> { %8818 = vmatprep.mubr.msk.bf16.mxu0 %vm1863_vm0, %v4127_v32  ;;  %v4174_v32 = vld [vmem:[%s13611_s13 + $0x1a8] sm:$0xff] }
 0x658   : >> { %8837 = vmatmul.mubr.msk.bf16.gmra.mrb[12].mxu1 %vm1863_vm0, %v4136_v20  ;;  %v4176_v20 = vld [vmem:[%s13611_s13 + $0x1b8] sm:$0xff] }
 0x659   : >> { %8819 = vmatmul.mubr.msk.bf16.gmra.mrb[12].mxu0 %vm1863_vm0, %v4128_v22  ;;  %8860 = vmatprep.mubr.msk.bf16.mxu1 %vm1863_vm0, %v4145_v56  ;;  %v4175_v22 = vld [vmem:[%s13611_s13 + $0x1b0] sm:$0xff] }
 0x65a   : >> { %8842 = vmatprep.mubr.msk.bf16.mxu0 %vm1863_vm0, %v4137_v11 }
 0x660   : >> { %8861 = vmatmul.mubr.msk.bf16.vlgmr.msra.gmra.mrb[16].mxu1 %vm1863_vm0, %v4146_v39 }
 0x661   : >> { %8843 = vmatmul.mubr.msk.bf16.vlgmr.msra.gmra.mrb[16].mxu0 %vm1863_vm0, %v4138_v24  ;;  %8864 = vmatprep.mubr.msk.bf16.mxu1 %vm1863_vm0, %v4147_v57 }
 0x662   : >> { %8846 = vmatprep.mubr.msk.bf16.mxu0 %vm1863_vm0, %v4139_v30  ;;  %8877 = vmatpush3.bf16.msra.mxu0 %v4192_v61  ;;  %v4171_v61 = vld [vmem:[%s13611_s13 + $0x190] sm:$0xff] }
 0x663   : >> { %8895 = vmatpush3.bf16.msra.mxu1 %v4193_v2  ;;  %8912 = vmatprep.subr.bf16.mxu0 %v4194_v48  ;;  %v4180_v2 = vld [vmem:[%s13611_s13 + $0x1d8] sm:$0xff] }
 0x664   : >> { %8930 = vmatprep.subr.bf16.mxu1 %v4195_v38 }
 0x668   : >> { %8865 = vmatmul.mubr.msk.bf16.gmra.mrb[20].mxu1 %vm1863_vm0, %v4148_v9 }
 0x669   : >> { %8847 = vmatmul.mubr.msk.bf16.gmra.mrb[20].mxu0 %vm1863_vm0, %v4140_v47  ;;  %8868 = vmatprep.mubr.msk.bf16.mxu1 %vm1863_vm0, %v4149_v23 }
 0x66a   : >> { %8850 = vmatprep.mubr.msk.bf16.mxu0 %vm1863_vm0, %v4141_v40 }
 0x670   : >> { %8869 = vmatmul.mubr.msk.bf16.gmra.mrb[24].mxu1 %vm1863_vm0, %v4150_v31 }
 0x671   : >> { %8851 = vmatmul.mubr.msk.bf16.gmra.mrb[24].mxu0 %vm1863_vm0, %v4142_v4  ;;  %8872 = vmatprep.mubr.msk.bf16.mxu1 %vm1863_vm0, %v4151_v17 }
 0x672   : >> { %8854 = vmatprep.mubr.msk.bf16.mxu0 %vm1863_vm0, %v4143_v0 }
 0x678   : >> { %8873 = vmatmul.mubr.msk.bf16.gmra.mrb[28].mxu1 %vm1863_vm0, %v4152_v8 }
 0x679   : >> { %8855 = vmatmul.mubr.msk.bf16.gmra.mrb[28].mxu0 %vm1863_vm0, %v4144_v44  ;;  %8896 = vmatprep.mubr.msk.bf16.mxu1 %vm1863_vm0, %v4161_v41 }
 0x67a   : >> { %8878 = vmatprep.mubr.msk.bf16.mxu0 %vm1863_vm0, %v4153_v51 }
 0x680   : >> { %8897 = vmatmul.mubr.msk.bf16.vlgmr.msra.gmra.mrb[32].mxu1 %vm1863_vm0, %v4162_v6 }
 0x681   : >> { %8879 = vmatmul.mubr.msk.bf16.vlgmr.msra.gmra.mrb[32].mxu0 %vm1863_vm0, %v4154_v16  ;;  %8900 = vmatprep.mubr.msk.bf16.mxu1 %vm1863_vm0, %v4163_v21 }
 0x682   : >> { %8882 = vmatprep.mubr.msk.bf16.mxu0 %vm1863_vm0, %v4155_v26  ;;  %8913 = vmatpush3.bf16.msra.mxu0 %v4194_v48 }
 0x683   : >> { %8931 = vmatpush3.bf16.msra.mxu1 %v4195_v38 }
 0x688   : >> { %8901 = vmatmul.mubr.msk.bf16.gmra.mrb[36].mxu1 %vm1863_vm0, %v4164_v25 }
 0x689   : >> { %8883 = vmatmul.mubr.msk.bf16.gmra.mrb[36].mxu0 %vm1863_vm0, %v4156_v62  ;;  %8904 = vmatprep.mubr.msk.bf16.mxu1 %vm1863_vm0, %v4165_v60 }
 0x68a   : >> { %8886 = vmatprep.mubr.msk.bf16.mxu0 %vm1863_vm0, %v4157_v10 }
 0x690   : >> { %8905 = vmatmul.mubr.msk.bf16.gmra.mrb[40].mxu1 %vm1863_vm0, %v4166_v14 }
 0x691   : >> { %8887 = vmatmul.mubr.msk.bf16.gmra.mrb[40].mxu0 %vm1863_vm0, %v4158_v35  ;;  %8908 = vmatprep.mubr.msk.bf16.mxu1 %vm1863_vm0, %v4167_v1 }
 0x692   : >> { %8890 = vmatprep.mubr.msk.bf16.mxu0 %vm1863_vm0, %v4159_v7 }
 0x698   : >> { %8909 = vmatmul.mubr.msk.bf16.gmra.mrb[44].mxu1 %vm1863_vm0, %v4168_v13 }
 0x699   : >> { %8891 = vmatmul.mubr.msk.bf16.gmra.mrb[44].mxu0 %vm1863_vm0, %v4160_v52  ;;  %8932 = vmatprep.mubr.msk.bf16.mxu1 %vm1863_vm0, %v4177_v19 }
 0x69a   : >> { %8914 = vmatprep.mubr.msk.bf16.mxu0 %vm1863_vm0, %v4169_v59 }
 0x6a0   : >> { %8933 = vmatmul.mubr.msk.bf16.vlgmr.msra.gmra.mrb[48].mxu1 %vm1863_vm0, %v4178_v58 }
 0x6a1   : >> { %8915 = vmatmul.mubr.msk.bf16.vlgmr.msra.gmra.mrb[48].mxu0 %vm1863_vm0, %v4170_v5  ;;  %8936 = vmatprep.mubr.msk.bf16.mxu1 %vm1863_vm0, %v4179_v45 }
 0x6a2   : >> { %8918 = vmatprep.mubr.msk.bf16.mxu0 %vm1863_vm0, %v4171_v61 }
 0x6a8   : >> { %8937 = vmatmul.mubr.msk.bf16.gmra.mrb[52].mxu1 %vm1863_vm0, %v4180_v2 }
 0x6a9   : >> { %8919 = vmatmul.mubr.msk.bf16.gmra.mrb[52].mxu0 %vm1863_vm0, %v4172_v55  ;;  %8940 = vmatprep.mubr.msk.bf16.mxu1 %vm1863_vm0, %v4181_v43 }
 0x6aa   : >> { %8922 = vmatprep.mubr.msk.bf16.mxu0 %vm1863_vm0, %v4173_v37 }
 0x6b0   : >> { %8941 = vmatmul.mubr.msk.bf16.gmra.mrb[56].mxu1 %vm1863_vm0, %v4182_v29 }
 0x6b1   : >> { %8923 = vmatmul.mubr.msk.bf16.gmra.mrb[56].mxu0 %vm1863_vm0, %v4174_v32 }
 0x6b2   : >> { %8926 = vmatprep.mubr.msk.bf16.mxu0 %vm1863_vm0, %v4175_v22 }
 0x6b9   : >> { %8927 = vmatmul.mubr.msk.bf16.gmra.mrb[60].mxu0 %vm1863_vm0, %v4176_v20 }
 0x713   : >> { %v8826_v56 = vpop.f32.mrb[0].mxu1 }
 0x714   : >> { %v8808_v11 = vpop.f32.mrb[0].mxu0  ;;  %v13751_v39 = vadd.f32 %v8826_v56, %v17058_v54  ;;  %v4375_v57 = vpop.f32.mrb[1].mxu1 }
 0x715   : >> { %v13748_v24 = vadd.f32 %v8808_v11, %v17058_v54  ;;  %v4254_v30 = vpop.f32.mrb[1].mxu0  ;;  %v8827_v38 = vpop.f32.mrb[2].mxu1  ;;  %v13764_v0 = vadd.f32 %v4375_v57, %v17057_v12 }
 0x716   : >> { %17061 = vst [vmem:[#allocation152_spill] sm:$0xff] %v13751_v39  ;;  %v8809_v48 = vpop.f32.mrb[2].mxu0  ;;  %5200 = vmax.xlane.f32.xlu0 %v13751_v39  ;;  %v4378_v47 = vpop.f32.mrb[3].mxu1  ;;  %v13756_v40 = vadd.f32 %v4254_v30, %v17057_v12  ;;  %v13767_v17 = vadd.f32 %v8827_v38, %v17059_v46 }
 0x717   : >> { %17060 = vst [vmem:[#allocation151_spill] sm:$0xff] %v13748_v24  ;;  %5168 = vmax.xlane.f32.xlu1 %v13748_v24  ;;  %v4257_v9 = vpop.f32.mrb[3].mxu0  ;;  %v13759_v23 = vadd.f32 %v8809_v48, %v17059_v46  ;;  %17064 = vst [vmem:[#allocation155_spill] sm:$0xff] %v13764_v0  ;;  %v13772_v26 = vadd.f32 %v4378_v47, %v17056_v53 }
 0x718   : >> { %17062 = vst [vmem:[#allocation153_spill] sm:$0xff] %v13756_v40  ;;  %17065 = vst [vmem:[#allocation156_spill] sm:$0xff] %v13767_v17  ;;  %v13775_v21 = vadd.f32 %v4257_v9, %v17056_v53 }
 0x719   : >> { %17063 = vst [vmem:[#allocation154_spill] sm:$0xff] %v13759_v23  ;;  %17066 = vst [vmem:[#allocation157_spill] sm:$0xff] %v13772_v26 }
 0x71a   : >> { %5164 = vmax.xlane.f32.xlu0 %v13756_v40  ;;  %17067 = vst [vmem:[#allocation158_spill] sm:$0xff] %v13775_v21 }
 0x71b   : >> { %5170 = vmax.xlane.f32.xlu1 %v13759_v23  ;;  %v8830_v31 = vpop.f32.mrb[4].mxu1 }
 0x71c   : >> { %v8812_v4 = vpop.f32.mrb[4].mxu0  ;;  %v4391_v8 = vpop.f32.mrb[5].mxu1  ;;  %v13788_v59 = vadd.f32 %v8830_v31, %v17055_v3 }
 0x71d   : >> { %v4270_v44 = vpop.f32.mrb[5].mxu0  ;;  %v8831_v41 = vpop.f32.mrb[6].mxu1  ;;  %v13780_v10 = vadd.f32 %v8812_v4, %v17055_v3  ;;  %v13808_v22 = vadd.f32 %v4391_v8, %v17052_v42 }
 0x71e   : >> { %v8813_v51 = vpop.f32.mrb[6].mxu0  ;;  %5196 = vmax.xlane.f32.xlu0 %v13764_v0  ;;  %v4394_v6 = vpop.f32.mrb[7].mxu1  ;;  %17070 = vst [vmem:[#allocation161_spill] sm:$0xff] %v13788_v59  ;;  %v13791_v19 = vadd.f32 %v8831_v41, %v17054_v15  ;;  %v13796_v61 = vadd.f32 %v4270_v44, %v17052_v42 }
 0x71f   : >> { %5202 = vmax.xlane.f32.xlu1 %v13767_v17  ;;  %v4273_v16 = vpop.f32.mrb[7].mxu0  ;;  %17068 = vst [vmem:[#allocation159_spill] sm:$0xff] %v13780_v10  ;;  %v13783_v60 = vadd.f32 %v8813_v51, %v17054_v15  ;;  %17074 = vst [vmem:[#allocation165_spill] sm:$0xff] %v13808_v22  ;;  %v13811_v20 = vadd.f32 %v4394_v6, %v17053_v33 }
 0x720   : >> { %17071 = vst [vmem:[#allocation162_spill] sm:$0xff] %v13791_v19  ;;  %17072 = vst [vmem:[#allocation163_spill] sm:$0xff] %v13796_v61  ;;  %v13799_v45 = vadd.f32 %v4273_v16, %v17053_v33 }
 0x721   : >> { %17069 = vst [vmem:[#allocation160_spill] sm:$0xff] %v13783_v60  ;;  %17075 = vst [vmem:[#allocation166_spill] sm:$0xff] %v13811_v20 }
 0x722   : >> { %5166 = vmax.xlane.f32.xlu0 %v13775_v21  ;;  %17073 = vst [vmem:[#allocation164_spill] sm:$0xff] %v13799_v45  ;;  %v4184_v21 = vld [vmem:[%s13611_s13 + $0x1f8] sm:$0xff] }
 0x723   : >> { %5198 = vmax.xlane.f32.xlu1 %v13772_v26  ;;  %v8834_v25 = vpop.f32.mrb[8].mxu1 }
 0x724   : >> { %v8816_v62 = vpop.f32.mrb[8].mxu0  ;;  %v4407_v14 = vpop.f32.mrb[9].mxu1  ;;  %v13838_v44 = vadd.f32 %v8834_v25, %v17051_v34 }
 0x725   : >> { %v4286_v35 = vpop.f32.mrb[9].mxu0  ;;  %v8835_v1 = vpop.f32.mrb[10].mxu1  ;;  %v13820_v30 = vadd.f32 %v8816_v62, %v17051_v34 }
 0x726   : >> { %v8817_v7 = vpop.f32.mrb[10].mxu0  ;;  %5176 = vmax.xlane.f32.xlu0 %v13780_v10  ;;  %v4410_v13 = vpop.f32.mrb[11].mxu1  ;;  %17078 = vst [vmem:[#allocation169_spill] sm:$0xff] %v13838_v44  ;;  %v13841_v8 = vadd.f32 %v8835_v1, %v17050_v63  ;;  %v13850_v16 = vadd.f32 %v4286_v35, %v17049_v18  ;;  %v13870_v35 = vadd.f32 %v4407_v14, %v17049_v18 }
 0x727   : >> { %5178 = vmax.xlane.f32.xlu1 %v13783_v60  ;;  %v4289_v52 = vpop.f32.mrb[11].mxu0  ;;  %17076 = vst [vmem:[#allocation167_spill] sm:$0xff] %v13820_v30  ;;  %v13823_v57 = vadd.f32 %v8817_v7, %v17050_v63 }
 0x728   : >> { %17079 = vst [vmem:[#allocation170_spill] sm:$0xff] %v13841_v8  ;;  %17080 = vst [vmem:[#allocation171_spill] sm:$0xff] %v13850_v16  ;;  %v13853_v6 = vadd.f32 %v4289_v52, %v17048_v49  ;;  %v13873_v52 = vadd.f32 %v4410_v13, %v17048_v49 }
 0x729   : >> { %17077 = vst [vmem:[#allocation168_spill] sm:$0xff] %v13823_v57  ;;  %17082 = vst [vmem:[#allocation173_spill] sm:$0xff] %v13870_v35 }
 0x72a   : >> { %5208 = vmax.xlane.f32.xlu0 %v13788_v59  ;;  %17081 = vst [vmem:[#allocation172_spill] sm:$0xff] %v13853_v6  ;;  %17083 = vst [vmem:[#allocation174_spill] sm:$0xff] %v13873_v52 }
 0x72b   : >> { %5210 = vmax.xlane.f32.xlu1 %v13791_v19  ;;  %v8838_v58 = vpop.f32.mrb[12].mxu1 }
 0x72c   : >> { %v8820_v5 = vpop.f32.mrb[12].mxu0  ;;  %v13801_v2 = vpop.f32.mrb[13].mxu1 }
 0x72d   : >> { %v4302_v55 = vpop.f32.mrb[13].mxu0  ;;  %v8839_v43 = vpop.f32.mrb[14].mxu1 }
 0x72e   : >> { %v8821_v37 = vpop.f32.mrb[14].mxu0  ;;  %5172 = vmax.xlane.f32.xlu0 %v13796_v61  ;;  %v13805_v29 = vpop.f32.mrb[15].mxu1 }
 0x72f   : >> { %5174 = vmax.xlane.f32.xlu1 %v13799_v45  ;;  %v4305_v32 = vpop.f32.mrb[15].mxu0 }
 0x732   : >> { %5204 = vmax.xlane.f32.xlu0 %v13808_v22 }
 0x733   : >> { %5206 = vmax.xlane.f32.xlu1 %v13811_v20  ;;  %v13817_v56 = vpop.f32.mrb[16].mxu1 }
 0x734   : >> { %v13815_v11 = vpop.f32.mrb[16].mxu0  ;;  %v13827_v38 = vpop.f32.mrb[17].mxu1 }
 0x735   : >> { %v13825_v48 = vpop.f32.mrb[17].mxu0  ;;  %v13829_v9 = vpop.f32.mrb[18].mxu1  ;;  %v13949_v10 = vadd.f32 %v13815_v11, %v17058_v54 }
 0x736   : >> { %v8845_v47 = vpop.f32.mrb[18].mxu0  ;;  %5184 = vmax.xlane.f32.xlu0 %v13820_v30  ;;  %v13835_v31 = vpop.f32.mrb[19].mxu1  ;;  %v13977_v40 = vadd.f32 %v13829_v9, %v17059_v46 }
 0x737   : >> { %5186 = vmax.xlane.f32.xlu1 %v13823_v57  ;;  %v13833_v4 = vpop.f32.mrb[19].mxu0  ;;  %17092 = vst [vmem:[#allocation183_spill] sm:$0xff] %v13949_v10  ;;  %v14014_v39 = vadd.f32 %v13835_v31, %v17056_v53 }
 0x738   : >> { %17095 = vst [vmem:[#allocation186_spill] sm:$0xff] %v13977_v40 }
 0x739   : >> { %17100 = vst [vmem:[#allocation191_spill] sm:$0xff] %v14014_v39 }
 0x73a   : >> { %5216 = vmax.xlane.f32.xlu0 %v13838_v44 }
 0x73b   : >> { %5218 = vmax.xlane.f32.xlu1 %v13841_v8  ;;  %v13847_v41 = vpop.f32.mrb[20].mxu1 }
 0x73c   : >> { %v13845_v51 = vpop.f32.mrb[20].mxu0  ;;  %v13857_v25 = vpop.f32.mrb[21].mxu1 }
 0x73d   : >> { %v13855_v62 = vpop.f32.mrb[21].mxu0  ;;  %v13861_v1 = vpop.f32.mrb[22].mxu1 }
 0x73e   : >> { %v13859_v7 = vpop.f32.mrb[22].mxu0  ;;  %5180 = vmax.xlane.f32.xlu0 %v13850_v16  ;;  %v13867_v8 = vpop.f32.mrb[23].mxu1  ;;  %v13882_v16 = vadd.f32 %v8820_v5, %v17047_v36  ;;  %v13902_v5 = vadd.f32 %v8838_v58, %v17047_v36 }
 0x73f   : >> { %5182 = vmax.xlane.f32.xlu1 %v13853_v6  ;;  %v13865_v44 = vpop.f32.mrb[23].mxu0  ;;  %v13885_v6 = vadd.f32 %v8821_v37, %v17046_v28  ;;  %v13905_v37 = vadd.f32 %v8839_v43, %v17046_v28 }
 0x740   : >> { %17084 = vst [vmem:[#allocation175_spill] sm:$0xff] %v13882_v16  ;;  %17086 = vst [vmem:[#allocation177_spill] sm:$0xff] %v13902_v5 }
 0x741   : >> { %17085 = vst [vmem:[#allocation176_spill] sm:$0xff] %v13885_v6  ;;  %17087 = vst [vmem:[#allocation178_spill] sm:$0xff] %v13905_v37 }
 0x742   : >> { %5212 = vmax.xlane.f32.xlu0 %v13870_v35 }
 0x743   : >> { %5214 = vmax.xlane.f32.xlu1 %v13873_v52  ;;  %v13879_v57 = vpop.f32.mrb[24].mxu1 }
 0x744   : >> { %v13877_v30 = vpop.f32.mrb[24].mxu0  ;;  %v13889_v14 = vpop.f32.mrb[25].mxu1 }
 0x745   : >> { %v13887_v22 = vpop.f32.mrb[25].mxu0  ;;  %v13893_v20 = vpop.f32.mrb[26].mxu1 }
 0x746   : >> { %v13891_v13 = vpop.f32.mrb[26].mxu0  ;;  %5192 = vmax.xlane.f32.xlu0 %v13882_v16  ;;  %v13899_v52 = vpop.f32.mrb[27].mxu1  ;;  %v13914_v16 = vadd.f32 %v4302_v55, %v17045_v50 }
 0x747   : >> { %5194 = vmax.xlane.f32.xlu1 %v13885_v6  ;;  %v13897_v35 = vpop.f32.mrb[27].mxu0  ;;  %v13917_v6 = vadd.f32 %v4305_v32, %v17044_v27  ;;  %v13935_v32 = vadd.f32 %v13801_v2, %v17045_v50  ;;  %v13952_v2 = vadd.f32 %v8845_v47, %v17059_v46  ;;  %v13973_v47 = vadd.f32 %v13817_v56, %v17058_v54 }
 0x748   : >> { %17088 = vst [vmem:[#allocation179_spill] sm:$0xff] %v13914_v16  ;;  %v13992_v56 = vadd.f32 %v13833_v4, %v17056_v53  ;;  %v14010_v4 = vadd.f32 %v13827_v38, %v17057_v12  ;;  %v14028_v38 = vadd.f32 %v13859_v7, %v17054_v15  ;;  %v14046_v7 = vadd.f32 %v13847_v41, %v17055_v3 }
 0x749   : >> { %17089 = vst [vmem:[#allocation180_spill] sm:$0xff] %v13917_v6  ;;  %17090 = vst [vmem:[#allocation181_spill] sm:$0xff] %v13935_v32  ;;  %v14064_v41 = vadd.f32 %v13865_v44, %v17053_v33  ;;  %v14082_v44 = vadd.f32 %v13857_v25, %v17052_v42  ;;  %v14100_v25 = vadd.f32 %v13891_v13, %v17050_v63 }
 0x74a   : >> { %5224 = vmax.xlane.f32.xlu0 %v13902_v5  ;;  %17093 = vst [vmem:[#allocation184_spill] sm:$0xff] %v13952_v2  ;;  %17094 = vst [vmem:[#allocation185_spill] sm:$0xff] %v13973_v47  ;;  %v14118_v13 = vadd.f32 %v13879_v57, %v17051_v34  ;;  %v14136_v57 = vadd.f32 %v13897_v35, %v17048_v49  ;;  %v14154_v35 = vadd.f32 %v13889_v14, %v17049_v18 }
 0x74b   : >> { %5226 = vmax.xlane.f32.xlu1 %v13905_v37  ;;  %v13911_v45 = vpop.f32.mrb[28].mxu1  ;;  %v13939_v37 = vadd.f32 %v13805_v29, %v17044_v27  ;;  %17097 = vst [vmem:[#allocation188_spill] sm:$0xff] %v13992_v56  ;;  %17099 = vst [vmem:[#allocation190_spill] sm:$0xff] %v14010_v4 }
 0x74c   : >> { %v13909_v61 = vpop.f32.mrb[28].mxu0  ;;  %v13921_v58 = vpop.f32.mrb[29].mxu1  ;;  %17102 = vst [vmem:[#allocation193_spill] sm:$0xff] %v14028_v38  ;;  %17107 = vst [vmem:[#allocation198_spill] sm:$0xff] %v14046_v7 }
 0x74d   : >> { %v13919_v59 = vpop.f32.mrb[29].mxu0  ;;  %v13925_v19 = vpop.f32.mrb[30].mxu1  ;;  %17091 = vst [vmem:[#allocation182_spill] sm:$0xff] %v13939_v37  ;;  %17110 = vst [vmem:[#allocation201_spill] sm:$0xff] %v14064_v41 }
 0x74e   : >> { %v13923_v43 = vpop.f32.mrb[30].mxu0  ;;  %5188 = vmax.xlane.f32.xlu0 %v13914_v16  ;;  %v13931_v55 = vpop.f32.mrb[31].mxu1  ;;  %17115 = vst [vmem:[#allocation206_spill] sm:$0xff] %v14082_v44  ;;  %17118 = vst [vmem:[#allocation209_spill] sm:$0xff] %v14100_v25 }
 0x74f   : >> { %5190 = vmax.xlane.f32.xlu1 %v13917_v6  ;;  %v13929_v5 = vpop.f32.mrb[31].mxu0  ;;  %17123 = vst [vmem:[#allocation214_spill] sm:$0xff] %v14118_v13  ;;  %17126 = vst [vmem:[#allocation217_spill] sm:$0xff] %v14136_v57  ;;  %v14172_v14 = vadd.f32 %v13923_v43, %v17046_v28  ;;  %v14190_v43 = vadd.f32 %v13911_v45, %v17047_v36 }
 0x750   : >> { %17131 = vst [vmem:[#allocation222_spill] sm:$0xff] %v14154_v35 }
 0x751   : >> { %17134 = vst [vmem:[#allocation225_spill] sm:$0xff] %v14172_v14  ;;  %17138 = vst [vmem:[#allocation229_spill] sm:$0xff] %v14190_v43 }
 0x752   : >> { %5220 = vmax.xlane.f32.xlu0 %v13935_v32  ;;  %v4183_v32 = vld [vmem:[%s13611_s13 + $0x1f0] sm:$0xff] }
 0x753   : >> { %5222 = vmax.xlane.f32.xlu1 %v13939_v37  ;;  %v13945_v16 = vpop.f32.mrb[32].mxu1  ;;  %8944 = vmatprep.mubr.msk.bf16.mxu1 %vm1863_vm0, %v4183_v32  ;;  %v13988_v32 = vadd.f32 %v13825_v48, %v17057_v12 }
 0x754   : >> { %v13943_v6 = vpop.f32.mrb[32].mxu0  ;;  %v13956_v29 = vpop.f32.mrb[33].mxu1  ;;  %8945 = vmatmul.mubr.msk.bf16.gmra.mrb[60].mxu1 %vm1863_vm0, %v4184_v21 }
 0x755   : >> { %v13954_v60 = vpop.f32.mrb[33].mxu0  ;;  %v13960_v37 = vpop.f32.mrb[34].mxu1  ;;  %17096 = vst [vmem:[#allocation187_spill] sm:$0xff] %v13988_v32 }
 0x756   : >> { %v13958_v26 = vpop.f32.mrb[34].mxu0  ;;  %5232 = vmax.xlane.f32.xlu0 %v13949_v10  ;;  %v13967_v11 = vpop.f32.mrb[35].mxu1 }
 0x757   : >> { %5234 = vmax.xlane.f32.xlu1 %v13952_v2  ;;  %v13965_v0 = vpop.f32.mrb[35].mxu0 }
 0x75a   : >> { %5264 = vmax.xlane.f32.xlu0 %v13973_v47 }
 0x75b   : >> { %5266 = vmax.xlane.f32.xlu1 %v13977_v40  ;;  %v13984_v2 = vpop.f32.mrb[36].mxu1 }
 0x75c   : >> { %v13982_v10 = vpop.f32.mrb[36].mxu0  ;;  %v13996_v17 = vpop.f32.mrb[37].mxu1 }
 0x75d   : >> { %v13994_v9 = vpop.f32.mrb[37].mxu0  ;;  %v14000_v40 = vpop.f32.mrb[38].mxu1 }
 0x75e   : >> { %v13998_v21 = vpop.f32.mrb[38].mxu0  ;;  %5228 = vmax.xlane.f32.xlu0 %v13988_v32  ;;  %v14006_v48 = vpop.f32.mrb[39].mxu1  ;;  %v14024_v32 = vadd.f32 %v13845_v51, %v17055_v3 }
 0x75f   : >> { %5230 = vmax.xlane.f32.xlu1 %v13992_v56  ;;  %v14004_v47 = vpop.f32.mrb[39].mxu0  ;;  %17098 = vst [vmem:[#allocation189_spill] sm:$0xff] %v14006_v48 }
 0x760   : >> { %17101 = vst [vmem:[#allocation192_spill] sm:$0xff] %v14024_v32 }
 0x762   : >> { %5260 = vmax.xlane.f32.xlu0 %v14010_v4 }
 0x763   : >> { %5262 = vmax.xlane.f32.xlu1 %v14014_v39  ;;  %v14020_v56 = vpop.f32.mrb[40].mxu1 }
 0x764   : >> { %v14018_v23 = vpop.f32.mrb[40].mxu0  ;;  %v14032_v31 = vpop.f32.mrb[41].mxu1 }
 0x765   : >> { %v14030_v24 = vpop.f32.mrb[41].mxu0  ;;  %17104 = vst [vmem:[#allocation195_spill] sm:$0xff] %v14032_v31  ;;  %v14036_v39 = vpop.f32.mrb[42].mxu1 }
 0x766   : >> { %17103 = vst [vmem:[#allocation194_spill] sm:$0xff] %v14030_v24  ;;  %v14034_v48 = vpop.f32.mrb[42].mxu0  ;;  %5240 = vmax.xlane.f32.xlu0 %v14024_v32  ;;  %v14042_v51 = vpop.f32.mrb[43].mxu1  ;;  %v14050_v24 = vadd.f32 %v13861_v1, %v17054_v15  ;;  %v14060_v32 = vadd.f32 %v13855_v62, %v17052_v42 }
 0x767   : >> { %5242 = vmax.xlane.f32.xlu1 %v14028_v38  ;;  %v14040_v4 = vpop.f32.mrb[43].mxu0  ;;  %17106 = vst [vmem:[#allocation197_spill] sm:$0xff] %v14042_v51 }
 0x768   : >> { %17105 = vst [vmem:[#allocation196_spill] sm:$0xff] %v14040_v4  ;;  %17108 = vst [vmem:[#allocation199_spill] sm:$0xff] %v14050_v24 }
 0x769   : >> { %17109 = vst [vmem:[#allocation200_spill] sm:$0xff] %v14060_v32 }
 0x76a   : >> { %5272 = vmax.xlane.f32.xlu0 %v14046_v7 }
 0x76b   : >> { %5274 = vmax.xlane.f32.xlu1 %v14050_v24  ;;  %v14056_v38 = vpop.f32.mrb[44].mxu1 }
 0x76c   : >> { %v14054_v31 = vpop.f32.mrb[44].mxu0  ;;  %v14068_v1 = vpop.f32.mrb[45].mxu1 }
 0x76d   : >> { %v14066_v51 = vpop.f32.mrb[45].mxu0  ;;  %17112 = vst [vmem:[#allocation203_spill] sm:$0xff] %v14068_v1  ;;  %v14072_v24 = vpop.f32.mrb[46].mxu1 }
 0x76e   : >> { %17111 = vst [vmem:[#allocation202_spill] sm:$0xff] %v14066_v51  ;;  %v14070_v4 = vpop.f32.mrb[46].mxu0  ;;  %5236 = vmax.xlane.f32.xlu0 %v14060_v32  ;;  %v14078_v62 = vpop.f32.mrb[47].mxu1  ;;  %v14086_v51 = vadd.f32 %v13867_v8, %v17053_v33  ;;  %v14096_v32 = vadd.f32 %v13877_v30, %v17051_v34 }
 0x76f   : >> { %5238 = vmax.xlane.f32.xlu1 %v14064_v41  ;;  %v14076_v7 = vpop.f32.mrb[47].mxu0  ;;  %17114 = vst [vmem:[#allocation205_spill] sm:$0xff] %v14078_v62 }
 0x770   : >> { %17113 = vst [vmem:[#allocation204_spill] sm:$0xff] %v14076_v7  ;;  %17116 = vst [vmem:[#allocation207_spill] sm:$0xff] %v14086_v51 }
 0x771   : >> { %17117 = vst [vmem:[#allocation208_spill] sm:$0xff] %v14096_v32 }
 0x772   : >> { %5268 = vmax.xlane.f32.xlu0 %v14082_v44 }
 0x773   : >> { %5270 = vmax.xlane.f32.xlu1 %v14086_v51  ;;  %v14092_v41 = vpop.f32.mrb[48].mxu1 }
 0x774   : >> { %v14090_v1 = vpop.f32.mrb[48].mxu0  ;;  %v14104_v8 = vpop.f32.mrb[49].mxu1 }
 0x775   : >> { %v14102_v62 = vpop.f32.mrb[49].mxu0  ;;  %17120 = vst [vmem:[#allocation211_spill] sm:$0xff] %v14104_v8  ;;  %v14108_v51 = vpop.f32.mrb[50].mxu1 }
 0x776   : >> { %17119 = vst [vmem:[#allocation210_spill] sm:$0xff] %v14102_v62  ;;  %v14106_v7 = vpop.f32.mrb[50].mxu0  ;;  %5248 = vmax.xlane.f32.xlu0 %v14096_v32  ;;  %v14114_v30 = vpop.f32.mrb[51].mxu1  ;;  %v14122_v62 = vadd.f32 %v13893_v20, %v17050_v63  ;;  %v14132_v32 = vadd.f32 %v13887_v22, %v17049_v18 }
 0x777   : >> { %5250 = vmax.xlane.f32.xlu1 %v14100_v25  ;;  %v14112_v44 = vpop.f32.mrb[51].mxu0  ;;  %17122 = vst [vmem:[#allocation213_spill] sm:$0xff] %v14114_v30 }
 0x778   : >> { %17121 = vst [vmem:[#allocation212_spill] sm:$0xff] %v14112_v44  ;;  %17124 = vst [vmem:[#allocation215_spill] sm:$0xff] %v14122_v62 }
 0x779   : >> { %17125 = vst [vmem:[#allocation216_spill] sm:$0xff] %v14132_v32 }
 0x77a   : >> { %5280 = vmax.xlane.f32.xlu0 %v14118_v13 }
 0x77b   : >> { %5282 = vmax.xlane.f32.xlu1 %v14122_v62  ;;  %v14128_v25 = vpop.f32.mrb[52].mxu1 }
 0x77c   : >> { %v14126_v8 = vpop.f32.mrb[52].mxu0  ;;  %v14140_v20 = vpop.f32.mrb[53].mxu1 }
 0x77d   : >> { %v14138_v30 = vpop.f32.mrb[53].mxu0  ;;  %17128 = vst [vmem:[#allocation219_spill] sm:$0xff] %v14140_v20  ;;  %v14144_v62 = vpop.f32.mrb[54].mxu1 }
 0x77e   : >> { %17127 = vst [vmem:[#allocation218_spill] sm:$0xff] %v14138_v30  ;;  %v14142_v44 = vpop.f32.mrb[54].mxu0  ;;  %5244 = vmax.xlane.f32.xlu0 %v14132_v32  ;;  %v14150_v22 = vpop.f32.mrb[55].mxu1  ;;  %v14158_v30 = vadd.f32 %v13899_v52, %v17048_v49  ;;  %v14168_v32 = vadd.f32 %v13909_v61, %v17047_v36 }
 0x77f   : >> { %5246 = vmax.xlane.f32.xlu1 %v14136_v57  ;;  %v14148_v13 = vpop.f32.mrb[55].mxu0  ;;  %17130 = vst [vmem:[#allocation221_spill] sm:$0xff] %v14150_v22 }
 0x780   : >> { %17129 = vst [vmem:[#allocation220_spill] sm:$0xff] %v14148_v13  ;;  %17132 = vst [vmem:[#allocation223_spill] sm:$0xff] %v14158_v30 }
 0x781   : >> { %17133 = vst [vmem:[#allocation224_spill] sm:$0xff] %v14168_v32 }
 0x782   : >> { %5276 = vmax.xlane.f32.xlu0 %v14154_v35 }
 0x783   : >> { %5278 = vmax.xlane.f32.xlu1 %v14158_v30  ;;  %v14164_v57 = vpop.f32.mrb[56].mxu1 }
 0x784   : >> { %v14162_v20 = vpop.f32.mrb[56].mxu0  ;;  %v14176_v52 = vpop.f32.mrb[57].mxu1 }
 0x785   : >> { %v14174_v22 = vpop.f32.mrb[57].mxu0  ;;  %17136 = vst [vmem:[#allocation227_spill] sm:$0xff] %v14176_v52  ;;  %v14180_v30 = vpop.f32.mrb[58].mxu1 }
 0x786   : >> { %17135 = vst [vmem:[#allocation226_spill] sm:$0xff] %v14174_v22  ;;  %v14178_v13 = vpop.f32.mrb[58].mxu0  ;;  %5256 = vmax.xlane.f32.xlu0 %v14168_v32  ;;  %v14186_v61 = vpop.f32.mrb[59].mxu1  ;;  %v14194_v22 = vadd.f32 %v13925_v19, %v17046_v28  ;;  %v14202_v32 = vadd.f32 %v13919_v59, %v17045_v50  ;;  %v14222_v59 = vadd.f32 %v13931_v55, %v17044_v27 }
 0x787   : >> { %5258 = vmax.xlane.f32.xlu1 %v14172_v14  ;;  %v14184_v35 = vpop.f32.mrb[59].mxu0  ;;  %17137 = vst [vmem:[#allocation228_spill] sm:$0xff] %v14186_v61  ;;  %v14206_v14 = vadd.f32 %v13929_v5, %v17044_v27  ;;  %v14228_v5 = vadd.f32 %v13943_v6, %v17058_v54  ;;  %v14242_v55 = vadd.f32 %v13960_v37, %v17059_v46 }
 0x788   : >> { %17139 = vst [vmem:[#allocation230_spill] sm:$0xff] %v14194_v22  ;;  %17140 = vst [vmem:[#allocation231_spill] sm:$0xff] %v14202_v32  ;;  %v14252_v6 = vadd.f32 %v13965_v0, %v17056_v53  ;;  %v14262_v37 = vadd.f32 %v13967_v11, %v17056_v53 }
 0x789   : >> { %17141 = vst [vmem:[#allocation232_spill] sm:$0xff] %v14206_v14  ;;  %17143 = vst [vmem:[#allocation234_spill] sm:$0xff] %v14222_v59 }
 0x78a   : >> { %5288 = vmax.xlane.f32.xlu0 %v14190_v43  ;;  %v14218_v43 = vadd.f32 %v13921_v58, %v17045_v50  ;;  %17144 = vst [vmem:[#allocation235_spill] sm:$0xff] %v14228_v5  ;;  %v14238_v58 = vadd.f32 %v13945_v16, %v17058_v54  ;;  %17147 = vst [vmem:[#allocation238_spill] sm:$0xff] %v14242_v55  ;;  %v14258_v16 = vadd.f32 %v13956_v29, %v17057_v12 }
 0x78b   : >> { %5290 = vmax.xlane.f32.xlu1 %v14194_v22  ;;  %17149 = vst [vmem:[#allocation240_spill] sm:$0xff] %v14252_v6  ;;  %17151 = vst [vmem:[#allocation242_spill] sm:$0xff] %v14262_v37  ;;  %v14276_v29 = vadd.f32 %v13998_v21, %v17054_v15  ;;  %v17183_v22 = vld [vmem:[#allocation205_spill] sm:$0xff] }
 0x78c   : >> { %v14198_v52 = vpop.f32.mrb[60].mxu0  ;;  %17142 = vst [vmem:[#allocation233_spill] sm:$0xff] %v14218_v43  ;;  %17146 = vst [vmem:[#allocation237_spill] sm:$0xff] %v14238_v58 }
 0x78d   : >> { %v14208_v45 = vpop.f32.mrb[61].mxu0  ;;  %17150 = vst [vmem:[#allocation241_spill] sm:$0xff] %v14258_v16  ;;  %17153 = vst [vmem:[#allocation244_spill] sm:$0xff] %v14276_v29 }
 0x78e   : >> { %v14210_v61 = vpop.f32.mrb[62].mxu0  ;;  %5252 = vmax.xlane.f32.xlu0 %v14202_v32  ;;  %v14232_v32 = vadd.f32 %v13958_v26, %v17059_v46  ;;  %v14248_v26 = vadd.f32 %v13954_v60, %v17057_v12 }
 0x78f   : >> { %5254 = vmax.xlane.f32.xlu1 %v14206_v14  ;;  %v14214_v19 = vpop.f32.mrb[63].mxu0 }
 0x790   : >> { %17145 = vst [vmem:[#allocation236_spill] sm:$0xff] %v14232_v32  ;;  %17148 = vst [vmem:[#allocation239_spill] sm:$0xff] %v14248_v26 }
 0x792   : >> { %5284 = vmax.xlane.f32.xlu0 %v14218_v43 }
 0x793   : >> { %5286 = vmax.xlane.f32.xlu1 %v14222_v59  ;;  %v17179_v59 = vld [vmem:[#allocation204_spill] sm:$0xff] }
 0x796   : >> { %5296 = vmax.xlane.f32.xlu0 %v14228_v5 }
 0x797   : >> { %5298 = vmax.xlane.f32.xlu1 %v14232_v32  ;;  %v17171_v32 = vld [vmem:[#allocation197_spill] sm:$0xff] }
 0x79a   : >> { %5328 = vmax.xlane.f32.xlu0 %v14238_v58  ;;  %v14272_v58 = vadd.f32 %v13982_v10, %v17055_v3  ;;  %v14290_v10 = vadd.f32 %v14000_v40, %v17054_v15 }
 0x79b   : >> { %5330 = vmax.xlane.f32.xlu1 %v14242_v55 }
 0x79c   : >> { %17152 = vst [vmem:[#allocation243_spill] sm:$0xff] %v14272_v58  ;;  %17155 = vst [vmem:[#allocation246_spill] sm:$0xff] %v14290_v10 }
 0x79e   : >> { %5292 = vmax.xlane.f32.xlu0 %v14248_v26 }
 0x79f   : >> { %5294 = vmax.xlane.f32.xlu1 %v14252_v6  ;;  %v17167_v6 = vld [vmem:[#allocation196_spill] sm:$0xff] }
 0x7a2   : >> { %5324 = vmax.xlane.f32.xlu0 %v14258_v16  ;;  %v14286_v16 = vadd.f32 %v13984_v2, %v17055_v3  ;;  %v14304_v2 = vadd.f32 %v14004_v47, %v17053_v33 }
 0x7a3   : >> { %5326 = vmax.xlane.f32.xlu1 %v14262_v37  ;;  %v14266_v60 = vpop.xlane.xlu0 %5200  ;;  %v17159_v37 = vld [vmem:[#allocation189_spill] sm:$0xff] }
 0x7a4   : >> { %v14268_v0 = vpop.xlane.xlu1 %5168  ;;  %17154 = vst [vmem:[#allocation245_spill] sm:$0xff] %v14286_v16  ;;  %17157 = vst [vmem:[#allocation248_spill] sm:$0xff] %v14304_v2 }
 0x7a6   : >> { %5304 = vmax.xlane.f32.xlu0 %v14272_v58  ;;  %v14300_v58 = vadd.f32 %v13994_v9, %v17052_v42  ;;  %v14318_v9 = vadd.f32 %v17159_v37, %v17053_v33 }
 0x7a7   : >> { %5306 = vmax.xlane.f32.xlu1 %v14276_v29  ;;  %v14282_v55 = vpop.xlane.xlu0 %5164 }
 0x7a8   : >> { %v14280_v11 = vpop.xlane.xlu1 %5170  ;;  %17156 = vst [vmem:[#allocation247_spill] sm:$0xff] %v14300_v58  ;;  %17160 = vst [vmem:[#allocation189_spill] sm:$0xff] %v14318_v9 }
 0x7aa   : >> { %5336 = vmax.xlane.f32.xlu0 %v14286_v16  ;;  %v14314_v16 = vadd.f32 %v13996_v17, %v17052_v42  ;;  %v14332_v17 = vadd.f32 %v14034_v48, %v17050_v63 }
 0x7ab   : >> { %5338 = vmax.xlane.f32.xlu1 %v14290_v10  ;;  %v14296_v29 = vpop.xlane.xlu0 %5196 }
 0x7ac   : >> { %v14294_v21 = vpop.xlane.xlu1 %5202  ;;  %17158 = vst [vmem:[#allocation249_spill] sm:$0xff] %v14314_v16  ;;  %17162 = vst [vmem:[#allocation251_spill] sm:$0xff] %v14332_v17 }
 0x7ae   : >> { %5300 = vmax.xlane.f32.xlu0 %v14300_v58  ;;  %v14328_v58 = vadd.f32 %v14018_v23, %v17051_v34  ;;  %v14346_v23 = vadd.f32 %v14036_v39, %v17050_v63 }
 0x7af   : >> { %5302 = vmax.xlane.f32.xlu1 %v14304_v2  ;;  %v14310_v10 = vpop.xlane.xlu0 %5166 }
 0x7b0   : >> { %v14308_v40 = vpop.xlane.xlu1 %5198  ;;  %17161 = vst [vmem:[#allocation250_spill] sm:$0xff] %v14328_v58  ;;  %17164 = vst [vmem:[#allocation253_spill] sm:$0xff] %v14346_v23 }
 0x7b2   : >> { %5332 = vmax.xlane.f32.xlu0 %v14314_v16  ;;  %v14342_v16 = vadd.f32 %v14020_v56, %v17051_v34  ;;  %v14360_v56 = vadd.f32 %v17167_v6, %v17048_v49 }
 0x7b3   : >> { %5334 = vmax.xlane.f32.xlu1 %v14318_v9  ;;  %v14324_v2 = vpop.xlane.xlu0 %5176 }
 0x7b4   : >> { %v14322_v47 = vpop.xlane.xlu1 %5178  ;;  %17163 = vst [vmem:[#allocation252_spill] sm:$0xff] %v14342_v16  ;;  %17168 = vst [vmem:[#allocation196_spill] sm:$0xff] %v14360_v56 }
 0x7b6   : >> { %5312 = vmax.xlane.f32.xlu0 %v14328_v58  ;;  %v17165_v58 = vld [vmem:[#allocation194_spill] sm:$0xff] }
 0x7b7   : >> { %5314 = vmax.xlane.f32.xlu1 %v14332_v17  ;;  %v14338_v9 = vpop.xlane.xlu0 %5208  ;;  %v14356_v26 = vadd.f32 %v17165_v58, %v17049_v18  ;;  %v14374_v58 = vadd.f32 %v17171_v32, %v17048_v49 }
 0x7b8   : >> { %v14336_v37 = vpop.xlane.xlu1 %5210 }
 0x7b9   : >> { %17166 = vst [vmem:[#allocation194_spill] sm:$0xff] %v14356_v26  ;;  %17172 = vst [vmem:[#allocation197_spill] sm:$0xff] %v14374_v58 }
 0x7ba   : >> { %5344 = vmax.xlane.f32.xlu0 %v14342_v16  ;;  %v17169_v16 = vld [vmem:[#allocation195_spill] sm:$0xff] }
 0x7bb   : >> { %5346 = vmax.xlane.f32.xlu1 %v14346_v23  ;;  %v14352_v17 = vpop.xlane.xlu0 %5172  ;;  %v14370_v5 = vadd.f32 %v17169_v16, %v17049_v18  ;;  %v14388_v16 = vadd.f32 %v14070_v4, %v17046_v28 }
 0x7bc   : >> { %v14350_v48 = vpop.xlane.xlu1 %5174 }
 0x7bd   : >> { %17170 = vst [vmem:[#allocation195_spill] sm:$0xff] %v14370_v5  ;;  %17174 = vst [vmem:[#allocation255_spill] sm:$0xff] %v14388_v16 }
 0x7be   : >> { %5308 = vmax.xlane.f32.xlu0 %v14356_v26  ;;  %v14384_v26 = vadd.f32 %v14054_v31, %v17047_v36  ;;  %v14402_v31 = vadd.f32 %v14072_v24, %v17046_v28 }
 0x7bf   : >> { %5310 = vmax.xlane.f32.xlu1 %v14360_v56  ;;  %v14366_v23 = vpop.xlane.xlu0 %5204 }
 0x7c0   : >> { %v14364_v39 = vpop.xlane.xlu1 %5206  ;;  %17173 = vst [vmem:[#allocation254_spill] sm:$0xff] %v14384_v26  ;;  %17176 = vst [vmem:[#allocation257_spill] sm:$0xff] %v14402_v31 }
 0x7c2   : >> { %5340 = vmax.xlane.f32.xlu0 %v14370_v5  ;;  %v14398_v5 = vadd.f32 %v14056_v38, %v17047_v36  ;;  %v14416_v38 = vadd.f32 %v17179_v59, %v17044_v27 }
 0x7c3   : >> { %5342 = vmax.xlane.f32.xlu1 %v14374_v58  ;;  %v14380_v56 = vpop.xlane.xlu0 %5184 }
 0x7c4   : >> { %v14378_v6 = vpop.xlane.xlu1 %5186  ;;  %17175 = vst [vmem:[#allocation256_spill] sm:$0xff] %v14398_v5  ;;  %17180 = vst [vmem:[#allocation204_spill] sm:$0xff] %v14416_v38 }
 0x7c6   : >> { %5320 = vmax.xlane.f32.xlu0 %v14384_v26  ;;  %v17177_v26 = vld [vmem:[#allocation202_spill] sm:$0xff] }
 0x7c7   : >> { %5322 = vmax.xlane.f32.xlu1 %v14388_v16  ;;  %v14394_v58 = vpop.xlane.xlu0 %5216  ;;  %v14412_v43 = vadd.f32 %v17177_v26, %v17045_v50  ;;  %v14430_v26 = vadd.f32 %v17183_v22, %v17044_v27 }
 0x7c8   : >> { %v14392_v32 = vpop.xlane.xlu1 %5218 }
 0x7c9   : >> { %17178 = vst [vmem:[#allocation202_spill] sm:$0xff] %v14412_v43  ;;  %17184 = vst [vmem:[#allocation205_spill] sm:$0xff] %v14430_v26 }
 0x7ca   : >> { %5352 = vmax.xlane.f32.xlu0 %v14398_v5  ;;  %v17181_v5 = vld [vmem:[#allocation203_spill] sm:$0xff] }
 0x7cb   : >> { %5354 = vmax.xlane.f32.xlu1 %v14402_v31  ;;  %v14408_v16 = vpop.xlane.xlu0 %5180  ;;  %v14426_v14 = vadd.f32 %v17181_v5, %v17045_v50  ;;  %v14444_v5 = vadd.f32 %v14106_v7, %v17059_v46 }
 0x7cc   : >> { %v14406_v4 = vpop.xlane.xlu1 %5182 }
 0x7cd   : >> { %17182 = vst [vmem:[#allocation203_spill] sm:$0xff] %v14426_v14  ;;  %17186 = vst [vmem:[#allocation259_spill] sm:$0xff] %v14444_v5 }
 0x7ce   : >> { %5316 = vmax.xlane.f32.xlu0 %v14412_v43  ;;  %v14440_v43 = vadd.f32 %v14090_v1, %v17058_v54  ;;  %v14458_v1 = vadd.f32 %v14108_v51, %v17059_v46 }
 0x7cf   : >> { %5318 = vmax.xlane.f32.xlu1 %v14416_v38  ;;  %v14422_v31 = vpop.xlane.xlu0 %5212 }
 0x7d0   : >> { %v14420_v24 = vpop.xlane.xlu1 %5214  ;;  %17185 = vst [vmem:[#allocation258_spill] sm:$0xff] %v14440_v43  ;;  %17190 = vst [vmem:[#allocation263_spill] sm:$0xff] %v14458_v1 }
 0x7d2   : >> { %5348 = vmax.xlane.f32.xlu0 %v14426_v14  ;;  %v14454_v14 = vadd.f32 %v14092_v41, %v17058_v54  ;;  %v17195_v54 = vld [vmem:[#allocation211_spill] sm:$0xff] }
 0x7d3   : >> { %5350 = vmax.xlane.f32.xlu1 %v14430_v26  ;;  %v14436_v38 = vpop.xlane.xlu0 %5192 }
 0x7d4   : >> { %v14434_v59 = vpop.xlane.xlu1 %5194  ;;  %17189 = vst [vmem:[#allocation262_spill] sm:$0xff] %v14454_v14 }
 0x7d6   : >> { %5360 = vmax.xlane.f32.xlu0 %v14440_v43  ;;  %v17191_v43 = vld [vmem:[#allocation210_spill] sm:$0xff] }
 0x7d7   : >> { %5362 = vmax.xlane.f32.xlu1 %v14444_v5  ;;  %v14450_v26 = vpop.xlane.xlu0 %5224 }
 0x7d8   : >> { %v14448_v22 = vpop.xlane.xlu1 %5226  ;;  %17188 = vst [vmem:[#allocation261_spill] sm:$0xff] %v14450_v26  ;;  %v17193_v26 = vld [vmem:[#allocation212_spill] sm:$0xff] }
 0x7d9   : >> { %17187 = vst [vmem:[#allocation260_spill] sm:$0xff] %v14448_v22  ;;  %v14468_v22 = vadd.f32 %v17191_v43, %v17057_v12  ;;  %v14472_v41 = vadd.f32 %v17193_v26, %v17056_v53 }
 0x7da   : >> { %5392 = vmax.xlane.f32.xlu0 %v14454_v14  ;;  %v14482_v14 = vadd.f32 %v17195_v54, %v17057_v12  ;;  %v14500_v54 = vadd.f32 %v14142_v44, %v17054_v15 }
 0x7db   : >> { %5394 = vmax.xlane.f32.xlu1 %v14458_v1  ;;  %v14464_v5 = vpop.xlane.xlu0 %5188  ;;  %17192 = vst [vmem:[#allocation210_spill] sm:$0xff] %v14468_v22  ;;  %17194 = vst [vmem:[#allocation212_spill] sm:$0xff] %v14472_v41  ;;  %v17197_v1 = vld [vmem:[#allocation213_spill] sm:$0xff] }
 0x7dc   : >> { %v14462_v7 = vpop.xlane.xlu1 %5190  ;;  %17196 = vst [vmem:[#allocation211_spill] sm:$0xff] %v14482_v14  ;;  %v14486_v43 = vadd.f32 %v17197_v1, %v17056_v53  ;;  %17200 = vst [vmem:[#allocation265_spill] sm:$0xff] %v14500_v54  ;;  %v14510_v53 = vadd.f32 %v14128_v25, %v17055_v3 }
 0x7de   : >> { %5356 = vmax.xlane.f32.xlu0 %v14468_v22  ;;  %17198 = vst [vmem:[#allocation213_spill] sm:$0xff] %v14486_v43  ;;  %v14496_v22 = vadd.f32 %v14126_v8, %v17055_v3  ;;  %17201 = vst [vmem:[#allocation266_spill] sm:$0xff] %v14510_v53  ;;  %v14514_v8 = vadd.f32 %v14144_v62, %v17054_v15  ;;  %v17207_v15 = vld [vmem:[#allocation219_spill] sm:$0xff] }
 0x7df   : >> { %5358 = vmax.xlane.f32.xlu1 %v14472_v41  ;;  %v14478_v46 = vpop.xlane.xlu0 %5220 }
 0x7e0   : >> { %v14476_v51 = vpop.xlane.xlu1 %5222  ;;  %17199 = vst [vmem:[#allocation264_spill] sm:$0xff] %v14496_v22  ;;  %17202 = vst [vmem:[#allocation267_spill] sm:$0xff] %v14514_v8 }
 0x7e2   : >> { %5388 = vmax.xlane.f32.xlu0 %v14482_v14 }
 0x7e3   : >> { %5390 = vmax.xlane.f32.xlu1 %v14486_v43  ;;  %v14492_v41 = vpop.xlane.xlu0 %5232  ;;  %v17203_v43 = vld [vmem:[#allocation218_spill] sm:$0xff] }
 0x7e4   : >> { %v14490_v26 = vpop.xlane.xlu1 %5234 }
 0x7e6   : >> { %5368 = vmax.xlane.f32.xlu0 %v14496_v22  ;;  %v14524_v22 = vadd.f32 %v17203_v43, %v17052_v42 }
 0x7e7   : >> { %5370 = vmax.xlane.f32.xlu1 %v14500_v54  ;;  %v14506_v12 = vpop.xlane.xlu0 %5264  ;;  %v17205_v54 = vld [vmem:[#allocation220_spill] sm:$0xff] }
 0x7e8   : >> { %v14504_v1 = vpop.xlane.xlu1 %5266  ;;  %17204 = vst [vmem:[#allocation218_spill] sm:$0xff] %v14524_v22  ;;  %v14528_v25 = vadd.f32 %v17205_v54, %v17053_v33 }
 0x7ea   : >> { %5400 = vmax.xlane.f32.xlu0 %v14510_v53  ;;  %17206 = vst [vmem:[#allocation220_spill] sm:$0xff] %v14528_v25  ;;  %v14538_v53 = vadd.f32 %v17207_v15, %v17052_v42  ;;  %v14556_v15 = vadd.f32 %v14178_v13, %v17050_v63  ;;  %v14566_v42 = vadd.f32 %v14164_v57, %v17051_v34  ;;  %v17220_v57 = vld [vmem:[#allocation226_spill] sm:$0xff] }
 0x7eb   : >> { %5402 = vmax.xlane.f32.xlu1 %v14514_v8  ;;  %v14520_v14 = vpop.xlane.xlu0 %5228  ;;  %v17209_v8 = vld [vmem:[#allocation221_spill] sm:$0xff] }
 0x7ec   : >> { %v14518_v44 = vpop.xlane.xlu1 %5230  ;;  %17208 = vst [vmem:[#allocation219_spill] sm:$0xff] %v14538_v53  ;;  %v14542_v43 = vadd.f32 %v17209_v8, %v17053_v33  ;;  %17212 = vst [vmem:[#allocation269_spill] sm:$0xff] %v14556_v15 }
 0x7ed   : >> { %17214 = vst [vmem:[#allocation271_spill] sm:$0xff] %v14566_v42 }
 0x7ee   : >> { %5364 = vmax.xlane.f32.xlu0 %v14524_v22  ;;  %17210 = vst [vmem:[#allocation221_spill] sm:$0xff] %v14542_v43  ;;  %v14552_v22 = vadd.f32 %v14162_v20, %v17051_v34  ;;  %v14570_v20 = vadd.f32 %v14180_v30, %v17050_v63  ;;  %v14584_v34 = vadd.f32 %v17220_v57, %v17049_v18 }
 0x7ef   : >> { %5366 = vmax.xlane.f32.xlu1 %v14528_v25  ;;  %v14534_v3 = vpop.xlane.xlu0 %5260  ;;  %v14588_v30 = vadd.f32 %v14184_v35, %v17048_v49 }
 0x7f0   : >> { %v14532_v62 = vpop.xlane.xlu1 %5262  ;;  %17211 = vst [vmem:[#allocation268_spill] sm:$0xff] %v14552_v22  ;;  %17215 = vst [vmem:[#allocation272_spill] sm:$0xff] %v14570_v20 }
 0x7f1   : >> { %17221 = vst [vmem:[#allocation226_spill] sm:$0xff] %v14584_v34  ;;  %17222 = vst [vmem:[#allocation273_spill] sm:$0xff] %v14588_v30 }
 0x7f2   : >> { %5396 = vmax.xlane.f32.xlu0 %v14538_v53  ;;  %v17216_v53 = vld [vmem:[#allocation151_spill] sm:$0xff] }
 0x7f3   : >> { %5398 = vmax.xlane.f32.xlu1 %v14542_v43  ;;  %v14548_v25 = vpop.xlane.xlu0 %5240  ;;  %v5422_v13 = vsub.f32 %v17216_v53, %v14268_v0  ;;  %v17217_v43 = vld [vmem:[#allocation154_spill] sm:$0xff]  ;;  %v17223_v53 = vld [vmem:[#allocation152_spill] sm:$0xff] }
 0x7f4   : >> { %v14546_v54 = vpop.xlane.xlu1 %5242  ;;  %v5438_v0 = vsub.f32 %v17223_v53, %v14266_v60  ;;  %v17229_v53 = vld [vmem:[#allocation153_spill] sm:$0xff] }
 0x7f5   : >> { %v5552_v63 = vmul.f32 1.442695, %v5422_v13 }
 0x7f6   : >> { %5376 = vmax.xlane.f32.xlu0 %v14552_v22  ;;  %v5423_v22 = vsub.f32 %v17217_v43, %v14280_v11  ;;  %v17224_v43 = vld [vmem:[#allocation156_spill] sm:$0xff]  ;;  %v5584_v13 = vmul.f32 1.442695, %v5438_v0  ;;  %v17233_v0 = vld [vmem:[#allocation155_spill] sm:$0xff] }
 0x7f7   : >> { %5378 = vmax.xlane.f32.xlu1 %v14556_v15  ;;  %v14562_v33 = vpop.xlane.xlu0 %5272  ;;  %10024 = vpow2.f32 %v5552_v63  ;;  %v14624_v63 = vadd.f32 %v14210_v61, %v17046_v28  ;;  %v14638_v61 = vadd.f32 %v14208_v45, %v17045_v50 }
 0x7f8   : >> { %v14560_v8 = vpop.xlane.xlu1 %5274  ;;  %17213 = vst [vmem:[#allocation270_spill] sm:$0xff] %v14562_v33  ;;  %v5554_v11 = vmul.f32 1.442695, %v5423_v22  ;;  %v5420_v22 = vsub.f32 %v17229_v53, %v14282_v55 }
 0x7f9   : >> { %17235 = vst [vmem:[#allocation153_spill] sm:$0xff] %v14638_v61 }
 0x7fa   : >> { %5408 = vmax.xlane.f32.xlu0 %v14566_v42  ;;  %v5439_v42 = vsub.f32 %v17224_v43, %v14294_v21  ;;  %10026 = vpow2.f32 %v5554_v11  ;;  %v17230_v43 = vld [vmem:[#allocation158_spill] sm:$0xff]  ;;  %v5548_v55 = vmul.f32 1.442695, %v5420_v22  ;;  %v17237_v22 = vld [vmem:[#allocation160_spill] sm:$0xff] }
 0x7fb   : >> { %5410 = vmax.xlane.f32.xlu1 %v14570_v20  ;;  %v14580_v33 = vpop.xlane.xlu0 %5236  ;;  %10028 = vpow2.f32 %v5584_v13 }
 0x7fc   : >> { %v14578_v15 = vpop.xlane.xlu1 %5238  ;;  %17219 = vst [vmem:[#allocation154_spill] sm:$0xff] %v14580_v33  ;;  %v17225_v33 = vld [vmem:[#allocation227_spill] sm:$0xff]  ;;  %v5586_v21 = vmul.f32 1.442695, %v5439_v42  ;;  %v5436_v42 = vsub.f32 %v17233_v0, %v14296_v29  ;;  %v14642_v29 = vadd.f32 %v14214_v19, %v17044_v27 }
 0x7fd   : >> { %17218 = vst [vmem:[#allocation151_spill] sm:$0xff] %v14578_v15  ;;  %v14602_v35 = vadd.f32 %v17225_v33, %v17049_v18  ;;  %v17227_v15 = vld [vmem:[#allocation228_spill] sm:$0xff] }
 0x7fe   : >> { %5372 = vmax.xlane.f32.xlu0 %v14584_v34  ;;  %v14606_v60 = vadd.f32 %v17227_v15, %v17048_v49  ;;  %v5421_v34 = vsub.f32 %v17230_v43, %v14310_v10  ;;  %v14620_v15 = vadd.f32 %v14198_v52, %v17047_v36  ;;  %17232 = vst [vmem:[#allocation228_spill] sm:$0xff] %v14624_v63  ;;  %10030 = vpow2.f32 %v5586_v21  ;;  %v17234_v10 = vld [vmem:[#allocation157_spill] sm:$0xff] }
 0x7ff   : >> { %5374 = vmax.xlane.f32.xlu1 %v14588_v30  ;;  %v14598_v57 = vpop.xlane.xlu0 %5268  ;;  %17226 = vst [vmem:[#allocation152_spill] sm:$0xff] %v14602_v35  ;;  %v5437_v11 = vsub.f32 %v17234_v10, %v14308_v40  ;;  %17236 = vst [vmem:[#allocation158_spill] sm:$0xff] %v14642_v29  ;;  %10032 = vpow2.f32 %v5548_v55  ;;  %v5580_v13 = vmul.f32 1.442695, %v5436_v42  ;;  %v5427_v21 = vsub.f32 %v17237_v22, %v14322_v47  ;;  %v17238_v40 = vld [vmem:[#allocation159_spill] sm:$0xff]  ;;  %v17240_v47 = vld [vmem:[#allocation162_spill] sm:$0xff] }
 0x800   : >> { %v14596_v20 = vpop.xlane.xlu1 %5270  ;;  %17228 = vst [vmem:[#allocation156_spill] sm:$0xff] %v14606_v60  ;;  %17231 = vst [vmem:[#allocation227_spill] sm:$0xff] %v14620_v15  ;;  %v5550_v53 = vmul.f32 1.442695, %v5421_v34  ;;  %v5426_v0 = vsub.f32 %v17238_v40, %v14324_v2  ;;  %v5443_v22 = vsub.f32 %v17240_v47, %v14336_v37  ;;  %v17241_v2 = vld [vmem:[#allocation161_spill] sm:$0xff]  ;;  %v17244_v37 = vld [vmem:[#allocation164_spill] sm:$0xff] }
 0x801   : >> { %v5582_v34 = vmul.f32 1.442695, %v5437_v11  ;;  %v14654_v19 = vpop.eup %10024  ;;  %v5562_v42 = vmul.f32 1.442695, %v5427_v21  ;;  %v5425_v47 = vsub.f32 %v17244_v37, %v14350_v48  ;;  %v17246_v48 = vld [vmem:[#allocation166_spill] sm:$0xff] }
 0x802   : >> { %5404 = vmax.xlane.f32.xlu0 %v14602_v35  ;;  %10034 = vpow2.f32 %v5550_v53  ;;  %v5560_v11 = vmul.f32 1.442695, %v5426_v0  ;;  %v5442_v53 = vsub.f32 %v17241_v2, %v14338_v9  ;;  %v5594_v21 = vmul.f32 1.442695, %v5443_v22  ;;  %v17245_v9 = vld [vmem:[#allocation163_spill] sm:$0xff] }
 0x803   : >> { %5406 = vmax.xlane.f32.xlu1 %v14606_v60  ;;  %v14616_v18 = vpop.xlane.xlu0 %5248  ;;  %10036 = vpow2.f32 %v5580_v13  ;;  %v5424_v0 = vsub.f32 %v17245_v9, %v14352_v17  ;;  %v5558_v22 = vmul.f32 1.442695, %v5425_v47  ;;  %v5441_v37 = vsub.f32 %v17246_v48, %v14364_v39  ;;  %v17247_v17 = vld [vmem:[#allocation165_spill] sm:$0xff]  ;;  %v17250_v39 = vld [vmem:[#allocation168_spill] sm:$0xff] }
 0x804   : >> { %v14614_v33 = vpop.xlane.xlu1 %5250  ;;  %v14656_v55 = vpop.eup %10026  ;;  %10038 = vpow2.f32 %v5582_v34  ;;  %v5592_v34 = vmul.f32 1.442695, %v5442_v53  ;;  %v5440_v53 = vsub.f32 %v17247_v17, %v14366_v23  ;;  %v5431_v48 = vsub.f32 %v17250_v39, %v14378_v6  ;;  %v17251_v23 = vld [vmem:[#allocation167_spill] sm:$0xff]  ;;  %v17254_v6 = vld [vmem:[#allocation170_spill] sm:$0xff] }
 0x805   : >> { %17239 = vst [vmem:[#allocation155_spill] sm:$0xff] %v14656_v55  ;;  %v14668_v35 = vpop.eup %10028  ;;  %10040 = vpow2.f32 %v5562_v42  ;;  %v5590_v47 = vmul.f32 1.442695, %v5441_v37  ;;  %v5447_v39 = vsub.f32 %v17254_v6, %v14392_v32  ;;  %v17258_v32 = vld [vmem:[#allocation172_spill] sm:$0xff] }
 0x806   : >> { %5384 = vmax.xlane.f32.xlu0 %v14620_v15  ;;  %17242 = vst [vmem:[#allocation157_spill] sm:$0xff] %v14668_v35  ;;  %10042 = vpow2.f32 %v5560_v11  ;;  %v5556_v11 = vmul.f32 1.442695, %v5424_v0  ;;  %v5430_v0 = vsub.f32 %v17251_v23, %v14380_v56  ;;  %v5570_v37 = vmul.f32 1.442695, %v5431_v48  ;;  %v17255_v56 = vld [vmem:[#allocation169_spill] sm:$0xff] }
 0x807   : >> { %5386 = vmax.xlane.f32.xlu1 %v14624_v63  ;;  %v14634_v43 = vpop.xlane.xlu0 %5280  ;;  %10044 = vpow2.f32 %v5594_v21  ;;  %v5602_v48 = vmul.f32 1.442695, %v5447_v39  ;;  %v5429_v6 = vsub.f32 %v17258_v32, %v14406_v4  ;;  %v17262_v4 = vld [vmem:[#allocation174_spill] sm:$0xff] }
 0x808   : >> { %v14632_v52 = vpop.xlane.xlu1 %5282  ;;  %v14670_v13 = vpop.eup %10030  ;;  %10046 = vpow2.f32 %v5592_v34  ;;  %v5588_v34 = vmul.f32 1.442695, %v5440_v53  ;;  %v5446_v53 = vsub.f32 %v17255_v56, %v14394_v58  ;;  %v17259_v58 = vld [vmem:[#allocation171_spill] sm:$0xff]  ;;  %v5445_v32 = vsub.f32 %v17262_v4, %v14420_v24  ;;  %v17266_v24 = vld [vmem:[#allocation176_spill] sm:$0xff] }
 0x809   : >> { %17243 = vst [vmem:[#allocation160_spill] sm:$0xff] %v14670_v13  ;;  %10048 = vpow2.f32 %v5558_v22  ;;  %v5566_v39 = vmul.f32 1.442695, %v5429_v6  ;;  %v5435_v4 = vsub.f32 %v17266_v24, %v14434_v59 }
 0x80a   : >> { %5380 = vmax.xlane.f32.xlu0 %v14638_v61  ;;  %v14682_v61 = vpop.eup %10032  ;;  %10050 = vpow2.f32 %v5556_v11  ;;  %v5568_v11 = vmul.f32 1.442695, %v5430_v0  ;;  %v5428_v0 = vsub.f32 %v17259_v58, %v14408_v16  ;;  %v17263_v16 = vld [vmem:[#allocation173_spill] sm:$0xff]  ;;  %v5598_v6 = vmul.f32 1.442695, %v5445_v32 }
 0x80b   : >> { %5382 = vmax.xlane.f32.xlu1 %v14642_v29  ;;  %v14652_v10 = vpop.xlane.xlu0 %5244  ;;  %10052 = vpow2.f32 %v5590_v47  ;;  %v5578_v24 = vmul.f32 1.442695, %v5435_v4 }
 0x80c   : >> { %v14650_v45 = vpop.xlane.xlu1 %5246  ;;  %v14684_v42 = vpop.eup %10034  ;;  %10054 = vpow2.f32 %v5588_v34  ;;  %v5600_v34 = vmul.f32 1.442695, %v5446_v53  ;;  %v5444_v53 = vsub.f32 %v17263_v16, %v14422_v31  ;;  %v17267_v31 = vld [vmem:[#allocation175_spill] sm:$0xff] }
 0x80d   : >> { %v14696_v15 = vpop.eup %10036  ;;  %10056 = vpow2.f32 %v5570_v37 }
 0x80e   : >> { %5808 = vadd.xlane.f32.xlu0 %v14654_v19  ;;  %17248 = vst [vmem:[#allocation159_spill] sm:$0xff] %v14696_v15  ;;  %v14698_v21 = vpop.eup %10038  ;;  %10058 = vpow2.f32 %v5568_v11  ;;  %v5564_v11 = vmul.f32 1.442695, %v5428_v0  ;;  %v5434_v0 = vsub.f32 %v17267_v31, %v14436_v38 }
 0x80f   : >> { %5810 = vadd.xlane.f32.xlu1 %v14656_v55  ;;  %v14666_v49 = vpop.xlane.xlu0 %5276  ;;  %17249 = vst [vmem:[#allocation162_spill] sm:$0xff] %v14698_v21  ;;  %v14710_v30 = vpop.eup %10040  ;;  %10060 = vpow2.f32 %v5602_v48 }
 0x810   : >> { %v14664_v40 = vpop.xlane.xlu1 %5278  ;;  %17252 = vst [vmem:[#allocation161_spill] sm:$0xff] %v14710_v30  ;;  %v14712_v22 = vpop.eup %10042  ;;  %10062 = vpow2.f32 %v5600_v34  ;;  %v5596_v34 = vmul.f32 1.442695, %v5444_v53  ;;  %v5576_v31 = vmul.f32 1.442695, %v5434_v0 }
 0x811   : >> { %17253 = vst [vmem:[#allocation164_spill] sm:$0xff] %v14712_v22  ;;  %v14724_v28 = vpop.eup %10044  ;;  %10064 = vpow2.f32 %v5566_v39 }
 0x812   : >> { %5840 = vadd.xlane.f32.xlu0 %v14668_v35  ;;  %17256 = vst [vmem:[#allocation163_spill] sm:$0xff] %v14724_v28  ;;  %v14726_v47 = vpop.eup %10046  ;;  %10066 = vpow2.f32 %v5564_v11  ;;  %v17272_v11 = vld [vmem:[#allocation178_spill] sm:$0xff]  ;;  %v17275_v35 = vld [vmem:[#allocation177_spill] sm:$0xff] }
 0x813   : >> { %5842 = vadd.xlane.f32.xlu1 %v14670_v13  ;;  %v14680_v60 = vpop.xlane.xlu0 %5256  ;;  %17257 = vst [vmem:[#allocation166_spill] sm:$0xff] %v14726_v47  ;;  %10068 = vpow2.f32 %v5598_v6 }
 0x814   : >> { %v14678_v2 = vpop.xlane.xlu1 %5258  ;;  %10070 = vpow2.f32 %v5596_v34 }
 0x815   : >> { %10072 = vpow2.f32 %v5578_v24 }
 0x816   : >> { %5804 = vadd.xlane.f32.xlu0 %v14682_v61  ;;  %10074 = vpow2.f32 %v5576_v31 }
 0x817   : >> { %5806 = vadd.xlane.f32.xlu1 %v14684_v42  ;;  %v14694_v29 = vpop.xlane.xlu0 %5288 }
 0x818   : >> { %v14692_v9 = vpop.xlane.xlu1 %5290 }
 0x81a   : >> { %5836 = vadd.xlane.f32.xlu0 %v14696_v15 }
 0x81b   : >> { %5838 = vadd.xlane.f32.xlu1 %v14698_v21  ;;  %v14708_v63 = vpop.xlane.xlu0 %5252 }
 0x81c   : >> { %v14706_v17 = vpop.xlane.xlu1 %5254 }
 0x81e   : >> { %5816 = vadd.xlane.f32.xlu0 %v14712_v22  ;;  %v14738_v22 = vpop.eup %10048 }
 0x81f   : >> { %5818 = vadd.xlane.f32.xlu1 %v14710_v30  ;;  %v14722_v36 = vpop.xlane.xlu0 %5284  ;;  %17260 = vst [vmem:[#allocation165_spill] sm:$0xff] %v14738_v22  ;;  %v14740_v37 = vpop.eup %10050 }
 0x820   : >> { %v14720_v23 = vpop.xlane.xlu1 %5286  ;;  %17261 = vst [vmem:[#allocation168_spill] sm:$0xff] %v14740_v37 }
 0x822   : >> { %5848 = vadd.xlane.f32.xlu0 %v14726_v47  ;;  %v14752_v47 = vpop.eup %10052 }
 0x823   : >> { %5850 = vadd.xlane.f32.xlu1 %v14724_v28  ;;  %v14736_v30 = vpop.xlane.xlu0 %5296  ;;  %17264 = vst [vmem:[#allocation167_spill] sm:$0xff] %v14752_v47  ;;  %v14754_v48 = vpop.eup %10054 }
 0x824   : >> { %v14734_v56 = vpop.xlane.xlu1 %5298  ;;  %17265 = vst [vmem:[#allocation170_spill] sm:$0xff] %v14754_v48 }
 0x826   : >> { %5812 = vadd.xlane.f32.xlu0 %v14740_v37 }
 0x827   : >> { %5814 = vadd.xlane.f32.xlu1 %v14738_v22  ;;  %v14750_v28 = vpop.xlane.xlu0 %5328  ;;  %v14766_v22 = vpop.eup %10056 }
 0x828   : >> { %v14748_v58 = vpop.xlane.xlu1 %5330  ;;  %17268 = vst [vmem:[#allocation169_spill] sm:$0xff] %v14766_v22  ;;  %v14768_v39 = vpop.f32.mrb[60].mxu1 }
 0x829   : >> { %17269 = vst [vmem:[#allocation172_spill] sm:$0xff] %v14768_v39  ;;  %v14770_v32 = vpop.eup %10058  ;;  %v14772_v59 = vpop.f32.mrb[61].mxu1 }
 0x82a   : >> { %5844 = vadd.xlane.f32.xlu0 %v14754_v48  ;;  %17270 = vst [vmem:[#allocation171_spill] sm:$0xff] %v14770_v32  ;;  %v17271_v48 = vld [vmem:[#allocation260_spill] sm:$0xff]  ;;  %v14778_v38 = vpop.f32.mrb[62].mxu1  ;;  %v14786_v6 = vpop.eup %10060 }
 0x82b   : >> { %5846 = vadd.xlane.f32.xlu1 %v14752_v47  ;;  %v14764_v37 = vpop.xlane.xlu0 %5292  ;;  %v5451_v53 = vsub.f32 %v17272_v11, %v17271_v48  ;;  %17273 = vst [vmem:[#allocation174_spill] sm:$0xff] %v14778_v38  ;;  %v17274_v47 = vld [vmem:[#allocation261_spill] sm:$0xff]  ;;  %17276 = vst [vmem:[#allocation173_spill] sm:$0xff] %v14786_v6  ;;  %v14788_v4 = vpop.f32.mrb[63].mxu1 }
 0x82c   : >> { %v14762_v16 = vpop.xlane.xlu1 %5294  ;;  %v5450_v39 = vsub.f32 %v17275_v35, %v17274_v47  ;;  %v14790_v48 = vpop.eup %10062  ;;  %v17279_v47 = vld [vmem:[#allocation179_spill] sm:$0xff] }
 0x82d   : >> { %17277 = vst [vmem:[#allocation176_spill] sm:$0xff] %v14790_v48  ;;  %v5610_v11 = vmul.f32 1.442695, %v5451_v53  ;;  %v5432_v34 = vsub.f32 %v17279_v47, %v14464_v5  ;;  %v14802_v21 = vpop.eup %10064  ;;  %v17283_v5 = vld [vmem:[#allocation181_spill] sm:$0xff] }
 0x82e   : >> { %5824 = vadd.xlane.f32.xlu0 %v14770_v32  ;;  %v5608_v35 = vmul.f32 1.442695, %v5450_v39  ;;  %17280 = vst [vmem:[#allocation175_spill] sm:$0xff] %v14802_v21  ;;  %v14804_v24 = vpop.eup %10066  ;;  %v5448_v31 = vsub.f32 %v17283_v5, %v14478_v46  ;;  %v17287_v46 = vld [vmem:[#allocation183_spill] sm:$0xff] }
 0x82f   : >> { %5826 = vadd.xlane.f32.xlu1 %v14766_v22  ;;  %v14784_v13 = vpop.xlane.xlu0 %5324  ;;  %v17278_v22 = vld [vmem:[#allocation180_spill] sm:$0xff]  ;;  %17281 = vst [vmem:[#allocation260_spill] sm:$0xff] %v14804_v24  ;;  %10076 = vpow2.f32 %v5610_v11  ;;  %v5572_v39 = vmul.f32 1.442695, %v5432_v34  ;;  %v5454_v34 = vsub.f32 %v17287_v46, %v14492_v41  ;;  %v17291_v41 = vld [vmem:[#allocation185_spill] sm:$0xff] }
 0x830   : >> { %v14782_v15 = vpop.xlane.xlu1 %5326  ;;  %v5433_v32 = vsub.f32 %v17278_v22, %v14462_v7  ;;  %v17282_v7 = vld [vmem:[#allocation182_spill] sm:$0xff]  ;;  %10078 = vpow2.f32 %v5608_v35  ;;  %v5604_v35 = vmul.f32 1.442695, %v5448_v31  ;;  %v5470_v31 = vsub.f32 %v17291_v41, %v14506_v12  ;;  %v17295_v12 = vld [vmem:[#allocation187_spill] sm:$0xff] }
 0x831   : >> { %v5449_v22 = vsub.f32 %v17282_v7, %v14476_v51  ;;  %v17286_v51 = vld [vmem:[#allocation184_spill] sm:$0xff] }
 0x832   : >> { %5856 = vadd.xlane.f32.xlu0 %v14790_v48  ;;  %v5574_v53 = vmul.f32 1.442695, %v5433_v32  ;;  %v14816_v48 = vpop.eup %10068  ;;  %v5455_v7 = vsub.f32 %v17286_v51, %v14490_v26  ;;  %v17290_v26 = vld [vmem:[#allocation186_spill] sm:$0xff] }
 0x833   : >> { %5858 = vadd.xlane.f32.xlu1 %v14786_v6  ;;  %v14800_v38 = vpop.xlane.xlu0 %5304  ;;  %17284 = vst [vmem:[#allocation178_spill] sm:$0xff] %v14816_v48  ;;  %v14818_v11 = vpop.eup %10070  ;;  %v5606_v32 = vmul.f32 1.442695, %v5449_v22  ;;  %v5471_v51 = vsub.f32 %v17290_v26, %v14504_v1  ;;  %v17294_v1 = vld [vmem:[#allocation188_spill] sm:$0xff] }
 0x834   : >> { %v14798_v0 = vpop.xlane.xlu1 %5306  ;;  %17285 = vst [vmem:[#allocation261_spill] sm:$0xff] %v14818_v11  ;;  %10080 = vpow2.f32 %v5574_v53  ;;  %v5618_v22 = vmul.f32 1.442695, %v5455_v7  ;;  %v5453_v26 = vsub.f32 %v17294_v1, %v14518_v44  ;;  %v17298_v44 = vld [vmem:[#allocation191_spill] sm:$0xff] }
 0x835   : >> { %10082 = vpow2.f32 %v5572_v39  ;;  %v5616_v39 = vmul.f32 1.442695, %v5454_v34  ;;  %v5650_v7 = vmul.f32 1.442695, %v5471_v51  ;;  %v5452_v34 = vsub.f32 %v17295_v12, %v14520_v14  ;;  %v17299_v14 = vld [vmem:[#allocation190_spill] sm:$0xff] }
 0x836   : >> { %5820 = vadd.xlane.f32.xlu0 %v14804_v24  ;;  %10084 = vpow2.f32 %v5606_v32  ;;  %v5614_v51 = vmul.f32 1.442695, %v5453_v26  ;;  %v5469_v1 = vsub.f32 %v17298_v44, %v14532_v62  ;;  %v17302_v62 = vld [vmem:[#allocation193_spill] sm:$0xff] }
 0x837   : >> { %5822 = vadd.xlane.f32.xlu1 %v14802_v21  ;;  %v14814_v6 = vpop.xlane.xlu0 %5336  ;;  %v14830_v21 = vpop.eup %10072  ;;  %10086 = vpow2.f32 %v5604_v35  ;;  %v5648_v35 = vmul.f32 1.442695, %v5470_v31  ;;  %v5468_v31 = vsub.f32 %v17299_v14, %v14534_v3  ;;  %v5459_v44 = vsub.f32 %v17302_v62, %v14546_v54  ;;  %v17303_v3 = vld [vmem:[#allocation192_spill] sm:$0xff]  ;;  %v17306_v54 = vld [vmem:[#allocation199_spill] sm:$0xff] }
 0x838   : >> { %v14812_v47 = vpop.xlane.xlu1 %5338  ;;  %17288 = vst [vmem:[#allocation177_spill] sm:$0xff] %v14830_v21  ;;  %v14832_v53 = vpop.eup %10074  ;;  %10088 = vpow2.f32 %v5618_v22  ;;  %v5646_v26 = vmul.f32 1.442695, %v5469_v1  ;;  %v5475_v62 = vsub.f32 %v17306_v54, %v14560_v8  ;;  %v17313_v8 = vld [vmem:[#allocation151_spill] sm:$0xff]  ;;  %v17314_v54 = vld [vmem:[#allocation201_spill] sm:$0xff] }
 0x839   : >> { %17289 = vst [vmem:[#allocation180_spill] sm:$0xff] %v14832_v53  ;;  %10090 = vpow2.f32 %v5616_v39  ;;  %v5612_v39 = vmul.f32 1.442695, %v5452_v34  ;;  %v5458_v34 = vsub.f32 %v17303_v3, %v14548_v25  ;;  %v5626_v1 = vmul.f32 1.442695, %v5459_v44  ;;  %v17307_v25 = vld [vmem:[#allocation270_spill] sm:$0xff] }
 0x83a   : >> { %5852 = vadd.xlane.f32.xlu0 %v14818_v11  ;;  %10092 = vpow2.f32 %v5650_v7  ;;  %v5658_v44 = vmul.f32 1.442695, %v5475_v62 }
 0x83b   : >> { %5854 = vadd.xlane.f32.xlu1 %v14816_v48  ;;  %v14828_v24 = vpop.xlane.xlu0 %5300  ;;  %v14844_v48 = vpop.eup %10076  ;;  %10094 = vpow2.f32 %v5648_v35  ;;  %v5644_v35 = vmul.f32 1.442695, %v5468_v31  ;;  %v17308_v31 = vld [vmem:[#allocation198_spill] sm:$0xff] }
 0x83c   : >> { %v14826_v5 = vpop.xlane.xlu1 %5302  ;;  %17292 = vst [vmem:[#allocation179_spill] sm:$0xff] %v14844_v48  ;;  %v14846_v32 = vpop.eup %10078  ;;  %10096 = vpow2.f32 %v5614_v51  ;;  %v5474_v3 = vsub.f32 %v17308_v31, %v17307_v25  ;;  %v17316_v25 = vld [vmem:[#allocation200_spill] sm:$0xff] }
 0x83d   : >> { %17293 = vst [vmem:[#allocation182_spill] sm:$0xff] %v14846_v32  ;;  %10098 = vpow2.f32 %v5612_v39  ;;  %v5624_v39 = vmul.f32 1.442695, %v5458_v34  ;;  %v17315_v34 = vld [vmem:[#allocation154_spill] sm:$0xff] }
 0x83e   : >> { %5832 = vadd.xlane.f32.xlu0 %v14832_v53  ;;  %v14858_v53 = vpop.eup %10080  ;;  %10100 = vpow2.f32 %v5646_v26  ;;  %v5456_v31 = vsub.f32 %v17316_v25, %v17315_v34 }
 0x83f   : >> { %5834 = vadd.xlane.f32.xlu1 %v14830_v21  ;;  %v14842_v11 = vpop.xlane.xlu0 %5332  ;;  %17296 = vst [vmem:[#allocation181_spill] sm:$0xff] %v14858_v53  ;;  %v14860_v22 = vpop.eup %10082  ;;  %10102 = vpow2.f32 %v5644_v35  ;;  %v5656_v35 = vmul.f32 1.442695, %v5474_v3  ;;  %v17320_v3 = vld [vmem:[#allocation206_spill] sm:$0xff] }
 0x840   : >> { %v14840_v46 = vpop.xlane.xlu1 %5334  ;;  %17297 = vst [vmem:[#allocation184_spill] sm:$0xff] %v14860_v22  ;;  %10104 = vpow2.f32 %v5626_v1  ;;  %v5472_v34 = vsub.f32 %v17320_v3, %v14598_v57  ;;  %v17324_v57 = vld [vmem:[#allocation208_spill] sm:$0xff] }
 0x841   : >> { %10106 = vpow2.f32 %v5624_v39  ;;  %v5620_v39 = vmul.f32 1.442695, %v5456_v31  ;;  %v5462_v31 = vsub.f32 %v17324_v57, %v14616_v18  ;;  %v17328_v18 = vld [vmem:[#allocation214_spill] sm:$0xff] }
 0x842   : >> { %5864 = vadd.xlane.f32.xlu0 %v14846_v32  ;;  %v14872_v32 = vpop.eup %10084  ;;  %10108 = vpow2.f32 %v5658_v44 }
 0x843   : >> { %5866 = vadd.xlane.f32.xlu1 %v14844_v48  ;;  %v14856_v21 = vpop.xlane.xlu0 %5312  ;;  %17300 = vst [vmem:[#allocation183_spill] sm:$0xff] %v14872_v32  ;;  %v14874_v7 = vpop.eup %10086  ;;  %10110 = vpow2.f32 %v5656_v35  ;;  %v5652_v35 = vmul.f32 1.442695, %v5472_v34  ;;  %v5478_v34 = vsub.f32 %v17328_v18, %v14634_v43  ;;  %v17332_v43 = vld [vmem:[#allocation216_spill] sm:$0xff] }
 0x844   : >> { %v14854_v41 = vpop.xlane.xlu1 %5314  ;;  %17301 = vst [vmem:[#allocation186_spill] sm:$0xff] %v14874_v7 }
 0x846   : >> { %5828 = vadd.xlane.f32.xlu0 %v14860_v22 }
 0x847   : >> { %5830 = vadd.xlane.f32.xlu1 %v14858_v53  ;;  %v14870_v48 = vpop.xlane.xlu0 %5344  ;;  %v14886_v53 = vpop.eup %10088 }
 0x848   : >> { %v14868_v12 = vpop.xlane.xlu1 %5346  ;;  %17304 = vst [vmem:[#allocation185_spill] sm:$0xff] %v14886_v53  ;;  %v14888_v51 = vpop.eup %10090 }
 0x849   : >> { %17305 = vst [vmem:[#allocation188_spill] sm:$0xff] %v14888_v51  ;;  %v14900_v55 = vpop.eup %10092 }
 0x84a   : >> { %5860 = vadd.xlane.f32.xlu0 %v14874_v7  ;;  %17311 = vst [vmem:[#allocation190_spill] sm:$0xff] %v14900_v55  ;;  %v14902_v26 = vpop.eup %10094 }
 0x84b   : >> { %5862 = vadd.xlane.f32.xlu1 %v14872_v32  ;;  %v14884_v22 = vpop.xlane.xlu0 %5308  ;;  %17312 = vst [vmem:[#allocation193_spill] sm:$0xff] %v14902_v26 }
 0x84c   : >> { %v14882_v14 = vpop.xlane.xlu1 %5310 }
 0x84e   : >> { %5872 = vadd.xlane.f32.xlu0 %v14888_v51 }
 0x84f   : >> { %5874 = vadd.xlane.f32.xlu1 %v14886_v53  ;;  %v14898_v32 = vpop.xlane.xlu0 %5340  ;;  %v5457_v53 = vsub.f32 %v17314_v54, %v17313_v8  ;;  %v17319_v8 = vld [vmem:[#allocation207_spill] sm:$0xff] }
 0x850   : >> { %v14896_v7 = vpop.xlane.xlu1 %5342  ;;  %17310 = vst [vmem:[#allocation191_spill] sm:$0xff] %v14898_v32  ;;  %v5473_v54 = vsub.f32 %v17319_v8, %v14596_v20  ;;  %v17323_v20 = vld [vmem:[#allocation209_spill] sm:$0xff] }
 0x851   : >> { %17309 = vst [vmem:[#allocation187_spill] sm:$0xff] %v14896_v7  ;;  %v14914_v7 = vpop.eup %10096  ;;  %v5622_v62 = vmul.f32 1.442695, %v5457_v53  ;;  %v5463_v8 = vsub.f32 %v17323_v20, %v14614_v33  ;;  %v17327_v33 = vld [vmem:[#allocation215_spill] sm:$0xff] }
 0x852   : >> { %5904 = vadd.xlane.f32.xlu0 %v14902_v26  ;;  %17317 = vst [vmem:[#allocation192_spill] sm:$0xff] %v14914_v7  ;;  %v14916_v1 = vpop.eup %10098  ;;  %v5654_v53 = vmul.f32 1.442695, %v5473_v54  ;;  %v5479_v20 = vsub.f32 %v17327_v33, %v14632_v52  ;;  %v17331_v52 = vld [vmem:[#allocation217_spill] sm:$0xff] }
 0x853   : >> { %5906 = vadd.xlane.f32.xlu1 %v14900_v55  ;;  %v14912_v32 = vpop.xlane.xlu0 %5320  ;;  %17318 = vst [vmem:[#allocation199_spill] sm:$0xff] %v14916_v1  ;;  %v14928_v26 = vpop.eup %10100  ;;  %10112 = vpow2.f32 %v5622_v62  ;;  %v5634_v54 = vmul.f32 1.442695, %v5463_v8  ;;  %v5461_v33 = vsub.f32 %v17331_v52, %v14650_v45  ;;  %v17335_v45 = vld [vmem:[#allocation223_spill] sm:$0xff] }
 0x854   : >> { %v14910_v51 = vpop.xlane.xlu1 %5322  ;;  %17321 = vst [vmem:[#allocation270_spill] sm:$0xff] %v14928_v26  ;;  %v14930_v44 = vpop.eup %10102  ;;  %10114 = vpow2.f32 %v5620_v39  ;;  %v5632_v39 = vmul.f32 1.442695, %v5462_v31  ;;  %v5666_v8 = vmul.f32 1.442695, %v5479_v20  ;;  %v5460_v31 = vsub.f32 %v17332_v43, %v14652_v10  ;;  %v17336_v10 = vld [vmem:[#allocation222_spill] sm:$0xff] }
 0x855   : >> { %17322 = vst [vmem:[#allocation198_spill] sm:$0xff] %v14930_v44  ;;  %10116 = vpow2.f32 %v5654_v53  ;;  %v5630_v20 = vmul.f32 1.442695, %v5461_v33  ;;  %v5477_v52 = vsub.f32 %v17335_v45, %v14664_v40  ;;  %v17339_v40 = vld [vmem:[#allocation225_spill] sm:$0xff] }
 0x856   : >> { %5868 = vadd.xlane.f32.xlu0 %v14916_v1  ;;  %10118 = vpow2.f32 %v5652_v35  ;;  %v5664_v35 = vmul.f32 1.442695, %v5478_v34  ;;  %v5476_v34 = vsub.f32 %v17336_v10, %v14666_v49  ;;  %v5467_v45 = vsub.f32 %v17339_v40, %v14678_v2  ;;  %v17340_v49 = vld [vmem:[#allocation224_spill] sm:$0xff]  ;;  %v17343_v2 = vld [vmem:[#allocation230_spill] sm:$0xff] }
 0x857   : >> { %5870 = vadd.xlane.f32.xlu1 %v14914_v7  ;;  %v14926_v55 = vpop.xlane.xlu0 %5352  ;;  %v14942_v7 = vpop.eup %10104  ;;  %10120 = vpow2.f32 %v5634_v54  ;;  %v5662_v33 = vmul.f32 1.442695, %v5477_v52  ;;  %v5483_v40 = vsub.f32 %v17343_v2, %v14692_v9  ;;  %v17347_v9 = vld [vmem:[#allocation232_spill] sm:$0xff] }
 0x858   : >> { %v14924_v25 = vpop.xlane.xlu1 %5354  ;;  %17325 = vst [vmem:[#allocation151_spill] sm:$0xff] %v14942_v7  ;;  %v14944_v62 = vpop.eup %10106  ;;  %10122 = vpow2.f32 %v5632_v39  ;;  %v5628_v39 = vmul.f32 1.442695, %v5460_v31  ;;  %v5466_v31 = vsub.f32 %v17340_v49, %v14680_v60  ;;  %v5642_v52 = vmul.f32 1.442695, %v5467_v45  ;;  %v17344_v60 = vld [vmem:[#allocation229_spill] sm:$0xff] }
 0x859   : >> { %17326 = vst [vmem:[#allocation201_spill] sm:$0xff] %v14944_v62  ;;  %10124 = vpow2.f32 %v5666_v8  ;;  %v5674_v45 = vmul.f32 1.442695, %v5483_v40  ;;  %v5465_v2 = vsub.f32 %v17347_v9, %v14706_v17  ;;  %v17351_v17 = vld [vmem:[#allocation234_spill] sm:$0xff] }
 0x85a   : >> { %5900 = vadd.xlane.f32.xlu0 %v14930_v44  ;;  %10126 = vpow2.f32 %v5664_v35  ;;  %v5660_v35 = vmul.f32 1.442695, %v5476_v34  ;;  %v5482_v34 = vsub.f32 %v17344_v60, %v14694_v29  ;;  %v17348_v29 = vld [vmem:[#allocation231_spill] sm:$0xff]  ;;  %v5481_v9 = vsub.f32 %v17351_v17, %v14720_v23  ;;  %v17355_v23 = vld [vmem:[#allocation236_spill] sm:$0xff] }
 0x85b   : >> { %5902 = vadd.xlane.f32.xlu1 %v14928_v26  ;;  %v14940_v1 = vpop.xlane.xlu0 %5316  ;;  %v14956_v26 = vpop.eup %10108  ;;  %10128 = vpow2.f32 %v5630_v20  ;;  %v5638_v40 = vmul.f32 1.442695, %v5465_v2  ;;  %v5487_v17 = vsub.f32 %v17355_v23, %v14734_v56  ;;  %v17359_v56 = vld [vmem:[#allocation240_spill] sm:$0xff] }
 0x85c   : >> { %v14938_v3 = vpop.xlane.xlu1 %5318  ;;  %17329 = vst [vmem:[#allocation154_spill] sm:$0xff] %v14956_v26  ;;  %v14958_v53 = vpop.eup %10110  ;;  %10130 = vpow2.f32 %v5628_v39  ;;  %v5640_v39 = vmul.f32 1.442695, %v5466_v31  ;;  %v5464_v31 = vsub.f32 %v17348_v29, %v14708_v63  ;;  %v17352_v63 = vld [vmem:[#allocation233_spill] sm:$0xff]  ;;  %v5670_v2 = vmul.f32 1.442695, %v5481_v9 }
 0x85d   : >> { %17330 = vst [vmem:[#allocation200_spill] sm:$0xff] %v14958_v53  ;;  %10132 = vpow2.f32 %v5662_v33  ;;  %v5682_v9 = vmul.f32 1.442695, %v5487_v17  ;;  %v5485_v23 = vsub.f32 %v17359_v56, %v14762_v16  ;;  %v17363_v16 = vld [vmem:[#allocation242_spill] sm:$0xff] }
 0x85e   : >> { %5880 = vadd.xlane.f32.xlu0 %v14944_v62  ;;  %v14970_v62 = vpop.eup %10112  ;;  %10134 = vpow2.f32 %v5660_v35  ;;  %v5672_v35 = vmul.f32 1.442695, %v5482_v34  ;;  %v5480_v34 = vsub.f32 %v17352_v63, %v14722_v36  ;;  %v17356_v36 = vld [vmem:[#allocation235_spill] sm:$0xff]  ;;  %v5501_v56 = vsub.f32 %v17363_v16, %v14782_v15  ;;  %v17367_v15 = vld [vmem:[#allocation244_spill] sm:$0xff] }
 0x85f   : >> { %5882 = vadd.xlane.f32.xlu1 %v14942_v7  ;;  %v14954_v44 = vpop.xlane.xlu0 %5348  ;;  %17333 = vst [vmem:[#allocation207_spill] sm:$0xff] %v14970_v62  ;;  %v14972_v54 = vpop.eup %10114  ;;  %10136 = vpow2.f32 %v5642_v52  ;;  %v5678_v17 = vmul.f32 1.442695, %v5485_v23  ;;  %v5491_v16 = vsub.f32 %v17367_v15, %v14798_v0  ;;  %v17373_v0 = vld [vmem:[#allocation248_spill] sm:$0xff] }
 0x860   : >> { %v14952_v57 = vpop.xlane.xlu1 %5350  ;;  %17334 = vst [vmem:[#allocation206_spill] sm:$0xff] %v14972_v54  ;;  %10138 = vpow2.f32 %v5640_v39  ;;  %v5636_v39 = vmul.f32 1.442695, %v5464_v31  ;;  %v5486_v31 = vsub.f32 %v17356_v36, %v14736_v30  ;;  %v17360_v30 = vld [vmem:[#allocation239_spill] sm:$0xff]  ;;  %v5710_v23 = vmul.f32 1.442695, %v5501_v56 }
 0x861   : >> { %10140 = vpow2.f32 %v5674_v45  ;;  %v5690_v56 = vmul.f32 1.442695, %v5491_v16  ;;  %v5489_v15 = vsub.f32 %v17373_v0, %v14826_v5  ;;  %v17377_v5 = vld [vmem:[#allocation251_spill] sm:$0xff] }
 0x862   : >> { %5912 = vadd.xlane.f32.xlu0 %v14958_v53  ;;  %v14984_v53 = vpop.eup %10116  ;;  %10142 = vpow2.f32 %v5672_v35  ;;  %v5668_v35 = vmul.f32 1.442695, %v5480_v34  ;;  %v5484_v34 = vsub.f32 %v17360_v30, %v14764_v37  ;;  %v17364_v37 = vld [vmem:[#allocation241_spill] sm:$0xff]  ;;  %v5495_v0 = vsub.f32 %v17377_v5, %v14854_v41  ;;  %v17381_v41 = vld [vmem:[#allocation196_spill] sm:$0xff] }
 0x863   : >> { %5914 = vadd.xlane.f32.xlu1 %v14956_v26  ;;  %v14968_v7 = vpop.xlane.xlu0 %5360  ;;  %17337 = vst [vmem:[#allocation209_spill] sm:$0xff] %v14984_v53  ;;  %v14986_v8 = vpop.eup %10118  ;;  %10144 = vpow2.f32 %v5638_v40  ;;  %v5686_v16 = vmul.f32 1.442695, %v5489_v15  ;;  %v5493_v5 = vsub.f32 %v17381_v41, %v14882_v14 }
 0x864   : >> { %v14966_v18 = vpop.xlane.xlu1 %5362  ;;  %17338 = vst [vmem:[#allocation208_spill] sm:$0xff] %v14986_v8  ;;  %10146 = vpow2.f32 %v5636_v39  ;;  %v5680_v39 = vmul.f32 1.442695, %v5486_v31  ;;  %v5500_v31 = vsub.f32 %v17364_v37, %v14784_v13  ;;  %v17368_v13 = vld [vmem:[#allocation243_spill] sm:$0xff]  ;;  %v5698_v15 = vmul.f32 1.442695, %v5495_v0 }
 0x865   : >> { %10148 = vpow2.f32 %v5670_v2  ;;  %v17385_v0 = vld [vmem:[#allocation238_spill] sm:$0xff]  ;;  %v5694_v41 = vmul.f32 1.442695, %v5493_v5 }
 0x866   : >> { %5876 = vadd.xlane.f32.xlu0 %v14972_v54  ;;  %10150 = vpow2.f32 %v5668_v35  ;;  %v5676_v35 = vmul.f32 1.442695, %v5484_v34  ;;  %v5490_v34 = vsub.f32 %v17368_v13, %v14800_v38  ;;  %v17374_v38 = vld [vmem:[#allocation247_spill] sm:$0xff]  ;;  %v5503_v14 = vsub.f32 %v17385_v0, %v14748_v58  ;;  %v17388_v58 = vld [vmem:[#allocation204_spill] sm:$0xff] }
 0x867   : >> { %5878 = vadd.xlane.f32.xlu1 %v14970_v62  ;;  %v14982_v26 = vpop.xlane.xlu0 %5392  ;;  %v14998_v62 = vpop.eup %10120  ;;  %10152 = vpow2.f32 %v5682_v9 }
 0x868   : >> { %v14980_v43 = vpop.xlane.xlu1 %5394  ;;  %17341 = vst [vmem:[#allocation215_spill] sm:$0xff] %v14998_v62  ;;  %v15000_v20 = vpop.eup %10122  ;;  %10154 = vpow2.f32 %v5680_v39  ;;  %v5708_v39 = vmul.f32 1.442695, %v5500_v31  ;;  %v5488_v31 = vsub.f32 %v17374_v38, %v14828_v24  ;;  %v17378_v24 = vld [vmem:[#allocation250_spill] sm:$0xff] }
 0x869   : >> { %17342 = vst [vmem:[#allocation214_spill] sm:$0xff] %v15000_v20 }
 0x86a   : >> { %5908 = vadd.xlane.f32.xlu0 %v14986_v8 }
 0x86b   : >> { %5910 = vadd.xlane.f32.xlu1 %v14984_v53  ;;  %v14996_v54 = vpop.xlane.xlu0 %5356  ;;  %v15012_v53 = vpop.eup %10124  ;;  %10156 = vpow2.f32 %v5678_v17 }
 0x86c   : >> { %v14994_v10 = vpop.xlane.xlu1 %5358  ;;  %17345 = vst [vmem:[#allocation217_spill] sm:$0xff] %v15012_v53  ;;  %v15014_v33 = vpop.eup %10126  ;;  %10158 = vpow2.f32 %v5676_v35  ;;  %v5688_v35 = vmul.f32 1.442695, %v5490_v34  ;;  %v5494_v34 = vsub.f32 %v17378_v24, %v14856_v21  ;;  %v17382_v21 = vld [vmem:[#allocation194_spill] sm:$0xff] }
 0x86d   : >> { %17346 = vst [vmem:[#allocation216_spill] sm:$0xff] %v15014_v33 }
 0x86e   : >> { %5888 = vadd.xlane.f32.xlu0 %v15000_v20  ;;  %v15026_v20 = vpop.eup %10128  ;;  %10160 = vpow2.f32 %v5710_v23 }
 0x86f   : >> { %5890 = vadd.xlane.f32.xlu1 %v14998_v62  ;;  %v15010_v8 = vpop.xlane.xlu0 %5388  ;;  %17349 = vst [vmem:[#allocation223_spill] sm:$0xff] %v15026_v20  ;;  %v15028_v52 = vpop.eup %10130  ;;  %10162 = vpow2.f32 %v5708_v39  ;;  %v5684_v39 = vmul.f32 1.442695, %v5488_v31  ;;  %v5492_v31 = vsub.f32 %v17382_v21, %v14884_v22 }
 0x870   : >> { %v15008_v49 = vpop.xlane.xlu1 %5390  ;;  %17350 = vst [vmem:[#allocation222_spill] sm:$0xff] %v15028_v52 }
 0x871   : >> { %v5692_v22 = vmul.f32 1.442695, %v5492_v31 }
 0x872   : >> { %5920 = vadd.xlane.f32.xlu0 %v15014_v33  ;;  %v15040_v33 = vpop.eup %10132  ;;  %10164 = vpow2.f32 %v5690_v56 }
 0x873   : >> { %5922 = vadd.xlane.f32.xlu1 %v15012_v53  ;;  %v15024_v62 = vpop.xlane.xlu0 %5368  ;;  %17353 = vst [vmem:[#allocation225_spill] sm:$0xff] %v15040_v33  ;;  %v15042_v45 = vpop.eup %10134  ;;  %10166 = vpow2.f32 %v5688_v35  ;;  %v5696_v35 = vmul.f32 1.442695, %v5494_v34  ;;  %v17387_v34 = vld [vmem:[#allocation254_spill] sm:$0xff] }
 0x874   : >> { %v15022_v60 = vpop.xlane.xlu1 %5370  ;;  %17354 = vst [vmem:[#allocation224_spill] sm:$0xff] %v15042_v45  ;;  %v5498_v21 = vsub.f32 %v17387_v34, %v14912_v32 }
 0x876   : >> { %5884 = vadd.xlane.f32.xlu0 %v15028_v52  ;;  %v5704_v32 = vmul.f32 1.442695, %v5498_v21  ;;  %v17392_v21 = vld [vmem:[#allocation237_spill] sm:$0xff] }
 0x877   : >> { %5886 = vadd.xlane.f32.xlu1 %v15026_v20  ;;  %v15038_v53 = vpop.xlane.xlu0 %5400  ;;  %v15054_v20 = vpop.eup %10136  ;;  %10168 = vpow2.f32 %v5686_v16 }
 0x878   : >> { %v15036_v29 = vpop.xlane.xlu1 %5402  ;;  %17357 = vst [vmem:[#allocation230_spill] sm:$0xff] %v15054_v20  ;;  %v15056_v40 = vpop.eup %10138  ;;  %10170 = vpow2.f32 %v5684_v39 }
 0x879   : >> { %17358 = vst [vmem:[#allocation229_spill] sm:$0xff] %v15056_v40 }
 0x87a   : >> { %5916 = vadd.xlane.f32.xlu0 %v15042_v45 }
 0x87b   : >> { %5918 = vadd.xlane.f32.xlu1 %v15040_v33  ;;  %v15052_v52 = vpop.xlane.xlu0 %5364  ;;  %v15068_v33 = vpop.eup %10140  ;;  %10172 = vpow2.f32 %v5698_v15  ;;  %v5497_v15 = vsub.f32 %v17388_v58, %v14938_v3  ;;  %v5502_v58 = vsub.f32 %v17392_v21, %v14750_v28  ;;  %v17396_v28 = vld [vmem:[#allocation189_spill] sm:$0xff] }
 0x87c   : >> { %v15050_v63 = vpop.xlane.xlu1 %5366  ;;  %17361 = vst [vmem:[#allocation232_spill] sm:$0xff] %v15068_v33  ;;  %v15070_v2 = vpop.eup %10142  ;;  %10174 = vpow2.f32 %v5696_v35 }
 0x87d   : >> { %17362 = vst [vmem:[#allocation231_spill] sm:$0xff] %v15070_v2  ;;  %v5712_v21 = vmul.f32 1.442695, %v5502_v58 }
 0x87e   : >> { %5896 = vadd.xlane.f32.xlu0 %v15056_v40  ;;  %v15082_v40 = vpop.eup %10144  ;;  %10176 = vpow2.f32 %v5694_v41 }
 0x87f   : >> { %5898 = vadd.xlane.f32.xlu1 %v15054_v20  ;;  %v15066_v45 = vpop.xlane.xlu0 %5396  ;;  %17365 = vst [vmem:[#allocation234_spill] sm:$0xff] %v15082_v40  ;;  %v15084_v9 = vpop.eup %10146  ;;  %10178 = vpow2.f32 %v5692_v22 }
 0x880   : >> { %v15064_v36 = vpop.xlane.xlu1 %5398  ;;  %17366 = vst [vmem:[#allocation233_spill] sm:$0xff] %v15084_v9 }
 0x882   : >> { %5928 = vadd.xlane.f32.xlu0 %v15070_v2  ;;  %v15096_v2 = vpop.eup %10148 }
 0x883   : >> { %5930 = vadd.xlane.f32.xlu1 %v15068_v33  ;;  %v15080_v20 = vpop.xlane.xlu0 %5376  ;;  %17371 = vst [vmem:[#allocation240_spill] sm:$0xff] %v15096_v2  ;;  %v15098_v17 = vpop.eup %10150 }
 0x884   : >> { %v15078_v30 = vpop.xlane.xlu1 %5378  ;;  %17372 = vst [vmem:[#allocation239_spill] sm:$0xff] %v15098_v17 }
 0x886   : >> { %5892 = vadd.xlane.f32.xlu0 %v15084_v9 }
 0x887   : >> { %5894 = vadd.xlane.f32.xlu1 %v15082_v40  ;;  %v15094_v33 = vpop.xlane.xlu0 %5408  ;;  %v15110_v40 = vpop.eup %10152 }
 0x888   : >> { %v15092_v37 = vpop.xlane.xlu1 %5410  ;;  %17370 = vst [vmem:[#allocation235_spill] sm:$0xff] %v15094_v33  ;;  %17375 = vst [vmem:[#allocation242_spill] sm:$0xff] %v15110_v40  ;;  %v15112_v23 = vpop.eup %10154 }
 0x889   : >> { %17369 = vst [vmem:[#allocation236_spill] sm:$0xff] %v15092_v37  ;;  %17376 = vst [vmem:[#allocation241_spill] sm:$0xff] %v15112_v23 }
 0x88a   : >> { %5924 = vadd.xlane.f32.xlu0 %v15098_v17 }
 0x88b   : >> { %5926 = vadd.xlane.f32.xlu1 %v15096_v2  ;;  %v15108_v9 = vpop.xlane.xlu0 %5372  ;;  %v15124_v2 = vpop.eup %10156 }
 0x88c   : >> { %v15106_v13 = vpop.xlane.xlu1 %5374  ;;  %17379 = vst [vmem:[#allocation244_spill] sm:$0xff] %v15124_v2  ;;  %v15126_v56 = vpop.eup %10158 }
 0x88d   : >> { %17380 = vst [vmem:[#allocation243_spill] sm:$0xff] %v15126_v56 }
 0x88e   : >> { %5936 = vadd.xlane.f32.xlu0 %v15112_v23  ;;  %v15138_v23 = vpop.eup %10160 }
 0x88f   : >> { %5938 = vadd.xlane.f32.xlu1 %v15110_v40  ;;  %v15122_v17 = vpop.xlane.xlu0 %5404  ;;  %17383 = vst [vmem:[#allocation248_spill] sm:$0xff] %v15138_v23  ;;  %v15140_v16 = vpop.eup %10162 }
 0x890   : >> { %v15120_v38 = vpop.xlane.xlu1 %5406  ;;  %17384 = vst [vmem:[#allocation247_spill] sm:$0xff] %v15140_v16  ;;  %v15154_v37 = vpop.eup %10164 }
 0x891   : >> { %v15158_v5 = vpop.eup %10166 }
 0x892   : >> { %5932 = vadd.xlane.f32.xlu0 %v15126_v56  ;;  %v17386_v56 = vld [vmem:[#allocation255_spill] sm:$0xff] }
 0x893   : >> { %5934 = vadd.xlane.f32.xlu1 %v15124_v2  ;;  %v15136_v40 = vpop.xlane.xlu0 %5384  ;;  %v5499_v39 = vsub.f32 %v17386_v56, %v14910_v51  ;;  %v5714_v51 = vmul.f32 1.442695, %v5503_v14  ;;  %v17389_v56 = vld [vmem:[#allocation202_spill] sm:$0xff] }
 0x894   : >> { %v15134_v24 = vpop.xlane.xlu1 %5386  ;;  %v5496_v0 = vsub.f32 %v17389_v56, %v14940_v1 }
 0x895   : >> { %v5706_v35 = vmul.f32 1.442695, %v5499_v39  ;;  %10180 = vpow2.f32 %v5714_v51 }
 0x896   : >> { %5964 = vadd.xlane.f32.xlu0 %v15140_v16  ;;  %v15164_v16 = vpop.eup %10168  ;;  %v5700_v14 = vmul.f32 1.442695, %v5496_v0 }
 0x897   : >> { %5966 = vadd.xlane.f32.xlu1 %v15138_v23  ;;  %v15152_v33 = vpop.xlane.xlu0 %5380  ;;  %v5702_v23 = vmul.f32 1.442695, %v5497_v15  ;;  %v15166_v3 = vpop.eup %10170  ;;  %10182 = vpow2.f32 %v5706_v35  ;;  %v17393_v15 = vld [vmem:[#allocation246_spill] sm:$0xff] }
 0x898   : >> { %v15150_v2 = vpop.xlane.xlu1 %5382  ;;  %10184 = vpow2.f32 %v5704_v32  ;;  %v15170_v39 = vpop.eup %10172  ;;  %v5507_v51 = vsub.f32 %v17393_v15, %v14812_v47 }
 0x899   : >> { %17390 = vst [vmem:[#allocation251_spill] sm:$0xff] %v15170_v39  ;;  %10186 = vpow2.f32 %v5702_v23  ;;  %v15172_v22 = vpop.eup %10174  ;;  %v17394_v23 = vld [vmem:[#allocation245_spill] sm:$0xff] }
 0x89a   : >> { %5944 = vadd.xlane.f32.xlu0 %v15158_v5  ;;  %17391 = vst [vmem:[#allocation250_spill] sm:$0xff] %v15172_v22  ;;  %10188 = vpow2.f32 %v5700_v14  ;;  %v15180_v35 = vpop.eup %10176  ;;  %v5506_v32 = vsub.f32 %v17394_v23, %v14814_v6  ;;  %v17398_v6 = vld [vmem:[#allocation253_spill] sm:$0xff] }
 0x89b   : >> { %5946 = vadd.xlane.f32.xlu1 %v15154_v37  ;;  %v5809_v34 = vpop.xlane.xlu0 %5808  ;;  %v15184_v14 = vpop.eup %10178  ;;  %v5511_v15 = vsub.f32 %v17398_v6, %v14868_v12 }
 0x89c   : >> { %v5811_v31 = vpop.xlane.xlu1 %5810  ;;  %17395 = vst [vmem:[#allocation196_spill] sm:$0xff] %v15184_v14  ;;  %v5720_v58 = vmul.f32 1.442695, %v5506_v32 }
 0x89d   : >> { %10190 = vrcp.f32 %v5811_v31  ;;  %v5505_v31 = vsub.f32 %v17396_v28, %v14840_v46 }
 0x89e   : >> { %5940 = vadd.xlane.f32.xlu0 %v15166_v3  ;;  %10192 = vrcp.f32 %v5809_v34  ;;  %v5722_v34 = vmul.f32 1.442695, %v5507_v51 }
 0x89f   : >> { %5942 = vadd.xlane.f32.xlu1 %v15164_v16  ;;  %v5841_v41 = vpop.xlane.xlu0 %5840  ;;  %v15192_v47 = vpop.eup %10180 }
 0x8a0   : >> { %v5843_v1 = vpop.xlane.xlu1 %5842 }
 0x8a1   : >> { %v15196_v46 = vpop.eup %10182 }
 0x8a2   : >> { %5952 = vadd.xlane.f32.xlu0 %v15172_v22  ;;  %v17397_v22 = vld [vmem:[#allocation249_spill] sm:$0xff]  ;;  %17399 = vst [vmem:[#allocation194_spill] sm:$0xff] %v15196_v46 }
 0x8a3   : >> { %5954 = vadd.xlane.f32.xlu1 %v15170_v39  ;;  %v5805_v0 = vpop.xlane.xlu0 %5804  ;;  %v5504_v39 = vsub.f32 %v17397_v22, %v14842_v11  ;;  %v5718_v22 = vmul.f32 1.442695, %v5505_v31 }
 0x8a4   : >> { %v5807_v56 = vpop.xlane.xlu1 %5806 }
 0x8a5   : >> { %10194 = vrcp.f32 %v5807_v56  ;;  %v5716_v51 = vmul.f32 1.442695, %v5504_v39 }
 0x8a6   : >> { %10196 = vrcp.f32 %v5805_v0  ;;  %5948 = vadd.xlane.f32.xlu0 %v15184_v14  ;;  %v17400_v0 = vld [vmem:[#allocation252_spill] sm:$0xff] }
 0x8a7   : >> { %10198 = vrcp.f32 %v5843_v1  ;;  %5950 = vadd.xlane.f32.xlu1 %v15180_v35  ;;  %v5837_v23 = vpop.xlane.xlu0 %5836  ;;  %v5510_v11 = vsub.f32 %v17400_v0, %v14870_v48  ;;  %v15200_v1 = vpop.eup %10184 }
 0x8a8   : >> { %10200 = vrcp.f32 %v5841_v41  ;;  %v5839_v56 = vpop.xlane.xlu1 %5838  ;;  %17401 = vst [vmem:[#allocation238_spill] sm:$0xff] %v15200_v1  ;;  %v15202_v28 = vpop.eup %10186  ;;  %v5730_v41 = vmul.f32 1.442695, %v5511_v15 }
 0x8a9   : >> { %10202 = vrcp.f32 %v5839_v56  ;;  %17402 = vst [vmem:[#allocation255_spill] sm:$0xff] %v15202_v28  ;;  %v15206_v12 = vpop.eup %10188  ;;  %v5728_v56 = vmul.f32 1.442695, %v5510_v11 }
 0x8aa   : >> { %10204 = vrcp.f32 %v5837_v23  ;;  %5960 = vadd.xlane.f32.xlu0 %v15200_v1  ;;  %17403 = vst [vmem:[#allocation254_spill] sm:$0xff] %v15206_v12  ;;  %v10191_v48 = vpop.eup %10190 }
 0x8ab   : >> { %10206 = vpow2.f32 %v5712_v21  ;;  %5962 = vadd.xlane.f32.xlu1 %v15196_v46  ;;  %v5817_v6 = vpop.xlane.xlu0 %5816  ;;  %v10193_v0 = vpop.eup %10192  ;;  %v15212_v21 = vadd.f32 %v14772_v59, %v17045_v50  ;;  %v17404_v46 = vld [vmem:[#allocation155_spill] sm:$0xff] }
 0x8ac   : >> { %10208 = vpow2.f32 %v5722_v34  ;;  %v5819_v32 = vpop.xlane.xlu1 %5818  ;;  %v15216_v34 = vadd.f32 %v14788_v4, %v17044_v27  ;;  %v17405_v50 = vld [vmem:[#allocation187_spill] sm:$0xff]  ;;  %v17411_v27 = vld [vmem:[#allocation160_spill] sm:$0xff] }
 0x8ad   : >> { %10210 = vpow2.f32 %v5720_v58 }
 0x8ae   : >> { %10212 = vpow2.f32 %v5718_v22  ;;  %5956 = vadd.xlane.f32.xlu0 %v15206_v12  ;;  %v17406_v12 = vld [vmem:[#allocation197_spill] sm:$0xff] }
 0x8af   : >> { %v10195_v31 = vpop.eup %10194  ;;  %10214 = vpow2.f32 %v5716_v51  ;;  %5958 = vadd.xlane.f32.xlu1 %v15202_v28  ;;  %v5849_v23 = vpop.xlane.xlu0 %5848  ;;  %v6190_v51 = vmul.f32 %v10193_v0, %v14654_v19  ;;  %v5509_v28 = vsub.f32 %v17406_v12, %v17405_v50  ;;  %v17409_v19 = vld [vmem:[#allocation257_spill] sm:$0xff] }
 0x8b0   : >> { %v10197_v39 = vpop.eup %10196  ;;  %10216 = vpow2.f32 %v5730_v41  ;;  %v5851_v15 = vpop.xlane.xlu1 %5850  ;;  %v6189_v58 = vmul.f32 %v10195_v31, %v14684_v42  ;;  %v6191_v41 = vmul.f32 %v10191_v48, %v17404_v46  ;;  %v17408_v31 = vld [vmem:[#allocation195_spill] sm:$0xff]  ;;  %v5515_v0 = vsub.f32 %v17409_v19, %v14924_v25  ;;  %v17415_v25 = vld [vmem:[#allocation256_spill] sm:$0xff] }
 0x8b1   : >> { %v10199_v11 = vpop.eup %10198  ;;  %10218 = vpow2.f32 %v5728_v56  ;;  %v6188_v22 = vmul.f32 %v10197_v39, %v14682_v61  ;;  %v17407_v56 = vld [vmem:[#allocation191_spill] sm:$0xff]  ;;  %v5514_v19 = vsub.f32 %v17415_v25, %v14926_v55 }
 0x8b2   : >> { %v10201_v1 = vpop.eup %10200  ;;  %10220 = vrcp.f32 %v5819_v32  ;;  %5412 = vmax.xlane.f32.xlu0 %v15212_v21  ;;  %v5508_v61 = vsub.f32 %v17408_v31, %v17407_v56  ;;  %v17410_v32 = vld [vmem:[#allocation162_spill] sm:$0xff]  ;;  %v6207_v14 = vmul.f32 %v10199_v11, %v17411_v27  ;;  %v15234_v12 = vpack.c.bf16 %v6191_v41, %v6190_v51  ;;  %v17417_v11 = vld [vmem:[#allocation205_spill] sm:$0xff]  ;;  %v17424_v25 = vld [vmem:[#allocation91_spill] sm:$0xff] }
 0x8b3   : >> { %v10203_v59 = vpop.eup %10202  ;;  %10222 = vrcp.f32 %v5817_v6  ;;  %5414 = vmax.xlane.f32.xlu1 %v15216_v34  ;;  %v6316_v42 = vpack.c.bf16 %v6189_v58, %v6188_v22  ;;  %v5813_v48 = vpop.xlane.xlu0 %5812  ;;  %v17413_v6 = vld [vmem:[#allocation159_spill] sm:$0xff]  ;;  %v17414_v22 = vld [vmem:[#allocation157_spill] sm:$0xff]  ;;  %v5726_v27 = vmul.f32 1.442695, %v5509_v28 }
 0x8b4   : >> { %v10205_v4 = vpop.eup %10204  ;;  %v5815_v46 = vpop.xlane.xlu1 %5814  ;;  %v6205_v39 = vmul.f32 %v10203_v59, %v17410_v32  ;;  %v6206_v56 = vmul.f32 %v10201_v1, %v17414_v22  ;;  %v5724_v41 = vmul.f32 1.442695, %v5508_v61  ;;  %v5736_v22 = vmul.f32 1.442695, %v5514_v19 }
 0x8b5   : >> { %v15232_v50 = vpop.eup %10206  ;;  %10224 = vrcp.f32 %v5815_v46  ;;  %8948 = vmatprep.subr.bf16.mxu0 %v6316_v42  ;;  %8964 = vmatprep.mubr.bf16.mxu0 %v6316_v42  ;;  %v6204_v58 = vmul.f32 %v10205_v4, %v17413_v6  ;;  %v5513_v46 = vsub.f32 %v17417_v11, %v14952_v57  ;;  %v17419_v4 = vld [vmem:[#allocation203_spill] sm:$0xff]  ;;  %v5738_v6 = vmul.f32 1.442695, %v5515_v0 }
 0x8b6   : >> { %17412 = vst [vmem:[#allocation204_spill] sm:$0xff] %v15232_v50  ;;  %v15238_v31 = vpop.eup %10208  ;;  %10226 = vrcp.f32 %v5813_v48  ;;  %8949 = vmatpush3.bf16.msra.mxu0 %v6316_v42  ;;  %v5512_v55 = vsub.f32 %v17419_v4, %v14954_v44  ;;  %v17420_v48 = vld [vmem:[#allocation50_spill] sm:$0xff]  ;;  %5968 = vadd.xlane.f32.xlu0 %v15232_v50  ;;  %v15261_v61 = vpack.c.bf16 %v6207_v14, %v6206_v56 }
 0x8b7   : >> { %v15242_v59 = vpop.eup %10210  ;;  %10228 = vrcp.f32 %v5851_v15  ;;  %8950 = vmatprep.subr.bf16.mxu0 %v15234_v12  ;;  %5970 = vadd.xlane.f32.xlu1 %v15192_v47  ;;  %v6324_v51 = vpack.c.bf16 %v6205_v39, %v6204_v58  ;;  %v17421_v42 = vld [vmem:[#allocation174_spill] sm:$0xff]  ;;  %v5845_v28 = vpop.xlane.xlu0 %5844  ;;  %v17423_v39 = vld [vmem:[#allocation259_spill] sm:$0xff] }
 0x8b8   : >> { %17416 = vst [vmem:[#allocation202_spill] sm:$0xff] %v15242_v59  ;;  %v15248_v1 = vpop.eup %10212  ;;  %v15254_v32 = vadd.f32 %v17421_v42, %v17420_v48  ;;  %10230 = vrcp.f32 %v5849_v23  ;;  %v5847_v57 = vpop.xlane.xlu1 %5846  ;;  %v5519_v58 = vsub.f32 %v17423_v39, %v14966_v18  ;;  %v17425_v23 = vld [vmem:[#allocation172_spill] sm:$0xff]  ;;  %v5734_v18 = vmul.f32 1.442695, %v5513_v46 }
 0x8b9   : >> { %17418 = vst [vmem:[#allocation237_spill] sm:$0xff] %v15248_v1  ;;  %v15257_v15 = vpop.eup %10214  ;;  %10232 = vrcp.f32 %v5847_v57  ;;  %8980 = vmatprep.subr.bf16.mxu1 %v6324_v51  ;;  %8996 = vmatprep.mubr.bf16.mxu1 %v6324_v51  ;;  %v15267_v11 = vadd.f32 %v17425_v23, %v17424_v25  ;;  %v5732_v56 = vmul.f32 1.442695, %v5512_v55  ;;  %v17427_v55 = vld [vmem:[#allocation165_spill] sm:$0xff] }
 0x8ba   : >> { %17422 = vst [vmem:[#allocation246_spill] sm:$0xff] %v15257_v15  ;;  %v15263_v44 = vpop.eup %10216  ;;  %10234 = vrcp.f32 %v5845_v28  ;;  %8951 = vmatpush3.bf16.msra.mxu0 %v15234_v12  ;;  %8981 = vmatpush3.bf16.msra.mxu1 %v6324_v51  ;;  %v5746_v42 = vmul.f32 1.442695, %v5519_v58  ;;  %v17428_v28 = vld [vmem:[#allocation164_spill] sm:$0xff]  ;;  %v17429_v25 = vld [vmem:[#allocation161_spill] sm:$0xff] }
 0x8bb   : >> { %v15270_v0 = vpop.eup %10218  ;;  %10236 = vpow2.f32 %v5726_v27  ;;  %8982 = vmatprep.subr.bf16.mxu1 %v15261_v61  ;;  %5418 = vmax.xlane.f32.xlu1 %v15254_v32  ;;  %v5825_v4 = vpop.xlane.xlu0 %5824 }
 0x8bc   : >> { %17426 = vst [vmem:[#allocation245_spill] sm:$0xff] %v15270_v0  ;;  %v10221_v14 = vpop.eup %10220  ;;  %10238 = vpow2.f32 %v5724_v41  ;;  %5416 = vmax.xlane.f32.xlu0 %v15267_v11  ;;  %v5827_v19 = vpop.xlane.xlu1 %5826 }
 0x8bd   : >> { %v10223_v48 = vpop.eup %10222  ;;  %10240 = vpow2.f32 %v5738_v6  ;;  %v6195_v6 = vmul.f32 %v10221_v14, %v17429_v25  ;;  %v17433_v14 = vld [vmem:[#allocation210_spill] sm:$0xff]  ;;  %v17434_v25 = vld [vmem:[#allocation167_spill] sm:$0xff] }
 0x8be   : >> { %10242 = vpow2.f32 %v5736_v22  ;;  %8983 = vmatpush3.bf16.msra.mxu1 %v15261_v61  ;;  %v6194_v39 = vmul.f32 %v10223_v48, %v17428_v28  ;;  %v17430_v22 = vld [vmem:[#allocation168_spill] sm:$0xff] }
 0x8bf   : >> { %v10225_v51 = vpop.eup %10224  ;;  %10244 = vpow2.f32 %v5734_v18  ;;  %5974 = vadd.xlane.f32.xlu1 %v15248_v1  ;;  %v5857_v41 = vpop.xlane.xlu0 %5856  ;;  %v17431_v1 = vld [vmem:[#allocation258_spill] sm:$0xff]  ;;  %v17432_v48 = vld [vmem:[#allocation212_spill] sm:$0xff] }
 0x8c0   : >> { %v10227_v27 = vpop.eup %10226  ;;  %10246 = vpow2.f32 %v5732_v56  ;;  %5972 = vadd.xlane.f32.xlu0 %v15257_v15  ;;  %v5859_v46 = vpop.xlane.xlu1 %5858  ;;  %v6193_v57 = vmul.f32 %v10225_v51, %v17427_v55  ;;  %v5518_v56 = vsub.f32 %v17431_v1, %v14968_v7  ;;  %v5517_v55 = vsub.f32 %v17432_v48, %v14994_v10 }
 0x8c1   : >> { %v10229_v58 = vpop.eup %10228  ;;  %10248 = vpow2.f32 %v5746_v42  ;;  %v6192_v23 = vmul.f32 %v10227_v27, %v17430_v22  ;;  %v5516_v42 = vsub.f32 %v17433_v14, %v14996_v54  ;;  %v15292_v28 = vpack.c.bf16 %v6195_v6, %v6194_v39  ;;  %v17436_v22 = vld [vmem:[#allocation166_spill] sm:$0xff]  ;;  %v17438_v14 = vld [vmem:[#allocation265_spill] sm:$0xff] }
 0x8c2   : >> { %v10231_v50 = vpop.eup %10230  ;;  %10250 = vrcp.f32 %v5827_v19  ;;  %v5744_v6 = vmul.f32 1.442695, %v5518_v56 }
 0x8c3   : >> { %v10233_v18 = vpop.eup %10232  ;;  %10252 = vrcp.f32 %v5825_v4  ;;  %5978 = vadd.xlane.f32.xlu1 %v15238_v31  ;;  %v15285_v15 = vpack.c.bf16 %v6193_v57, %v6192_v23  ;;  %v5821_v19 = vpop.xlane.xlu0 %5820  ;;  %v17435_v4 = vld [vmem:[#allocation170_spill] sm:$0xff]  ;;  %v6210_v10 = vmul.f32 %v10231_v50, %v17436_v22  ;;  %v17437_v23 = vld [vmem:[#allocation163_spill] sm:$0xff] }
 0x8c4   : >> { %v10235_v51 = vpop.eup %10234  ;;  %5976 = vadd.xlane.f32.xlu0 %v15242_v59  ;;  %v5823_v27 = vpop.xlane.xlu1 %5822  ;;  %v6209_v7 = vmul.f32 %v10233_v18, %v17434_v25  ;;  %v6211_v48 = vmul.f32 %v10229_v58, %v17437_v23  ;;  %v5523_v59 = vsub.f32 %v17438_v14, %v15022_v60  ;;  %v17439_v18 = vld [vmem:[#allocation264_spill] sm:$0xff] }
 0x8c5   : >> { %v15295_v1 = vpop.eup %10236  ;;  %10254 = vrcp.f32 %v5823_v27  ;;  %8952 = vmatprep.subr.bf16.mxu0 %v15285_v15  ;;  %v6208_v57 = vmul.f32 %v10235_v51, %v17435_v4  ;;  %v5522_v27 = vsub.f32 %v17439_v18, %v15024_v62  ;;  %v5742_v51 = vmul.f32 1.442695, %v5517_v55  ;;  %v17441_v60 = vld [vmem:[#allocation220_spill] sm:$0xff] }
 0x8c6   : >> { %v15301_v54 = vpop.eup %10238  ;;  %10256 = vrcp.f32 %v5821_v19  ;;  %8953 = vmatpush3.bf16.msra.mxu0 %v15285_v15  ;;  %v5521_v19 = vsub.f32 %v17441_v60, %v15050_v63  ;;  %v5740_v62 = vmul.f32 1.442695, %v5516_v42 }
 0x8c7   : >> { %v15306_v39 = vpop.eup %10240  ;;  %10258 = vrcp.f32 %v5859_v46  ;;  %8954 = vmatprep.subr.bf16.mxu0 %v15292_v28  ;;  %5982 = vadd.xlane.f32.xlu1 %v15295_v1  ;;  %v15312_v50 = vpack.c.bf16 %v6209_v7, %v6208_v57  ;;  %v5853_v25 = vpop.xlane.xlu0 %5852  ;;  %v17443_v46 = vld [vmem:[#allocation218_spill] sm:$0xff]  ;;  %v15324_v7 = vpack.c.bf16 %v6211_v48, %v6210_v10  ;;  %v5754_v57 = vmul.f32 1.442695, %v5523_v59 }
 0x8c8   : >> { %v15314_v58 = vpop.eup %10242  ;;  %10260 = vrcp.f32 %v5857_v41  ;;  %5980 = vadd.xlane.f32.xlu0 %v15301_v54  ;;  %v5855_v56 = vpop.xlane.xlu1 %5854  ;;  %v5520_v22 = vsub.f32 %v17443_v46, %v15052_v52  ;;  %v5752_v41 = vmul.f32 1.442695, %v5522_v27  ;;  %v5750_v42 = vmul.f32 1.442695, %v5521_v19  ;;  %v17447_v19 = vld [vmem:[#allocation171_spill] sm:$0xff] }
 0x8c9   : >> { %17440 = vst [vmem:[#allocation189_spill] sm:$0xff] %v15314_v58  ;;  %v15319_v4 = vpop.eup %10244  ;;  %10262 = vrcp.f32 %v5855_v56  ;;  %8984 = vmatprep.subr.bf16.mxu1 %v15312_v50 }
 0x8ca   : >> { %17442 = vst [vmem:[#allocation249_spill] sm:$0xff] %v15319_v4  ;;  %v15326_v55 = vpop.eup %10246  ;;  %10264 = vrcp.f32 %v5853_v25  ;;  %8955 = vmatpush3.bf16.msra.mxu0 %v15292_v28  ;;  %8985 = vmatpush3.bf16.msra.mxu1 %v15312_v50  ;;  %v5748_v48 = vmul.f32 1.442695, %v5520_v22  ;;  %v17448_v25 = vld [vmem:[#allocation169_spill] sm:$0xff]  ;;  %v17449_v22 = vld [vmem:[#allocation260_spill] sm:$0xff] }
 0x8cb   : >> { %17444 = vst [vmem:[#allocation253_spill] sm:$0xff] %v15326_v55  ;;  %v15330_v63 = vpop.eup %10248  ;;  %10266 = vpow2.f32 %v5744_v6  ;;  %8986 = vmatprep.subr.bf16.mxu1 %v15324_v7  ;;  %5986 = vadd.xlane.f32.xlu1 %v15263_v44  ;;  %v5833_v59 = vpop.xlane.xlu0 %5832 }
 0x8cc   : >> { %17445 = vst [vmem:[#allocation252_spill] sm:$0xff] %v15330_v63  ;;  %v10251_v52 = vpop.eup %10250  ;;  %10268 = vpow2.f32 %v5742_v51  ;;  %5984 = vadd.xlane.f32.xlu0 %v15270_v0  ;;  %v5835_v10 = vpop.xlane.xlu1 %5834  ;;  %v17446_v51 = vld [vmem:[#allocation175_spill] sm:$0xff] }
 0x8cd   : >> { %v10253_v23 = vpop.eup %10252  ;;  %10270 = vpow2.f32 %v5740_v62  ;;  %v6199_v62 = vmul.f32 %v10251_v52, %v17448_v25  ;;  %v17452_v52 = vld [vmem:[#allocation226_spill] sm:$0xff] }
 0x8ce   : >> { %10272 = vpow2.f32 %v5754_v57  ;;  %8987 = vmatpush3.bf16.msra.mxu1 %v15324_v7  ;;  %v6198_v56 = vmul.f32 %v10253_v23, %v17447_v19  ;;  %v17451_v23 = vld [vmem:[#allocation273_spill] sm:$0xff]  ;;  %v17453_v25 = vld [vmem:[#allocation178_spill] sm:$0xff] }
 0x8cf   : >> { %v10255_v14 = vpop.eup %10254  ;;  %10274 = vpow2.f32 %v5752_v41  ;;  %5990 = vadd.xlane.f32.xlu1 %v15319_v4  ;;  %v5865_v27 = vpop.xlane.xlu0 %5864  ;;  %v17450_v4 = vld [vmem:[#allocation269_spill] sm:$0xff] }
 0x8d0   : >> { %v10257_v6 = vpop.eup %10256  ;;  %10276 = vpow2.f32 %v5750_v42  ;;  %5988 = vadd.xlane.f32.xlu0 %v15326_v55  ;;  %v5867_v18 = vpop.xlane.xlu1 %5866  ;;  %v6197_v60 = vmul.f32 %v10255_v14, %v17446_v51  ;;  %v5527_v42 = vsub.f32 %v17450_v4, %v15078_v30  ;;  %v5525_v51 = vsub.f32 %v17451_v23, %v15106_v13 }
 0x8d1   : >> { %v10259_v46 = vpop.eup %10258  ;;  %10278 = vpow2.f32 %v5748_v48  ;;  %v6196_v57 = vmul.f32 %v10257_v6, %v17449_v22  ;;  %v5524_v48 = vsub.f32 %v17452_v52, %v15108_v9  ;;  %v15352_v19 = vpack.c.bf16 %v6199_v62, %v6198_v56  ;;  %v17456_v22 = vld [vmem:[#allocation176_spill] sm:$0xff] }
 0x8d2   : >> { %v10261_v0 = vpop.eup %10260  ;;  %10280 = vrcp.f32 %v5835_v10  ;;  %v17458_v52 = vld [vmem:[#allocation268_spill] sm:$0xff]  ;;  %v5762_v62 = vmul.f32 1.442695, %v5527_v42 }
 0x8d3   : >> { %v10263_v41 = vpop.eup %10262  ;;  %10282 = vrcp.f32 %v5833_v59  ;;  %5994 = vadd.xlane.f32.xlu1 %v15306_v39  ;;  %v15345_v55 = vpack.c.bf16 %v6197_v60, %v6196_v57  ;;  %v5829_v10 = vpop.xlane.xlu0 %5828  ;;  %v17455_v59 = vld [vmem:[#allocation261_spill] sm:$0xff]  ;;  %v6214_v13 = vmul.f32 %v10261_v0, %v17456_v22 }
 0x8d4   : >> { %v10265_v14 = vpop.eup %10264  ;;  %5992 = vadd.xlane.f32.xlu0 %v15314_v58  ;;  %v5831_v6 = vpop.xlane.xlu1 %5830  ;;  %v6213_v30 = vmul.f32 %v10263_v41, %v17453_v25  ;;  %v17457_v57 = vld [vmem:[#allocation173_spill] sm:$0xff]  ;;  %v5526_v58 = vsub.f32 %v17458_v52, %v15080_v20  ;;  %v17459_v41 = vld [vmem:[#allocation228_spill] sm:$0xff]  ;;  %v17460_v20 = vld [vmem:[#allocation227_spill] sm:$0xff] }
 0x8d5   : >> { %v15355_v4 = vpop.eup %10266  ;;  %10284 = vrcp.f32 %v5831_v6  ;;  %8956 = vmatprep.subr.bf16.mxu0 %v15345_v55  ;;  %v6212_v60 = vmul.f32 %v10265_v14, %v17455_v59  ;;  %v6215_v23 = vmul.f32 %v10259_v46, %v17457_v57  ;;  %v5531_v6 = vsub.f32 %v17459_v41, %v15134_v24 }
 0x8d6   : >> { %17454 = vst [vmem:[#allocation155_spill] sm:$0xff] %v15355_v4  ;;  %v15361_v9 = vpop.eup %10268  ;;  %10286 = vrcp.f32 %v5829_v10  ;;  %8957 = vmatpush3.bf16.msra.mxu0 %v15345_v55  ;;  %v5758_v14 = vmul.f32 1.442695, %v5525_v51  ;;  %v5530_v10 = vsub.f32 %v17460_v20, %v15136_v40  ;;  %v5756_v24 = vmul.f32 1.442695, %v5524_v48  ;;  %v17463_v40 = vld [vmem:[#allocation153_spill] sm:$0xff] }
 0x8d7   : >> { %v15366_v56 = vpop.eup %10270  ;;  %10288 = vrcp.f32 %v5867_v18  ;;  %8958 = vmatprep.subr.bf16.mxu0 %v15352_v19  ;;  %5998 = vadd.xlane.f32.xlu1 %v15361_v9  ;;  %v15372_v0 = vpack.c.bf16 %v6213_v30, %v6212_v60  ;;  %v5861_v25 = vpop.xlane.xlu0 %5860  ;;  %v17461_v18 = vld [vmem:[#allocation158_spill] sm:$0xff]  ;;  %v15384_v30 = vpack.c.bf16 %v6215_v23, %v6214_v13  ;;  %v5760_v60 = vmul.f32 1.442695, %v5526_v58 }
 0x8d8   : >> { %v15374_v46 = vpop.eup %10272  ;;  %10290 = vrcp.f32 %v5865_v27  ;;  %5996 = vadd.xlane.f32.xlu0 %v15366_v56  ;;  %v5863_v42 = vpop.xlane.xlu1 %5862  ;;  %v5529_v22 = vsub.f32 %v17461_v18, %v15150_v2  ;;  %v5528_v27 = vsub.f32 %v17463_v40, %v15152_v33  ;;  %v5770_v2 = vmul.f32 1.442695, %v5531_v6  ;;  %v17468_v40 = vld [vmem:[#allocation184_spill] sm:$0xff] }
 0x8d9   : >> { %v15379_v59 = vpop.eup %10274  ;;  %10292 = vrcp.f32 %v5863_v42  ;;  %8988 = vmatprep.subr.bf16.mxu1 %v15372_v0  ;;  %v5768_v57 = vmul.f32 1.442695, %v5530_v10  ;;  %v17465_v10 = vld [vmem:[#allocation181_spill] sm:$0xff] }
 0x8da   : >> { %v15386_v51 = vpop.eup %10276  ;;  %10294 = vrcp.f32 %v5861_v25  ;;  %8959 = vmatpush3.bf16.msra.mxu0 %v15352_v19  ;;  %8989 = vmatpush3.bf16.msra.mxu1 %v15372_v0  ;;  %v5766_v52 = vmul.f32 1.442695, %v5529_v22  ;;  %v5764_v41 = vmul.f32 1.442695, %v5528_v27  ;;  %v17466_v25 = vld [vmem:[#allocation180_spill] sm:$0xff] }
 0x8db   : >> { %17462 = vst [vmem:[#allocation187_spill] sm:$0xff] %v15386_v51  ;;  %v15392_v48 = vpop.eup %10278  ;;  %10296 = vpow2.f32 %v5762_v62  ;;  %8990 = vmatprep.subr.bf16.mxu1 %v15384_v30  ;;  %6002 = vadd.xlane.f32.xlu1 %v15330_v63  ;;  %v5873_v33 = vpop.xlane.xlu0 %5872 }
 0x8dc   : >> { %17464 = vst [vmem:[#allocation197_spill] sm:$0xff] %v15392_v48  ;;  %v10281_v13 = vpop.eup %10280  ;;  %10298 = vpow2.f32 %v5758_v14  ;;  %6000 = vadd.xlane.f32.xlu0 %v15355_v4  ;;  %v5875_v58 = vpop.xlane.xlu1 %5874 }
 0x8dd   : >> { %v10283_v23 = vpop.eup %10282  ;;  %10300 = vpow2.f32 %v5756_v24  ;;  %v17467_v24 = vld [vmem:[#allocation177_spill] sm:$0xff] }
 0x8de   : >> { %10302 = vpow2.f32 %v5760_v60  ;;  %8991 = vmatpush3.bf16.msra.mxu1 %v15384_v30  ;;  %v6202_v18 = vmul.f32 %v10283_v23, %v17466_v25  ;;  %v6203_v22 = vmul.f32 %v10281_v13, %v17467_v24  ;;  %v17471_v13 = vld [vmem:[#allocation211_spill] sm:$0xff] }
 0x8df   : >> { %v10285_v62 = vpop.eup %10284  ;;  %10304 = vpow2.f32 %v5770_v2  ;;  %6006 = vadd.xlane.f32.xlu1 %v15386_v51  ;;  %v5905_v20 = vpop.xlane.xlu0 %5904  ;;  %v17469_v51 = vld [vmem:[#allocation263_spill] sm:$0xff] }
 0x8e0   : >> { %v10287_v6 = vpop.eup %10286  ;;  %10306 = vpow2.f32 %v5768_v57  ;;  %6004 = vadd.xlane.f32.xlu0 %v15392_v48  ;;  %v5907_v14 = vpop.xlane.xlu1 %5906  ;;  %v6201_v42 = vmul.f32 %v10285_v62, %v17465_v10  ;;  %v5535_v57 = vsub.f32 %v17469_v51, %v14980_v43  ;;  %v17470_v48 = vld [vmem:[#allocation213_spill] sm:$0xff]  ;;  %v15414_v10 = vpack.c.bf16 %v6203_v22, %v6202_v18  ;;  %v17472_v43 = vld [vmem:[#allocation183_spill] sm:$0xff] }
 0x8e1   : >> { %v10289_v60 = vpop.eup %10288  ;;  %10308 = vpow2.f32 %v5766_v52  ;;  %v6200_v27 = vmul.f32 %v10287_v6, %v17468_v40  ;;  %v5533_v63 = vsub.f32 %v17470_v48, %v15008_v49  ;;  %v5532_v52 = vsub.f32 %v17471_v13, %v15010_v8  ;;  %v17473_v49 = vld [vmem:[#allocation186_spill] sm:$0xff]  ;;  %v17475_v24 = vld [vmem:[#allocation179_spill] sm:$0xff] }
 0x8e2   : >> { %v10291_v4 = vpop.eup %10290  ;;  %10310 = vpow2.f32 %v5764_v41  ;;  %v6219_v8 = vmul.f32 %v10289_v60, %v17475_v24  ;;  %v17476_v40 = vld [vmem:[#allocation262_spill] sm:$0xff]  ;;  %v5778_v22 = vmul.f32 1.442695, %v5535_v57 }
 0x8e3   : >> { %v10293_v2 = vpop.eup %10292  ;;  %10312 = vrcp.f32 %v5875_v58  ;;  %6010 = vadd.xlane.f32.xlu1 %v15374_v46  ;;  %v15409_v62 = vpack.c.bf16 %v6201_v42, %v6200_v27  ;;  %v5869_v6 = vpop.xlane.xlu0 %5868  ;;  %v17474_v58 = vld [vmem:[#allocation182_spill] sm:$0xff]  ;;  %v5534_v27 = vsub.f32 %v17476_v40, %v14982_v26 }
 0x8e4   : >> { %v10295_v23 = vpop.eup %10294  ;;  %10314 = vrcp.f32 %v5873_v33  ;;  %6008 = vadd.xlane.f32.xlu0 %v15379_v59  ;;  %v5871_v41 = vpop.xlane.xlu1 %5870  ;;  %v6217_v51 = vmul.f32 %v10293_v2, %v17472_v43  ;;  %v6218_v42 = vmul.f32 %v10291_v4, %v17474_v58  ;;  %v17477_v2 = vld [vmem:[#allocation267_spill] sm:$0xff]  ;;  %v17478_v26 = vld [vmem:[#allocation266_spill] sm:$0xff] }
 0x8e5   : >> { %v15417_v25 = vpop.eup %10296  ;;  %10316 = vrcp.f32 %v5871_v41  ;;  %8960 = vmatprep.subr.bf16.mxu0 %v15409_v62  ;;  %v6216_v48 = vmul.f32 %v10295_v23, %v17473_v49  ;;  %v5539_v13 = vsub.f32 %v17477_v2, %v15036_v29  ;;  %v5774_v23 = vmul.f32 1.442695, %v5533_v63  ;;  %v17480_v58 = vld [vmem:[#allocation219_spill] sm:$0xff] }
 0x8e6   : >> { %v15423_v33 = vpop.eup %10298  ;;  %10318 = vrcp.f32 %v5869_v6  ;;  %8961 = vmatpush3.bf16.msra.mxu0 %v15409_v62  ;;  %v5538_v41 = vsub.f32 %v17478_v26, %v15038_v53  ;;  %v5772_v29 = vmul.f32 1.442695, %v5532_v52 }
 0x8e7   : >> { %v15428_v18 = vpop.eup %10300  ;;  %10320 = vrcp.f32 %v5907_v14  ;;  %8962 = vmatprep.subr.bf16.mxu0 %v15414_v10  ;;  %6014 = vadd.xlane.f32.xlu1 %v15423_v33  ;;  %v15434_v4 = vpack.c.bf16 %v6217_v51, %v6216_v48  ;;  %v5901_v6 = vpop.xlane.xlu0 %5900  ;;  %v17479_v14 = vld [vmem:[#allocation221_spill] sm:$0xff]  ;;  %v15446_v51 = vpack.c.bf16 %v6219_v8, %v6218_v42  ;;  %v5776_v48 = vmul.f32 1.442695, %v5534_v27 }
 0x8e8   : >> { %v15436_v60 = vpop.eup %10302  ;;  %10322 = vrcp.f32 %v5905_v20  ;;  %6012 = vadd.xlane.f32.xlu0 %v15428_v18  ;;  %v5903_v57 = vpop.xlane.xlu1 %5902  ;;  %v5537_v49 = vsub.f32 %v17479_v14, %v15064_v36  ;;  %v5786_v20 = vmul.f32 1.442695, %v5539_v13  ;;  %v5784_v52 = vmul.f32 1.442695, %v5538_v41  ;;  %v17481_v41 = vld [vmem:[#allocation192_spill] sm:$0xff] }
 0x8e9   : >> { %v15441_v43 = vpop.eup %10304  ;;  %10324 = vrcp.f32 %v5903_v57  ;;  %8992 = vmatprep.subr.bf16.mxu1 %v15434_v4  ;;  %v5536_v42 = vsub.f32 %v17480_v58, %v15066_v45 }
 0x8ea   : >> { %v15448_v63 = vpop.eup %10306  ;;  %10326 = vrcp.f32 %v5901_v6  ;;  %8963 = vmatpush3.bf16.msra.mxu0 %v15414_v10  ;;  %8993 = vmatpush3.bf16.msra.mxu1 %v15434_v4  ;;  %v5782_v27 = vmul.f32 1.442695, %v5537_v49  ;;  %v17484_v49 = vld [vmem:[#allocation185_spill] sm:$0xff] }
 0x8eb   : >> { %v15452_v53 = vpop.eup %10308  ;;  %10328 = vpow2.f32 %v5778_v22  ;;  %8994 = vmatprep.subr.bf16.mxu1 %v15446_v51  ;;  %6018 = vadd.xlane.f32.xlu1 %v15417_v25  ;;  %v5881_v8 = vpop.xlane.xlu0 %5880  ;;  %v5780_v13 = vmul.f32 1.442695, %v5536_v42 }
 0x8ec   : >> { %v15456_v36 = vpop.eup %10310  ;;  %10330 = vpow2.f32 %v5774_v23  ;;  %6016 = vadd.xlane.f32.xlu0 %v15436_v60  ;;  %v5883_v24 = vpop.xlane.xlu1 %5882 }
 0x8ed   : >> { %v10313_v40 = vpop.eup %10312  ;;  %10332 = vpow2.f32 %v5772_v29  ;;  %8965 = vmatmul.mubr.bf16.vlgmr.msra.gmra.mrb[64].mxu0 %v15234_v12  ;;  %v17483_v29 = vld [vmem:[#allocation188_spill] sm:$0xff] }
 0x8ee   : >> { %v10315_v22 = vpop.eup %10314  ;;  %10334 = vpow2.f32 %v5776_v48  ;;  %8968 = vmatprep.mubr.bf16.mxu0 %v15285_v15  ;;  %8995 = vmatpush3.bf16.msra.mxu1 %v15446_v51  ;;  %v17482_v15 = vld [vmem:[#allocation199_spill] sm:$0xff]  ;;  %v6223_v48 = vmul.f32 %v10313_v40, %v17484_v49  ;;  %v17486_v40 = vld [vmem:[#allocation270_spill] sm:$0xff] }
 0x8ef   : >> { %v10317_v2 = vpop.eup %10316  ;;  %10336 = vpow2.f32 %v5786_v20  ;;  %6022 = vadd.xlane.f32.xlu1 %v15452_v53  ;;  %v5913_v26 = vpop.xlane.xlu0 %5912  ;;  %v6222_v14 = vmul.f32 %v10315_v22, %v17483_v29  ;;  %v17490_v29 = vld [vmem:[#allocation190_spill] sm:$0xff] }
 0x8f0   : >> { %v10319_v45 = vpop.eup %10318  ;;  %10338 = vpow2.f32 %v5784_v52  ;;  %6020 = vadd.xlane.f32.xlu0 %v15456_v36  ;;  %v5915_v23 = vpop.xlane.xlu1 %5914  ;;  %v6221_v57 = vmul.f32 %v10317_v2, %v17481_v41  ;;  %v17488_v41 = vld [vmem:[#allocation198_spill] sm:$0xff] }
 0x8f1   : >> { %v10321_v12 = vpop.eup %10320  ;;  %10340 = vpow2.f32 %v5782_v27  ;;  %8997 = vmatmul.mubr.bf16.vlgmr.msra.gmra.mrb[64].mxu1 %v15261_v61  ;;  %v6220_v6 = vmul.f32 %v10319_v45, %v17482_v15  ;;  %v17485_v61 = vld [vmem:[#allocation156_spill] sm:$0xff]  ;;  %v17489_v15 = vld [vmem:[#allocation193_spill] sm:$0xff] }
 0x8f2   : >> { %v10323_v20 = vpop.eup %10322  ;;  %10342 = vrcp.f32 %v5883_v24  ;;  %9000 = vmatprep.mubr.bf16.mxu1 %v15312_v50  ;;  %v5541_v27 = vsub.f32 %v17485_v61, %v15120_v38  ;;  %v17487_v50 = vld [vmem:[#allocation152_spill] sm:$0xff] }
 0x8f3   : >> { %v10325_v52 = vpop.eup %10324  ;;  %10344 = vrcp.f32 %v5881_v8  ;;  %6026 = vadd.xlane.f32.xlu1 %v15441_v43  ;;  %v15473_v58 = vpack.c.bf16 %v6221_v57, %v6220_v6  ;;  %v5877_v2 = vpop.xlane.xlu0 %5876  ;;  %v5540_v8 = vsub.f32 %v17487_v50, %v15122_v17  ;;  %v6238_v6 = vmul.f32 %v10323_v20, %v17489_v15 }
 0x8f4   : >> { %v10327_v42 = vpop.eup %10326  ;;  %10346 = vpow2.f32 %v5780_v13  ;;  %6024 = vadd.xlane.f32.xlu0 %v15448_v63  ;;  %v5879_v22 = vpop.xlane.xlu1 %5878  ;;  %v6237_v45 = vmul.f32 %v10325_v52, %v17486_v40  ;;  %v15485_v13 = vpack.c.bf16 %v6223_v48, %v6222_v14  ;;  %v6239_v17 = vmul.f32 %v10321_v12, %v17490_v29  ;;  %v17491_v48 = vld [vmem:[#allocation236_spill] sm:$0xff] }
 0x8f5   : >> { %v15479_v24 = vpop.eup %10328  ;;  %10348 = vrcp.f32 %v5879_v22  ;;  %8969 = vmatmul.mubr.bf16.gmra.mrb[68].mxu0 %v15292_v28  ;;  %9012 = vmatprep.subr.bf16.mxu0 %v15473_v58  ;;  %v6236_v38 = vmul.f32 %v10327_v42, %v17488_v41  ;;  %v17492_v52 = vld [vmem:[#allocation272_spill] sm:$0xff]  ;;  %v5790_v42 = vmul.f32 1.442695, %v5541_v27  ;;  %v17495_v22 = vld [vmem:[#allocation271_spill] sm:$0xff]  ;;  %v5788_v40 = vmul.f32 1.442695, %v5540_v8 }
 0x8f6   : >> { %v15488_v57 = vpop.eup %10330  ;;  %10350 = vrcp.f32 %v5877_v2  ;;  %8972 = vmatprep.mubr.bf16.mxu0 %v15345_v55  ;;  %9013 = vmatpush3.bf16.msra.mxu0 %v15473_v58  ;;  %v5543_v55 = vsub.f32 %v17492_v52, %v17491_v48  ;;  %v17499_v52 = vld [vmem:[#allocation207_spill] sm:$0xff] }
 0x8f7   : >> { %v15494_v49 = vpop.eup %10332  ;;  %10352 = vrcp.f32 %v5915_v23  ;;  %9014 = vmatprep.subr.bf16.mxu0 %v15485_v13  ;;  %6030 = vadd.xlane.f32.xlu1 %v15488_v57  ;;  %v15498_v28 = vpack.c.bf16 %v6237_v45, %v6236_v38  ;;  %v5909_v12 = vpop.xlane.xlu0 %5908  ;;  %v17494_v23 = vld [vmem:[#allocation235_spill] sm:$0xff] }
 0x8f8   : >> { %v15500_v14 = vpop.eup %10334  ;;  %10354 = vrcp.f32 %v5913_v26  ;;  %6028 = vadd.xlane.f32.xlu0 %v15494_v49  ;;  %v5911_v20 = vpop.xlane.xlu1 %5910  ;;  %v5542_v2 = vsub.f32 %v17495_v22, %v17494_v23  ;;  %v15515_v26 = vpack.c.bf16 %v6239_v17, %v6238_v6  ;;  %v5794_v8 = vmul.f32 1.442695, %v5543_v55 }
 0x8f9   : >> { %v15505_v61 = vpop.eup %10336  ;;  %10356 = vrcp.f32 %v5911_v20  ;;  %9001 = vmatmul.mubr.bf16.gmra.mrb[68].mxu1 %v15324_v7  ;;  %9044 = vmatprep.subr.bf16.mxu1 %v15498_v28 }
 0x8fa   : >> { %17493 = vst [vmem:[#allocation191_spill] sm:$0xff] %v15505_v61  ;;  %v15511_v45 = vpop.eup %10338  ;;  %10358 = vrcp.f32 %v5909_v12  ;;  %9004 = vmatprep.mubr.bf16.mxu1 %v15372_v0  ;;  %9015 = vmatpush3.bf16.msra.mxu0 %v15485_v13  ;;  %v5792_v38 = vmul.f32 1.442695, %v5542_v2 }
 0x8fb   : >> { %17496 = vst [vmem:[#allocation195_spill] sm:$0xff] %v15511_v45  ;;  %v15517_v27 = vpop.eup %10340  ;;  %9045 = vmatpush3.bf16.msra.mxu1 %v15498_v28  ;;  %6034 = vadd.xlane.f32.xlu1 %v15479_v24  ;;  %10360 = vpow2.f32 %v5790_v42  ;;  %v5889_v41 = vpop.xlane.xlu0 %5888  ;;  %v17500_v42 = vld [vmem:[#allocation201_spill] sm:$0xff] }
 0x8fc   : >> { %17497 = vst [vmem:[#allocation257_spill] sm:$0xff] %v15517_v27  ;;  %v10343_v50 = vpop.eup %10342  ;;  %9046 = vmatprep.subr.bf16.mxu1 %v15515_v26  ;;  %6032 = vadd.xlane.f32.xlu0 %v15500_v14  ;;  %v5891_v7 = vpop.xlane.xlu1 %5890  ;;  %10362 = vpow2.f32 %v5788_v40 }
 0x8fd   : >> { %v10345_v0 = vpop.eup %10344  ;;  %8973 = vmatmul.mubr.bf16.gmra.mrb[72].mxu0 %v15352_v19  ;;  %10364 = vpow2.f32 %v5794_v8  ;;  %v17501_v19 = vld [vmem:[#allocation151_spill] sm:$0xff] }
 0x8fe   : >> { %v15524_v15 = vpop.eup %10346  ;;  %8976 = vmatprep.mubr.bf16.mxu0 %v15409_v62  ;;  %v6226_v20 = vmul.f32 %v10345_v0, %v17500_v42  ;;  %v6227_v12 = vmul.f32 %v10343_v50, %v17501_v19  ;;  %10366 = vpow2.f32 %v5792_v38  ;;  %v17502_v62 = vld [vmem:[#allocation206_spill] sm:$0xff] }
 0x8ff   : >> { %17498 = vst [vmem:[#allocation162_spill] sm:$0xff] %v15524_v15  ;;  %v10349_v6 = vpop.eup %10348  ;;  %9047 = vmatpush3.bf16.msra.mxu1 %v15515_v26  ;;  %6038 = vadd.xlane.f32.xlu1 %v15517_v27  ;;  %v5921_v48 = vpop.xlane.xlu0 %5920  ;;  %10368 = vrcp.f32 %v5891_v7  ;;  %v17523_v27 = vld [vmem:[#allocation240_spill] sm:$0xff] }
 0x900   : >> { %v10351_v29 = vpop.eup %10350  ;;  %6036 = vadd.xlane.f32.xlu0 %v15524_v15  ;;  %v5923_v17 = vpop.xlane.xlu1 %5922  ;;  %v6225_v55 = vmul.f32 %v10349_v6, %v17499_v52  ;;  %10370 = vrcp.f32 %v5889_v41  ;;  %v15540_v38 = vpack.c.bf16 %v6227_v12, %v6226_v20  ;;  %v17505_v41 = vld [vmem:[#allocation200_spill] sm:$0xff] }
 0x901   : >> { %v10353_v23 = vpop.eup %10352  ;;  %9005 = vmatmul.mubr.bf16.gmra.mrb[72].mxu1 %v15384_v30  ;;  %v6224_v22 = vmul.f32 %v10351_v29, %v17502_v62  ;;  %v17503_v30 = vld [vmem:[#allocation209_spill] sm:$0xff] }
 0x902   : >> { %v10355_v2 = vpop.eup %10354  ;;  %9008 = vmatprep.mubr.bf16.mxu1 %v15434_v4  ;;  %v17504_v4 = vld [vmem:[#allocation208_spill] sm:$0xff] }
 0x903   : >> { %v10357_v40 = vpop.eup %10356  ;;  %6042 = vadd.xlane.f32.xlu1 %v15505_v61  ;;  %v15537_v8 = vpack.c.bf16 %v6225_v55, %v6224_v22  ;;  %v5885_v0 = vpop.xlane.xlu0 %5884  ;;  %v6242_v29 = vmul.f32 %v10355_v2, %v17505_v41  ;;  %v17506_v55 = vld [vmem:[#allocation154_spill] sm:$0xff]  ;;  %v17515_v61 = vld [vmem:[#allocation225_spill] sm:$0xff] }
 0x904   : >> { %v10359_v6 = vpop.eup %10358  ;;  %6040 = vadd.xlane.f32.xlu0 %v15511_v45  ;;  %v5887_v50 = vpop.xlane.xlu1 %5886  ;;  %v6241_v52 = vmul.f32 %v10357_v40, %v17503_v30  ;;  %v6243_v42 = vmul.f32 %v10353_v23, %v17506_v55  ;;  %v17511_v30 = vld [vmem:[#allocation223_spill] sm:$0xff]  ;;  %v17514_v55 = vld [vmem:[#allocation222_spill] sm:$0xff] }
 0x905   : >> { %10372 = vrcp.f32 %v5887_v50  ;;  %8977 = vmatmul.mubr.bf16.gmra.mrb[76].mxu0 %v15414_v10  ;;  %9016 = vmatprep.subr.bf16.mxu0 %v15537_v8  ;;  %v6240_v7 = vmul.f32 %v10359_v6, %v17504_v4  ;;  %v15548_v19 = vpop.eup %10360  ;;  %v17512_v4 = vld [vmem:[#allocation214_spill] sm:$0xff] }
 0x906   : >> { %17507 = vst [vmem:[#allocation160_spill] sm:$0xff] %v15548_v19  ;;  %10374 = vrcp.f32 %v5885_v0  ;;  %9017 = vmatpush3.bf16.msra.mxu0 %v15537_v8  ;;  %9028 = vmatprep.mubr.bf16.mxu0 %v15473_v58  ;;  %v15552_v20 = vpop.eup %10362  ;;  %v15561_v58 = vpack.c.bf16 %v6243_v42, %v6242_v29 }
 0x907   : >> { %17508 = vst [vmem:[#allocation159_spill] sm:$0xff] %v15552_v20  ;;  %10376 = vrcp.f32 %v5923_v17  ;;  %9018 = vmatprep.subr.bf16.mxu0 %v15540_v38  ;;  %6046 = vadd.xlane.f32.xlu1 %v15548_v19  ;;  %v15556_v10 = vpack.c.bf16 %v6241_v52, %v6240_v7  ;;  %v5917_v23 = vpop.xlane.xlu0 %5916  ;;  %v15563_v62 = vpop.eup %10364  ;;  %v17513_v7 = vld [vmem:[#allocation215_spill] sm:$0xff] }
 0x908   : >> { %10378 = vrcp.f32 %v5921_v48  ;;  %6044 = vadd.xlane.f32.xlu0 %v15552_v20  ;;  %v5919_v12 = vpop.xlane.xlu1 %5918  ;;  %17509 = vst [vmem:[#allocation157_spill] sm:$0xff] %v15563_v62  ;;  %v15567_v17 = vpop.eup %10366 }
 0x909   : >> { %10380 = vrcp.f32 %v5919_v12  ;;  %9009 = vmatmul.mubr.bf16.gmra.mrb[76].mxu1 %v15446_v51  ;;  %9048 = vmatprep.subr.bf16.mxu1 %v15556_v10  ;;  %17510 = vst [vmem:[#allocation256_spill] sm:$0xff] %v15567_v17  ;;  %v10369_v48 = vpop.eup %10368 }
 0x90a   : >> { %10382 = vrcp.f32 %v5917_v23  ;;  %9019 = vmatpush3.bf16.msra.mxu0 %v15540_v38  ;;  %9049 = vmatpush3.bf16.msra.mxu1 %v15556_v10  ;;  %v10371_v2 = vpop.eup %10370  ;;  %v6231_v41 = vmul.f32 %v10369_v48, %v17513_v7  ;;  %v17516_v48 = vld [vmem:[#allocation224_spill] sm:$0xff] }
 0x90b   : >> { %9060 = vmatprep.mubr.bf16.mxu1 %v15498_v28  ;;  %9050 = vmatprep.subr.bf16.mxu1 %v15561_v58  ;;  %v5897_v22 = vpop.xlane.xlu0 %5896  ;;  %v6230_v28 = vmul.f32 %v10371_v2, %v17512_v4  ;;  %v17518_v4 = vld [vmem:[#allocation217_spill] sm:$0xff] }
 0x90c   : >> { %6050 = vadd.xlane.f32.xlu1 %v15563_v62  ;;  %6048 = vadd.xlane.f32.xlu0 %v15567_v17  ;;  %v5899_v51 = vpop.xlane.xlu1 %5898 }
 0x90d   : >> { %10384 = vrcp.f32 %v5899_v51  ;;  %v15580_v45 = vpack.c.bf16 %v6231_v41, %v6230_v28 }
 0x90e   : >> { %9051 = vmatpush3.bf16.msra.mxu1 %v15561_v58  ;;  %10386 = vrcp.f32 %v5897_v22 }
 0x90f   : >> { %v10373_v40 = vpop.eup %10372  ;;  %v5929_v0 = vpop.xlane.xlu0 %5928 }
 0x910   : >> { %v10375_v6 = vpop.eup %10374  ;;  %v5931_v50 = vpop.xlane.xlu1 %5930  ;;  %v6229_v52 = vmul.f32 %v10373_v40, %v17511_v30  ;;  %v17517_v30 = vld [vmem:[#allocation216_spill] sm:$0xff] }
 0x911   : >> { %v10377_v29 = vpop.eup %10376  ;;  %v6228_v42 = vmul.f32 %v10375_v6, %v17514_v55  ;;  %v17519_v55 = vld [vmem:[#allocation234_spill] sm:$0xff] }
 0x912   : >> { %v10379_v12 = vpop.eup %10378  ;;  %v6247_v51 = vmul.f32 %v10377_v29, %v17518_v4 }
 0x913   : >> { %v10381_v23 = vpop.eup %10380  ;;  %v15578_v17 = vpack.c.bf16 %v6229_v52, %v6228_v42  ;;  %v5893_v19 = vpop.xlane.xlu0 %5892  ;;  %v6246_v6 = vmul.f32 %v10379_v12, %v17517_v30  ;;  %v17520_v12 = vld [vmem:[#allocation229_spill] sm:$0xff] }
 0x914   : >> { %v10383_v62 = vpop.eup %10382  ;;  %v5895_v20 = vpop.xlane.xlu1 %5894  ;;  %v6245_v40 = vmul.f32 %v10381_v23, %v17515_v61  ;;  %v17522_v30 = vld [vmem:[#allocation233_spill] sm:$0xff] }
 0x915   : >> { %10388 = vrcp.f32 %v5895_v20  ;;  %9020 = vmatprep.subr.bf16.mxu0 %v15578_v17  ;;  %v6244_v2 = vmul.f32 %v10383_v62, %v17516_v48  ;;  %v15592_v20 = vpack.c.bf16 %v6247_v51, %v6246_v6 }
 0x916   : >> { %10390 = vrcp.f32 %v5893_v19  ;;  %9021 = vmatpush3.bf16.msra.mxu0 %v15578_v17 }
 0x917   : >> { %10392 = vrcp.f32 %v5931_v50  ;;  %9022 = vmatprep.subr.bf16.mxu0 %v15580_v45  ;;  %v15589_v22 = vpack.c.bf16 %v6245_v40, %v6244_v2  ;;  %v5925_v61 = vpop.xlane.xlu0 %5924  ;;  %v10385_v19 = vpop.eup %10384  ;;  %v17521_v40 = vld [vmem:[#allocation230_spill] sm:$0xff] }
 0x918   : >> { %10394 = vrcp.f32 %v5929_v0  ;;  %v5927_v52 = vpop.xlane.xlu1 %5926  ;;  %v10387_v28 = vpop.eup %10386  ;;  %v6235_v48 = vmul.f32 %v10385_v19, %v17521_v40  ;;  %v17524_v19 = vld [vmem:[#allocation239_spill] sm:$0xff] }
 0x919   : >> { %10396 = vrcp.f32 %v5927_v52  ;;  %9052 = vmatprep.subr.bf16.mxu1 %v15589_v22  ;;  %v6234_v23 = vmul.f32 %v10387_v28, %v17520_v12 }
 0x91a   : >> { %10398 = vrcp.f32 %v5925_v61  ;;  %9023 = vmatpush3.bf16.msra.mxu0 %v15580_v45  ;;  %9053 = vmatpush3.bf16.msra.mxu1 %v15589_v22 }
 0x91b   : >> { %9054 = vmatprep.subr.bf16.mxu1 %v15592_v20  ;;  %v5937_v50 = vpop.xlane.xlu0 %5936  ;;  %v15604_v15 = vpack.c.bf16 %v6235_v48, %v6234_v23 }
 0x91c   : >> { %v5939_v62 = vpop.xlane.xlu1 %5938 }
 0x91d   : >> { %10400 = vrcp.f32 %v5939_v62 }
 0x91e   : >> { %9055 = vmatpush3.bf16.msra.mxu1 %v15592_v20  ;;  %10402 = vrcp.f32 %v5937_v50 }
 0x91f   : >> { %v10389_v0 = vpop.eup %10388  ;;  %v5933_v29 = vpop.xlane.xlu0 %5932 }
 0x920   : >> { %v10391_v7 = vpop.eup %10390  ;;  %v5935_v41 = vpop.xlane.xlu1 %5934  ;;  %v6233_v42 = vmul.f32 %v10389_v0, %v17519_v55 }
 0x921   : >> { %v10393_v2 = vpop.eup %10392  ;;  %10404 = vrcp.f32 %v5935_v41  ;;  %v6232_v6 = vmul.f32 %v10391_v7, %v17522_v30  ;;  %v17525_v41 = vld [vmem:[#allocation231_spill] sm:$0xff]  ;;  %v17526_v7 = vld [vmem:[#allocation232_spill] sm:$0xff] }
 0x922   : >> { %v10395_v4 = vpop.eup %10394  ;;  %10406 = vrcp.f32 %v5933_v29  ;;  %v6251_v12 = vmul.f32 %v10393_v2, %v17526_v7 }
 0x923   : >> { %v10397_v51 = vpop.eup %10396  ;;  %v15602_v52 = vpack.c.bf16 %v6233_v42, %v6232_v6  ;;  %v5965_v50 = vpop.xlane.xlu0 %5964  ;;  %v6250_v55 = vmul.f32 %v10395_v4, %v17525_v41 }
 0x924   : >> { %v10399_v61 = vpop.eup %10398  ;;  %v5967_v62 = vpop.xlane.xlu1 %5966  ;;  %v6249_v0 = vmul.f32 %v10397_v51, %v17523_v27  ;;  %v17527_v51 = vld [vmem:[#allocation244_spill] sm:$0xff] }
 0x925   : >> { %10408 = vrcp.f32 %v5967_v62  ;;  %9024 = vmatprep.subr.bf16.mxu0 %v15602_v52  ;;  %v6248_v28 = vmul.f32 %v10399_v61, %v17524_v19  ;;  %v15616_v27 = vpack.c.bf16 %v6251_v12, %v6250_v55  ;;  %v17528_v62 = vld [vmem:[#allocation243_spill] sm:$0xff] }
 0x926   : >> { %10410 = vrcp.f32 %v5965_v50  ;;  %9025 = vmatpush3.bf16.msra.mxu0 %v15602_v52 }
 0x927   : >> { %9026 = vmatprep.subr.bf16.mxu0 %v15604_v15  ;;  %v15613_v29 = vpack.c.bf16 %v6249_v0, %v6248_v28  ;;  %v5945_v23 = vpop.xlane.xlu0 %5944  ;;  %v10401_v40 = vpop.eup %10400  ;;  %v17529_v0 = vld [vmem:[#allocation241_spill] sm:$0xff]  ;;  %v17530_v28 = vld [vmem:[#allocation242_spill] sm:$0xff] }
 0x928   : >> { %v5947_v42 = vpop.xlane.xlu1 %5946  ;;  %v10403_v48 = vpop.eup %10402  ;;  %v6255_v41 = vmul.f32 %v10401_v40, %v17530_v28  ;;  %v17532_v40 = vld [vmem:[#allocation247_spill] sm:$0xff] }
 0x929   : >> { %9056 = vmatprep.subr.bf16.mxu1 %v15613_v29  ;;  %10412 = vrcp.f32 %v5947_v42  ;;  %v6254_v19 = vmul.f32 %v10403_v48, %v17529_v0 }
 0x92a   : >> { %9027 = vmatpush3.bf16.msra.mxu0 %v15604_v15  ;;  %9057 = vmatpush3.bf16.msra.mxu1 %v15613_v29  ;;  %10414 = vrcp.f32 %v5945_v23 }
 0x92b   : >> { %v10405_v2 = vpop.eup %10404  ;;  %9058 = vmatprep.subr.bf16.mxu1 %v15616_v27  ;;  %v5941_v4 = vpop.xlane.xlu0 %5940 }
 0x92c   : >> { %v10407_v30 = vpop.eup %10406  ;;  %v5943_v6 = vpop.xlane.xlu1 %5942  ;;  %v6253_v61 = vmul.f32 %v10405_v2, %v17527_v51  ;;  %v17531_v2 = vld [vmem:[#allocation248_spill] sm:$0xff] }
 0x92d   : >> { %10416 = vrcp.f32 %v5943_v6  ;;  %9029 = vmatmul.mubr.bf16.vlgmr.msra.gmra.mrb[80].mxu0 %v15485_v13  ;;  %v6252_v50 = vmul.f32 %v10407_v30, %v17528_v62  ;;  %v15633_v13 = vpack.c.bf16 %v6255_v41, %v6254_v19 }
 0x92e   : >> { %10418 = vrcp.f32 %v5941_v4  ;;  %9032 = vmatprep.mubr.bf16.mxu0 %v15537_v8  ;;  %9059 = vmatpush3.bf16.msra.mxu1 %v15616_v27 }
 0x92f   : >> { %v10409_v55 = vpop.eup %10408  ;;  %v15628_v7 = vpack.c.bf16 %v6253_v61, %v6252_v50  ;;  %v5953_v23 = vpop.xlane.xlu0 %5952 }
 0x930   : >> { %v10411_v12 = vpop.eup %10410  ;;  %v5955_v42 = vpop.xlane.xlu1 %5954  ;;  %v6269_v6 = vmul.f32 %v10409_v55, %v17531_v2 }
 0x931   : >> { %9061 = vmatmul.mubr.bf16.vlgmr.msra.gmra.mrb[80].mxu1 %v15515_v26  ;;  %9076 = vmatprep.subr.bf16.mxu0 %v15628_v7  ;;  %v6268_v48 = vmul.f32 %v10411_v12, %v17532_v40  ;;  %10420 = vrcp.f32 %v5955_v42  ;;  %v17534_v40 = vld [vmem:[#allocation196_spill] sm:$0xff] }
 0x932   : >> { %9064 = vmatprep.mubr.bf16.mxu1 %v15556_v10  ;;  %9077 = vmatpush3.bf16.msra.mxu0 %v15628_v7  ;;  %10422 = vrcp.f32 %v5953_v23  ;;  %v17533_v23 = vld [vmem:[#allocation251_spill] sm:$0xff] }
 0x933   : >> { %9078 = vmatprep.subr.bf16.mxu0 %v15633_v13  ;;  %v15639_v8 = vpack.c.bf16 %v6269_v6, %v6268_v48  ;;  %v5949_v4 = vpop.xlane.xlu0 %5948  ;;  %v10413_v51 = vpop.eup %10412  ;;  %v17535_v48 = vld [vmem:[#allocation250_spill] sm:$0xff] }
 0x934   : >> { %v5951_v30 = vpop.xlane.xlu1 %5950  ;;  %v10415_v26 = vpop.eup %10414  ;;  %v6259_v28 = vmul.f32 %v10413_v51, %v15154_v37 }
 0x935   : >> { %10424 = vrcp.f32 %v5951_v30  ;;  %9033 = vmatmul.mubr.bf16.gmra.mrb[84].mxu0 %v15540_v38  ;;  %9108 = vmatprep.subr.bf16.mxu1 %v15639_v8  ;;  %v6258_v19 = vmul.f32 %v10415_v26, %v15158_v5 }
 0x936   : >> { %10426 = vrcp.f32 %v5949_v4  ;;  %9036 = vmatprep.mubr.bf16.mxu0 %v15578_v17  ;;  %9079 = vmatpush3.bf16.msra.mxu0 %v15633_v13 }
 0x937   : >> { %v10417_v10 = vpop.eup %10416  ;;  %9109 = vmatpush3.bf16.msra.mxu1 %v15639_v8  ;;  %v5961_v50 = vpop.xlane.xlu0 %5960 }
 0x938   : >> { %v10419_v61 = vpop.eup %10418  ;;  %v5963_v62 = vpop.xlane.xlu1 %5962  ;;  %v6257_v0 = vmul.f32 %v10417_v10, %v15164_v16  ;;  %v15656_v16 = vpack.c.bf16 %v6259_v28, %v6258_v19  ;;  %v17537_v19 = vld [vmem:[#allocation254_spill] sm:$0xff] }
 0x939   : >> { %9065 = vmatmul.mubr.bf16.gmra.mrb[84].mxu1 %v15561_v58  ;;  %v6256_v38 = vmul.f32 %v10419_v61, %v15166_v3  ;;  %10428 = vrcp.f32 %v5963_v62 }
 0x93a   : >> { %9068 = vmatprep.mubr.bf16.mxu1 %v15589_v22  ;;  %10430 = vrcp.f32 %v5961_v50  ;;  %v17536_v50 = vld [vmem:[#allocation255_spill] sm:$0xff] }
 0x93b   : >> { %v15652_v17 = vpack.c.bf16 %v6257_v0, %v6256_v38  ;;  %v5957_v55 = vpop.xlane.xlu0 %5956  ;;  %v10421_v12 = vpop.eup %10420 }
 0x93c   : >> { %v5959_v41 = vpop.xlane.xlu1 %5958  ;;  %v10423_v3 = vpop.eup %10422 }
 0x93d   : >> { %10432 = vrcp.f32 %v5959_v41  ;;  %9037 = vmatmul.mubr.bf16.gmra.mrb[88].mxu0 %v15580_v45  ;;  %9080 = vmatprep.subr.bf16.mxu0 %v15652_v17  ;;  %v6263_v45 = vmul.f32 %v10421_v12, %v17533_v23  ;;  %v6262_v30 = vmul.f32 %v10423_v3, %v17535_v48  ;;  %v17538_v41 = vld [vmem:[#allocation238_spill] sm:$0xff] }
 0x93e   : >> { %10434 = vrcp.f32 %v5957_v55  ;;  %9040 = vmatprep.mubr.bf16.mxu0 %v15602_v52  ;;  %9081 = vmatpush3.bf16.msra.mxu0 %v15652_v17  ;;  %v17539_v12 = vld [vmem:[#allocation194_spill] sm:$0xff] }
 0x93f   : >> { %v10425_v37 = vpop.eup %10424  ;;  %9082 = vmatprep.subr.bf16.mxu0 %v15656_v16  ;;  %v5413_v22 = vpop.xlane.xlu0 %5412 }
 0x940   : >> { %v10427_v5 = vpop.eup %10426  ;;  %v5415_v58 = vpop.xlane.xlu1 %5414  ;;  %v6261_v42 = vmul.f32 %v10425_v37, %v15180_v35  ;;  %v5544_v6 = vsub.f32 %v15212_v21, %v5413_v22 }
 0x941   : >> { %v5545_v2 = vsub.f32 %v15216_v34, %v5415_v58  ;;  %9069 = vmatmul.mubr.bf16.gmra.mrb[88].mxu1 %v15592_v20  ;;  %v6260_v52 = vmul.f32 %v10427_v5, %v17534_v40  ;;  %v15674_v34 = vpack.c.bf16 %v6263_v45, %v6262_v30  ;;  %v17540_v40 = vld [vmem:[#allocation204_spill] sm:$0xff] }
 0x942   : >> { %9072 = vmatprep.mubr.bf16.mxu1 %v15613_v29  ;;  %9083 = vmatpush3.bf16.msra.mxu0 %v15656_v16  ;;  %v5796_v51 = vmul.f32 1.442695, %v5544_v6 }
 0x943   : >> { %v5798_v4 = vmul.f32 1.442695, %v5545_v2  ;;  %v15670_v26 = vpack.c.bf16 %v6261_v42, %v6260_v52  ;;  %v10429_v10 = vpop.eup %10428  ;;  %v5969_v21 = vpop.xlane.xlu0 %5968 }
 0x944   : >> { %v5971_v35 = vpop.xlane.xlu1 %5970  ;;  %v10431_v20 = vpop.eup %10430 }
 0x945   : >> { %10436 = vpow2.f32 %v5798_v4  ;;  %9041 = vmatmul.mubr.bf16.gmra.mrb[92].mxu0 %v15604_v15  ;;  %9084 = vmatprep.subr.bf16.mxu0 %v15670_v26  ;;  %v6266_v55 = vmul.f32 %v10431_v20, %v17538_v41  ;;  %v17541_v20 = vld [vmem:[#allocation237_spill] sm:$0xff] }
 0x946   : >> { %10438 = vpow2.f32 %v5796_v51  ;;  %9085 = vmatpush3.bf16.msra.mxu0 %v15670_v26  ;;  %9092 = vmatprep.mubr.bf16.mxu0 %v15628_v7  ;;  %v6267_v7 = vmul.f32 %v10429_v10, %v17539_v12 }
 0x947   : >> { %v10433_v29 = vpop.eup %10432  ;;  %10440 = vrcp.f32 %v5971_v35  ;;  %9086 = vmatprep.subr.bf16.mxu0 %v15674_v34 }
 0x948   : >> { %v10435_v61 = vpop.eup %10434  ;;  %10442 = vrcp.f32 %v5969_v21  ;;  %v5419_v62 = vpop.xlane.xlu1 %5418  ;;  %v6265_v15 = vmul.f32 %v10433_v29, %v17536_v50  ;;  %v15691_v22 = vpack.c.bf16 %v6267_v7, %v6266_v55 }
 0x949   : >> { %v5547_v0 = vsub.f32 %v15254_v32, %v5419_v62  ;;  %9073 = vmatmul.mubr.bf16.gmra.mrb[92].mxu1 %v15616_v27  ;;  %v5417_v38 = vpop.xlane.xlu0 %5416  ;;  %v6264_v28 = vmul.f32 %v10435_v61, %v17537_v19  ;;  %v17542_v61 = vld [vmem:[#allocation246_spill] sm:$0xff] }
 0x94a   : >> { %v5546_v3 = vsub.f32 %v15267_v11, %v5417_v38  ;;  %9087 = vmatpush3.bf16.msra.mxu0 %v15674_v34  ;;  %9124 = vmatprep.mubr.bf16.mxu1 %v15639_v8 }
 0x94b   : >> { %v5802_v37 = vmul.f32 1.442695, %v5547_v0  ;;  %v15688_v5 = vpack.c.bf16 %v6265_v15, %v6264_v28  ;;  %v17543_v28 = vld [vmem:[#allocation202_spill] sm:$0xff] }
 0x94c   : >> { %v5800_v58 = vmul.f32 1.442695, %v5546_v3  ;;  %v5975_v32 = vpop.xlane.xlu1 %5974 }
 0x94d   : >> { %10444 = vpow2.f32 %v5802_v37  ;;  %9088 = vmatprep.subr.bf16.mxu0 %v15688_v5  ;;  %v5973_v27 = vpop.xlane.xlu0 %5972 }
 0x94e   : >> { %10446 = vpow2.f32 %v5800_v58  ;;  %9089 = vmatpush3.bf16.msra.mxu0 %v15688_v5 }
 0x94f   : >> { %v15694_v42 = vpop.eup %10436  ;;  %10448 = vrcp.f32 %v5975_v32  ;;  %9090 = vmatprep.subr.bf16.mxu0 %v15691_v22 }
 0x950   : >> { %v15697_v11 = vpop.eup %10438  ;;  %10450 = vrcp.f32 %v5973_v27  ;;  %6054 = vadd.xlane.f32.xlu1 %v15694_v42  ;;  %v5979_v8 = vpop.xlane.xlu1 %5978 }
 0x951   : >> { %v10441_v23 = vpop.eup %10440  ;;  %10452 = vrcp.f32 %v5979_v8  ;;  %6052 = vadd.xlane.f32.xlu0 %v15697_v11  ;;  %v5977_v45 = vpop.xlane.xlu0 %5976 }
 0x952   : >> { %v10443_v2 = vpop.eup %10442  ;;  %10454 = vrcp.f32 %v5977_v45  ;;  %9091 = vmatpush3.bf16.msra.mxu0 %v15691_v22  ;;  %v6271_v6 = vmul.f32 %v10441_v23, %v15192_v47  ;;  %v17544_v23 = vld [vmem:[#allocation245_spill] sm:$0xff] }
 0x953   : >> { %v6270_v52 = vmul.f32 %v10443_v2, %v17540_v40 }
 0x954   : >> { %v5983_v48 = vpop.xlane.xlu1 %5982 }
 0x955   : >> { %10456 = vrcp.f32 %v5983_v48  ;;  %9093 = vmatmul.mubr.bf16.vlgmr.msra.gmra.mrb[96].mxu0 %v15633_v13  ;;  %v15705_v30 = vpack.c.bf16 %v6271_v6, %v6270_v52  ;;  %v5981_v4 = vpop.xlane.xlu0 %5980  ;;  %v17545_v52 = vld [vmem:[#allocation249_spill] sm:$0xff] }
 0x956   : >> { %10458 = vrcp.f32 %v5981_v4  ;;  %9096 = vmatprep.mubr.bf16.mxu0 %v15652_v17  ;;  %v17546_v48 = vld [vmem:[#allocation253_spill] sm:$0xff] }
 0x957   : >> { %v15708_v51 = vpop.eup %10444  ;;  %9110 = vmatprep.subr.bf16.mxu1 %v15705_v30 }
 0x958   : >> { %v15711_v35 = vpop.eup %10446  ;;  %9111 = vmatpush3.bf16.msra.mxu1 %v15705_v30  ;;  %6058 = vadd.xlane.f32.xlu1 %v15708_v51  ;;  %v5987_v47 = vpop.xlane.xlu1 %5986 }
 0x959   : >> { %v10449_v10 = vpop.eup %10448  ;;  %10460 = vrcp.f32 %v5987_v47  ;;  %6056 = vadd.xlane.f32.xlu0 %v15711_v35  ;;  %v5985_v13 = vpop.xlane.xlu0 %5984 }
 0x95a   : >> { %v10451_v21 = vpop.eup %10450  ;;  %10462 = vrcp.f32 %v5985_v13  ;;  %v6273_v17 = vmul.f32 %v10449_v10, %v17541_v20 }
 0x95b   : >> { %v10453_v29 = vpop.eup %10452  ;;  %v6272_v62 = vmul.f32 %v10451_v21, %v17542_v61 }
 0x95c   : >> { %v10455_v50 = vpop.eup %10454  ;;  %v5991_v15 = vpop.xlane.xlu1 %5990  ;;  %v6275_v0 = vmul.f32 %v10453_v29, %v15238_v31 }
 0x95d   : >> { %10464 = vrcp.f32 %v5991_v15  ;;  %9097 = vmatmul.mubr.bf16.gmra.mrb[100].mxu0 %v15656_v16  ;;  %v15720_v38 = vpack.c.bf16 %v6273_v17, %v6272_v62  ;;  %v5989_v19 = vpop.xlane.xlu0 %5988  ;;  %v6274_v41 = vmul.f32 %v10455_v50, %v17543_v28  ;;  %v17547_v17 = vld [vmem:[#allocation189_spill] sm:$0xff] }
 0x95e   : >> { %10466 = vrcp.f32 %v5989_v19  ;;  %9100 = vmatprep.mubr.bf16.mxu0 %v15670_v26 }
 0x95f   : >> { %v10457_v55 = vpop.eup %10456  ;;  %9112 = vmatprep.subr.bf16.mxu1 %v15720_v38  ;;  %v15725_v12 = vpack.c.bf16 %v6275_v0, %v6274_v41 }
 0x960   : >> { %v10459_v7 = vpop.eup %10458  ;;  %9113 = vmatpush3.bf16.msra.mxu1 %v15720_v38  ;;  %v5995_v31 = vpop.xlane.xlu1 %5994  ;;  %v6277_v3 = vmul.f32 %v10457_v55, %v15295_v1 }
 0x961   : >> { %10468 = vrcp.f32 %v5995_v31  ;;  %9114 = vmatprep.subr.bf16.mxu1 %v15725_v12  ;;  %v5993_v16 = vpop.xlane.xlu0 %5992  ;;  %v6276_v37 = vmul.f32 %v10459_v7, %v15301_v54  ;;  %v17548_v7 = vld [vmem:[#allocation252_spill] sm:$0xff] }
 0x962   : >> { %10470 = vrcp.f32 %v5993_v16 }
 0x963   : >> { %v10461_v58 = vpop.eup %10460  ;;  %v15731_v26 = vpack.c.bf16 %v6277_v3, %v6276_v37 }
 0x964   : >> { %v10463_v32 = vpop.eup %10462  ;;  %9115 = vmatpush3.bf16.msra.mxu1 %v15725_v12  ;;  %v5999_v27 = vpop.xlane.xlu1 %5998  ;;  %v6279_v8 = vmul.f32 %v10461_v58, %v15263_v44 }
 0x965   : >> { %10472 = vrcp.f32 %v5999_v27  ;;  %9101 = vmatmul.mubr.bf16.gmra.mrb[104].mxu0 %v15674_v34  ;;  %9116 = vmatprep.subr.bf16.mxu1 %v15731_v26  ;;  %v5997_v1 = vpop.xlane.xlu0 %5996  ;;  %v6278_v45 = vmul.f32 %v10463_v32, %v17544_v23  ;;  %v17550_v27 = vld [vmem:[#allocation187_spill] sm:$0xff]  ;;  %v17551_v23 = vld [vmem:[#allocation197_spill] sm:$0xff] }
 0x966   : >> { %10474 = vrcp.f32 %v5997_v1  ;;  %9104 = vmatprep.mubr.bf16.mxu0 %v15688_v5 }
 0x967   : >> { %v10465_v54 = vpop.eup %10464  ;;  %v15739_v2 = vpack.c.bf16 %v6279_v8, %v6278_v45 }
 0x968   : >> { %v10467_v6 = vpop.eup %10466  ;;  %9117 = vmatpush3.bf16.msra.mxu1 %v15731_v26  ;;  %v6003_v40 = vpop.xlane.xlu1 %6002  ;;  %v6281_v44 = vmul.f32 %v10465_v54, %v17545_v52 }
 0x969   : >> { %10476 = vrcp.f32 %v6003_v40  ;;  %9118 = vmatprep.subr.bf16.mxu1 %v15739_v2  ;;  %v6001_v34 = vpop.xlane.xlu0 %6000  ;;  %v6280_v4 = vmul.f32 %v10467_v6, %v17546_v48 }
 0x96a   : >> { %10478 = vrcp.f32 %v6001_v34 }
 0x96b   : >> { %v10469_v47 = vpop.eup %10468  ;;  %v15745_v10 = vpack.c.bf16 %v6281_v44, %v6280_v4 }
 0x96c   : >> { %v10471_v5 = vpop.eup %10470  ;;  %9119 = vmatpush3.bf16.msra.mxu1 %v15739_v2  ;;  %v6007_v13 = vpop.xlane.xlu1 %6006  ;;  %v6283_v21 = vmul.f32 %v10469_v47, %v15306_v39 }
 0x96d   : >> { %10480 = vrcp.f32 %v6007_v13  ;;  %9105 = vmatmul.mubr.bf16.gmra.mrb[108].mxu0 %v15691_v22  ;;  %9120 = vmatprep.subr.bf16.mxu1 %v15745_v10  ;;  %v6005_v20 = vpop.xlane.xlu0 %6004  ;;  %v6282_v29 = vmul.f32 %v10471_v5, %v17547_v17 }
 0x96e   : >> { %10482 = vrcp.f32 %v6005_v20 }
 0x96f   : >> { %v10473_v61 = vpop.eup %10472  ;;  %v15752_v62 = vpack.c.bf16 %v6283_v21, %v6282_v29 }
 0x970   : >> { %v10475_v50 = vpop.eup %10474  ;;  %9121 = vmatpush3.bf16.msra.mxu1 %v15745_v10  ;;  %v6011_v15 = vpop.xlane.xlu1 %6010  ;;  %v6285_v0 = vmul.f32 %v10473_v61, %v15361_v9  ;;  %v17549_v9 = vld [vmem:[#allocation155_spill] sm:$0xff] }
 0x971   : >> { %10484 = vrcp.f32 %v6011_v15  ;;  %9122 = vmatprep.subr.bf16.mxu1 %v15752_v62  ;;  %v6009_v39 = vpop.xlane.xlu0 %6008  ;;  %v6284_v22 = vmul.f32 %v10475_v50, %v15366_v56 }
 0x972   : >> { %10486 = vrcp.f32 %v6009_v39 }
 0x973   : >> { %v10477_v19 = vpop.eup %10476  ;;  %v6364_v28 = vpack.c.bf16 %v6285_v0, %v6284_v22 }
 0x974   : >> { %v10479_v41 = vpop.eup %10478  ;;  %9123 = vmatpush3.bf16.msra.mxu1 %v15752_v62  ;;  %v6015_v55 = vpop.xlane.xlu1 %6014  ;;  %v6287_v31 = vmul.f32 %v10477_v19, %v17548_v7 }
 0x975   : >> { %10488 = vrcp.f32 %v6015_v55  ;;  %9140 = vmatprep.subr.bf16.mxu0 %v6364_v28  ;;  %9156 = vmatprep.mubr.bf16.mxu0 %v6364_v28  ;;  %v6013_v3 = vpop.xlane.xlu0 %6012  ;;  %v6286_v16 = vmul.f32 %v10479_v41, %v17549_v9  ;;  %v15807_v41 = vld [vmem:[%s13645_s29] sm:$0xff]  }
 0x976   : >> { %10490 = vrcp.f32 %v6013_v3  ;;  %9141 = vmatpush3.bf16.msra.mxu0 %v6364_v28 }
 0x977   : >> { %v10481_v37 = vpop.eup %10480  ;;  %9125 = vmatmul.mubr.bf16.vlgmr.msra.gmra.mrb[96].mxu1 %v15705_v30  ;;  %v15762_v56 = vpack.c.bf16 %v6287_v31, %v6286_v16 }
 0x978   : >> { %v10483_v58 = vpop.eup %10482  ;;  %9128 = vmatprep.mubr.bf16.mxu1 %v15720_v38  ;;  %v6019_v32 = vpop.xlane.xlu1 %6018  ;;  %v6289_v8 = vmul.f32 %v10481_v37, %v17550_v27 }
 0x979   : >> { %10492 = vrcp.f32 %v6019_v32  ;;  %9142 = vmatprep.subr.bf16.mxu0 %v15762_v56  ;;  %v6017_v1 = vpop.xlane.xlu0 %6016  ;;  %v6288_v45 = vmul.f32 %v10483_v58, %v17551_v23  ;;  %v15816_v58 = vld [vmem:[%s13645_s29 + $0x8] sm:$0xff]  }
 0x97a   : >> { %10494 = vrcp.f32 %v6017_v1  ;;  %9143 = vmatpush3.bf16.msra.mxu0 %v15762_v56 }
 0x97b   : >> { %v10485_v54 = vpop.eup %10484  ;;  %v15769_v6 = vpack.c.bf16 %v6289_v8, %v6288_v45  ;;  %v17552_v8 = vld [vmem:[#allocation257_spill] sm:$0xff]  ;;  %v17553_v45 = vld [vmem:[#allocation162_spill] sm:$0xff] }
 0x97c   : >> { %v10487_v30 = vpop.eup %10486  ;;  %v6023_v40 = vpop.xlane.xlu1 %6022  ;;  %v6291_v52 = vmul.f32 %v10485_v54, %v15374_v46 }
 0x97d   : >> { %10496 = vrcp.f32 %v6023_v40  ;;  %9144 = vmatprep.subr.bf16.mxu0 %v15769_v6  ;;  %v6021_v38 = vpop.xlane.xlu0 %6020  ;;  %v6290_v44 = vmul.f32 %v10487_v30, %v15379_v59 }
 0x97e   : >> { %10498 = vrcp.f32 %v6021_v38  ;;  %9145 = vmatpush3.bf16.msra.mxu0 %v15769_v6 }
 0x97f   : >> { %v10489_v34 = vpop.eup %10488  ;;  %9129 = vmatmul.mubr.bf16.gmra.mrb[100].mxu1 %v15725_v12  ;;  %v15776_v48 = vpack.c.bf16 %v6291_v52, %v6290_v44  ;;  %v17554_v52 = vld [vmem:[#allocation191_spill] sm:$0xff] }
 0x980   : >> { %v10491_v4 = vpop.eup %10490  ;;  %9132 = vmatprep.mubr.bf16.mxu1 %v15731_v26  ;;  %v6027_v47 = vpop.xlane.xlu1 %6026  ;;  %v6293_v46 = vmul.f32 %v10489_v34, %v15423_v33  ;;  %v15838_v44 = vld [vmem:[%s13645_s29 + $0x18] sm:$0xff]  }
 0x981   : >> { %10500 = vrcp.f32 %v6027_v47  ;;  %9146 = vmatprep.subr.bf16.mxu0 %v15776_v48  ;;  %v6025_v5 = vpop.xlane.xlu0 %6024  ;;  %v6292_v59 = vmul.f32 %v10491_v4, %v15428_v18  ;;  %v17555_v34 = vld [vmem:[#allocation195_spill] sm:$0xff] }
 0x982   : >> { %10502 = vrcp.f32 %v6025_v5  ;;  %9147 = vmatpush3.bf16.msra.mxu0 %v15776_v48 }
 0x983   : >> { %v10493_v13 = vpop.eup %10492  ;;  %v15783_v21 = vpack.c.bf16 %v6293_v46, %v6292_v59  ;;  %v17556_v59 = vld [vmem:[#allocation160_spill] sm:$0xff] }
 0x984   : >> { %v10495_v12 = vpop.eup %10494  ;;  %v6031_v20 = vpop.xlane.xlu1 %6030  ;;  %v6295_v17 = vmul.f32 %v10493_v13, %v15417_v25 }
 0x985   : >> { %10504 = vrcp.f32 %v6031_v20  ;;  %9148 = vmatprep.subr.bf16.mxu0 %v15783_v21  ;;  %v6029_v33 = vpop.xlane.xlu0 %6028  ;;  %v6294_v26 = vmul.f32 %v10495_v12, %v15436_v60  ;;  %v17557_v12 = vld [vmem:[#allocation159_spill] sm:$0xff] }
 0x986   : >> { %10506 = vrcp.f32 %v6029_v33  ;;  %9149 = vmatpush3.bf16.msra.mxu0 %v15783_v21  ;;  %v15861_v33 = vld [vmem:[%s13645_s29 + $0x28] sm:$0xff]  }
 0x987   : >> { %v10497_v18 = vpop.eup %10496  ;;  %9133 = vmatmul.mubr.bf16.gmra.mrb[104].mxu1 %v15739_v2  ;;  %v15790_v29 = vpack.c.bf16 %v6295_v17, %v6294_v26 }
 0x988   : >> { %v10499_v61 = vpop.eup %10498  ;;  %9136 = vmatprep.mubr.bf16.mxu1 %v15745_v10  ;;  %v6035_v50 = vpop.xlane.xlu1 %6034  ;;  %v6297_v25 = vmul.f32 %v10497_v18, %v15452_v53  ;;  %v17558_v18 = vld [vmem:[#allocation157_spill] sm:$0xff] }
 0x989   : >> { %10508 = vrcp.f32 %v6035_v50  ;;  %9150 = vmatprep.subr.bf16.mxu0 %v15790_v29  ;;  %v6033_v15 = vpop.xlane.xlu0 %6032  ;;  %v6296_v60 = vmul.f32 %v10499_v61, %v15456_v36  ;;  %v17559_v50 = vld [vmem:[#allocation256_spill] sm:$0xff] }
 0x98a   : >> { %10510 = vrcp.f32 %v6033_v15  ;;  %9151 = vmatpush3.bf16.msra.mxu0 %v15790_v29 }
 0x98b   : >> { %v10501_v0 = vpop.eup %10500  ;;  %v15797_v2 = vpack.c.bf16 %v6297_v25, %v6296_v60  ;;  %v15874_v60 = vld [vmem:[%s13645_s29 + $0x30] sm:$0xff]  }
 0x98c   : >> { %v10503_v39 = vpop.eup %10502  ;;  %v6039_v22 = vpop.xlane.xlu1 %6038  ;;  %v6299_v10 = vmul.f32 %v10501_v0, %v15441_v43 }
 0x98d   : >> { %10512 = vrcp.f32 %v6039_v22  ;;  %9152 = vmatprep.subr.bf16.mxu0 %v15797_v2  ;;  %v6037_v53 = vpop.xlane.xlu0 %6036  ;;  %v6298_v19 = vmul.f32 %v10503_v39, %v15448_v63 }
 0x98e   : >> { %10514 = vrcp.f32 %v6037_v53  ;;  %9153 = vmatpush3.bf16.msra.mxu0 %v15797_v2 }
 0x98f   : >> { %v10505_v36 = vpop.eup %10504  ;;  %9137 = vmatmul.mubr.bf16.gmra.mrb[108].mxu1 %v15752_v62  ;;  %v15804_v28 = vpack.c.bf16 %v6299_v10, %v6298_v19 }
 0x990   : >> { %v10507_v55 = vpop.eup %10506  ;;  %v6043_v7 = vpop.xlane.xlu1 %6042  ;;  %v6301_v43 = vmul.f32 %v10505_v36, %v15488_v57 }
 0x991   : >> { %10516 = vrcp.f32 %v6043_v7  ;;  %9154 = vmatprep.subr.bf16.mxu0 %v15804_v28  ;;  %v6041_v31 = vpop.xlane.xlu0 %6040  ;;  %v6300_v63 = vmul.f32 %v10507_v55, %v15494_v49 }
 0x992   : >> { %10518 = vrcp.f32 %v6041_v31  ;;  %9155 = vmatpush3.bf16.msra.mxu0 %v15804_v28 }
 0x993   : >> { %v10509_v3 = vpop.eup %10508  ;;  %v6372_v62 = vpack.c.bf16 %v6301_v43, %v6300_v63  ;;  %9204 = vmatprep.subr.bf16.mxu0 %v15807_v41 }
 0x994   : >> { %v10511_v9 = vpop.eup %10510  ;;  %v6047_v16 = vpop.xlane.xlu1 %6046  ;;  %v6303_v37 = vmul.f32 %v10509_v3, %v15479_v24 }
 0x995   : >> { %10520 = vrcp.f32 %v6047_v16  ;;  %9157 = vmatmul.mubr.bf16.vlgmr.msra.gmra.mrb[112].mxu0 %v15762_v56  ;;  %9172 = vmatprep.subr.bf16.mxu1 %v6372_v62  ;;  %v6045_v57 = vpop.xlane.xlu0 %6044  ;;  %v6302_v49 = vmul.f32 %v10511_v9, %v15500_v14  ;;  %v15827_v56 = vld [vmem:[%s13645_s29 + $0x10] sm:$0xff]  }
 0x996   : >> { %9188 = vmatprep.mubr.bf16.mxu1 %v6372_v62  ;;  %10522 = vrcp.f32 %v6045_v57  ;;  %9160 = vmatprep.mubr.bf16.mxu0 %v15769_v6 }
 0x997   : >> { %v10513_v32 = vpop.eup %10512  ;;  %9173 = vmatpush3.bf16.msra.mxu1 %v6372_v62  ;;  %v15821_v27 = vpack.c.bf16 %v6303_v37, %v6302_v49  ;;  %9205 = vmatpush3.bf16.msra.mxu0 %v15807_v41 }
 0x998   : >> { %v10515_v24 = vpop.eup %10514  ;;  %v6305_v1 = vmul.f32 %v10513_v32, %v17552_v8  ;;  %9206 = vmatprep.subr.bf16.mxu0 %v15816_v58 }
 0x999   : >> { %v6051_v23 = vpop.xlane.xlu1 %6050  ;;  %9174 = vmatprep.subr.bf16.mxu1 %v15821_v27  ;;  %v6049_v14 = vpop.xlane.xlu0 %6048  ;;  %v6304_v54 = vmul.f32 %v10515_v24, %v17553_v45 }
 0x99a   : >> { %10524 = vrcp.f32 %v6051_v23 }
 0x99b   : >> { %v10517_v6 = vpop.eup %10516  ;;  %10526 = vrcp.f32 %v6049_v14  ;;  %9175 = vmatpush3.bf16.msra.mxu1 %v15821_v27  ;;  %v15832_v30 = vpack.c.bf16 %v6305_v1, %v6304_v54  ;;  %9207 = vmatpush3.bf16.msra.mxu0 %v15816_v58 }
 0x99c   : >> { %v10519_v40 = vpop.eup %10518  ;;  %v6307_v38 = vmul.f32 %v10517_v6, %v17554_v52  ;;  %9208 = vmatprep.subr.bf16.mxu0 %v15827_v56 }
 0x99d   : >> { %9161 = vmatmul.mubr.bf16.gmra.mrb[116].mxu0 %v15776_v48  ;;  %9176 = vmatprep.subr.bf16.mxu1 %v15832_v30  ;;  %v6306_v4 = vmul.f32 %v10519_v40, %v17555_v34  ;;  %v15851_v48 = vld [vmem:[%s13645_s29 + $0x20] sm:$0xff]  }
 0x99e   : >> { %9164 = vmatprep.mubr.bf16.mxu0 %v15783_v21 }
 0x99f   : >> { %v10521_v47 = vpop.eup %10520  ;;  %9177 = vmatpush3.bf16.msra.mxu1 %v15832_v30  ;;  %v15845_v46 = vpack.c.bf16 %v6307_v38, %v6306_v4  ;;  %9209 = vmatpush3.bf16.msra.mxu0 %v15827_v56 }
 0x9a0   : >> { %v10523_v5 = vpop.eup %10522  ;;  %v6309_v13 = vmul.f32 %v10521_v47, %v17556_v59  ;;  %9210 = vmatprep.subr.bf16.mxu0 %v15838_v44 }
 0x9a1   : >> { %9178 = vmatprep.subr.bf16.mxu1 %v15845_v46  ;;  %v6308_v20 = vmul.f32 %v10523_v5, %v17557_v12 }
 0x9a3   : >> { %9179 = vmatpush3.bf16.msra.mxu1 %v15845_v46  ;;  %v15856_v21 = vpack.c.bf16 %v6309_v13, %v6308_v20  ;;  %9211 = vmatpush3.bf16.msra.mxu0 %v15838_v44 }
 0x9a4   : >> { %v10525_v17 = vpop.eup %10524  ;;  %9212 = vmatprep.subr.bf16.mxu0 %v15851_v48 }
 0x9a5   : >> { %v10527_v26 = vpop.eup %10526  ;;  %9165 = vmatmul.mubr.bf16.gmra.mrb[120].mxu0 %v15790_v29  ;;  %9180 = vmatprep.subr.bf16.mxu1 %v15856_v21  ;;  %v6311_v61 = vmul.f32 %v10525_v17, %v17558_v18  ;;  %v15881_v29 = vld [vmem:[%s13645_s29 + $0x38] sm:$0xff]  }
 0x9a6   : >> { %9168 = vmatprep.mubr.bf16.mxu0 %v15797_v2  ;;  %v6310_v25 = vmul.f32 %v10527_v26, %v17559_v50 }
 0x9a7   : >> { %9181 = vmatpush3.bf16.msra.mxu1 %v15856_v21  ;;  %9213 = vmatpush3.bf16.msra.mxu0 %v15851_v48 }
 0x9a8   : >> { %v15870_v15 = vpack.c.bf16 %v6311_v61, %v6310_v25  ;;  %9214 = vmatprep.subr.bf16.mxu0 %v15861_v33 }
 0x9aa   : >> { %9182 = vmatprep.subr.bf16.mxu1 %v15870_v15 }
 0x9ab   : >> { %9183 = vmatpush3.bf16.msra.mxu1 %v15870_v15  ;;  %9215 = vmatpush3.bf16.msra.mxu0 %v15861_v33 }
 0x9ac   : >> { %9216 = vmatprep.subr.bf16.mxu0 %v15874_v60 }
 0x9ad   : >> { %9169 = vmatmul.mubr.bf16.gmra.mrb[124].mxu0 %v15804_v28 }
 0x9af   : >> { %9217 = vmatpush3.bf16.msra.mxu0 %v15874_v60 }
 0x9b0   : >> { %9218 = vmatprep.subr.bf16.mxu0 %v15881_v29 }
 0x9b3   : >> { %9219 = vmatpush3.bf16.msra.mxu0 %v15881_v29 }
 0x9c0   : >> { %v8966_v0 = vpop.f32.mrb[64].mxu0 }
 0x9c1   : >> { %v6414_v2 = vpop.f32.mrb[65].mxu0 }
 0x9c2   : >> { %v8967_v39 = vpop.f32.mrb[66].mxu0 }
 0x9c3   : >> { %v7157_v22 = vpack.c.bf16 %v8967_v39, %v8966_v0  ;;  %v6417_v10 = vpop.f32.mrb[67].mxu0 }
 0x9c4   : >> { %v7156_v53 = vpack.c.bf16 %v6417_v10, %v6414_v2  ;;  %v8998_v19 = vpop.f32.mrb[64].mxu1 }
 0x9c5   : >> { %v6511_v36 = vpop.f32.mrb[65].mxu1 }
 0x9c6   : >> { %v8999_v55 = vpop.f32.mrb[66].mxu1  ;;  %9220 = vmatprep.mubr.bf16.mxu0 %v7156_v53 }
 0x9c7   : >> { %v7165_v7 = vpack.c.bf16 %v8999_v55, %v8998_v19  ;;  %v6514_v43 = vpop.f32.mrb[67].mxu1  ;;  %9221 = vmatmul.mubr.bf16.vlgmr.msra.gmra.mrb[128].mxu0 %v7157_v22 }
 0x9c8   : >> { %v7164_v28 = vpack.c.bf16 %v6514_v43, %v6511_v36  ;;  %v8970_v31 = vpop.f32.mrb[68].mxu0 }
 0x9c9   : >> { %v6430_v63 = vpop.f32.mrb[69].mxu0 }
 0x9ca   : >> { %v8971_v3 = vpop.f32.mrb[70].mxu0 }
 0x9cb   : >> { %v7159_v62 = vpack.c.bf16 %v8971_v3, %v8970_v31  ;;  %v6433_v9 = vpop.f32.mrb[71].mxu0 }
 0x9cc   : >> { %v7158_v16 = vpack.c.bf16 %v6433_v9, %v6430_v63  ;;  %v9002_v37 = vpop.f32.mrb[68].mxu1 }
 0x9cd   : >> { %v6527_v57 = vpop.f32.mrb[69].mxu1 }
 0x9ce   : >> { %v9003_v49 = vpop.f32.mrb[70].mxu1  ;;  %9224 = vmatprep.mubr.bf16.mxu0 %v7158_v16 }
 0x9cf   : >> { %v7167_v32 = vpack.c.bf16 %v9003_v49, %v9002_v37  ;;  %v6530_v24 = vpop.f32.mrb[71].mxu1  ;;  %9225 = vmatmul.mubr.bf16.gmra.mrb[132].mxu0 %v7159_v62 }
 0x9d0   : >> { %v7166_v8 = vpack.c.bf16 %v6530_v24, %v6527_v57  ;;  %v8974_v1 = vpop.f32.mrb[72].mxu0 }
 0x9d1   : >> { %v6446_v23 = vpop.f32.mrb[73].mxu0 }
 0x9d2   : >> { %v8975_v14 = vpop.f32.mrb[74].mxu0 }
 0x9d3   : >> { %v7161_v45 = vpack.c.bf16 %v8975_v14, %v8974_v1  ;;  %v6449_v54 = vpop.f32.mrb[75].mxu0 }
 0x9d4   : >> { %v7160_v6 = vpack.c.bf16 %v6449_v54, %v6446_v23  ;;  %v9006_v40 = vpop.f32.mrb[72].mxu1 }
 0x9d5   : >> { %v6543_v52 = vpop.f32.mrb[73].mxu1 }
 0x9d6   : >> { %v9007_v38 = vpop.f32.mrb[74].mxu1  ;;  %9228 = vmatprep.mubr.bf16.mxu0 %v7160_v6 }
 0x9d7   : >> { %v7169_v34 = vpack.c.bf16 %v9007_v38, %v9006_v40  ;;  %v6546_v4 = vpop.f32.mrb[75].mxu1  ;;  %9229 = vmatmul.mubr.bf16.gmra.mrb[136].mxu0 %v7161_v45 }
 0x9d8   : >> { %v7168_v47 = vpack.c.bf16 %v6546_v4, %v6543_v52  ;;  %v8978_v5 = vpop.f32.mrb[76].mxu0 }
 0x9d9   : >> { %v6462_v59 = vpop.f32.mrb[77].mxu0 }
 0x9da   : >> { %v8979_v13 = vpop.f32.mrb[78].mxu0 }
 0x9db   : >> { %v7163_v12 = vpack.c.bf16 %v8979_v13, %v8978_v5  ;;  %v6465_v20 = vpop.f32.mrb[79].mxu0 }
 0x9dc   : >> { %v7162_v17 = vpack.c.bf16 %v6465_v20, %v6462_v59  ;;  %v9010_v26 = vpop.f32.mrb[76].mxu1 }
 0x9dd   : >> { %v6559_v18 = vpop.f32.mrb[77].mxu1  ;;  %v6055_v61 = vpop.xlane.xlu1 %6054 }
 0x9de   : >> { %10528 = vrcp.f32 %v6055_v61  ;;  %v9011_v50 = vpop.f32.mrb[78].mxu1  ;;  %9232 = vmatprep.mubr.bf16.mxu0 %v7162_v17  ;;  %v6053_v25 = vpop.xlane.xlu0 %6052 }
 0x9df   : >> { %v7171_v0 = vpack.c.bf16 %v9011_v50, %v9010_v26  ;;  %10530 = vrcp.f32 %v6053_v25  ;;  %v6562_v2 = vpop.f32.mrb[79].mxu1  ;;  %9233 = vmatmul.mubr.bf16.gmra.mrb[140].mxu0 %v7163_v12 }
 0x9e0   : >> { %v7170_v39 = vpack.c.bf16 %v6562_v2, %v6559_v18  ;;  %9236 = vmatprep.mubr.bf16.mxu0 %v7164_v28 }
 0x9e5   : >> { %v6059_v22 = vpop.xlane.xlu1 %6058 }
 0x9e6   : >> { %10532 = vrcp.f32 %v6059_v22  ;;  %v6057_v10 = vpop.xlane.xlu0 %6056 }
 0x9e7   : >> { %10534 = vrcp.f32 %v6057_v10  ;;  %9237 = vmatmul.mubr.bf16.gmra.mrb[144].mxu0 %v7165_v7 }
 0x9e8   : >> { %v10529_v53 = vpop.eup %10528  ;;  %9240 = vmatprep.mubr.bf16.mxu0 %v7166_v8 }
 0x9e9   : >> { %v10531_v19 = vpop.eup %10530  ;;  %v6313_v36 = vmul.f32 %v10529_v53, %v15694_v42 }
 0x9ea   : >> { %v6312_v55 = vmul.f32 %v10531_v19, %v15697_v11 }
 0x9ec   : >> { %v6378_v43 = vpack.c.bf16 %v6313_v36, %v6312_v55 }
 0x9ee   : >> { %9184 = vmatprep.subr.bf16.mxu1 %v6378_v43 }
 0x9ef   : >> { %9185 = vmatpush3.bf16.msra.mxu1 %v6378_v43  ;;  %9241 = vmatmul.mubr.bf16.gmra.mrb[148].mxu0 %v7167_v32 }
 0x9f0   : >> { %v10533_v31 = vpop.eup %10532  ;;  %9244 = vmatprep.mubr.bf16.mxu0 %v7168_v47 }
 0x9f1   : >> { %v10535_v63 = vpop.eup %10534  ;;  %v6315_v28 = vmul.f32 %v10533_v31, %v15708_v51 }
 0x9f2   : >> { %v6314_v3 = vmul.f32 %v10535_v63, %v15711_v35 }
 0x9f4   : >> { %v6379_v62 = vpack.c.bf16 %v6315_v28, %v6314_v3 }
 0x9f6   : >> { %9186 = vmatprep.subr.bf16.mxu1 %v6379_v62 }
 0x9f7   : >> { %9187 = vmatpush3.bf16.msra.mxu1 %v6379_v62  ;;  %9245 = vmatmul.mubr.bf16.gmra.mrb[152].mxu0 %v7169_v34 }
 0x9f8   : >> { %9248 = vmatprep.mubr.bf16.mxu0 %v7170_v39  ;;  %9364 = vmatprep.subr.bf16.mxu1 %v15807_v41 }
 0x9fa   : >> { %9189 = vmatmul.mubr.bf16.vlgmr.msra.gmra.mrb[112].mxu1 %v15821_v27 }
 0x9fb   : >> { %9192 = vmatprep.mubr.bf16.mxu1 %v15832_v30  ;;  %9372 = vmatpush3.bf16.msra.mxu1 %v15807_v41 }
 0x9fc   : >> { %9365 = vmatprep.subr.bf16.mxu1 %v15816_v58 }
 0x9ff   : >> { %9249 = vmatmul.mubr.bf16.gmra.mrb[156].mxu0 %v7171_v0  ;;  %9373 = vmatpush3.bf16.msra.mxu1 %v15816_v58 }
 0xa00   : >> { %v9030_v42 = vpop.f32.mrb[80].mxu0  ;;  %9366 = vmatprep.subr.bf16.mxu1 %v15827_v56 }
 0xa01   : >> { %v6608_v11 = vpop.f32.mrb[81].mxu0 }
 0xa02   : >> { %v9031_v51 = vpop.f32.mrb[82].mxu0  ;;  %9193 = vmatmul.mubr.bf16.gmra.mrb[116].mxu1 %v15845_v46 }
 0xa03   : >> { %v7173_v35 = vpack.c.bf16 %v9031_v51, %v9030_v42  ;;  %v6611_v7 = vpop.f32.mrb[83].mxu0  ;;  %9196 = vmatprep.mubr.bf16.mxu1 %v15856_v21  ;;  %9374 = vmatpush3.bf16.msra.mxu1 %v15827_v56 }
 0xa04   : >> { %v7172_v27 = vpack.c.bf16 %v6611_v7, %v6608_v11  ;;  %v15901_v41 = vpop.f32.mrb[80].mxu1  ;;  %9367 = vmatprep.subr.bf16.mxu1 %v15838_v44 }
 0xa05   : >> { %v6705_v30 = vpop.f32.mrb[81].mxu1 }
 0xa06   : >> { %v9063_v58 = vpop.f32.mrb[82].mxu1  ;;  %9252 = vmatprep.mubr.bf16.mxu0 %v7172_v27 }
 0xa07   : >> { %v7181_v9 = vpack.c.bf16 %v9063_v58, %v15901_v41  ;;  %v6708_v16 = vpop.f32.mrb[83].mxu1  ;;  %9253 = vmatmul.mubr.bf16.gmra.mrb[160].mxu0 %v7173_v35  ;;  %9375 = vmatpush3.bf16.msra.mxu1 %v15838_v44 }
 0xa08   : >> { %v7180_v46 = vpack.c.bf16 %v6708_v16, %v6705_v30  ;;  %v9034_v37 = vpop.f32.mrb[84].mxu0  ;;  %9368 = vmatprep.subr.bf16.mxu1 %v15851_v48 }
 0xa09   : >> { %v6624_v21 = vpop.f32.mrb[85].mxu0 }
 0xa0a   : >> { %v9035_v56 = vpop.f32.mrb[86].mxu0  ;;  %9197 = vmatmul.mubr.bf16.gmra.mrb[120].mxu1 %v15870_v15 }
 0xa0b   : >> { %v7175_v57 = vpack.c.bf16 %v9035_v56, %v9034_v37  ;;  %v6627_v49 = vpop.f32.mrb[87].mxu0  ;;  %9200 = vmatprep.mubr.bf16.mxu1 %v6378_v43  ;;  %9376 = vmatpush3.bf16.msra.mxu1 %v15851_v48 }
 0xa0c   : >> { %v7174_v32 = vpack.c.bf16 %v6627_v49, %v6624_v21  ;;  %v9066_v24 = vpop.f32.mrb[84].mxu1  ;;  %9369 = vmatprep.subr.bf16.mxu1 %v15861_v33 }
 0xa0d   : >> { %v6721_v8 = vpop.f32.mrb[85].mxu1 }
 0xa0e   : >> { %v9067_v1 = vpop.f32.mrb[86].mxu1  ;;  %9256 = vmatprep.mubr.bf16.mxu0 %v7174_v32 }
 0xa0f   : >> { %v7183_v44 = vpack.c.bf16 %v9067_v1, %v9066_v24  ;;  %v6724_v23 = vpop.f32.mrb[87].mxu1  ;;  %9257 = vmatmul.mubr.bf16.gmra.mrb[164].mxu0 %v7175_v57  ;;  %9377 = vmatpush3.bf16.msra.mxu1 %v15861_v33 }
 0xa10   : >> { %v7182_v14 = vpack.c.bf16 %v6724_v23, %v6721_v8  ;;  %v9038_v45 = vpop.f32.mrb[88].mxu0  ;;  %9370 = vmatprep.subr.bf16.mxu1 %v15874_v60 }
 0xa11   : >> { %v6640_v15 = vpop.f32.mrb[89].mxu0 }
 0xa12   : >> { %v9039_v54 = vpop.f32.mrb[90].mxu0  ;;  %9201 = vmatmul.mubr.bf16.gmra.mrb[124].mxu1 %v6379_v62 }
 0xa13   : >> { %v7177_v48 = vpack.c.bf16 %v9039_v54, %v9038_v45  ;;  %v6643_v6 = vpop.f32.mrb[91].mxu0  ;;  %9378 = vmatpush3.bf16.msra.mxu1 %v15874_v60 }
 0xa14   : >> { %v7176_v40 = vpack.c.bf16 %v6643_v6, %v6640_v15  ;;  %v9070_v52 = vpop.f32.mrb[88].mxu1  ;;  %9371 = vmatprep.subr.bf16.mxu1 %v15881_v29 }
 0xa15   : >> { %v6737_v38 = vpop.f32.mrb[89].mxu1 }
 0xa16   : >> { %v9071_v34 = vpop.f32.mrb[90].mxu1  ;;  %9260 = vmatprep.mubr.bf16.mxu0 %v7176_v40 }
 0xa17   : >> { %v7185_v4 = vpack.c.bf16 %v9071_v34, %v9070_v52  ;;  %v6740_v33 = vpop.f32.mrb[91].mxu1  ;;  %9261 = vmatmul.mubr.bf16.gmra.mrb[168].mxu0 %v7177_v48  ;;  %9379 = vmatpush3.bf16.msra.mxu1 %v15881_v29 }
 0xa18   : >> { %v7184_v47 = vpack.c.bf16 %v6740_v33, %v6737_v38  ;;  %v9042_v5 = vpop.f32.mrb[92].mxu0 }
 0xa19   : >> { %v6656_v59 = vpop.f32.mrb[93].mxu0 }
 0xa1a   : >> { %v9043_v13 = vpop.f32.mrb[94].mxu0 }
 0xa1b   : >> { %v7179_v12 = vpack.c.bf16 %v9043_v13, %v9042_v5  ;;  %v6659_v20 = vpop.f32.mrb[95].mxu0 }
 0xa1c   : >> { %v7178_v17 = vpack.c.bf16 %v6659_v20, %v6656_v59  ;;  %v9074_v60 = vpop.f32.mrb[92].mxu1 }
 0xa1d   : >> { %v6753_v26 = vpop.f32.mrb[93].mxu1 }
 0xa1e   : >> { %v9075_v18 = vpop.f32.mrb[94].mxu1  ;;  %9264 = vmatprep.mubr.bf16.mxu0 %v7178_v17 }
 0xa1f   : >> { %v7187_v61 = vpack.c.bf16 %v9075_v18, %v9074_v60  ;;  %v6756_v50 = vpop.f32.mrb[95].mxu1  ;;  %9265 = vmatmul.mubr.bf16.gmra.mrb[172].mxu0 %v7179_v12 }
 0xa20   : >> { %v7186_v25 = vpack.c.bf16 %v6756_v50, %v6753_v26  ;;  %9268 = vmatprep.mubr.bf16.mxu0 %v7180_v46 }
 0xa27   : >> { %9269 = vmatmul.mubr.bf16.gmra.mrb[176].mxu0 %v7181_v9 }
 0xa28   : >> { %v9094_v0 = vpop.f32.mrb[96].mxu0  ;;  %9272 = vmatprep.mubr.bf16.mxu0 %v7182_v14 }
 0xa29   : >> { %v6802_v29 = vpop.f32.mrb[97].mxu0 }
 0xa2a   : >> { %v9095_v2 = vpop.f32.mrb[98].mxu0 }
 0xa2b   : >> { %v7189_v39 = vpack.c.bf16 %v9095_v2, %v9094_v0  ;;  %v6805_v22 = vpop.f32.mrb[99].mxu0 }
 0xa2c   : >> { %v7188_v10 = vpack.c.bf16 %v6805_v22, %v6802_v29 }
 0xa2e   : >> { %9284 = vmatprep.mubr.bf16.mxu1 %v7188_v10 }
 0xa2f   : >> { %9273 = vmatmul.mubr.bf16.gmra.mrb[180].mxu0 %v7183_v44  ;;  %9285 = vmatmul.mubr.bf16.vlgmr.msra.gmra.mrb[128].mxu1 %v7189_v39 }
 0xa30   : >> { %v9098_v53 = vpop.f32.mrb[100].mxu0  ;;  %9276 = vmatprep.mubr.bf16.mxu0 %v7184_v47 }
 0xa31   : >> { %v6818_v19 = vpop.f32.mrb[101].mxu0 }
 0xa32   : >> { %v9099_v36 = vpop.f32.mrb[102].mxu0 }
 0xa33   : >> { %v7191_v55 = vpack.c.bf16 %v9099_v36, %v9098_v53  ;;  %v6821_v43 = vpop.f32.mrb[103].mxu0  ;;  %v7834_v36 = vld [vmem:[%s10990_s23 + $0x10] sm:$0xff] }
 0xa34   : >> { %v7190_v31 = vpack.c.bf16 %v6821_v43, %v6818_v19 }
 0xa36   : >> { %9288 = vmatprep.mubr.bf16.mxu1 %v7190_v31  ;;  %v7835_v31 = vld [vmem:[%s10990_s23 + $0x18] sm:$0xff] }
 0xa37   : >> { %9277 = vmatmul.mubr.bf16.gmra.mrb[184].mxu0 %v7185_v4  ;;  %9289 = vmatmul.mubr.bf16.gmra.mrb[132].mxu1 %v7191_v55  ;;  %v7832_v55 = vld [vmem:[%s10990_s23] sm:$0xff] }
 0xa38   : >> { %v9102_v63 = vpop.f32.mrb[104].mxu0  ;;  %9280 = vmatprep.mubr.bf16.mxu0 %v7186_v25 }
 0xa39   : >> { %v6834_v28 = vpop.f32.mrb[105].mxu0 }
 0xa3a   : >> { %v9103_v3 = vpop.f32.mrb[106].mxu0 }
 0xa3b   : >> { %v7193_v62 = vpack.c.bf16 %v9103_v3, %v9102_v63  ;;  %v6837_v42 = vpop.f32.mrb[107].mxu0  ;;  %v7833_v3 = vld [vmem:[%s10990_s23 + $0x8] sm:$0xff] }
 0xa3c   : >> { %v7192_v11 = vpack.c.bf16 %v6837_v42, %v6834_v28 }
 0xa3e   : >> { %9292 = vmatprep.mubr.bf16.mxu1 %v7192_v11 }
 0xa3f   : >> { %9281 = vmatmul.mubr.bf16.gmra.mrb[188].mxu0 %v7187_v61  ;;  %9293 = vmatmul.mubr.bf16.gmra.mrb[136].mxu1 %v7193_v62 }
 0xa40   : >> { %v9106_v51 = vpop.f32.mrb[108].mxu0 }
 0xa41   : >> { %v6850_v35 = vpop.f32.mrb[109].mxu0 }
 0xa42   : >> { %v9107_v7 = vpop.f32.mrb[110].mxu0 }
 0xa43   : >> { %v7195_v27 = vpack.c.bf16 %v9107_v7, %v9106_v51  ;;  %v6853_v41 = vpop.f32.mrb[111].mxu0  ;;  %v7838_v7 = vld [vmem:[%s10990_s23 + $0x30] sm:$0xff] }
 0xa44   : >> { %v7194_v30 = vpack.c.bf16 %v6853_v41, %v6850_v35 }
 0xa46   : >> { %9296 = vmatprep.mubr.bf16.mxu1 %v7194_v30  ;;  %v7839_v30 = vld [vmem:[%s10990_s23 + $0x38] sm:$0xff] }
 0xa47   : >> { %9297 = vmatmul.mubr.bf16.gmra.mrb[140].mxu1 %v7195_v27  ;;  %v7836_v27 = vld [vmem:[%s10990_s23 + $0x20] sm:$0xff] }
 0xa4a   : >> { %v9126_v58 = vpop.f32.mrb[96].mxu1 }
 0xa4b   : >> { %v6899_v9 = vpop.f32.mrb[97].mxu1 }
 0xa4c   : >> { %v9127_v16 = vpop.f32.mrb[98].mxu1 }
 0xa4d   : >> { %v7197_v46 = vpack.c.bf16 %v9127_v16, %v9126_v58  ;;  %v6902_v37 = vpop.f32.mrb[99].mxu1  ;;  %v7837_v16 = vld [vmem:[%s10990_s23 + $0x28] sm:$0xff] }
 0xa4e   : >> { %v7196_v21 = vpack.c.bf16 %v6902_v37, %v6899_v9 }
 0xa50   : >> { %9300 = vmatprep.mubr.bf16.mxu1 %v7196_v21 }
 0xa51   : >> { %9301 = vmatmul.mubr.bf16.gmra.mrb[144].mxu1 %v7197_v46 }
 0xa52   : >> { %v9130_v56 = vpop.f32.mrb[100].mxu1 }
 0xa53   : >> { %v6915_v57 = vpop.f32.mrb[101].mxu1 }
 0xa54   : >> { %v9131_v49 = vpop.f32.mrb[102].mxu1 }
 0xa55   : >> { %v7199_v32 = vpack.c.bf16 %v9131_v49, %v9130_v56  ;;  %v6918_v24 = vpop.f32.mrb[103].mxu1  ;;  %v7842_v49 = vld [vmem:[%s10990_s23 + $0x50] sm:$0xff] }
 0xa56   : >> { %v7198_v8 = vpack.c.bf16 %v6918_v24, %v6915_v57 }
 0xa58   : >> { %9304 = vmatprep.mubr.bf16.mxu1 %v7198_v8  ;;  %v7843_v8 = vld [vmem:[%s10990_s23 + $0x58] sm:$0xff] }
 0xa59   : >> { %9305 = vmatmul.mubr.bf16.gmra.mrb[148].mxu1 %v7199_v32  ;;  %v7840_v32 = vld [vmem:[%s10990_s23 + $0x40] sm:$0xff] }
 0xa5a   : >> { %v9134_v1 = vpop.f32.mrb[104].mxu1 }
 0xa5b   : >> { %v6931_v44 = vpop.f32.mrb[105].mxu1 }
 0xa5c   : >> { %v9135_v23 = vpop.f32.mrb[106].mxu1 }
 0xa5d   : >> { %v7201_v14 = vpack.c.bf16 %v9135_v23, %v9134_v1  ;;  %v6934_v45 = vpop.f32.mrb[107].mxu1  ;;  %v7841_v23 = vld [vmem:[%s10990_s23 + $0x48] sm:$0xff] }
 0xa5e   : >> { %v7200_v15 = vpack.c.bf16 %v6934_v45, %v6931_v44 }
 0xa60   : >> { %9308 = vmatprep.mubr.bf16.mxu1 %v7200_v15 }
 0xa61   : >> { %9309 = vmatmul.mubr.bf16.gmra.mrb[152].mxu1 %v7201_v14 }
 0xa62   : >> { %v9138_v54 = vpop.f32.mrb[108].mxu1 }
 0xa63   : >> { %v6947_v48 = vpop.f32.mrb[109].mxu1 }
 0xa64   : >> { %v9139_v6 = vpop.f32.mrb[110].mxu1 }
 0xa65   : >> { %v7203_v40 = vpack.c.bf16 %v9139_v6, %v9138_v54  ;;  %v6950_v52 = vpop.f32.mrb[111].mxu1  ;;  %v7846_v6 = vld [vmem:[%s10990_s23 + $0x70] sm:$0xff] }
 0xa66   : >> { %v7202_v38 = vpack.c.bf16 %v6950_v52, %v6947_v48 }
 0xa68   : >> { %9312 = vmatprep.mubr.bf16.mxu1 %v7202_v38  ;;  %v9158_v34 = vpop.f32.mrb[112].mxu0  ;;  %v7847_v38 = vld [vmem:[%s10990_s23 + $0x78] sm:$0xff] }
 0xa69   : >> { %9313 = vmatmul.mubr.bf16.gmra.mrb[156].mxu1 %v7203_v40  ;;  %v6996_v4 = vpop.f32.mrb[113].mxu0  ;;  %v7844_v40 = vld [vmem:[%s10990_s23 + $0x60] sm:$0xff] }
 0xa6a   : >> { %v9159_v33 = vpop.f32.mrb[114].mxu0 }
 0xa6b   : >> { %v7205_v47 = vpack.c.bf16 %v9159_v33, %v9158_v34  ;;  %v6999_v5 = vpop.f32.mrb[115].mxu0  ;;  %v7845_v33 = vld [vmem:[%s10990_s23 + $0x68] sm:$0xff] }
 0xa6c   : >> { %v7204_v59 = vpack.c.bf16 %v6999_v5, %v6996_v4 }
 0xa6e   : >> { %9316 = vmatprep.mubr.bf16.mxu1 %v7204_v59 }
 0xa70   : >> { %v9162_v13 = vpop.f32.mrb[116].mxu0 }
 0xa71   : >> { %9317 = vmatmul.mubr.bf16.gmra.mrb[160].mxu1 %v7205_v47  ;;  %v7012_v12 = vpop.f32.mrb[117].mxu0 }
 0xa72   : >> { %v9163_v20 = vpop.f32.mrb[118].mxu0 }
 0xa73   : >> { %v7207_v17 = vpack.c.bf16 %v9163_v20, %v9162_v13  ;;  %v7015_v60 = vpop.f32.mrb[119].mxu0  ;;  %v7850_v20 = vld [vmem:[%s10990_s23 + $0x90] sm:$0xff] }
 0xa74   : >> { %v7206_v26 = vpack.c.bf16 %v7015_v60, %v7012_v12 }
 0xa76   : >> { %9320 = vmatprep.mubr.bf16.mxu1 %v7206_v26  ;;  %v7851_v26 = vld [vmem:[%s10990_s23 + $0x98] sm:$0xff] }
 0xa78   : >> { %v9166_v18 = vpop.f32.mrb[120].mxu0 }
 0xa79   : >> { %9321 = vmatmul.mubr.bf16.gmra.mrb[164].mxu1 %v7207_v17  ;;  %v7028_v61 = vpop.f32.mrb[121].mxu0  ;;  %v7848_v17 = vld [vmem:[%s10990_s23 + $0x80] sm:$0xff] }
 0xa7a   : >> { %v9167_v50 = vpop.f32.mrb[122].mxu0 }
 0xa7b   : >> { %v7209_v25 = vpack.c.bf16 %v9167_v50, %v9166_v18  ;;  %v7031_v0 = vpop.f32.mrb[123].mxu0  ;;  %v7849_v50 = vld [vmem:[%s10990_s23 + $0x88] sm:$0xff] }
 0xa7c   : >> { %v7208_v29 = vpack.c.bf16 %v7031_v0, %v7028_v61 }
 0xa7e   : >> { %9324 = vmatprep.mubr.bf16.mxu1 %v7208_v29 }
 0xa80   : >> { %v9170_v2 = vpop.f32.mrb[124].mxu0 }
 0xa81   : >> { %9325 = vmatmul.mubr.bf16.gmra.mrb[168].mxu1 %v7209_v25  ;;  %v7044_v39 = vpop.f32.mrb[125].mxu0 }
 0xa82   : >> { %v9171_v22 = vpop.f32.mrb[126].mxu0 }
 0xa83   : >> { %v7211_v10 = vpack.c.bf16 %v9171_v22, %v9170_v2  ;;  %v7047_v53 = vpop.f32.mrb[127].mxu0  ;;  %v7854_v22 = vld [vmem:[%s10990_s23 + $0xb0] sm:$0xff] }
 0xa84   : >> { %v7210_v19 = vpack.c.bf16 %v7047_v53, %v7044_v39 }
 0xa86   : >> { %9328 = vmatprep.mubr.bf16.mxu1 %v7210_v19  ;;  %v7855_v19 = vld [vmem:[%s10990_s23 + $0xb8] sm:$0xff] }
 0xa89   : >> { %9329 = vmatmul.mubr.bf16.gmra.mrb[172].mxu1 %v7211_v10  ;;  %v7852_v10 = vld [vmem:[%s10990_s23 + $0xa0] sm:$0xff] }
 0xa9a   : >> { %v9222_v43 = vpop.f32.mrb[128].mxu0 }
 0xa9b   : >> { %v7962_v63 = vadd.f32 %v9222_v43, %v7834_v36  ;;  %v7321_v28 = vpop.f32.mrb[129].mxu0  ;;  %v7853_v43 = vld [vmem:[%s10990_s23 + $0xa8] sm:$0xff] }
 0xa9c   : >> { %v7960_v62 = vadd.f32 %v7832_v55, %v7321_v28  ;;  %v9223_v42 = vpop.f32.mrb[130].mxu0 }
 0xa9d   : >> { %8090 = vst [vmem:[%s10990_s23 + $0x10] sm:$0xff] %v7962_v63  ;;  %v7963_v11 = vadd.f32 %v9223_v42, %v7835_v31  ;;  %v7324_v51 = vpop.f32.mrb[131].mxu0  ;;  %v7858_v42 = vld [vmem:[%s10990_s23 + $0xd0] sm:$0xff] }
 0xa9e   : >> { %8088 = vst [vmem:[%s10990_s23] sm:$0xff] %v7960_v62  ;;  %v7961_v35 = vadd.f32 %v7833_v3, %v7324_v51 }
 0xa9f   : >> { %8091 = vst [vmem:[%s10990_s23 + $0x18] sm:$0xff] %v7963_v11  ;;  %v7856_v11 = vld [vmem:[%s10990_s23 + $0xc0] sm:$0xff] }
 0xaa0   : >> { %8089 = vst [vmem:[%s10990_s23 + $0x8] sm:$0xff] %v7961_v35  ;;  %v7859_v35 = vld [vmem:[%s10990_s23 + $0xd8] sm:$0xff] }
 0xaa2   : >> { %v9226_v41 = vpop.f32.mrb[132].mxu0 }
 0xaa3   : >> { %v7966_v58 = vadd.f32 %v9226_v41, %v7838_v7  ;;  %v7337_v9 = vpop.f32.mrb[133].mxu0  ;;  %v7857_v41 = vld [vmem:[%s10990_s23 + $0xc8] sm:$0xff] }
 0xaa4   : >> { %v7964_v46 = vadd.f32 %v7836_v27, %v7337_v9  ;;  %v9227_v37 = vpop.f32.mrb[134].mxu0 }
 0xaa5   : >> { %8094 = vst [vmem:[%s10990_s23 + $0x30] sm:$0xff] %v7966_v58  ;;  %v7967_v21 = vadd.f32 %v9227_v37, %v7839_v30  ;;  %v7340_v56 = vpop.f32.mrb[135].mxu0 }
 0xaa6   : >> { %8092 = vst [vmem:[%s10990_s23 + $0x20] sm:$0xff] %v7964_v46  ;;  %v7965_v57 = vadd.f32 %v7837_v16, %v7340_v56 }
 0xaa7   : >> { %8095 = vst [vmem:[%s10990_s23 + $0x38] sm:$0xff] %v7967_v21 }
 0xaa8   : >> { %8093 = vst [vmem:[%s10990_s23 + $0x28] sm:$0xff] %v7965_v57 }
 0xaaa   : >> { %v9230_v24 = vpop.f32.mrb[136].mxu0 }
 0xaab   : >> { %v7970_v1 = vadd.f32 %v9230_v24, %v7842_v49  ;;  %v7353_v44 = vpop.f32.mrb[137].mxu0 }
 0xaac   : >> { %v7968_v14 = vadd.f32 %v7840_v32, %v7353_v44  ;;  %v9231_v45 = vpop.f32.mrb[138].mxu0  ;;  %v7862_v32 = vld [vmem:[%s10990_s23 + $0xf0] sm:$0xff]  ;;  %v7863_v44 = vld [vmem:[%s10990_s23 + $0xf8] sm:$0xff] }
 0xaad   : >> { %8098 = vst [vmem:[%s10990_s23 + $0x50] sm:$0xff] %v7970_v1  ;;  %v7971_v15 = vadd.f32 %v9231_v45, %v7843_v8  ;;  %v7356_v54 = vpop.f32.mrb[139].mxu0  ;;  %v7860_v8 = vld [vmem:[%s10990_s23 + $0xe0] sm:$0xff]  ;;  %v7861_v45 = vld [vmem:[%s10990_s23 + $0xe8] sm:$0xff] }
 0xaae   : >> { %8096 = vst [vmem:[%s10990_s23 + $0x40] sm:$0xff] %v7968_v14  ;;  %v7969_v48 = vadd.f32 %v7841_v23, %v7356_v54 }
 0xaaf   : >> { %8099 = vst [vmem:[%s10990_s23 + $0x58] sm:$0xff] %v7971_v15 }
 0xab0   : >> { %8097 = vst [vmem:[%s10990_s23 + $0x48] sm:$0xff] %v7969_v48 }
 0xab2   : >> { %v9234_v52 = vpop.f32.mrb[140].mxu0 }
 0xab3   : >> { %v7974_v34 = vadd.f32 %v9234_v52, %v7846_v6  ;;  %v7369_v4 = vpop.f32.mrb[141].mxu0 }
 0xab4   : >> { %v7972_v47 = vadd.f32 %v7844_v40, %v7369_v4  ;;  %v9235_v5 = vpop.f32.mrb[142].mxu0 }
 0xab5   : >> { %8102 = vst [vmem:[%s10990_s23 + $0x70] sm:$0xff] %v7974_v34  ;;  %v7975_v59 = vadd.f32 %v9235_v5, %v7847_v38  ;;  %v7372_v13 = vpop.f32.mrb[143].mxu0 }
 0xab6   : >> { %8100 = vst [vmem:[%s10990_s23 + $0x60] sm:$0xff] %v7972_v47  ;;  %v7973_v12 = vadd.f32 %v7845_v33, %v7372_v13  ;;  %v7866_v47 = vld [vmem:[%s10990_s23 + $0x110] sm:$0xff] }
 0xab7   : >> { %8103 = vst [vmem:[%s10990_s23 + $0x78] sm:$0xff] %v7975_v59  ;;  %v7864_v59 = vld [vmem:[%s10990_s23 + $0x100] sm:$0xff] }
 0xab8   : >> { %8101 = vst [vmem:[%s10990_s23 + $0x68] sm:$0xff] %v7973_v12  ;;  %v7867_v12 = vld [vmem:[%s10990_s23 + $0x118] sm:$0xff] }
 0xaba   : >> { %v9238_v60 = vpop.f32.mrb[144].mxu0 }
 0xabb   : >> { %v7978_v18 = vadd.f32 %v9238_v60, %v7850_v20  ;;  %v7385_v61 = vpop.f32.mrb[145].mxu0  ;;  %v7865_v60 = vld [vmem:[%s10990_s23 + $0x108] sm:$0xff] }
 0xabc   : >> { %v7976_v25 = vadd.f32 %v7848_v17, %v7385_v61  ;;  %v9239_v0 = vpop.f32.mrb[146].mxu0 }
 0xabd   : >> { %8106 = vst [vmem:[%s10990_s23 + $0x90] sm:$0xff] %v7978_v18  ;;  %v7979_v29 = vadd.f32 %v9239_v0, %v7851_v26  ;;  %v7388_v2 = vpop.f32.mrb[147].mxu0 }
 0xabe   : >> { %8104 = vst [vmem:[%s10990_s23 + $0x80] sm:$0xff] %v7976_v25  ;;  %v7977_v39 = vadd.f32 %v7849_v50, %v7388_v2 }
 0xabf   : >> { %8107 = vst [vmem:[%s10990_s23 + $0x98] sm:$0xff] %v7979_v29 }
 0xac0   : >> { %8105 = vst [vmem:[%s10990_s23 + $0x88] sm:$0xff] %v7977_v39 }
 0xac2   : >> { %v9242_v53 = vpop.f32.mrb[148].mxu0 }
 0xac3   : >> { %v7982_v36 = vadd.f32 %v9242_v53, %v7854_v22  ;;  %v7401_v55 = vpop.f32.mrb[149].mxu0 }
 0xac4   : >> { %v7980_v31 = vadd.f32 %v7852_v10, %v7401_v55  ;;  %v9243_v63 = vpop.f32.mrb[150].mxu0  ;;  %v7870_v10 = vld [vmem:[%s10990_s23 + $0x130] sm:$0xff]  ;;  %v7871_v55 = vld [vmem:[%s10990_s23 + $0x138] sm:$0xff] }
 0xac5   : >> { %8110 = vst [vmem:[%s10990_s23 + $0xb0] sm:$0xff] %v7982_v36  ;;  %v7983_v28 = vadd.f32 %v9243_v63, %v7855_v19  ;;  %v7404_v3 = vpop.f32.mrb[151].mxu0  ;;  %v7868_v19 = vld [vmem:[%s10990_s23 + $0x120] sm:$0xff]  ;;  %v7869_v63 = vld [vmem:[%s10990_s23 + $0x128] sm:$0xff] }
 0xac6   : >> { %8108 = vst [vmem:[%s10990_s23 + $0xa0] sm:$0xff] %v7980_v31  ;;  %v7981_v62 = vadd.f32 %v7853_v43, %v7404_v3 }
 0xac7   : >> { %8111 = vst [vmem:[%s10990_s23 + $0xb8] sm:$0xff] %v7983_v28 }
 0xac8   : >> { %8109 = vst [vmem:[%s10990_s23 + $0xa8] sm:$0xff] %v7981_v62 }
 0xaca   : >> { %v9246_v51 = vpop.f32.mrb[152].mxu0 }
 0xacb   : >> { %v7986_v7 = vadd.f32 %v9246_v51, %v7858_v42  ;;  %v7417_v27 = vpop.f32.mrb[153].mxu0 }
 0xacc   : >> { %v7984_v30 = vadd.f32 %v7856_v11, %v7417_v27  ;;  %v9247_v58 = vpop.f32.mrb[154].mxu0 }
 0xacd   : >> { %8114 = vst [vmem:[%s10990_s23 + $0xd0] sm:$0xff] %v7986_v7  ;;  %v7987_v9 = vadd.f32 %v9247_v58, %v7859_v35  ;;  %v9190_v16 = vpop.f32.mrb[112].mxu1  ;;  %v7420_v46 = vpop.f32.mrb[155].mxu0 }
 0xace   : >> { %8112 = vst [vmem:[%s10990_s23 + $0xc0] sm:$0xff] %v7984_v30  ;;  %v7985_v37 = vadd.f32 %v7857_v41, %v7420_v46  ;;  %v7093_v21 = vpop.f32.mrb[113].mxu1  ;;  %v7874_v30 = vld [vmem:[%s10990_s23 + $0x150] sm:$0xff]  ;;  %v7875_v46 = vld [vmem:[%s10990_s23 + $0x158] sm:$0xff] }
 0xacf   : >> { %8115 = vst [vmem:[%s10990_s23 + $0xd8] sm:$0xff] %v7987_v9  ;;  %v9191_v56 = vpop.f32.mrb[114].mxu1  ;;  %v7872_v9 = vld [vmem:[%s10990_s23 + $0x140] sm:$0xff] }
 0xad0   : >> { %8113 = vst [vmem:[%s10990_s23 + $0xc8] sm:$0xff] %v7985_v37  ;;  %v7213_v57 = vpack.c.bf16 %v9191_v56, %v9190_v16  ;;  %v7096_v49 = vpop.f32.mrb[115].mxu1  ;;  %v7873_v56 = vld [vmem:[%s10990_s23 + $0x148] sm:$0xff] }
 0xad1   : >> { %v7212_v24 = vpack.c.bf16 %v7096_v49, %v7093_v21 }
 0xad2   : >> { %v9250_v1 = vpop.f32.mrb[156].mxu0 }
 0xad3   : >> { %v7990_v23 = vadd.f32 %v9250_v1, %v7862_v32  ;;  %v7433_v14 = vpop.f32.mrb[157].mxu0  ;;  %9332 = vmatprep.mubr.bf16.mxu1 %v7212_v24  ;;  %v7878_v1 = vld [vmem:[%s10990_s23 + $0x170] sm:$0xff] }
 0xad4   : >> { %v7988_v15 = vadd.f32 %v7860_v8, %v7433_v14  ;;  %v9251_v54 = vpop.f32.mrb[158].mxu0  ;;  %9333 = vmatmul.mubr.bf16.gmra.mrb[176].mxu1 %v7213_v57  ;;  %v7879_v14 = vld [vmem:[%s10990_s23 + $0x178] sm:$0xff] }
 0xad5   : >> { %8118 = vst [vmem:[%s10990_s23 + $0xf0] sm:$0xff] %v7990_v23  ;;  %v7991_v48 = vadd.f32 %v9251_v54, %v7863_v44  ;;  %v9194_v6 = vpop.f32.mrb[116].mxu1  ;;  %v7436_v40 = vpop.f32.mrb[159].mxu0  ;;  %v7876_v44 = vld [vmem:[%s10990_s23 + $0x160] sm:$0xff]  ;;  %v7877_v54 = vld [vmem:[%s10990_s23 + $0x168] sm:$0xff] }
 0xad6   : >> { %8116 = vst [vmem:[%s10990_s23 + $0xe0] sm:$0xff] %v7988_v15  ;;  %v7989_v52 = vadd.f32 %v7861_v45, %v7436_v40  ;;  %v7109_v38 = vpop.f32.mrb[117].mxu1 }
 0xad7   : >> { %8119 = vst [vmem:[%s10990_s23 + $0xf8] sm:$0xff] %v7991_v48  ;;  %v9195_v34 = vpop.f32.mrb[118].mxu1 }
 0xad8   : >> { %8117 = vst [vmem:[%s10990_s23 + $0xe8] sm:$0xff] %v7989_v52  ;;  %v7215_v4 = vpack.c.bf16 %v9195_v34, %v9194_v6  ;;  %v7112_v33 = vpop.f32.mrb[119].mxu1  ;;  %v7882_v34 = vld [vmem:[%s10990_s23 + $0x190] sm:$0xff] }
 0xad9   : >> { %v7214_v5 = vpack.c.bf16 %v7112_v33, %v7109_v38 }
 0xada   : >> { %v9254_v13 = vpop.f32.mrb[160].mxu0 }
 0xadb   : >> { %v7994_v20 = vadd.f32 %v9254_v13, %v7866_v47  ;;  %v7449_v17 = vpop.f32.mrb[161].mxu0  ;;  %9336 = vmatprep.mubr.bf16.mxu1 %v7214_v5  ;;  %v7883_v47 = vld [vmem:[%s10990_s23 + $0x198] sm:$0xff]  ;;  %v7881_v13 = vld [vmem:[%s10990_s23 + $0x188] sm:$0xff] }
 0xadc   : >> { %v7992_v26 = vadd.f32 %v7864_v59, %v7449_v17  ;;  %v9255_v18 = vpop.f32.mrb[162].mxu0  ;;  %9337 = vmatmul.mubr.bf16.gmra.mrb[180].mxu1 %v7215_v4  ;;  %v7880_v4 = vld [vmem:[%s10990_s23 + $0x180] sm:$0xff] }
 0xadd   : >> { %8122 = vst [vmem:[%s10990_s23 + $0x110] sm:$0xff] %v7994_v20  ;;  %v7995_v61 = vadd.f32 %v9255_v18, %v7867_v12  ;;  %v9198_v50 = vpop.f32.mrb[120].mxu1  ;;  %v7452_v25 = vpop.f32.mrb[163].mxu0  ;;  %v7886_v18 = vld [vmem:[%s10990_s23 + $0x1b0] sm:$0xff] }
 0xade   : >> { %8120 = vst [vmem:[%s10990_s23 + $0x100] sm:$0xff] %v7992_v26  ;;  %v7993_v0 = vadd.f32 %v7865_v60, %v7452_v25  ;;  %v7125_v29 = vpop.f32.mrb[121].mxu1  ;;  %v7896_v25 = vld [vmem:[%s10990_s23 + $0x200] sm:$0xff] }
 0xadf   : >> { %8123 = vst [vmem:[%s10990_s23 + $0x118] sm:$0xff] %v7995_v61  ;;  %v9199_v2 = vpop.f32.mrb[122].mxu1  ;;  %v7898_v61 = vld [vmem:[%s10990_s23 + $0x210] sm:$0xff] }
 0xae0   : >> { %8121 = vst [vmem:[%s10990_s23 + $0x108] sm:$0xff] %v7993_v0  ;;  %v7217_v39 = vpack.c.bf16 %v9199_v2, %v9198_v50  ;;  %v7128_v22 = vpop.f32.mrb[123].mxu1  ;;  %v7884_v50 = vld [vmem:[%s10990_s23 + $0x1a0] sm:$0xff]  ;;  %v7887_v2 = vld [vmem:[%s10990_s23 + $0x1b8] sm:$0xff] }
 0xae1   : >> { %v7216_v53 = vpack.c.bf16 %v7128_v22, %v7125_v29 }
 0xae2   : >> { %v9258_v36 = vpop.f32.mrb[164].mxu0 }
 0xae3   : >> { %v7998_v43 = vadd.f32 %v9258_v36, %v7870_v10  ;;  %v7465_v31 = vpop.f32.mrb[165].mxu0  ;;  %9340 = vmatprep.mubr.bf16.mxu1 %v7216_v53  ;;  %v7885_v36 = vld [vmem:[%s10990_s23 + $0x1a8] sm:$0xff] }
 0xae4   : >> { %v7996_v28 = vadd.f32 %v7868_v19, %v7465_v31  ;;  %v9259_v3 = vpop.f32.mrb[166].mxu0  ;;  %9341 = vmatmul.mubr.bf16.gmra.mrb[184].mxu1 %v7217_v39  ;;  %v7899_v39 = vld [vmem:[%s10990_s23 + $0x218] sm:$0xff] }
 0xae5   : >> { %8126 = vst [vmem:[%s10990_s23 + $0x130] sm:$0xff] %v7998_v43  ;;  %v7999_v62 = vadd.f32 %v9259_v3, %v7871_v55  ;;  %v9202_v42 = vpop.f32.mrb[124].mxu1  ;;  %v7468_v11 = vpop.f32.mrb[167].mxu0  ;;  %v7897_v55 = vld [vmem:[%s10990_s23 + $0x208] sm:$0xff] }
 0xae6   : >> { %8124 = vst [vmem:[%s10990_s23 + $0x120] sm:$0xff] %v7996_v28  ;;  %v7997_v51 = vadd.f32 %v7869_v63, %v7468_v11  ;;  %v7141_v35 = vpop.f32.mrb[125].mxu1 }
 0xae7   : >> { %8127 = vst [vmem:[%s10990_s23 + $0x138] sm:$0xff] %v7999_v62  ;;  %v9203_v7 = vpop.f32.mrb[126].mxu1 }
 0xae8   : >> { %8125 = vst [vmem:[%s10990_s23 + $0x128] sm:$0xff] %v7997_v51  ;;  %v7219_v27 = vpack.c.bf16 %v9203_v7, %v9202_v42  ;;  %v7144_v41 = vpop.f32.mrb[127].mxu1  ;;  %v7890_v7 = vld [vmem:[%s10990_s23 + $0x1d0] sm:$0xff] }
 0xae9   : >> { %v7218_v58 = vpack.c.bf16 %v7144_v41, %v7141_v35  ;;  %v7888_v41 = vld [vmem:[%s10990_s23 + $0x1c0] sm:$0xff] }
 0xaea   : >> { %v9262_v16 = vpop.f32.mrb[168].mxu0 }
 0xaeb   : >> { %v8002_v37 = vadd.f32 %v9262_v16, %v7874_v30  ;;  %v7481_v21 = vpop.f32.mrb[169].mxu0  ;;  %9344 = vmatprep.mubr.bf16.mxu1 %v7218_v58  ;;  %v7900_v30 = vld [vmem:[%s10990_s23 + $0x220] sm:$0xff]  ;;  %v7891_v16 = vld [vmem:[%s10990_s23 + $0x1d8] sm:$0xff] }
 0xaec   : >> { %v8000_v57 = vadd.f32 %v7872_v9, %v7481_v21  ;;  %v9263_v49 = vpop.f32.mrb[170].mxu0  ;;  %9345 = vmatmul.mubr.bf16.gmra.mrb[188].mxu1 %v7219_v27  ;;  %v7902_v27 = vld [vmem:[%s10990_s23 + $0x230] sm:$0xff] }
 0xaed   : >> { %8130 = vst [vmem:[%s10990_s23 + $0x150] sm:$0xff] %v8002_v37  ;;  %v8003_v32 = vadd.f32 %v9263_v49, %v7875_v46  ;;  %v7484_v24 = vpop.f32.mrb[171].mxu0  ;;  %v7903_v46 = vld [vmem:[%s10990_s23 + $0x238] sm:$0xff]  ;;  %v7889_v49 = vld [vmem:[%s10990_s23 + $0x1c8] sm:$0xff] }
 0xaee   : >> { %8128 = vst [vmem:[%s10990_s23 + $0x140] sm:$0xff] %v8000_v57  ;;  %v8001_v8 = vadd.f32 %v7873_v56, %v7484_v24 }
 0xaef   : >> { %8131 = vst [vmem:[%s10990_s23 + $0x158] sm:$0xff] %v8003_v32  ;;  %v7901_v32 = vld [vmem:[%s10990_s23 + $0x228] sm:$0xff] }
 0xaf0   : >> { %8129 = vst [vmem:[%s10990_s23 + $0x148] sm:$0xff] %v8001_v8 }
 0xaf2   : >> { %v9266_v23 = vpop.f32.mrb[172].mxu0 }
 0xaf3   : >> { %v8006_v45 = vadd.f32 %v9266_v23, %v7878_v1  ;;  %v7497_v15 = vpop.f32.mrb[173].mxu0 }
 0xaf4   : >> { %v8004_v48 = vadd.f32 %v7876_v44, %v7497_v15  ;;  %v9267_v6 = vpop.f32.mrb[174].mxu0 }
 0xaf5   : >> { %8134 = vst [vmem:[%s10990_s23 + $0x170] sm:$0xff] %v8006_v45  ;;  %v8007_v40 = vadd.f32 %v9267_v6, %v7879_v14  ;;  %v7500_v52 = vpop.f32.mrb[175].mxu0  ;;  %v7894_v6 = vld [vmem:[%s10990_s23 + $0x1f0] sm:$0xff] }
 0xaf6   : >> { %8132 = vst [vmem:[%s10990_s23 + $0x160] sm:$0xff] %v8004_v48  ;;  %v8005_v38 = vadd.f32 %v7877_v54, %v7500_v52  ;;  %v7892_v52 = vld [vmem:[%s10990_s23 + $0x1e0] sm:$0xff] }
 0xaf7   : >> { %8135 = vst [vmem:[%s10990_s23 + $0x178] sm:$0xff] %v8007_v40  ;;  %v7906_v40 = vld [vmem:[%s10990_s23 + $0x250] sm:$0xff] }
 0xaf8   : >> { %8133 = vst [vmem:[%s10990_s23 + $0x168] sm:$0xff] %v8005_v38  ;;  %v7904_v38 = vld [vmem:[%s10990_s23 + $0x240] sm:$0xff] }
 0xafa   : >> { %v9270_v33 = vpop.f32.mrb[176].mxu0 }
 0xafb   : >> { %v8010_v5 = vadd.f32 %v9270_v33, %v7882_v34  ;;  %v7513_v59 = vpop.f32.mrb[177].mxu0  ;;  %v7895_v33 = vld [vmem:[%s10990_s23 + $0x1f8] sm:$0xff] }
 0xafc   : >> { %v8008_v12 = vadd.f32 %v7880_v4, %v7513_v59  ;;  %v9271_v20 = vpop.f32.mrb[178].mxu0 }
 0xafd   : >> { %8138 = vst [vmem:[%s10990_s23 + $0x190] sm:$0xff] %v8010_v5  ;;  %v8011_v17 = vadd.f32 %v9271_v20, %v7883_v47  ;;  %v7516_v60 = vpop.f32.mrb[179].mxu0  ;;  %v7907_v47 = vld [vmem:[%s10990_s23 + $0x258] sm:$0xff]  ;;  %v7893_v20 = vld [vmem:[%s10990_s23 + $0x1e8] sm:$0xff] }
 0xafe   : >> { %8136 = vst [vmem:[%s10990_s23 + $0x180] sm:$0xff] %v8008_v12  ;;  %v8009_v26 = vadd.f32 %v7881_v13, %v7516_v60 }
 0xaff   : >> { %8139 = vst [vmem:[%s10990_s23 + $0x198] sm:$0xff] %v8011_v17  ;;  %v7905_v17 = vld [vmem:[%s10990_s23 + $0x248] sm:$0xff] }
 0xb00   : >> { %8137 = vst [vmem:[%s10990_s23 + $0x188] sm:$0xff] %v8009_v26 }
 0xb02   : >> { %v9274_v0 = vpop.f32.mrb[180].mxu0  ;;  %v9286_v29 = vpop.f32.mrb[128].mxu1 }
 0xb03   : >> { %v8014_v22 = vadd.f32 %v9274_v0, %v7886_v18  ;;  %v8026_v10 = vadd.f32 %v9286_v29, %v7898_v61  ;;  %v7529_v53 = vpop.f32.mrb[181].mxu0  ;;  %v7577_v19 = vpop.f32.mrb[129].mxu1 }
 0xb04   : >> { %v8012_v43 = vadd.f32 %v7884_v50, %v7529_v53  ;;  %v8024_v31 = vadd.f32 %v7896_v25, %v7577_v19  ;;  %v9275_v63 = vpop.f32.mrb[182].mxu0  ;;  %v9287_v28 = vpop.f32.mrb[130].mxu1  ;;  %v7911_v19 = vld [vmem:[%s10990_s23 + $0x278] sm:$0xff] }
 0xb05   : >> { %8142 = vst [vmem:[%s10990_s23 + $0x1b0] sm:$0xff] %v8014_v22  ;;  %8154 = vst [vmem:[%s10990_s23 + $0x210] sm:$0xff] %v8026_v10  ;;  %v8015_v3 = vadd.f32 %v9275_v63, %v7887_v2  ;;  %v8027_v62 = vadd.f32 %v9287_v28, %v7899_v39  ;;  %v7532_v42 = vpop.f32.mrb[183].mxu0  ;;  %v7580_v11 = vpop.f32.mrb[131].mxu1  ;;  %v7910_v22 = vld [vmem:[%s10990_s23 + $0x270] sm:$0xff]  ;;  %v7908_v10 = vld [vmem:[%s10990_s23 + $0x260] sm:$0xff] }
 0xb06   : >> { %8140 = vst [vmem:[%s10990_s23 + $0x1a0] sm:$0xff] %v8012_v43  ;;  %8152 = vst [vmem:[%s10990_s23 + $0x200] sm:$0xff] %v8024_v31  ;;  %v8013_v51 = vadd.f32 %v7885_v36, %v7532_v42  ;;  %v8025_v35 = vadd.f32 %v7897_v55, %v7580_v11  ;;  %v7909_v43 = vld [vmem:[%s10990_s23 + $0x268] sm:$0xff]  ;;  %v7914_v42 = vld [vmem:[%s10990_s23 + $0x290] sm:$0xff] }
 0xb07   : >> { %8143 = vst [vmem:[%s10990_s23 + $0x1b8] sm:$0xff] %v8015_v3  ;;  %8155 = vst [vmem:[%s10990_s23 + $0x218] sm:$0xff] %v8027_v62  ;;  %v7912_v11 = vld [vmem:[%s10990_s23 + $0x280] sm:$0xff] }
 0xb08   : >> { %8141 = vst [vmem:[%s10990_s23 + $0x1a8] sm:$0xff] %v8013_v51  ;;  %8153 = vst [vmem:[%s10990_s23 + $0x208] sm:$0xff] %v8025_v35  ;;  %v7915_v35 = vld [vmem:[%s10990_s23 + $0x298] sm:$0xff] }
 0xb0a   : >> { %v9278_v58 = vpop.f32.mrb[184].mxu0  ;;  %v9290_v9 = vpop.f32.mrb[132].mxu1 }
 0xb0b   : >> { %v8018_v37 = vadd.f32 %v9278_v58, %v7890_v7  ;;  %v8030_v21 = vadd.f32 %v9290_v9, %v7902_v27  ;;  %v7545_v56 = vpop.f32.mrb[185].mxu0  ;;  %v7593_v57 = vpop.f32.mrb[133].mxu1 }
 0xb0c   : >> { %v8016_v24 = vadd.f32 %v7888_v41, %v7545_v56  ;;  %v8028_v8 = vadd.f32 %v7900_v30, %v7593_v57  ;;  %v9279_v1 = vpop.f32.mrb[186].mxu0  ;;  %v9291_v44 = vpop.f32.mrb[134].mxu1  ;;  %v7913_v41 = vld [vmem:[%s10990_s23 + $0x288] sm:$0xff]  ;;  %v7919_v57 = vld [vmem:[%s10990_s23 + $0x2b8] sm:$0xff] }
 0xb0d   : >> { %8146 = vst [vmem:[%s10990_s23 + $0x1d0] sm:$0xff] %v8018_v37  ;;  %8158 = vst [vmem:[%s10990_s23 + $0x230] sm:$0xff] %v8030_v21  ;;  %v8019_v23 = vadd.f32 %v9279_v1, %v7891_v16  ;;  %v8031_v14 = vadd.f32 %v9291_v44, %v7903_v46  ;;  %v7548_v45 = vpop.f32.mrb[187].mxu0  ;;  %v7596_v15 = vpop.f32.mrb[135].mxu1  ;;  %v7918_v37 = vld [vmem:[%s10990_s23 + $0x2b0] sm:$0xff]  ;;  %v7916_v21 = vld [vmem:[%s10990_s23 + $0x2a0] sm:$0xff] }
 0xb0e   : >> { %8144 = vst [vmem:[%s10990_s23 + $0x1c0] sm:$0xff] %v8016_v24  ;;  %8156 = vst [vmem:[%s10990_s23 + $0x220] sm:$0xff] %v8028_v8  ;;  %v8017_v54 = vadd.f32 %v7889_v49, %v7548_v45  ;;  %v8029_v48 = vadd.f32 %v7901_v32, %v7596_v15  ;;  %v7917_v24 = vld [vmem:[%s10990_s23 + $0x2a8] sm:$0xff]  ;;  %v7922_v45 = vld [vmem:[%s10990_s23 + $0x2d0] sm:$0xff] }
 0xb0f   : >> { %8147 = vst [vmem:[%s10990_s23 + $0x1d8] sm:$0xff] %v8019_v23  ;;  %8159 = vst [vmem:[%s10990_s23 + $0x238] sm:$0xff] %v8031_v14  ;;  %v7920_v15 = vld [vmem:[%s10990_s23 + $0x2c0] sm:$0xff] }
 0xb10   : >> { %8145 = vst [vmem:[%s10990_s23 + $0x1c8] sm:$0xff] %v8017_v54  ;;  %8157 = vst [vmem:[%s10990_s23 + $0x228] sm:$0xff] %v8029_v48  ;;  %v7923_v48 = vld [vmem:[%s10990_s23 + $0x2d8] sm:$0xff] }
 0xb12   : >> { %v9282_v34 = vpop.f32.mrb[188].mxu0  ;;  %v9294_v4 = vpop.f32.mrb[136].mxu1 }
 0xb13   : >> { %v8022_v5 = vadd.f32 %v9282_v34, %v7894_v6  ;;  %v8034_v59 = vadd.f32 %v9294_v4, %v7906_v40  ;;  %v7561_v13 = vpop.f32.mrb[189].mxu0  ;;  %v7609_v12 = vpop.f32.mrb[137].mxu1 }
 0xb14   : >> { %v8020_v60 = vadd.f32 %v7892_v52, %v7561_v13  ;;  %v8032_v26 = vadd.f32 %v7904_v38, %v7609_v12  ;;  %v9283_v18 = vpop.f32.mrb[190].mxu0  ;;  %v9295_v61 = vpop.f32.mrb[138].mxu1  ;;  %v7921_v52 = vld [vmem:[%s10990_s23 + $0x2c8] sm:$0xff]  ;;  %v7927_v12 = vld [vmem:[%s10990_s23 + $0x2f8] sm:$0xff] }
 0xb15   : >> { %8150 = vst [vmem:[%s10990_s23 + $0x1f0] sm:$0xff] %v8022_v5  ;;  %8162 = vst [vmem:[%s10990_s23 + $0x250] sm:$0xff] %v8034_v59  ;;  %v8023_v50 = vadd.f32 %v9283_v18, %v7895_v33  ;;  %v8035_v25 = vadd.f32 %v9295_v61, %v7907_v47  ;;  %v7564_v0 = vpop.f32.mrb[191].mxu0  ;;  %v7612_v29 = vpop.f32.mrb[139].mxu1  ;;  %v7926_v5 = vld [vmem:[%s10990_s23 + $0x2f0] sm:$0xff]  ;;  %v7924_v59 = vld [vmem:[%s10990_s23 + $0x2e0] sm:$0xff] }
 0xb16   : >> { %8148 = vst [vmem:[%s10990_s23 + $0x1e0] sm:$0xff] %v8020_v60  ;;  %8160 = vst [vmem:[%s10990_s23 + $0x240] sm:$0xff] %v8032_v26  ;;  %v8021_v2 = vadd.f32 %v7893_v20, %v7564_v0  ;;  %v8033_v39 = vadd.f32 %v7905_v17, %v7612_v29  ;;  %v7925_v60 = vld [vmem:[%s10990_s23 + $0x2e8] sm:$0xff]  ;;  %v7930_v0 = vld [vmem:[%s10990_s23 + $0x310] sm:$0xff] }
 0xb17   : >> { %8151 = vst [vmem:[%s10990_s23 + $0x1f8] sm:$0xff] %v8023_v50  ;;  %8163 = vst [vmem:[%s10990_s23 + $0x258] sm:$0xff] %v8035_v25  ;;  %v7928_v29 = vld [vmem:[%s10990_s23 + $0x300] sm:$0xff] }
 0xb18   : >> { %8149 = vst [vmem:[%s10990_s23 + $0x1e8] sm:$0xff] %v8021_v2  ;;  %8161 = vst [vmem:[%s10990_s23 + $0x248] sm:$0xff] %v8033_v39  ;;  %v7931_v39 = vld [vmem:[%s10990_s23 + $0x318] sm:$0xff] }
 0xb1a   : >> { %v9298_v53 = vpop.f32.mrb[140].mxu1 }
 0xb1b   : >> { %v8038_v36 = vadd.f32 %v9298_v53, %v7910_v22  ;;  %v7625_v55 = vpop.f32.mrb[141].mxu1  ;;  %v7929_v53 = vld [vmem:[%s10990_s23 + $0x308] sm:$0xff] }
 0xb1c   : >> { %v8036_v31 = vadd.f32 %v7908_v10, %v7625_v55  ;;  %v9299_v63 = vpop.f32.mrb[142].mxu1 }
 0xb1d   : >> { %8166 = vst [vmem:[%s10990_s23 + $0x270] sm:$0xff] %v8038_v36  ;;  %v8039_v28 = vadd.f32 %v9299_v63, %v7911_v19  ;;  %v7628_v3 = vpop.f32.mrb[143].mxu1  ;;  %v7934_v63 = vld [vmem:[%s10990_s23 + $0x330] sm:$0xff] }
 0xb1e   : >> { %8164 = vst [vmem:[%s10990_s23 + $0x260] sm:$0xff] %v8036_v31  ;;  %v8037_v62 = vadd.f32 %v7909_v43, %v7628_v3 }
 0xb1f   : >> { %8167 = vst [vmem:[%s10990_s23 + $0x278] sm:$0xff] %v8039_v28  ;;  %v7932_v28 = vld [vmem:[%s10990_s23 + $0x320] sm:$0xff] }
 0xb20   : >> { %8165 = vst [vmem:[%s10990_s23 + $0x268] sm:$0xff] %v8037_v62  ;;  %v7935_v62 = vld [vmem:[%s10990_s23 + $0x338] sm:$0xff] }
 0xb24   : >> { %v9302_v51 = vpop.f32.mrb[144].mxu1 }
 0xb25   : >> { %v8042_v7 = vadd.f32 %v9302_v51, %v7914_v42  ;;  %v7641_v27 = vpop.f32.mrb[145].mxu1  ;;  %v7933_v51 = vld [vmem:[%s10990_s23 + $0x328] sm:$0xff] }
 0xb26   : >> { %v8040_v30 = vadd.f32 %v7912_v11, %v7641_v27  ;;  %v9303_v58 = vpop.f32.mrb[146].mxu1 }
 0xb27   : >> { %8170 = vst [vmem:[%s10990_s23 + $0x290] sm:$0xff] %v8042_v7  ;;  %v8043_v9 = vadd.f32 %v9303_v58, %v7915_v35  ;;  %v7644_v16 = vpop.f32.mrb[147].mxu1  ;;  %v7938_v58 = vld [vmem:[%s10990_s23 + $0x350] sm:$0xff] }
 0xb28   : >> { %8168 = vst [vmem:[%s10990_s23 + $0x280] sm:$0xff] %v8040_v30  ;;  %v8041_v46 = vadd.f32 %v7913_v41, %v7644_v16 }
 0xb29   : >> { %8171 = vst [vmem:[%s10990_s23 + $0x298] sm:$0xff] %v8043_v9  ;;  %v7936_v9 = vld [vmem:[%s10990_s23 + $0x340] sm:$0xff] }
 0xb2a   : >> { %8169 = vst [vmem:[%s10990_s23 + $0x288] sm:$0xff] %v8041_v46  ;;  %v7939_v46 = vld [vmem:[%s10990_s23 + $0x358] sm:$0xff] }
 0xb2c   : >> { %v9306_v56 = vpop.f32.mrb[148].mxu1 }
 0xb2d   : >> { %v8046_v49 = vadd.f32 %v9306_v56, %v7918_v37  ;;  %v7657_v32 = vpop.f32.mrb[149].mxu1  ;;  %v7937_v56 = vld [vmem:[%s10990_s23 + $0x348] sm:$0xff] }
 0xb2e   : >> { %v8044_v8 = vadd.f32 %v7916_v21, %v7657_v32  ;;  %v9307_v1 = vpop.f32.mrb[150].mxu1 }
 0xb2f   : >> { %8174 = vst [vmem:[%s10990_s23 + $0x2b0] sm:$0xff] %v8046_v49  ;;  %v8047_v44 = vadd.f32 %v9307_v1, %v7919_v57  ;;  %v7660_v23 = vpop.f32.mrb[151].mxu1  ;;  %v7942_v1 = vld [vmem:[%s10990_s23 + $0x370] sm:$0xff] }
 0xb30   : >> { %8172 = vst [vmem:[%s10990_s23 + $0x2a0] sm:$0xff] %v8044_v8  ;;  %v8045_v14 = vadd.f32 %v7917_v24, %v7660_v23 }
 0xb31   : >> { %8175 = vst [vmem:[%s10990_s23 + $0x2b8] sm:$0xff] %v8047_v44  ;;  %v7940_v44 = vld [vmem:[%s10990_s23 + $0x360] sm:$0xff] }
 0xb32   : >> { %8173 = vst [vmem:[%s10990_s23 + $0x2a8] sm:$0xff] %v8045_v14  ;;  %v7943_v14 = vld [vmem:[%s10990_s23 + $0x378] sm:$0xff] }
 0xb34   : >> { %v9310_v54 = vpop.f32.mrb[152].mxu1 }
 0xb35   : >> { %v8050_v6 = vadd.f32 %v9310_v54, %v7922_v45  ;;  %v7673_v40 = vpop.f32.mrb[153].mxu1  ;;  %v7941_v54 = vld [vmem:[%s10990_s23 + $0x368] sm:$0xff] }
 0xb36   : >> { %v8048_v38 = vadd.f32 %v7920_v15, %v7673_v40  ;;  %v9311_v34 = vpop.f32.mrb[154].mxu1 }
 0xb37   : >> { %8178 = vst [vmem:[%s10990_s23 + $0x2d0] sm:$0xff] %v8050_v6  ;;  %v8051_v4 = vadd.f32 %v9311_v34, %v7923_v48  ;;  %v7676_v33 = vpop.f32.mrb[155].mxu1  ;;  %v7946_v34 = vld [vmem:[%s10990_s23 + $0x390] sm:$0xff] }
 0xb38   : >> { %8176 = vst [vmem:[%s10990_s23 + $0x2c0] sm:$0xff] %v8048_v38  ;;  %v8049_v47 = vadd.f32 %v7921_v52, %v7676_v33 }
 0xb39   : >> { %8179 = vst [vmem:[%s10990_s23 + $0x2d8] sm:$0xff] %v8051_v4  ;;  %v7944_v4 = vld [vmem:[%s10990_s23 + $0x380] sm:$0xff] }
 0xb3a   : >> { %8177 = vst [vmem:[%s10990_s23 + $0x2c8] sm:$0xff] %v8049_v47  ;;  %v7947_v47 = vld [vmem:[%s10990_s23 + $0x398] sm:$0xff] }
 0xb3c   : >> { %v9314_v13 = vpop.f32.mrb[156].mxu1 }
 0xb3d   : >> { %v8054_v20 = vadd.f32 %v9314_v13, %v7926_v5  ;;  %v7689_v17 = vpop.f32.mrb[157].mxu1  ;;  %v7945_v13 = vld [vmem:[%s10990_s23 + $0x388] sm:$0xff] }
 0xb3e   : >> { %v8052_v26 = vadd.f32 %v7924_v59, %v7689_v17  ;;  %v9315_v18 = vpop.f32.mrb[158].mxu1 }
 0xb3f   : >> { %8182 = vst [vmem:[%s10990_s23 + $0x2f0] sm:$0xff] %v8054_v20  ;;  %v8055_v61 = vadd.f32 %v9315_v18, %v7927_v12  ;;  %v7692_v50 = vpop.f32.mrb[159].mxu1  ;;  %v7950_v18 = vld [vmem:[%s10990_s23 + $0x3b0] sm:$0xff] }
 0xb40   : >> { %8180 = vst [vmem:[%s10990_s23 + $0x2e0] sm:$0xff] %v8052_v26  ;;  %v8053_v25 = vadd.f32 %v7925_v60, %v7692_v50 }
 0xb41   : >> { %8183 = vst [vmem:[%s10990_s23 + $0x2f8] sm:$0xff] %v8055_v61  ;;  %v7948_v61 = vld [vmem:[%s10990_s23 + $0x3a0] sm:$0xff] }
 0xb42   : >> { %8181 = vst [vmem:[%s10990_s23 + $0x2e8] sm:$0xff] %v8053_v25  ;;  %v7951_v25 = vld [vmem:[%s10990_s23 + $0x3b8] sm:$0xff] }
 0xb44   : >> { %v9318_v2 = vpop.f32.mrb[160].mxu1 }
 0xb45   : >> { %v8058_v22 = vadd.f32 %v9318_v2, %v7930_v0  ;;  %v7705_v10 = vpop.f32.mrb[161].mxu1  ;;  %v7949_v2 = vld [vmem:[%s10990_s23 + $0x3a8] sm:$0xff] }
 0xb46   : >> { %v8056_v19 = vadd.f32 %v7928_v29, %v7705_v10  ;;  %v9319_v36 = vpop.f32.mrb[162].mxu1 }
 0xb47   : >> { %8186 = vst [vmem:[%s10990_s23 + $0x310] sm:$0xff] %v8058_v22  ;;  %v8059_v55 = vadd.f32 %v9319_v36, %v7931_v39  ;;  %v7708_v43 = vpop.f32.mrb[163].mxu1  ;;  %v7954_v36 = vld [vmem:[%s10990_s23 + $0x3d0] sm:$0xff] }
 0xb48   : >> { %8184 = vst [vmem:[%s10990_s23 + $0x300] sm:$0xff] %v8056_v19  ;;  %v8057_v31 = vadd.f32 %v7929_v53, %v7708_v43 }
 0xb49   : >> { %8187 = vst [vmem:[%s10990_s23 + $0x318] sm:$0xff] %v8059_v55  ;;  %v7952_v55 = vld [vmem:[%s10990_s23 + $0x3c0] sm:$0xff] }
 0xb4a   : >> { %8185 = vst [vmem:[%s10990_s23 + $0x308] sm:$0xff] %v8057_v31  ;;  %v7955_v31 = vld [vmem:[%s10990_s23 + $0x3d8] sm:$0xff] }
 0xb4c   : >> { %v9322_v3 = vpop.f32.mrb[164].mxu1 }
 0xb4d   : >> { %v8062_v42 = vadd.f32 %v9322_v3, %v7934_v63  ;;  %v7721_v11 = vpop.f32.mrb[165].mxu1  ;;  %v7953_v3 = vld [vmem:[%s10990_s23 + $0x3c8] sm:$0xff] }
 0xb4e   : >> { %v8060_v35 = vadd.f32 %v7932_v28, %v7721_v11  ;;  %v9323_v7 = vpop.f32.mrb[166].mxu1 }
 0xb4f   : >> { %8190 = vst [vmem:[%s10990_s23 + $0x330] sm:$0xff] %v8062_v42  ;;  %v8063_v27 = vadd.f32 %v9323_v7, %v7935_v62  ;;  %v7724_v41 = vpop.f32.mrb[167].mxu1  ;;  %v7958_v7 = vld [vmem:[%s10990_s23 + $0x3f0] sm:$0xff] }
 0xb50   : >> { %8188 = vst [vmem:[%s10990_s23 + $0x320] sm:$0xff] %v8060_v35  ;;  %v8061_v30 = vadd.f32 %v7933_v51, %v7724_v41 }
 0xb51   : >> { %8191 = vst [vmem:[%s10990_s23 + $0x338] sm:$0xff] %v8063_v27  ;;  %v7956_v27 = vld [vmem:[%s10990_s23 + $0x3e0] sm:$0xff] }
 0xb52   : >> { %8189 = vst [vmem:[%s10990_s23 + $0x328] sm:$0xff] %v8061_v30  ;;  %v7959_v30 = vld [vmem:[%s10990_s23 + $0x3f8] sm:$0xff] }
 0xb54   : >> { %v9326_v16 = vpop.f32.mrb[168].mxu1 }
 0xb55   : >> { %v8066_v37 = vadd.f32 %v9326_v16, %v7938_v58  ;;  %v7737_v21 = vpop.f32.mrb[169].mxu1  ;;  %v7957_v16 = vld [vmem:[%s10990_s23 + $0x3e8] sm:$0xff] }
 0xb56   : >> { %v8064_v57 = vadd.f32 %v7936_v9, %v7737_v21  ;;  %v9327_v49 = vpop.f32.mrb[170].mxu1 }
 0xb57   : >> { %8194 = vst [vmem:[%s10990_s23 + $0x350] sm:$0xff] %v8066_v37  ;;  %v8067_v32 = vadd.f32 %v9327_v49, %v7939_v46  ;;  %v7740_v24 = vpop.f32.mrb[171].mxu1 }
 0xb58   : >> { %8192 = vst [vmem:[%s10990_s23 + $0x340] sm:$0xff] %v8064_v57  ;;  %v8065_v8 = vadd.f32 %v7937_v56, %v7740_v24 }
 0xb59   : >> { %8195 = vst [vmem:[%s10990_s23 + $0x358] sm:$0xff] %v8067_v32 }
 0xb5a   : >> { %8193 = vst [vmem:[%s10990_s23 + $0x348] sm:$0xff] %v8065_v8 }
 0xb5c   : >> { %v9330_v23 = vpop.f32.mrb[172].mxu1 }
 0xb5d   : >> { %v8070_v45 = vadd.f32 %v9330_v23, %v7942_v1  ;;  %v7753_v15 = vpop.f32.mrb[173].mxu1 }
 0xb5e   : >> { %v8068_v48 = vadd.f32 %v7940_v44, %v7753_v15  ;;  %v9331_v6 = vpop.f32.mrb[174].mxu1 }
 0xb5f   : >> { %8198 = vst [vmem:[%s10990_s23 + $0x370] sm:$0xff] %v8070_v45  ;;  %v8071_v40 = vadd.f32 %v9331_v6, %v7943_v14  ;;  %v7756_v52 = vpop.f32.mrb[175].mxu1 }
 0xb60   : >> { %8196 = vst [vmem:[%s10990_s23 + $0x360] sm:$0xff] %v8068_v48  ;;  %v8069_v38 = vadd.f32 %v7941_v54, %v7756_v52 }
 0xb61   : >> { %8199 = vst [vmem:[%s10990_s23 + $0x378] sm:$0xff] %v8071_v40 }
 0xb62   : >> { %8197 = vst [vmem:[%s10990_s23 + $0x368] sm:$0xff] %v8069_v38 }
 0xba7   : >> { %v9334_v33 = vpop.f32.mrb[176].mxu1 }
 0xba8   : >> { %v8074_v5 = vadd.f32 %v9334_v33, %v7946_v34  ;;  %v7769_v59 = vpop.f32.mrb[177].mxu1 }
 0xba9   : >> { %v8072_v12 = vadd.f32 %v7944_v4, %v7769_v59  ;;  %v9335_v20 = vpop.f32.mrb[178].mxu1 }
 0xbaa   : >> { %8202 = vst [vmem:[%s10990_s23 + $0x390] sm:$0xff] %v8074_v5  ;;  %v8075_v17 = vadd.f32 %v9335_v20, %v7947_v47  ;;  %v7772_v60 = vpop.f32.mrb[179].mxu1 }
 0xbab   : >> { %8200 = vst [vmem:[%s10990_s23 + $0x380] sm:$0xff] %v8072_v12  ;;  %v8073_v26 = vadd.f32 %v7945_v13, %v7772_v60 }
 0xbac   : >> { %8203 = vst [vmem:[%s10990_s23 + $0x398] sm:$0xff] %v8075_v17 }
 0xbad   : >> { %8201 = vst [vmem:[%s10990_s23 + $0x388] sm:$0xff] %v8073_v26 }
 0xbaf   : >> { %v9338_v50 = vpop.f32.mrb[180].mxu1 }
 0xbb0   : >> { %v8078_v0 = vadd.f32 %v9338_v50, %v7950_v18  ;;  %v7785_v29 = vpop.f32.mrb[181].mxu1 }
 0xbb1   : >> { %v8076_v39 = vadd.f32 %v7948_v61, %v7785_v29  ;;  %v9339_v22 = vpop.f32.mrb[182].mxu1 }
 0xbb2   : >> { %8206 = vst [vmem:[%s10990_s23 + $0x3b0] sm:$0xff] %v8078_v0  ;;  %v8079_v10 = vadd.f32 %v9339_v22, %v7951_v25  ;;  %v7788_v53 = vpop.f32.mrb[183].mxu1 }
 0xbb3   : >> { %8204 = vst [vmem:[%s10990_s23 + $0x3a0] sm:$0xff] %v8076_v39  ;;  %v8077_v19 = vadd.f32 %v7949_v2, %v7788_v53 }
 0xbb4   : >> { %8207 = vst [vmem:[%s10990_s23 + $0x3b8] sm:$0xff] %v8079_v10 }
 0xbb5   : >> { %8205 = vst [vmem:[%s10990_s23 + $0x3a8] sm:$0xff] %v8077_v19 }
 0xbb7   : >> { %v9342_v43 = vpop.f32.mrb[184].mxu1 }
 0xbb8   : >> { %v8082_v63 = vadd.f32 %v9342_v43, %v7954_v36  ;;  %v7801_v28 = vpop.f32.mrb[185].mxu1 }
 0xbb9   : >> { %v8080_v62 = vadd.f32 %v7952_v55, %v7801_v28  ;;  %v9343_v42 = vpop.f32.mrb[186].mxu1 }
 0xbba   : >> { %8210 = vst [vmem:[%s10990_s23 + $0x3d0] sm:$0xff] %v8082_v63  ;;  %v8083_v11 = vadd.f32 %v9343_v42, %v7955_v31  ;;  %v7804_v51 = vpop.f32.mrb[187].mxu1 }
 0xbbb   : >> { %8208 = vst [vmem:[%s10990_s23 + $0x3c0] sm:$0xff] %v8080_v62  ;;  %v8081_v35 = vadd.f32 %v7953_v3, %v7804_v51 }
 0xbbc   : >> { %8211 = vst [vmem:[%s10990_s23 + $0x3d8] sm:$0xff] %v8083_v11 }
 0xbbd   : >> { %8209 = vst [vmem:[%s10990_s23 + $0x3c8] sm:$0xff] %v8081_v35 }
 0xbbf   : >> { %v9346_v41 = vpop.f32.mrb[188].mxu1  ;;  %4116 = sbr.rel (!%p4114_p4) target bundleno = 1590 (0x636), region = 117 }
 0xbc0   : >> { %v8086_v58 = vadd.f32 %v9346_v41, %v7958_v7  ;;  %v7817_v9 = vpop.f32.mrb[189].mxu1 }
 0xbc1   : >> { %v8084_v46 = vadd.f32 %v7956_v27, %v7817_v9  ;;  %v9347_v37 = vpop.f32.mrb[190].mxu1 }
 0xbc2   : >> { %8214 = vst [vmem:[%s10990_s23 + $0x3f0] sm:$0xff] %v8086_v58  ;;  %v8087_v21 = vadd.f32 %v9347_v37, %v7959_v30  ;;  %v7820_v56 = vpop.f32.mrb[191].mxu1 }
 0xbc3   : >> { %8212 = vst [vmem:[%s10990_s23 + $0x3e0] sm:$0xff] %v8084_v46  ;;  %v8085_v57 = vadd.f32 %v7957_v16, %v7820_v56 }
 0xbc4   : >> { %8215 = vst [vmem:[%s10990_s23 + $0x3f8] sm:$0xff] %v8087_v21 }
 0xbc5   : >> { %8213 = vst [vmem:[%s10990_s23 + $0x3e8] sm:$0xff] %v8085_v57 }
 0xbc6   : > { %10663 = shalt.err (!%p10660_p0)
}
 0xbc7   : > { %s10664_s23 = scalar_lea.hbm %s16178_s10, 16384  ;;  %s10668_s7 = scalar_lea.hbm %s16228_s4, 65536 }
 0xbc8   : > { %p10665_p5 = scmp.ne.s32.totalorder %s16178_s10, %s10664_s23  ;;  %p10669_p1 = scmp.lt.u32.totalorder %s16178_s10, %s16228_s4 }
 0xbc9   : > { %p10670_p2 = scmp.lt.u32.totalorder %s10668_s7, %s10664_s23  ;;  %p10672_p6 = scmp.lt.u32.totalorder %s10664_s23, %s16178_s10 }
 0xbca   : > { %p10666_p10 = pnand %p10665_p5, %p10916_p8 }
 0xbcb   : > { %p10671_p4 = por %p10670_p2, %p10669_p1 }
 0xbcc   : > { %p10667_p11 = pneg %p10666_p10 }
 0xbcd   : > { %p10673_p13 = por %p10672_p6, %p10671_p4 }
 0xbcf   : > { %p10674_p3 = pnand %p10673_p13, %p10667_p11 }
 0xbd1   : > { %10677 = shalt.err (!%p10674_p3)
}
 0xbd2   : > { %s10752_s29 = smov 128   ;;  %s10753_s30 = smov 8  }
 0xbd3   : > { %9394 = dma.vmem_to_hbm [thread:$0]  (%p10916_p8), %s16181_s14, 16384, %s16178_s10, %s8217_s28, %s10752_s29, %s10752_s29, %s10753_s30  }
 0xbd4 PF: > { %p9421_p7 = scmp.ge.s32.totalorder %s10728_s18, 2  ;;  %s8246_s21 = sand.u32 1, %s10716_s15  }
 0xbd5   : > { %p17560_p9 = scmp.ne.s32.totalorder %s16666_s22, 0  ;;  %s8247_s9 = scalar_lea.sflag [#allocation6], %s8246_s21 }
 0xbd7   : > { %p9411_p12 = pnand %p9421_p7, %p17560_p9 }
 0xbd9   : > { %10711 = dma.done.wait (!%p9411_p12), %s8247_s9, 16384  }
 0xbda   : > { %10713 = vsyncadd (!%p9411_p12), %s8247_s9, 4294950912  ;;  %p19_p0 = scmp.ge.s32.totalorder %s10884_s20, 6   ;;  %s17561_s15 = smov %s10720_s16 }
 0xbdb   : > { %s17562_s16 = smov %s10724_s17  ;;  %s17563_s17 = smov %s10912_s26 }
 0xbdc   : > { %s17564_s18 = smov %s10884_s20  ;;  %21 = sbr.rel (!%p19_p0) target bundleno = 7 (0x7), region = 128 }
 0xbe3   :  { %8252 = vsyncpa [#allocation5], 1 }
 0xbe4   :  { %8254 = vsyncpa [#allocation5 + $0x1], 1 }
 0xbe5   :  { %8255 = vsyncpa [#allocation8], 1 }
 0xbe6   :  { %8256 = vsyncpa [#allocation11], 1 }
 0xbe7   :  { %8257 = vsyncpa [#allocation6], 1 }
 0xbe8   :  { %8259 = vsyncpa [#allocation6 + $0x1], 1 }

</bundles_post_ra>
